<compile_context>
chip_gen: v6e
topology: v6e:2x2x1
jax: 0.10.0
libtpu: 0.0.40
codegen_flags: <defaults>
</compile_context>

<pallas_src>
import functools

import jax
import jax.numpy as jnp
from jax import lax
from jax.experimental import pallas as pl
from jax.experimental.pallas import tpu as pltpu

VMEM_LIMIT = 32 * 1024 * 1024  # safe on v5e/v6e/v7x


# --------------------------------------------------------------------------
# helpers
# --------------------------------------------------------------------------
def _round_up(x, m):
    return (x + m - 1) // m * m


def _pick_tile_m(M, max_tile=256):
    """Pick a row-tile (multiple of 8) and the padded M."""
    if M >= max_tile:
        tm = max_tile
    else:
        tm = _round_up(max(M, 8), 8)
    return tm, _round_up(M, tm)


# --------------------------------------------------------------------------
# Pallas kernels
# --------------------------------------------------------------------------
def _matmul_bias_act_kernel(x_ref, w_ref, b_ref, o_ref, *, relu):
    """o = act(x @ w + b); x:[TM,K] bf16, w:[K,N] bf16, b:[1,N] f32."""
    acc = jnp.dot(x_ref[...], w_ref[...], preferred_element_type=jnp.float32)
    acc = acc + b_ref[...]
    if relu:
        acc = jnp.maximum(acc, 0.0)
    o_ref[...] = acc.astype(o_ref.dtype)


def _conv3x3_relu_kernel(x_ref, w_ref, b_ref, o_ref, acc_ref, *, S, L):
    """Fused 3x3 conv (pad=1, stride=1) + bias + ReLU for one image.

    x_ref : [1, R, C] bf16  flattened padded rows (row stride S = W+2, plus
                            8 guard rows so every tap slice stays in bounds)
    w_ref : [9, C, Cout] bf16 (tap order dy-major, dx-minor)
    b_ref : [1, Cout] f32
    o_ref : [1, L, Cout] bf16 with L = H*S (columns x >= W are junk, sliced
            away by the wrapper)
    acc_ref: VMEM (L, Cout) f32 scratch accumulator
    """
    t = 0
    for dy in range(3):
        for dx in range(3):
            off = dy * S + dx
            tap = x_ref[0, off:off + L, :]                       # [L, C] bf16
            contrib = jnp.dot(tap, w_ref[t],
                              preferred_element_type=jnp.float32)
            if t == 0:
                acc_ref[...] = contrib
            else:
                acc_ref[...] += contrib
            t += 1
    o_ref[0] = jnp.maximum(acc_ref[...] + b_ref[...], 0.0).astype(o_ref.dtype)


def _pred_decode_kernel(x_ref, w_ref, b_ref, ax_ref, ay_ref, o_ref):
    """Fused reg_pred/ctn_pred 1x1 conv + FCOS box decode.

    acc = x @ w + b  (cols 0..3 = reg logits, col 4 = ctn logit, rest pad=0)
    out cols 0..3 = anchor +/- exp(reg), col 4 = raw ctn logit.
    """
    acc = jnp.dot(x_ref[...], w_ref[...], preferred_element_type=jnp.float32)
    acc = acc + b_ref[...]
    col = lax.broadcasted_iota(jnp.int32, acc.shape, 1)
    anchor = jnp.where((col % 2) == 0, ax_ref[...], ay_ref[...])   # [TM,128]
    sign = jnp.where(col < 2, jnp.float32(-1.0), jnp.float32(1.0))
    decoded = anchor + sign * jnp.exp(acc)
    o_ref[...] = jnp.where(col < 4, decoded, acc).astype(o_ref.dtype)


# --------------------------------------------------------------------------
# Pallas wrappers
# --------------------------------------------------------------------------
def pallas_matmul_bias(x, w, bias, *, relu, out_dtype=jnp.float32,
                       max_tile_m=256):
    """x:[M,K], w:[K,N], bias:[N] -> [M,N]. bf16 matmul, f32 accumulate."""
    M, K = x.shape
    Kw, N = w.shape
    assert K == Kw
    tm, Mp = _pick_tile_m(M, max_tile_m)
    x = x.astype(jnp.bfloat16)
    if Mp != M:
        x = jnp.pad(x, ((0, Mp - M), (0, 0)))
    w = w.astype(jnp.bfloat16)
    b2 = bias.reshape(1, N).astype(jnp.float32)

    flops = 2 * Mp * K * N
    bytes_accessed = int(Mp * K * 2 + K * N * 2 + N * 4 +
                         Mp * N * jnp.dtype(out_dtype).itemsize)
    out = pl.pallas_call(
        functools.partial(_matmul_bias_act_kernel, relu=relu),
        grid=(Mp // tm,),
        out_shape=jax.ShapeDtypeStruct((Mp, N), out_dtype),
        in_specs=[
            pl.BlockSpec((tm, K), lambda i: (i, 0)),
            pl.BlockSpec((K, N), lambda i: (0, 0)),   # resident weights
            pl.BlockSpec((1, N), lambda i: (0, 0)),   # resident bias
        ],
        out_specs=pl.BlockSpec((tm, N), lambda i: (i, 0)),
        compiler_params=pltpu.CompilerParams(
            dimension_semantics=("parallel",),
            vmem_limit_bytes=VMEM_LIMIT),
        cost_estimate=pl.CostEstimate(flops=flops, transcendentals=0,
                                      bytes_accessed=bytes_accessed),
    )(x, w, b2)
    return out[:M] if Mp != M else out


def conv3x3_relu(x, w9, bias):
    """x:[B,H,W,Cin] bf16, w9:[9,Cin,Cout] bf16, bias:[Cout] f32
    -> [B,H,W,Cout] bf16, fully inside one Pallas kernel per image."""
    B, H, W, Cin = x.shape
    Cout = w9.shape[-1]
    S = W + 2
    L = H * S
    GUARD = 8
    R = (H + 2) * S + GUARD

    xp = jnp.pad(x.astype(jnp.bfloat16), ((0, 0), (1, 1), (1, 1), (0, 0)))
    xp = xp.reshape(B, (H + 2) * S, Cin)
    xp = jnp.pad(xp, ((0, 0), (0, GUARD), (0, 0)))                # [B,R,Cin]

    flops = 2 * B * 9 * L * Cin * Cout
    bytes_accessed = int(xp.size * 2 + w9.size * 2 + B * L * Cout * 2 +
                         Cout * 4)
    out = pl.pallas_call(
        functools.partial(_conv3x3_relu_kernel, S=S, L=L),
        grid=(B,),
        out_shape=jax.ShapeDtypeStruct((B, L, Cout), jnp.bfloat16),
        in_specs=[
            pl.BlockSpec((1, R, Cin), lambda b: (b, 0, 0)),
            pl.BlockSpec((9, Cin, Cout), lambda b: (0, 0, 0)),
            pl.BlockSpec((1, Cout), lambda b: (0, 0)),
        ],
        out_specs=pl.BlockSpec((1, L, Cout), lambda b: (b, 0, 0)),
        scratch_shapes=[pltpu.VMEM((L, Cout), jnp.float32)],
        compiler_params=pltpu.CompilerParams(
            dimension_semantics=("parallel",),
            vmem_limit_bytes=VMEM_LIMIT),
        cost_estimate=pl.CostEstimate(flops=flops, transcendentals=0,
                                      bytes_accessed=bytes_accessed),
    )(xp, w9, bias.reshape(1, Cout))
    return out.reshape(B, H, S, Cout)[:, :, :W, :]


def pallas_pred_decode(x, w, bias, ax, ay, *, max_tile_m=256):
    """x:[M,C] bf16, w:[C,128] bf16, bias:[128] f32, ax/ay:[M,1] f32
    -> [M,128] f32 (cols 0..3 decoded box, col 4 centerness logit)."""
    M, K = x.shape
    N = w.shape[1]
    tm, Mp = _pick_tile_m(M, max_tile_m)
    x = x.astype(jnp.bfloat16)
    if Mp != M:
        pad = Mp - M
        x = jnp.pad(x, ((0, pad), (0, 0)))
        ax = jnp.pad(ax, ((0, pad), (0, 0)))
        ay = jnp.pad(ay, ((0, pad), (0, 0)))
    w = w.astype(jnp.bfloat16)
    b2 = bias.reshape(1, N).astype(jnp.float32)

    flops = 2 * Mp * K * N
    bytes_accessed = int(Mp * K * 2 + K * N * 2 + N * 4 + 2 * Mp * 4 +
                         Mp * N * 4)
    out = pl.pallas_call(
        _pred_decode_kernel,
        grid=(Mp // tm,),
        out_shape=jax.ShapeDtypeStruct((Mp, N), jnp.float32),
        in_specs=[
            pl.BlockSpec((tm, K), lambda i: (i, 0)),
            pl.BlockSpec((K, N), lambda i: (0, 0)),
            pl.BlockSpec((1, N), lambda i: (0, 0)),
            pl.BlockSpec((tm, 1), lambda i: (i, 0)),
            pl.BlockSpec((tm, 1), lambda i: (i, 0)),
        ],
        out_specs=pl.BlockSpec((tm, N), lambda i: (i, 0)),
        compiler_params=pltpu.CompilerParams(
            dimension_semantics=("parallel",),
            vmem_limit_bytes=VMEM_LIMIT),
        cost_estimate=pl.CostEstimate(flops=flops, transcendentals=Mp * N,
                                      bytes_accessed=bytes_accessed),
    )(x, w, b2, ax, ay)
    return out[:M]


# --------------------------------------------------------------------------
# Deterministic parameter construction
# --------------------------------------------------------------------------
def init_params(key, head_dims=64, num_classes=20, strides=(8, 16, 32)):
    NPAD = 128  # lane-dense padded output width for the prediction heads
    p = {}
    ks = iter(jax.random.split(key, 64))

    # Stand-in "backbone + FPN": per-stride space-to-depth -> 1x1 projection.
    p["neck"] = []
    for s in strides:
        k_in = 3 * s * s
        w = 0.02 * jax.random.normal(next(ks), (k_in, head_dims), jnp.float32)
        p["neck"].append((w.astype(jnp.bfloat16),
                          jnp.zeros((head_dims,), jnp.float32)))

    def conv_stack():
        stack = []
        for _ in range(4):
            w = 0.01 * jax.random.normal(next(ks),
                                         (3, 3, head_dims, head_dims),
                                         jnp.float32)
            w9 = w.reshape(9, head_dims, head_dims).astype(jnp.bfloat16)
            stack.append((w9, jnp.zeros((head_dims,), jnp.float32)))
        return stack

    p["cls_feat"] = conv_stack()
    p["reg_feat"] = conv_stack()

    # cls_pred, padded to 128 output lanes.
    cw = 0.01 * jax.random.normal(next(ks), (head_dims, num_classes),
                                  jnp.float32)
    cls_w = jnp.zeros((head_dims, NPAD), jnp.float32).at[:, :num_classes].set(cw)
    p["cls_pred_w_pad"] = cls_w.astype(jnp.bfloat16)
    init_prob = 0.01
    bias_value = -jnp.log((1.0 - init_prob) / init_prob)
    p["cls_pred_b_pad"] = jnp.zeros((NPAD,), jnp.float32).at[:num_classes].set(
        bias_value)

    # reg_pred (4) + ctn_pred (1) fused and padded to 128 output lanes.
    rw = 0.01 * jax.random.normal(next(ks), (head_dims, 4), jnp.float32)
    tw = 0.01 * jax.random.normal(next(ks), (head_dims, 1), jnp.float32)
    rc_w = (jnp.zeros((head_dims, NPAD), jnp.float32)
            .at[:, :4].set(rw).at[:, 4:5].set(tw))
    p["regctn_w_pad"] = rc_w.astype(jnp.bfloat16)
    p["regctn_b_pad"] = jnp.zeros((NPAD,), jnp.float32)
    return p


# --------------------------------------------------------------------------
# FCOS_RT forward (trainable=True branch of the reference forward)
# --------------------------------------------------------------------------
def fcos_rt_forward(image_nchw, params, num_classes=20, strides=(8, 16, 32)):
    """image_nchw: [B, 3, H, W] float32. Returns dict like the PyTorch module."""
    B, Cimg, H, W = image_nchw.shape
    x = jnp.transpose(image_nchw, (0, 2, 3, 1))  # -> NHWC

    cls_rows, reg_rows, ax_list, ay_list, fmp_sizes = [], [], [], [], []

    for i, s in enumerate(strides):
        h, w = H // s, W // s
        # Stand-in neck: space-to-depth + projection (Pallas tiled matmul).
        feat = x.reshape(B, h, s, w, s, Cimg).transpose(0, 1, 3, 2, 4, 5)
        feat = feat.reshape(B * h * w, s * s * Cimg)
        nw, nb = params["neck"][i]
        feat = pallas_matmul_bias(feat, nw, nb, relu=True,
                                  out_dtype=jnp.bfloat16)
        feat = feat.reshape(B, h, w, -1)                          # bf16

        # Head towers (fused 3x3 conv kernels, no im2col in HBM).
        cls_f = feat
        for (cw9, cb) in params["cls_feat"]:
            cls_f = conv3x3_relu(cls_f, cw9, cb)
        reg_f = feat
        for (rw9, rb) in params["reg_feat"]:
            reg_f = conv3x3_relu(reg_f, rw9, rb)

        Ch = cls_f.shape[-1]
        cls_rows.append(cls_f.reshape(B, h * w, Ch))
        reg_rows.append(reg_f.reshape(B, h * w, Ch))

        yy, xx = jnp.meshgrid(jnp.arange(h), jnp.arange(w), indexing="ij")
        ax_list.append(xx.reshape(-1).astype(jnp.float32) + 0.5)
        ay_list.append(yy.reshape(-1).astype(jnp.float32) + 0.5)
        fmp_sizes.append([h, w])

    sum_hw = sum(hh * ww for hh, ww in fmp_sizes)
    Ch = cls_rows[0].shape[-1]

    # Batch all pyramid levels into single prediction-head launches.
    cls_all = jnp.concatenate(cls_rows, axis=1).reshape(B * sum_hw, Ch)
    reg_all = jnp.concatenate(reg_rows, axis=1).reshape(B * sum_hw, Ch)
    ax = jnp.tile(jnp.concatenate(ax_list), (B,)).reshape(B * sum_hw, 1)
    ay = jnp.tile(jnp.concatenate(ay_list), (B,)).reshape(B * sum_hw, 1)

    # cls_pred (lane-dense padded output, slice afterwards).
    cls_out = pallas_matmul_bias(cls_all, params["cls_pred_w_pad"],
                                 params["cls_pred_b_pad"], relu=False,
                                 out_dtype=jnp.float32)
    pred_cls = cls_out[:, :num_classes].reshape(B, sum_hw, num_classes)

    # Fused reg_pred + ctn_pred + box decode (training branch: stride=None).
    rc_out = pallas_pred_decode(reg_all, params["regctn_w_pad"],
                                params["regctn_b_pad"], ax, ay)
    pred_box = rc_out[:, :4].reshape(B, sum_hw, 4)
    pred_ctn = rc_out[:, 4:5].reshape(B, sum_hw, 1)

    return {
        "pred_cls": pred_cls,
        "pred_box": pred_box,
        "pred_ctn": pred_ctn,
        "masks": [],        # TODO(synk): mask interpolate path unused (masks=None)
        "fmp_size": fmp_sizes,
        "strides": list(strides),
    }


# --------------------------------------------------------------------------
if __name__ == "__main__":
    key = jax.random.PRNGKey(0)
    k_img, k_par = jax.random.split(key)

    B, H, W = 2, 64, 64
    num_classes, head_dims = 20, 64
    image = jax.random.normal(k_img, (B, 3, H, W), jnp.float32)

    params = init_params(k_par, head_dims=head_dims, num_classes=num_classes)

    fwd = jax.jit(functools.partial(fcos_rt_forward, num_classes=num_classes,
                                    strides=(8, 16, 32)))
    out = fwd(image, params)

    jax.block_until_ready(out["pred_cls"])
    jax.block_until_ready(out["pred_box"])
    jax.block_until_ready(out["pred_ctn"])

    # sum_hw = 64 + 16 + 4 = 84
    assert out["pred_cls"].shape == (B, 84, num_classes)
    assert out["pred_box"].shape == (B, 84, 4)
    assert out["pred_ctn"].shape == (B, 84, 1)
    assert bool(jnp.all(jnp.isfinite(out["pred_box"])))
    assert bool(jnp.all(jnp.isfinite(out["pred_cls"])))

    print("KERNEL_OK")
</pallas_src>

<mosaic_0001>
module attributes {stable_mosaic.version = 11 : i64} {
  func.func @_matmul_bias_act_kernel(%arg0: i32, %arg1: memref<8x3072xbf16, #tpu.memory_space<vmem>>, %arg2: memref<3072x64xbf16, #tpu.memory_space<vmem>>, %arg3: memref<1x64xf32, #tpu.memory_space<vmem>>, %arg4: memref<8x64xbf16, #tpu.memory_space<vmem>>) attributes {dimension_semantics = [#tpu.dimension_semantics<parallel>], iteration_bounds = array<i64: 1>, scalar_prefetch = 0 : i64, scratch_operands = 0 : i64, tpu.core_type = #tpu.core_type<tc>, window_params = [{transform_indices = @transform_0, window_bounds = array<i64: 8, 3072>}, {pipeline_mode = #tpu.pipeline_mode<synchronous>, transform_indices = @transform_1, window_bounds = array<i64: 3072, 64>}, {pipeline_mode = #tpu.pipeline_mode<synchronous>, transform_indices = @transform_2, window_bounds = array<i64: 1, 64>}, {transform_indices = @transform_3, window_bounds = array<i64: 8, 64>}]} {
    %c0 = arith.constant 0 : index
    %c0_0 = arith.constant 0 : index
    %0 = vector.load %arg1[%c0, %c0_0] : memref<8x3072xbf16, #tpu.memory_space<vmem>>, vector<8x3072xbf16>
    %c0_1 = arith.constant 0 : index
    %c0_2 = arith.constant 0 : index
    %1 = vector.load %arg2[%c0_1, %c0_2] : memref<3072x64xbf16, #tpu.memory_space<vmem>>, vector<3072x64xbf16>
    %cst = arith.constant dense<0.000000e+00> : vector<8x64xf32>
    %2 = tpu.matmul %0, %1, %cst {dimension_numbers = #tpu.dot_dimension_numbers<[1], [0], [0], [1], [0, 0, 1, 1], [], []>} : vector<8x3072xbf16>, vector<3072x64xbf16>, vector<8x64xf32> -> vector<8x64xf32>
    %c0_3 = arith.constant 0 : index
    %c0_4 = arith.constant 0 : index
    %3 = vector.load %arg3[%c0_3, %c0_4] : memref<1x64xf32, #tpu.memory_space<vmem>>, vector<1x64xf32>
    %4 = vector.broadcast %3 : vector<1x64xf32> to vector<8x64xf32>
    %5 = arith.addf %2, %4 : vector<8x64xf32>
    %cst_5 = arith.constant 0.000000e+00 : f32
    %6 = vector.broadcast %cst_5 : f32 to vector<8x64xf32>
    %7 = arith.maximumf %5, %6 : vector<8x64xf32>
    %8 = arith.truncf %7 : vector<8x64xf32> to vector<8x64xbf16>
    %c0_6 = arith.constant 0 : index
    %c0_7 = arith.constant 0 : index
    %9 = vector.load %arg4[%c0_6, %c0_7] : memref<8x64xbf16, #tpu.memory_space<vmem>>, vector<8x64xbf16>
    tpu.vector_store %arg4[%c0_6, %c0_7], %8 {strides = array<i32>} : memref<8x64xbf16, #tpu.memory_space<vmem>>, vector<8x64xbf16>,
    return
  }
  func.func @transform_0(%arg0: i32) -> (i32, i32) {
    %c0_i32 = arith.constant 0 : i32
    %c0_i32_0 = arith.constant 0 : i32
    return %arg0, %c0_i32 : i32, i32
  }
  func.func @transform_1(%arg0: i32) -> (i32, i32) {
    %c0_i32 = arith.constant 0 : i32
    %c0_i32_0 = arith.constant 0 : i32
    %c0_i32_1 = arith.constant 0 : i32
    return %c0_i32, %c0_i32_0 : i32, i32
  }
  func.func @transform_2(%arg0: i32) -> (i32, i32) {
    %c0_i32 = arith.constant 0 : i32
    %c0_i32_0 = arith.constant 0 : i32
    %c0_i32_1 = arith.constant 0 : i32
    return %c0_i32, %c0_i32_0 : i32, i32
  }
  func.func @transform_3(%arg0: i32) -> (i32, i32) {
    %c0_i32 = arith.constant 0 : i32
    %c0_i32_0 = arith.constant 0 : i32
    return %arg0, %c0_i32 : i32, i32
  }
}

module attributes {stable_mosaic.version = 11 : i64} {
  func.func @_conv3x3_relu_kernel(%arg0: i32, %arg1: memref<1x24x64xbf16, #tpu.memory_space<vmem>>, %arg2: memref<9x64x64xbf16, #tpu.memory_space<vmem>>, %arg3: memref<1x64xf32, #tpu.memory_space<vmem>>, %arg4: memref<1x8x64xbf16, #tpu.memory_space<vmem>>, %arg5: memref<8x64xf32, #tpu.memory_space<vmem>>) attributes {dimension_semantics = [#tpu.dimension_semantics<parallel>], iteration_bounds = array<i64: 2>, scalar_prefetch = 0 : i64, scratch_operands = 1 : i64, tpu.core_type = #tpu.core_type<tc>, window_params = [{transform_indices = @transform_0, window_bounds = array<i64: 1, 24, 64>}, {pipeline_mode = #tpu.pipeline_mode<synchronous>, transform_indices = @transform_1, window_bounds = array<i64: 9, 64, 64>}, {pipeline_mode = #tpu.pipeline_mode<synchronous>, transform_indices = @transform_2, window_bounds = array<i64: 1, 64>}, {transform_indices = @transform_3, window_bounds = array<i64: 1, 8, 64>}]} {
    %c0 = arith.constant 0 : index
    %c0_0 = arith.constant 0 : index
    %c0_1 = arith.constant 0 : index
    %0 = vector.load %arg1[%c0, %c0_0, %c0_1] : memref<1x24x64xbf16, #tpu.memory_space<vmem>>, vector<1x8x64xbf16>
    %1 = vector.shape_cast %0 : vector<1x8x64xbf16> to vector<8x64xbf16>
    %c0_2 = arith.constant 0 : index
    %c0_3 = arith.constant 0 : index
    %c0_4 = arith.constant 0 : index
    %2 = vector.load %arg2[%c0_2, %c0_3, %c0_4] : memref<9x64x64xbf16, #tpu.memory_space<vmem>>, vector<1x64x64xbf16>
    %3 = vector.shape_cast %2 : vector<1x64x64xbf16> to vector<64x64xbf16>
    %cst = arith.constant dense<0.000000e+00> : vector<8x64xf32>
    %4 = tpu.matmul %1, %3, %cst {dimension_numbers = #tpu.dot_dimension_numbers<[1], [0], [0], [1], [0, 0, 1, 1], [], []>} : vector<8x64xbf16>, vector<64x64xbf16>, vector<8x64xf32> -> vector<8x64xf32>
    %c0_5 = arith.constant 0 : index
    %c0_6 = arith.constant 0 : index
    %5 = vector.load %arg5[%c0_5, %c0_6] : memref<8x64xf32, #tpu.memory_space<vmem>>, vector<8x64xf32>
    tpu.vector_store %arg5[%c0_5, %c0_6], %4 {strides = array<i32>} : memref<8x64xf32, #tpu.memory_space<vmem>>, vector<8x64xf32>,
    %c0_7 = arith.constant 0 : index
    %c1 = arith.constant 1 : index
    %c0_8 = arith.constant 0 : index
    %6 = vector.load %arg1[%c0_7, %c1, %c0_8] : memref<1x24x64xbf16, #tpu.memory_space<vmem>>, vector<1x8x64xbf16>
    %7 = vector.shape_cast %6 : vector<1x8x64xbf16> to vector<8x64xbf16>
    %c1_9 = arith.constant 1 : index
    %c0_10 = arith.constant 0 : index
    %c0_11 = arith.constant 0 : index
    %8 = vector.load %arg2[%c1_9, %c0_10, %c0_11] : memref<9x64x64xbf16, #tpu.memory_space<vmem>>, vector<1x64x64xbf16>
    %9 = vector.shape_cast %8 : vector<1x64x64xbf16> to vector<64x64xbf16>
    %cst_12 = arith.constant dense<0.000000e+00> : vector<8x64xf32>
    %10 = tpu.matmul %7, %9, %cst_12 {dimension_numbers = #tpu.dot_dimension_numbers<[1], [0], [0], [1], [0, 0, 1, 1], [], []>} : vector<8x64xbf16>, vector<64x64xbf16>, vector<8x64xf32> -> vector<8x64xf32>
    %c0_13 = arith.constant 0 : index
    %c0_14 = arith.constant 0 : index
    %11 = vector.load %arg5[%c0_13, %c0_14] : memref<8x64xf32, #tpu.memory_space<vmem>>, vector<8x64xf32>
    %12 = arith.addf %11, %10 : vector<8x64xf32>
    %c0_15 = arith.constant 0 : index
    %c0_16 = arith.constant 0 : index
    %13 = vector.load %arg5[%c0_15, %c0_16] : memref<8x64xf32, #tpu.memory_space<vmem>>, vector<8x64xf32>
    tpu.vector_store %arg5[%c0_15, %c0_16], %12 {strides = array<i32>} : memref<8x64xf32, #tpu.memory_space<vmem>>, vector<8x64xf32>,
    %c0_17 = arith.constant 0 : index
    %c2 = arith.constant 2 : index
    %c0_18 = arith.constant 0 : index
    %14 = vector.load %arg1[%c0_17, %c2, %c0_18] : memref<1x24x64xbf16, #tpu.memory_space<vmem>>, vector<1x8x64xbf16>
    %15 = vector.shape_cast %14 : vector<1x8x64xbf16> to vector<8x64xbf16>
    %c2_19 = arith.constant 2 : index
    %c0_20 = arith.constant 0 : index
    %c0_21 = arith.constant 0 : index
    %16 = vector.load %arg2[%c2_19, %c0_20, %c0_21] : memref<9x64x64xbf16, #tpu.memory_space<vmem>>, vector<1x64x64xbf16>
    %17 = vector.shape_cast %16 : vector<1x64x64xbf16> to vector<64x64xbf16>
    %cst_22 = arith.constant dense<0.000000e+00> : vector<8x64xf32>
    %18 = tpu.matmul %15, %17, %cst_22 {dimension_numbers = #tpu.dot_dimension_numbers<[1], [0], [0], [1], [0, 0, 1, 1], [], []>} : vector<8x64xbf16>, vector<64x64xbf16>, vector<8x64xf32> -> vector<8x64xf32>
    %c0_23 = arith.constant 0 : index
    %c0_24 = arith.constant 0 : index
    %19 = vector.load %arg5[%c0_23, %c0_24] : memref<8x64xf32, #tpu.memory_space<vmem>>, vector<8x64xf32>
    %20 = arith.addf %19, %18 : vector<8x64xf32>
    %c0_25 = arith.constant 0 : index
    %c0_26 = arith.constant 0 : index
    %21 = vector.load %arg5[%c0_25, %c0_26] : memref<8x64xf32, #tpu.memory_space<vmem>>, vector<8x64xf32>
    tpu.vector_store %arg5[%c0_25, %c0_26], %20 {strides = array<i32>} : memref<8x64xf32, #tpu.memory_space<vmem>>, vector<8x64xf32>,
    %c0_27 = arith.constant 0 : index
    %c4 = arith.constant 4 : index
    %c0_28 = arith.constant 0 : index
    %22 = vector.load %arg1[%c0_27, %c4, %c0_28] : memref<1x24x64xbf16, #tpu.memory_space<vmem>>, vector<1x8x64xbf16>
    %23 = vector.shape_cast %22 : vector<1x8x64xbf16> to vector<8x64xbf16>
    %c3 = arith.constant 3 : index
    %c0_29 = arith.constant 0 : index
    %c0_30 = arith.constant 0 : index
    %24 = vector.load %arg2[%c3, %c0_29, %c0_30] : memref<9x64x64xbf16, #tpu.memory_space<vmem>>, vector<1x64x64xbf16>
    %25 = vector.shape_cast %24 : vector<1x64x64xbf16> to vector<64x64xbf16>
    %cst_31 = arith.constant dense<0.000000e+00> : vector<8x64xf32>
    %26 = tpu.matmul %23, %25, %cst_31 {dimension_numbers = #tpu.dot_dimension_numbers<[1], [0], [0], [1], [0, 0, 1, 1], [], []>} : vector<8x64xbf16>, vector<64x64xbf16>, vector<8x64xf32> -> vector<8x64xf32>
    %c0_32 = arith.constant 0 : index
    %c0_33 = arith.constant 0 : index
    %27 = vector.load %arg5[%c0_32, %c0_33] : memref<8x64xf32, #tpu.memory_space<vmem>>, vector<8x64xf32>
    %28 = arith.addf %27, %26 : vector<8x64xf32>
    %c0_34 = arith.constant 0 : index
    %c0_35 = arith.constant 0 : index
    %29 = vector.load %arg5[%c0_34, %c0_35] : memref<8x64xf32, #tpu.memory_space<vmem>>, vector<8x64xf32>
    tpu.vector_store %arg5[%c0_34, %c0_35], %28 {strides = array<i32>} : memref<8x64xf32, #tpu.memory_space<vmem>>, vector<8x64xf32>,
    %c0_36 = arith.constant 0 : index
    %c5 = arith.constant 5 : index
    %c0_37 = arith.constant 0 : index
    %30 = vector.load %arg1[%c0_36, %c5, %c0_37] : memref<1x24x64xbf16, #tpu.memory_space<vmem>>, vector<1x8x64xbf16>
    %31 = vector.shape_cast %30 : vector<1x8x64xbf16> to vector<8x64xbf16>
    %c4_38 = arith.constant 4 : index
    %c0_39 = arith.constant 0 : index
    %c0_40 = arith.constant 0 : index
    %32 = vector.load %arg2[%c4_38, %c0_39, %c0_40] : memref<9x64x64xbf16, #tpu.memory_space<vmem>>, vector<1x64x64xbf16>
    %33 = vector.shape_cast %32 : vector<1x64x64xbf16> to vector<64x64xbf16>
    %cst_41 = arith.constant dense<0.000000e+00> : vector<8x64xf32>
    %34 = tpu.matmul %31, %33, %cst_41 {dimension_numbers = #tpu.dot_dimension_numbers<[1], [0], [0], [1], [0, 0, 1, 1], [], []>} : vector<8x64xbf16>, vector<64x64xbf16>, vector<8x64xf32> -> vector<8x64xf32>
    %c0_42 = arith.constant 0 : index
    %c0_43 = arith.constant 0 : index
    %35 = vector.load %arg5[%c0_42, %c0_43] : memref<8x64xf32, #tpu.memory_space<vmem>>, vector<8x64xf32>
    %36 = arith.addf %35, %34 : vector<8x64xf32>
    %c0_44 = arith.constant 0 : index
    %c0_45 = arith.constant 0 : index
    %37 = vector.load %arg5[%c0_44, %c0_45] : memref<8x64xf32, #tpu.memory_space<vmem>>, vector<8x64xf32>
    tpu.vector_store %arg5[%c0_44, %c0_45], %36 {strides = array<i32>} : memref<8x64xf32, #tpu.memory_space<vmem>>, vector<8x64xf32>,
    %c0_46 = arith.constant 0 : index
    %c6 = arith.constant 6 : index
    %c0_47 = arith.constant 0 : index
    %38 = vector.load %arg1[%c0_46, %c6, %c0_47] : memref<1x24x64xbf16, #tpu.memory_space<vmem>>, vector<1x8x64xbf16>
    %39 = vector.shape_cast %38 : vector<1x8x64xbf16> to vector<8x64xbf16>
    %c5_48 = arith.constant 5 : index
    %c0_49 = arith.constant 0 : index
    %c0_50 = arith.constant 0 : index
    %40 = vector.load %arg2[%c5_48, %c0_49, %c0_50] : memref<9x64x64xbf16, #tpu.memory_space<vmem>>, vector<1x64x64xbf16>
    %41 = vector.shape_cast %40 : vector<1x64x64xbf16> to vector<64x64xbf16>
    %cst_51 = arith.constant dense<0.000000e+00> : vector<8x64xf32>
    %42 = tpu.matmul %39, %41, %cst_51 {dimension_numbers = #tpu.dot_dimension_numbers<[1], [0], [0], [1], [0, 0, 1, 1], [], []>} : vector<8x64xbf16>, vector<64x64xbf16>, vector<8x64xf32> -> vector<8x64xf32>
    %c0_52 = arith.constant 0 : index
    %c0_53 = arith.constant 0 : index
    %43 = vector.load %arg5[%c0_52, %c0_53] : memref<8x64xf32, #tpu.memory_space<vmem>>, vector<8x64xf32>
    %44 = arith.addf %43, %42 : vector<8x64xf32>
    %c0_54 = arith.constant 0 : index
    %c0_55 = arith.constant 0 : index
    %45 = vector.load %arg5[%c0_54, %c0_55] : memref<8x64xf32, #tpu.memory_space<vmem>>, vector<8x64xf32>
    tpu.vector_store %arg5[%c0_54, %c0_55], %44 {strides = array<i32>} : memref<8x64xf32, #tpu.memory_space<vmem>>, vector<8x64xf32>,
    %c0_56 = arith.constant 0 : index
    %c8 = arith.constant 8 : index
    %c0_57 = arith.constant 0 : index
    %46 = vector.load %arg1[%c0_56, %c8, %c0_57] : memref<1x24x64xbf16, #tpu.memory_space<vmem>>, vector<1x8x64xbf16>
    %47 = vector.shape_cast %46 : vector<1x8x64xbf16> to vector<8x64xbf16>
    %c6_58 = arith.constant 6 : index
    %c0_59 = arith.constant 0 : index
    %c0_60 = arith.constant 0 : index
    %48 = vector.load %arg2[%c6_58, %c0_59, %c0_60] : memref<9x64x64xbf16, #tpu.memory_space<vmem>>, vector<1x64x64xbf16>
    %49 = vector.shape_cast %48 : vector<1x64x64xbf16> to vector<64x64xbf16>
    %cst_61 = arith.constant dense<0.000000e+00> : vector<8x64xf32>
    %50 = tpu.matmul %47, %49, %cst_61 {dimension_numbers = #tpu.dot_dimension_numbers<[1], [0], [0], [1], [0, 0, 1, 1], [], []>} : vector<8x64xbf16>, vector<64x64xbf16>, vector<8x64xf32> -> vector<8x64xf32>
    %c0_62 = arith.constant 0 : index
    %c0_63 = arith.constant 0 : index
    %51 = vector.load %arg5[%c0_62, %c0_63] : memref<8x64xf32, #tpu.memory_space<vmem>>, vector<8x64xf32>
    %52 = arith.addf %51, %50 : vector<8x64xf32>
    %c0_64 = arith.constant 0 : index
    %c0_65 = arith.constant 0 : index
    %53 = vector.load %arg5[%c0_64, %c0_65] : memref<8x64xf32, #tpu.memory_space<vmem>>, vector<8x64xf32>
    tpu.vector_store %arg5[%c0_64, %c0_65], %52 {strides = array<i32>} : memref<8x64xf32, #tpu.memory_space<vmem>>, vector<8x64xf32>,
    %c0_66 = arith.constant 0 : index
    %c9 = arith.constant 9 : index
    %c0_67 = arith.constant 0 : index
    %54 = vector.load %arg1[%c0_66, %c9, %c0_67] : memref<1x24x64xbf16, #tpu.memory_space<vmem>>, vector<1x8x64xbf16>
    %55 = vector.shape_cast %54 : vector<1x8x64xbf16> to vector<8x64xbf16>
    %c7 = arith.constant 7 : index
    %c0_68 = arith.constant 0 : index
    %c0_69 = arith.constant 0 : index
    %56 = vector.load %arg2[%c7, %c0_68, %c0_69] : memref<9x64x64xbf16, #tpu.memory_space<vmem>>, vector<1x64x64xbf16>
    %57 = vector.shape_cast %56 : vector<1x64x64xbf16> to vector<64x64xbf16>
    %cst_70 = arith.constant dense<0.000000e+00> : vector<8x64xf32>
    %58 = tpu.matmul %55, %57, %cst_70 {dimension_numbers = #tpu.dot_dimension_numbers<[1], [0], [0], [1], [0, 0, 1, 1], [], []>} : vector<8x64xbf16>, vector<64x64xbf16>, vector<8x64xf32> -> vector<8x64xf32>
    %c0_71 = arith.constant 0 : index
    %c0_72 = arith.constant 0 : index
    %59 = vector.load %arg5[%c0_71, %c0_72] : memref<8x64xf32, #tpu.memory_space<vmem>>, vector<8x64xf32>
    %60 = arith.addf %59, %58 : vector<8x64xf32>
    %c0_73 = arith.constant 0 : index
    %c0_74 = arith.constant 0 : index
    %61 = vector.load %arg5[%c0_73, %c0_74] : memref<8x64xf32, #tpu.memory_space<vmem>>, vector<8x64xf32>
    tpu.vector_store %arg5[%c0_73, %c0_74], %60 {strides = array<i32>} : memref<8x64xf32, #tpu.memory_space<vmem>>, vector<8x64xf32>,
    %c0_75 = arith.constant 0 : index
    %c10 = arith.constant 10 : index
    %c0_76 = arith.constant 0 : index
    %62 = vector.load %arg1[%c0_75, %c10, %c0_76] : memref<1x24x64xbf16, #tpu.memory_space<vmem>>, vector<1x8x64xbf16>
    %63 = vector.shape_cast %62 : vector<1x8x64xbf16> to vector<8x64xbf16>
    %c8_77 = arith.constant 8 : index
    %c0_78 = arith.constant 0 : index
    %c0_79 = arith.constant 0 : index
    %64 = vector.load %arg2[%c8_77, %c0_78, %c0_79] : memref<9x64x64xbf16, #tpu.memory_space<vmem>>, vector<1x64x64xbf16>
    %65 = vector.shape_cast %64 : vector<1x64x64xbf16> to vector<64x64xbf16>
    %cst_80 = arith.constant dense<0.000000e+00> : vector<8x64xf32>
    %66 = tpu.matmul %63, %65, %cst_80 {dimension_numbers = #tpu.dot_dimension_numbers<[1], [0], [0], [1], [0, 0, 1, 1], [], []>} : vector<8x64xbf16>, vector<64x64xbf16>, vector<8x64xf32> -> vector<8x64xf32>
    %c0_81 = arith.constant 0 : index
    %c0_82 = arith.constant 0 : index
    %67 = vector.load %arg5[%c0_81, %c0_82] : memref<8x64xf32, #tpu.memory_space<vmem>>, vector<8x64xf32>
    %68 = arith.addf %67, %66 : vector<8x64xf32>
    %c0_83 = arith.constant 0 : index
    %c0_84 = arith.constant 0 : index
    %69 = vector.load %arg5[%c0_83, %c0_84] : memref<8x64xf32, #tpu.memory_space<vmem>>, vector<8x64xf32>
    tpu.vector_store %arg5[%c0_83, %c0_84], %68 {strides = array<i32>} : memref<8x64xf32, #tpu.memory_space<vmem>>, vector<8x64xf32>,
    %c0_85 = arith.constant 0 : index
    %c0_86 = arith.constant 0 : index
    %70 = vector.load %arg5[%c0_85, %c0_86] : memref<8x64xf32, #tpu.memory_space<vmem>>, vector<8x64xf32>
    %c0_87 = arith.constant 0 : index
    %c0_88 = arith.constant 0 : index
    %71 = vector.load %arg3[%c0_87, %c0_88] : memref<1x64xf32, #tpu.memory_space<vmem>>, vector<1x64xf32>
    %72 = vector.broadcast %71 : vector<1x64xf32> to vector<8x64xf32>
    %73 = arith.addf %70, %72 : vector<8x64xf32>
    %cst_89 = arith.constant 0.000000e+00 : f32
    %74 = vector.broadcast %cst_89 : f32 to vector<8x64xf32>
    %75 = arith.maximumf %73, %74 : vector<8x64xf32>
    %76 = arith.truncf %75 : vector<8x64xf32> to vector<8x64xbf16>
    %c0_90 = arith.constant 0 : index
    %c0_91 = arith.constant 0 : index
    %c0_92 = arith.constant 0 : index
    %77 = vector.load %arg4[%c0_90, %c0_91, %c0_92] : memref<1x8x64xbf16, #tpu.memory_space<vmem>>, vector<1x8x64xbf16>
    %78 = vector.shape_cast %77 : vector<1x8x64xbf16> to vector<8x64xbf16>
    %79 = vector.shape_cast %76 : vector<8x64xbf16> to vector<1x8x64xbf16>
    tpu.vector_store %arg4[%c0_90, %c0_91, %c0_92], %79 {strides = array<i32>} : memref<1x8x64xbf16, #tpu.memory_space<vmem>>, vector<1x8x64xbf16>,
    return
  }
  func.func @transform_0(%arg0: i32) -> (i32, i32, i32) {
    %c0_i32 = arith.constant 0 : i32
    %c0_i32_0 = arith.constant 0 : i32
    %c0_i32_1 = arith.constant 0 : i32
    return %arg0, %c0_i32, %c0_i32_0 : i32, i32, i32
  }
  func.func @transform_1(%arg0: i32) -> (i32, i32, i32) {
    %c0_i32 = arith.constant 0 : i32
    %c0_i32_0 = arith.constant 0 : i32
    %c0_i32_1 = arith.constant 0 : i32
    %c0_i32_2 = arith.constant 0 : i32
    return %c0_i32, %c0_i32_0, %c0_i32_1 : i32, i32, i32
  }
  func.func @transform_2(%arg0: i32) -> (i32, i32) {
    %c0_i32 = arith.constant 0 : i32
    %c0_i32_0 = arith.constant 0 : i32
    %c0_i32_1 = arith.constant 0 : i32
    return %c0_i32, %c0_i32_0 : i32, i32
  }
  func.func @transform_3(%arg0: i32) -> (i32, i32, i32) {
    %c0_i32 = arith.constant 0 : i32
    %c0_i32_0 = arith.constant 0 : i32
    %c0_i32_1 = arith.constant 0 : i32
    return %arg0, %c0_i32, %c0_i32_0 : i32, i32, i32
  }
}

module attributes {stable_mosaic.version = 11 : i64} {
  func.func @_matmul_bias_act_kernel(%arg0: i32, %arg1: memref<128x192xbf16, #tpu.memory_space<vmem>>, %arg2: memref<192x64xbf16, #tpu.memory_space<vmem>>, %arg3: memref<1x64xf32, #tpu.memory_space<vmem>>, %arg4: memref<128x64xbf16, #tpu.memory_space<vmem>>) attributes {dimension_semantics = [#tpu.dimension_semantics<parallel>], iteration_bounds = array<i64: 1>, scalar_prefetch = 0 : i64, scratch_operands = 0 : i64, tpu.core_type = #tpu.core_type<tc>, window_params = [{transform_indices = @transform_0, window_bounds = array<i64: 128, 192>}, {pipeline_mode = #tpu.pipeline_mode<synchronous>, transform_indices = @transform_1, window_bounds = array<i64: 192, 64>}, {pipeline_mode = #tpu.pipeline_mode<synchronous>, transform_indices = @transform_2, window_bounds = array<i64: 1, 64>}, {transform_indices = @transform_3, window_bounds = array<i64: 128, 64>}]} {
    %c0 = arith.constant 0 : index
    %c0_0 = arith.constant 0 : index
    %0 = vector.load %arg1[%c0, %c0_0] : memref<128x192xbf16, #tpu.memory_space<vmem>>, vector<128x192xbf16>
    %c0_1 = arith.constant 0 : index
    %c0_2 = arith.constant 0 : index
    %1 = vector.load %arg2[%c0_1, %c0_2] : memref<192x64xbf16, #tpu.memory_space<vmem>>, vector<192x64xbf16>
    %cst = arith.constant dense<0.000000e+00> : vector<128x64xf32>
    %2 = tpu.matmul %0, %1, %cst {dimension_numbers = #tpu.dot_dimension_numbers<[1], [0], [0], [1], [0, 0, 1, 1], [], []>} : vector<128x192xbf16>, vector<192x64xbf16>, vector<128x64xf32> -> vector<128x64xf32>
    %c0_3 = arith.constant 0 : index
    %c0_4 = arith.constant 0 : index
    %3 = vector.load %arg3[%c0_3, %c0_4] : memref<1x64xf32, #tpu.memory_space<vmem>>, vector<1x64xf32>
    %4 = vector.broadcast %3 : vector<1x64xf32> to vector<128x64xf32>
    %5 = arith.addf %2, %4 : vector<128x64xf32>
    %cst_5 = arith.constant 0.000000e+00 : f32
    %6 = vector.broadcast %cst_5 : f32 to vector<128x64xf32>
    %7 = arith.maximumf %5, %6 : vector<128x64xf32>
    %8 = arith.truncf %7 : vector<128x64xf32> to vector<128x64xbf16>
    %c0_6 = arith.constant 0 : index
    %c0_7 = arith.constant 0 : index
    %9 = vector.load %arg4[%c0_6, %c0_7] : memref<128x64xbf16, #tpu.memory_space<vmem>>, vector<128x64xbf16>
    tpu.vector_store %arg4[%c0_6, %c0_7], %8 {strides = array<i32>} : memref<128x64xbf16, #tpu.memory_space<vmem>>, vector<128x64xbf16>,
    return
  }
  func.func @transform_0(%arg0: i32) -> (i32, i32) {
    %c0_i32 = arith.constant 0 : i32
    %c0_i32_0 = arith.constant 0 : i32
    return %arg0, %c0_i32 : i32, i32
  }
  func.func @transform_1(%arg0: i32) -> (i32, i32) {
    %c0_i32 = arith.constant 0 : i32
    %c0_i32_0 = arith.constant 0 : i32
    %c0_i32_1 = arith.constant 0 : i32
    return %c0_i32, %c0_i32_0 : i32, i32
  }
  func.func @transform_2(%arg0: i32) -> (i32, i32) {
    %c0_i32 = arith.constant 0 : i32
    %c0_i32_0 = arith.constant 0 : i32
    %c0_i32_1 = arith.constant 0 : i32
    return %c0_i32, %c0_i32_0 : i32, i32
  }
  func.func @transform_3(%arg0: i32) -> (i32, i32) {
    %c0_i32 = arith.constant 0 : i32
    %c0_i32_0 = arith.constant 0 : i32
    return %arg0, %c0_i32 : i32, i32
  }
}

module attributes {stable_mosaic.version = 11 : i64} {
  func.func @_conv3x3_relu_kernel(%arg0: i32, %arg1: memref<1x108x64xbf16, #tpu.memory_space<vmem>>, %arg2: memref<9x64x64xbf16, #tpu.memory_space<vmem>>, %arg3: memref<1x64xf32, #tpu.memory_space<vmem>>, %arg4: memref<1x80x64xbf16, #tpu.memory_space<vmem>>, %arg5: memref<80x64xf32, #tpu.memory_space<vmem>>) attributes {dimension_semantics = [#tpu.dimension_semantics<parallel>], iteration_bounds = array<i64: 2>, scalar_prefetch = 0 : i64, scratch_operands = 1 : i64, tpu.core_type = #tpu.core_type<tc>, window_params = [{transform_indices = @transform_0, window_bounds = array<i64: 1, 108, 64>}, {pipeline_mode = #tpu.pipeline_mode<synchronous>, transform_indices = @transform_1, window_bounds = array<i64: 9, 64, 64>}, {pipeline_mode = #tpu.pipeline_mode<synchronous>, transform_indices = @transform_2, window_bounds = array<i64: 1, 64>}, {transform_indices = @transform_3, window_bounds = array<i64: 1, 80, 64>}]} {
    %c0 = arith.constant 0 : index
    %c0_0 = arith.constant 0 : index
    %c0_1 = arith.constant 0 : index
    %0 = vector.load %arg1[%c0, %c0_0, %c0_1] : memref<1x108x64xbf16, #tpu.memory_space<vmem>>, vector<1x80x64xbf16>
    %1 = vector.shape_cast %0 : vector<1x80x64xbf16> to vector<80x64xbf16>
    %c0_2 = arith.constant 0 : index
    %c0_3 = arith.constant 0 : index
    %c0_4 = arith.constant 0 : index
    %2 = vector.load %arg2[%c0_2, %c0_3, %c0_4] : memref<9x64x64xbf16, #tpu.memory_space<vmem>>, vector<1x64x64xbf16>
    %3 = vector.shape_cast %2 : vector<1x64x64xbf16> to vector<64x64xbf16>
    %cst = arith.constant dense<0.000000e+00> : vector<80x64xf32>
    %4 = tpu.matmul %1, %3, %cst {dimension_numbers = #tpu.dot_dimension_numbers<[1], [0], [0], [1], [0, 0, 1, 1], [], []>} : vector<80x64xbf16>, vector<64x64xbf16>, vector<80x64xf32> -> vector<80x64xf32>
    %c0_5 = arith.constant 0 : index
    %c0_6 = arith.constant 0 : index
    %5 = vector.load %arg5[%c0_5, %c0_6] : memref<80x64xf32, #tpu.memory_space<vmem>>, vector<80x64xf32>
    tpu.vector_store %arg5[%c0_5, %c0_6], %4 {strides = array<i32>} : memref<80x64xf32, #tpu.memory_space<vmem>>, vector<80x64xf32>,
    %c0_7 = arith.constant 0 : index
    %c1 = arith.constant 1 : index
    %c0_8 = arith.constant 0 : index
    %6 = vector.load %arg1[%c0_7, %c1, %c0_8] : memref<1x108x64xbf16, #tpu.memory_space<vmem>>, vector<1x80x64xbf16>
    %7 = vector.shape_cast %6 : vector<1x80x64xbf16> to vector<80x64xbf16>
    %c1_9 = arith.constant 1 : index
    %c0_10 = arith.constant 0 : index
    %c0_11 = arith.constant 0 : index
    %8 = vector.load %arg2[%c1_9, %c0_10, %c0_11] : memref<9x64x64xbf16, #tpu.memory_space<vmem>>, vector<1x64x64xbf16>
    %9 = vector.shape_cast %8 : vector<1x64x64xbf16> to vector<64x64xbf16>
    %cst_12 = arith.constant dense<0.000000e+00> : vector<80x64xf32>
    %10 = tpu.matmul %7, %9, %cst_12 {dimension_numbers = #tpu.dot_dimension_numbers<[1], [0], [0], [1], [0, 0, 1, 1], [], []>} : vector<80x64xbf16>, vector<64x64xbf16>, vector<80x64xf32> -> vector<80x64xf32>
    %c0_13 = arith.constant 0 : index
    %c0_14 = arith.constant 0 : index
    %11 = vector.load %arg5[%c0_13, %c0_14] : memref<80x64xf32, #tpu.memory_space<vmem>>, vector<80x64xf32>
    %12 = arith.addf %11, %10 : vector<80x64xf32>
    %c0_15 = arith.constant 0 : index
    %c0_16 = arith.constant 0 : index
    %13 = vector.load %arg5[%c0_15, %c0_16] : memref<80x64xf32, #tpu.memory_space<vmem>>, vector<80x64xf32>
    tpu.vector_store %arg5[%c0_15, %c0_16], %12 {strides = array<i32>} : memref<80x64xf32, #tpu.memory_space<vmem>>, vector<80x64xf32>,
    %c0_17 = arith.constant 0 : index
    %c2 = arith.constant 2 : index
    %c0_18 = arith.constant 0 : index
    %14 = vector.load %arg1[%c0_17, %c2, %c0_18] : memref<1x108x64xbf16, #tpu.memory_space<vmem>>, vector<1x80x64xbf16>
    %15 = vector.shape_cast %14 : vector<1x80x64xbf16> to vector<80x64xbf16>
    %c2_19 = arith.constant 2 : index
    %c0_20 = arith.constant 0 : index
    %c0_21 = arith.constant 0 : index
    %16 = vector.load %arg2[%c2_19, %c0_20, %c0_21] : memref<9x64x64xbf16, #tpu.memory_space<vmem>>, vector<1x64x64xbf16>
    %17 = vector.shape_cast %16 : vector<1x64x64xbf16> to vector<64x64xbf16>
    %cst_22 = arith.constant dense<0.000000e+00> : vector<80x64xf32>
    %18 = tpu.matmul %15, %17, %cst_22 {dimension_numbers = #tpu.dot_dimension_numbers<[1], [0], [0], [1], [0, 0, 1, 1], [], []>} : vector<80x64xbf16>, vector<64x64xbf16>, vector<80x64xf32> -> vector<80x64xf32>
    %c0_23 = arith.constant 0 : index
    %c0_24 = arith.constant 0 : index
    %19 = vector.load %arg5[%c0_23, %c0_24] : memref<80x64xf32, #tpu.memory_space<vmem>>, vector<80x64xf32>
    %20 = arith.addf %19, %18 : vector<80x64xf32>
    %c0_25 = arith.constant 0 : index
    %c0_26 = arith.constant 0 : index
    %21 = vector.load %arg5[%c0_25, %c0_26] : memref<80x64xf32, #tpu.memory_space<vmem>>, vector<80x64xf32>
    tpu.vector_store %arg5[%c0_25, %c0_26], %20 {strides = array<i32>} : memref<80x64xf32, #tpu.memory_space<vmem>>, vector<80x64xf32>,
    %c0_27 = arith.constant 0 : index
    %c10 = arith.constant 10 : index
    %c0_28 = arith.constant 0 : index
    %22 = vector.load %arg1[%c0_27, %c10, %c0_28] : memref<1x108x64xbf16, #tpu.memory_space<vmem>>, vector<1x80x64xbf16>
    %23 = vector.shape_cast %22 : vector<1x80x64xbf16> to vector<80x64xbf16>
    %c3 = arith.constant 3 : index
    %c0_29 = arith.constant 0 : index
    %c0_30 = arith.constant 0 : index
    %24 = vector.load %arg2[%c3, %c0_29, %c0_30] : memref<9x64x64xbf16, #tpu.memory_space<vmem>>, vector<1x64x64xbf16>
    %25 = vector.shape_cast %24 : vector<1x64x64xbf16> to vector<64x64xbf16>
    %cst_31 = arith.constant dense<0.000000e+00> : vector<80x64xf32>
    %26 = tpu.matmul %23, %25, %cst_31 {dimension_numbers = #tpu.dot_dimension_numbers<[1], [0], [0], [1], [0, 0, 1, 1], [], []>} : vector<80x64xbf16>, vector<64x64xbf16>, vector<80x64xf32> -> vector<80x64xf32>
    %c0_32 = arith.constant 0 : index
    %c0_33 = arith.constant 0 : index
    %27 = vector.load %arg5[%c0_32, %c0_33] : memref<80x64xf32, #tpu.memory_space<vmem>>, vector<80x64xf32>
    %28 = arith.addf %27, %26 : vector<80x64xf32>
    %c0_34 = arith.constant 0 : index
    %c0_35 = arith.constant 0 : index
    %29 = vector.load %arg5[%c0_34, %c0_35] : memref<80x64xf32, #tpu.memory_space<vmem>>, vector<80x64xf32>
    tpu.vector_store %arg5[%c0_34, %c0_35], %28 {strides = array<i32>} : memref<80x64xf32, #tpu.memory_space<vmem>>, vector<80x64xf32>,
    %c0_36 = arith.constant 0 : index
    %c11 = arith.constant 11 : index
    %c0_37 = arith.constant 0 : index
    %30 = vector.load %arg1[%c0_36, %c11, %c0_37] : memref<1x108x64xbf16, #tpu.memory_space<vmem>>, vector<1x80x64xbf16>
    %31 = vector.shape_cast %30 : vector<1x80x64xbf16> to vector<80x64xbf16>
    %c4 = arith.constant 4 : index
    %c0_38 = arith.constant 0 : index
    %c0_39 = arith.constant 0 : index
    %32 = vector.load %arg2[%c4, %c0_38, %c0_39] : memref<9x64x64xbf16, #tpu.memory_space<vmem>>, vector<1x64x64xbf16>
    %33 = vector.shape_cast %32 : vector<1x64x64xbf16> to vector<64x64xbf16>
    %cst_40 = arith.constant dense<0.000000e+00> : vector<80x64xf32>
    %34 = tpu.matmul %31, %33, %cst_40 {dimension_numbers = #tpu.dot_dimension_numbers<[1], [0], [0], [1], [0, 0, 1, 1], [], []>} : vector<80x64xbf16>, vector<64x64xbf16>, vector<80x64xf32> -> vector<80x64xf32>
    %c0_41 = arith.constant 0 : index
    %c0_42 = arith.constant 0 : index
    %35 = vector.load %arg5[%c0_41, %c0_42] : memref<80x64xf32, #tpu.memory_space<vmem>>, vector<80x64xf32>
    %36 = arith.addf %35, %34 : vector<80x64xf32>
    %c0_43 = arith.constant 0 : index
    %c0_44 = arith.constant 0 : index
    %37 = vector.load %arg5[%c0_43, %c0_44] : memref<80x64xf32, #tpu.memory_space<vmem>>, vector<80x64xf32>
    tpu.vector_store %arg5[%c0_43, %c0_44], %36 {strides = array<i32>} : memref<80x64xf32, #tpu.memory_space<vmem>>, vector<80x64xf32>,
    %c0_45 = arith.constant 0 : index
    %c12 = arith.constant 12 : index
    %c0_46 = arith.constant 0 : index
    %38 = vector.load %arg1[%c0_45, %c12, %c0_46] : memref<1x108x64xbf16, #tpu.memory_space<vmem>>, vector<1x80x64xbf16>
    %39 = vector.shape_cast %38 : vector<1x80x64xbf16> to vector<80x64xbf16>
    %c5 = arith.constant 5 : index
    %c0_47 = arith.constant 0 : index
    %c0_48 = arith.constant 0 : index
    %40 = vector.load %arg2[%c5, %c0_47, %c0_48] : memref<9x64x64xbf16, #tpu.memory_space<vmem>>, vector<1x64x64xbf16>
    %41 = vector.shape_cast %40 : vector<1x64x64xbf16> to vector<64x64xbf16>
    %cst_49 = arith.constant dense<0.000000e+00> : vector<80x64xf32>
    %42 = tpu.matmul %39, %41, %cst_49 {dimension_numbers = #tpu.dot_dimension_numbers<[1], [0], [0], [1], [0, 0, 1, 1], [], []>} : vector<80x64xbf16>, vector<64x64xbf16>, vector<80x64xf32> -> vector<80x64xf32>
    %c0_50 = arith.constant 0 : index
    %c0_51 = arith.constant 0 : index
    %43 = vector.load %arg5[%c0_50, %c0_51] : memref<80x64xf32, #tpu.memory_space<vmem>>, vector<80x64xf32>
    %44 = arith.addf %43, %42 : vector<80x64xf32>
    %c0_52 = arith.constant 0 : index
    %c0_53 = arith.constant 0 : index
    %45 = vector.load %arg5[%c0_52, %c0_53] : memref<80x64xf32, #tpu.memory_space<vmem>>, vector<80x64xf32>
    tpu.vector_store %arg5[%c0_52, %c0_53], %44 {strides = array<i32>} : memref<80x64xf32, #tpu.memory_space<vmem>>, vector<80x64xf32>,
    %c0_54 = arith.constant 0 : index
    %c20 = arith.constant 20 : index
    %c0_55 = arith.constant 0 : index
    %46 = vector.load %arg1[%c0_54, %c20, %c0_55] : memref<1x108x64xbf16, #tpu.memory_space<vmem>>, vector<1x80x64xbf16>
    %47 = vector.shape_cast %46 : vector<1x80x64xbf16> to vector<80x64xbf16>
    %c6 = arith.constant 6 : index
    %c0_56 = arith.constant 0 : index
    %c0_57 = arith.constant 0 : index
    %48 = vector.load %arg2[%c6, %c0_56, %c0_57] : memref<9x64x64xbf16, #tpu.memory_space<vmem>>, vector<1x64x64xbf16>
    %49 = vector.shape_cast %48 : vector<1x64x64xbf16> to vector<64x64xbf16>
    %cst_58 = arith.constant dense<0.000000e+00> : vector<80x64xf32>
    %50 = tpu.matmul %47, %49, %cst_58 {dimension_numbers = #tpu.dot_dimension_numbers<[1], [0], [0], [1], [0, 0, 1, 1], [], []>} : vector<80x64xbf16>, vector<64x64xbf16>, vector<80x64xf32> -> vector<80x64xf32>
    %c0_59 = arith.constant 0 : index
    %c0_60 = arith.constant 0 : index
    %51 = vector.load %arg5[%c0_59, %c0_60] : memref<80x64xf32, #tpu.memory_space<vmem>>, vector<80x64xf32>
    %52 = arith.addf %51, %50 : vector<80x64xf32>
    %c0_61 = arith.constant 0 : index
    %c0_62 = arith.constant 0 : index
    %53 = vector.load %arg5[%c0_61, %c0_62] : memref<80x64xf32, #tpu.memory_space<vmem>>, vector<80x64xf32>
    tpu.vector_store %arg5[%c0_61, %c0_62], %52 {strides = array<i32>} : memref<80x64xf32, #tpu.memory_space<vmem>>, vector<80x64xf32>,
    %c0_63 = arith.constant 0 : index
    %c21 = arith.constant 21 : index
    %c0_64 = arith.constant 0 : index
    %54 = vector.load %arg1[%c0_63, %c21, %c0_64] : memref<1x108x64xbf16, #tpu.memory_space<vmem>>, vector<1x80x64xbf16>
    %55 = vector.shape_cast %54 : vector<1x80x64xbf16> to vector<80x64xbf16>
    %c7 = arith.constant 7 : index
    %c0_65 = arith.constant 0 : index
    %c0_66 = arith.constant 0 : index
    %56 = vector.load %arg2[%c7, %c0_65, %c0_66] : memref<9x64x64xbf16, #tpu.memory_space<vmem>>, vector<1x64x64xbf16>
    %57 = vector.shape_cast %56 : vector<1x64x64xbf16> to vector<64x64xbf16>
    %cst_67 = arith.constant dense<0.000000e+00> : vector<80x64xf32>
    %58 = tpu.matmul %55, %57, %cst_67 {dimension_numbers = #tpu.dot_dimension_numbers<[1], [0], [0], [1], [0, 0, 1, 1], [], []>} : vector<80x64xbf16>, vector<64x64xbf16>, vector<80x64xf32> -> vector<80x64xf32>
    %c0_68 = arith.constant 0 : index
    %c0_69 = arith.constant 0 : index
    %59 = vector.load %arg5[%c0_68, %c0_69] : memref<80x64xf32, #tpu.memory_space<vmem>>, vector<80x64xf32>
    %60 = arith.addf %59, %58 : vector<80x64xf32>
    %c0_70 = arith.constant 0 : index
    %c0_71 = arith.constant 0 : index
    %61 = vector.load %arg5[%c0_70, %c0_71] : memref<80x64xf32, #tpu.memory_space<vmem>>, vector<80x64xf32>
    tpu.vector_store %arg5[%c0_70, %c0_71], %60 {strides = array<i32>} : memref<80x64xf32, #tpu.memory_space<vmem>>, vector<80x64xf32>,
    %c0_72 = arith.constant 0 : index
    %c22 = arith.constant 22 : index
    %c0_73 = arith.constant 0 : index
    %62 = vector.load %arg1[%c0_72, %c22, %c0_73] : memref<1x108x64xbf16, #tpu.memory_space<vmem>>, vector<1x80x64xbf16>
    %63 = vector.shape_cast %62 : vector<1x80x64xbf16> to vector<80x64xbf16>
    %c8 = arith.constant 8 : index
    %c0_74 = arith.constant 0 : index
    %c0_75 = arith.constant 0 : index
    %64 = vector.load %arg2[%c8, %c0_74, %c0_75] : memref<9x64x64xbf16, #tpu.memory_space<vmem>>, vector<1x64x64xbf16>
    %65 = vector.shape_cast %64 : vector<1x64x64xbf16> to vector<64x64xbf16>
    %cst_76 = arith.constant dense<0.000000e+00> : vector<80x64xf32>
    %66 = tpu.matmul %63, %65, %cst_76 {dimension_numbers = #tpu.dot_dimension_numbers<[1], [0], [0], [1], [0, 0, 1, 1], [], []>} : vector<80x64xbf16>, vector<64x64xbf16>, vector<80x64xf32> -> vector<80x64xf32>
    %c0_77 = arith.constant 0 : index
    %c0_78 = arith.constant 0 : index
    %67 = vector.load %arg5[%c0_77, %c0_78] : memref<80x64xf32, #tpu.memory_space<vmem>>, vector<80x64xf32>
    %68 = arith.addf %67, %66 : vector<80x64xf32>
    %c0_79 = arith.constant 0 : index
    %c0_80 = arith.constant 0 : index
    %69 = vector.load %arg5[%c0_79, %c0_80] : memref<80x64xf32, #tpu.memory_space<vmem>>, vector<80x64xf32>
    tpu.vector_store %arg5[%c0_79, %c0_80], %68 {strides = array<i32>} : memref<80x64xf32, #tpu.memory_space<vmem>>, vector<80x64xf32>,
    %c0_81 = arith.constant 0 : index
    %c0_82 = arith.constant 0 : index
    %70 = vector.load %arg5[%c0_81, %c0_82] : memref<80x64xf32, #tpu.memory_space<vmem>>, vector<80x64xf32>
    %c0_83 = arith.constant 0 : index
    %c0_84 = arith.constant 0 : index
    %71 = vector.load %arg3[%c0_83, %c0_84] : memref<1x64xf32, #tpu.memory_space<vmem>>, vector<1x64xf32>
    %72 = vector.broadcast %71 : vector<1x64xf32> to vector<80x64xf32>
    %73 = arith.addf %70, %72 : vector<80x64xf32>
    %cst_85 = arith.constant 0.000000e+00 : f32
    %74 = vector.broadcast %cst_85 : f32 to vector<80x64xf32>
    %75 = arith.maximumf %73, %74 : vector<80x64xf32>
    %76 = arith.truncf %75 : vector<80x64xf32> to vector<80x64xbf16>
    %c0_86 = arith.constant 0 : index
    %c0_87 = arith.constant 0 : index
    %c0_88 = arith.constant 0 : index
    %77 = vector.load %arg4[%c0_86, %c0_87, %c0_88] : memref<1x80x64xbf16, #tpu.memory_space<vmem>>, vector<1x80x64xbf16>
    %78 = vector.shape_cast %77 : vector<1x80x64xbf16> to vector<80x64xbf16>
    %79 = vector.shape_cast %76 : vector<80x64xbf16> to vector<1x80x64xbf16>
    tpu.vector_store %arg4[%c0_86, %c0_87, %c0_88], %79 {strides = array<i32>} : memref<1x80x64xbf16, #tpu.memory_space<vmem>>, vector<1x80x64xbf16>,
    return
  }
  func.func @transform_0(%arg0: i32) -> (i32, i32, i32) {
    %c0_i32 = arith.constant 0 : i32
    %c0_i32_0 = arith.constant 0 : i32
    %c0_i32_1 = arith.constant 0 : i32
    return %arg0, %c0_i32, %c0_i32_0 : i32, i32, i32
  }
  func.func @transform_1(%arg0: i32) -> (i32, i32, i32) {
    %c0_i32 = arith.constant 0 : i32
    %c0_i32_0 = arith.constant 0 : i32
    %c0_i32_1 = arith.constant 0 : i32
    %c0_i32_2 = arith.constant 0 : i32
    return %c0_i32, %c0_i32_0, %c0_i32_1 : i32, i32, i32
  }
  func.func @transform_2(%arg0: i32) -> (i32, i32) {
    %c0_i32 = arith.constant 0 : i32
    %c0_i32_0 = arith.constant 0 : i32
    %c0_i32_1 = arith.constant 0 : i32
    return %c0_i32, %c0_i32_0 : i32, i32
  }
  func.func @transform_3(%arg0: i32) -> (i32, i32, i32) {
    %c0_i32 = arith.constant 0 : i32
    %c0_i32_0 = arith.constant 0 : i32
    %c0_i32_1 = arith.constant 0 : i32
    return %arg0, %c0_i32, %c0_i32_0 : i32, i32, i32
  }
}

module attributes {stable_mosaic.version = 11 : i64} {
  func.func @_matmul_bias_act_kernel(%arg0: i32, %arg1: memref<32x768xbf16, #tpu.memory_space<vmem>>, %arg2: memref<768x64xbf16, #tpu.memory_space<vmem>>, %arg3: memref<1x64xf32, #tpu.memory_space<vmem>>, %arg4: memref<32x64xbf16, #tpu.memory_space<vmem>>) attributes {dimension_semantics = [#tpu.dimension_semantics<parallel>], iteration_bounds = array<i64: 1>, scalar_prefetch = 0 : i64, scratch_operands = 0 : i64, tpu.core_type = #tpu.core_type<tc>, window_params = [{transform_indices = @transform_0, window_bounds = array<i64: 32, 768>}, {pipeline_mode = #tpu.pipeline_mode<synchronous>, transform_indices = @transform_1, window_bounds = array<i64: 768, 64>}, {pipeline_mode = #tpu.pipeline_mode<synchronous>, transform_indices = @transform_2, window_bounds = array<i64: 1, 64>}, {transform_indices = @transform_3, window_bounds = array<i64: 32, 64>}]} {
    %c0 = arith.constant 0 : index
    %c0_0 = arith.constant 0 : index
    %0 = vector.load %arg1[%c0, %c0_0] : memref<32x768xbf16, #tpu.memory_space<vmem>>, vector<32x768xbf16>
    %c0_1 = arith.constant 0 : index
    %c0_2 = arith.constant 0 : index
    %1 = vector.load %arg2[%c0_1, %c0_2] : memref<768x64xbf16, #tpu.memory_space<vmem>>, vector<768x64xbf16>
    %cst = arith.constant dense<0.000000e+00> : vector<32x64xf32>
    %2 = tpu.matmul %0, %1, %cst {dimension_numbers = #tpu.dot_dimension_numbers<[1], [0], [0], [1], [0, 0, 1, 1], [], []>} : vector<32x768xbf16>, vector<768x64xbf16>, vector<32x64xf32> -> vector<32x64xf32>
    %c0_3 = arith.constant 0 : index
    %c0_4 = arith.constant 0 : index
    %3 = vector.load %arg3[%c0_3, %c0_4] : memref<1x64xf32, #tpu.memory_space<vmem>>, vector<1x64xf32>
    %4 = vector.broadcast %3 : vector<1x64xf32> to vector<32x64xf32>
    %5 = arith.addf %2, %4 : vector<32x64xf32>
    %cst_5 = arith.constant 0.000000e+00 : f32
    %6 = vector.broadcast %cst_5 : f32 to vector<32x64xf32>
    %7 = arith.maximumf %5, %6 : vector<32x64xf32>
    %8 = arith.truncf %7 : vector<32x64xf32> to vector<32x64xbf16>
    %c0_6 = arith.constant 0 : index
    %c0_7 = arith.constant 0 : index
    %9 = vector.load %arg4[%c0_6, %c0_7] : memref<32x64xbf16, #tpu.memory_space<vmem>>, vector<32x64xbf16>
    tpu.vector_store %arg4[%c0_6, %c0_7], %8 {strides = array<i32>} : memref<32x64xbf16, #tpu.memory_space<vmem>>, vector<32x64xbf16>,
    return
  }
  func.func @transform_0(%arg0: i32) -> (i32, i32) {
    %c0_i32 = arith.constant 0 : i32
    %c0_i32_0 = arith.constant 0 : i32
    return %arg0, %c0_i32 : i32, i32
  }
  func.func @transform_1(%arg0: i32) -> (i32, i32) {
    %c0_i32 = arith.constant 0 : i32
    %c0_i32_0 = arith.constant 0 : i32
    %c0_i32_1 = arith.constant 0 : i32
    return %c0_i32, %c0_i32_0 : i32, i32
  }
  func.func @transform_2(%arg0: i32) -> (i32, i32) {
    %c0_i32 = arith.constant 0 : i32
    %c0_i32_0 = arith.constant 0 : i32
    %c0_i32_1 = arith.constant 0 : i32
    return %c0_i32, %c0_i32_0 : i32, i32
  }
  func.func @transform_3(%arg0: i32) -> (i32, i32) {
    %c0_i32 = arith.constant 0 : i32
    %c0_i32_0 = arith.constant 0 : i32
    return %arg0, %c0_i32 : i32, i32
  }
}

module attributes {stable_mosaic.version = 11 : i64} {
  func.func @_conv3x3_relu_kernel(%arg0: i32, %arg1: memref<1x44x64xbf16, #tpu.memory_space<vmem>>, %arg2: memref<9x64x64xbf16, #tpu.memory_space<vmem>>, %arg3: memref<1x64xf32, #tpu.memory_space<vmem>>, %arg4: memref<1x24x64xbf16, #tpu.memory_space<vmem>>, %arg5: memref<24x64xf32, #tpu.memory_space<vmem>>) attributes {dimension_semantics = [#tpu.dimension_semantics<parallel>], iteration_bounds = array<i64: 2>, scalar_prefetch = 0 : i64, scratch_operands = 1 : i64, tpu.core_type = #tpu.core_type<tc>, window_params = [{transform_indices = @transform_0, window_bounds = array<i64: 1, 44, 64>}, {pipeline_mode = #tpu.pipeline_mode<synchronous>, transform_indices = @transform_1, window_bounds = array<i64: 9, 64, 64>}, {pipeline_mode = #tpu.pipeline_mode<synchronous>, transform_indices = @transform_2, window_bounds = array<i64: 1, 64>}, {transform_indices = @transform_3, window_bounds = array<i64: 1, 24, 64>}]} {
    %c0 = arith.constant 0 : index
    %c0_0 = arith.constant 0 : index
    %c0_1 = arith.constant 0 : index
    %0 = vector.load %arg1[%c0, %c0_0, %c0_1] : memref<1x44x64xbf16, #tpu.memory_space<vmem>>, vector<1x24x64xbf16>
    %1 = vector.shape_cast %0 : vector<1x24x64xbf16> to vector<24x64xbf16>
    %c0_2 = arith.constant 0 : index
    %c0_3 = arith.constant 0 : index
    %c0_4 = arith.constant 0 : index
    %2 = vector.load %arg2[%c0_2, %c0_3, %c0_4] : memref<9x64x64xbf16, #tpu.memory_space<vmem>>, vector<1x64x64xbf16>
    %3 = vector.shape_cast %2 : vector<1x64x64xbf16> to vector<64x64xbf16>
    %cst = arith.constant dense<0.000000e+00> : vector<24x64xf32>
    %4 = tpu.matmul %1, %3, %cst {dimension_numbers = #tpu.dot_dimension_numbers<[1], [0], [0], [1], [0, 0, 1, 1], [], []>} : vector<24x64xbf16>, vector<64x64xbf16>, vector<24x64xf32> -> vector<24x64xf32>
    %c0_5 = arith.constant 0 : index
    %c0_6 = arith.constant 0 : index
    %5 = vector.load %arg5[%c0_5, %c0_6] : memref<24x64xf32, #tpu.memory_space<vmem>>, vector<24x64xf32>
    tpu.vector_store %arg5[%c0_5, %c0_6], %4 {strides = array<i32>} : memref<24x64xf32, #tpu.memory_space<vmem>>, vector<24x64xf32>,
    %c0_7 = arith.constant 0 : index
    %c1 = arith.constant 1 : index
    %c0_8 = arith.constant 0 : index
    %6 = vector.load %arg1[%c0_7, %c1, %c0_8] : memref<1x44x64xbf16, #tpu.memory_space<vmem>>, vector<1x24x64xbf16>
    %7 = vector.shape_cast %6 : vector<1x24x64xbf16> to vector<24x64xbf16>
    %c1_9 = arith.constant 1 : index
    %c0_10 = arith.constant 0 : index
    %c0_11 = arith.constant 0 : index
    %8 = vector.load %arg2[%c1_9, %c0_10, %c0_11] : memref<9x64x64xbf16, #tpu.memory_space<vmem>>, vector<1x64x64xbf16>
    %9 = vector.shape_cast %8 : vector<1x64x64xbf16> to vector<64x64xbf16>
    %cst_12 = arith.constant dense<0.000000e+00> : vector<24x64xf32>
    %10 = tpu.matmul %7, %9, %cst_12 {dimension_numbers = #tpu.dot_dimension_numbers<[1], [0], [0], [1], [0, 0, 1, 1], [], []>} : vector<24x64xbf16>, vector<64x64xbf16>, vector<24x64xf32> -> vector<24x64xf32>
    %c0_13 = arith.constant 0 : index
    %c0_14 = arith.constant 0 : index
    %11 = vector.load %arg5[%c0_13, %c0_14] : memref<24x64xf32, #tpu.memory_space<vmem>>, vector<24x64xf32>
    %12 = arith.addf %11, %10 : vector<24x64xf32>
    %c0_15 = arith.constant 0 : index
    %c0_16 = arith.constant 0 : index
    %13 = vector.load %arg5[%c0_15, %c0_16] : memref<24x64xf32, #tpu.memory_space<vmem>>, vector<24x64xf32>
    tpu.vector_store %arg5[%c0_15, %c0_16], %12 {strides = array<i32>} : memref<24x64xf32, #tpu.memory_space<vmem>>, vector<24x64xf32>,
    %c0_17 = arith.constant 0 : index
    %c2 = arith.constant 2 : index
    %c0_18 = arith.constant 0 : index
    %14 = vector.load %arg1[%c0_17, %c2, %c0_18] : memref<1x44x64xbf16, #tpu.memory_space<vmem>>, vector<1x24x64xbf16>
    %15 = vector.shape_cast %14 : vector<1x24x64xbf16> to vector<24x64xbf16>
    %c2_19 = arith.constant 2 : index
    %c0_20 = arith.constant 0 : index
    %c0_21 = arith.constant 0 : index
    %16 = vector.load %arg2[%c2_19, %c0_20, %c0_21] : memref<9x64x64xbf16, #tpu.memory_space<vmem>>, vector<1x64x64xbf16>
    %17 = vector.shape_cast %16 : vector<1x64x64xbf16> to vector<64x64xbf16>
    %cst_22 = arith.constant dense<0.000000e+00> : vector<24x64xf32>
    %18 = tpu.matmul %15, %17, %cst_22 {dimension_numbers = #tpu.dot_dimension_numbers<[1], [0], [0], [1], [0, 0, 1, 1], [], []>} : vector<24x64xbf16>, vector<64x64xbf16>, vector<24x64xf32> -> vector<24x64xf32>
    %c0_23 = arith.constant 0 : index
    %c0_24 = arith.constant 0 : index
    %19 = vector.load %arg5[%c0_23, %c0_24] : memref<24x64xf32, #tpu.memory_space<vmem>>, vector<24x64xf32>
    %20 = arith.addf %19, %18 : vector<24x64xf32>
    %c0_25 = arith.constant 0 : index
    %c0_26 = arith.constant 0 : index
    %21 = vector.load %arg5[%c0_25, %c0_26] : memref<24x64xf32, #tpu.memory_space<vmem>>, vector<24x64xf32>
    tpu.vector_store %arg5[%c0_25, %c0_26], %20 {strides = array<i32>} : memref<24x64xf32, #tpu.memory_space<vmem>>, vector<24x64xf32>,
    %c0_27 = arith.constant 0 : index
    %c6 = arith.constant 6 : index
    %c0_28 = arith.constant 0 : index
    %22 = vector.load %arg1[%c0_27, %c6, %c0_28] : memref<1x44x64xbf16, #tpu.memory_space<vmem>>, vector<1x24x64xbf16>
    %23 = vector.shape_cast %22 : vector<1x24x64xbf16> to vector<24x64xbf16>
    %c3 = arith.constant 3 : index
    %c0_29 = arith.constant 0 : index
    %c0_30 = arith.constant 0 : index
    %24 = vector.load %arg2[%c3, %c0_29, %c0_30] : memref<9x64x64xbf16, #tpu.memory_space<vmem>>, vector<1x64x64xbf16>
    %25 = vector.shape_cast %24 : vector<1x64x64xbf16> to vector<64x64xbf16>
    %cst_31 = arith.constant dense<0.000000e+00> : vector<24x64xf32>
    %26 = tpu.matmul %23, %25, %cst_31 {dimension_numbers = #tpu.dot_dimension_numbers<[1], [0], [0], [1], [0, 0, 1, 1], [], []>} : vector<24x64xbf16>, vector<64x64xbf16>, vector<24x64xf32> -> vector<24x64xf32>
    %c0_32 = arith.constant 0 : index
    %c0_33 = arith.constant 0 : index
    %27 = vector.load %arg5[%c0_32, %c0_33] : memref<24x64xf32, #tpu.memory_space<vmem>>, vector<24x64xf32>
    %28 = arith.addf %27, %26 : vector<24x64xf32>
    %c0_34 = arith.constant 0 : index
    %c0_35 = arith.constant 0 : index
    %29 = vector.load %arg5[%c0_34, %c0_35] : memref<24x64xf32, #tpu.memory_space<vmem>>, vector<24x64xf32>
    tpu.vector_store %arg5[%c0_34, %c0_35], %28 {strides = array<i32>} : memref<24x64xf32, #tpu.memory_space<vmem>>, vector<24x64xf32>,
    %c0_36 = arith.constant 0 : index
    %c7 = arith.constant 7 : index
    %c0_37 = arith.constant 0 : index
    %30 = vector.load %arg1[%c0_36, %c7, %c0_37] : memref<1x44x64xbf16, #tpu.memory_space<vmem>>, vector<1x24x64xbf16>
    %31 = vector.shape_cast %30 : vector<1x24x64xbf16> to vector<24x64xbf16>
    %c4 = arith.constant 4 : index
    %c0_38 = arith.constant 0 : index
    %c0_39 = arith.constant 0 : index
    %32 = vector.load %arg2[%c4, %c0_38, %c0_39] : memref<9x64x64xbf16, #tpu.memory_space<vmem>>, vector<1x64x64xbf16>
    %33 = vector.shape_cast %32 : vector<1x64x64xbf16> to vector<64x64xbf16>
    %cst_40 = arith.constant dense<0.000000e+00> : vector<24x64xf32>
    %34 = tpu.matmul %31, %33, %cst_40 {dimension_numbers = #tpu.dot_dimension_numbers<[1], [0], [0], [1], [0, 0, 1, 1], [], []>} : vector<24x64xbf16>, vector<64x64xbf16>, vector<24x64xf32> -> vector<24x64xf32>
    %c0_41 = arith.constant 0 : index
    %c0_42 = arith.constant 0 : index
    %35 = vector.load %arg5[%c0_41, %c0_42] : memref<24x64xf32, #tpu.memory_space<vmem>>, vector<24x64xf32>
    %36 = arith.addf %35, %34 : vector<24x64xf32>
    %c0_43 = arith.constant 0 : index
    %c0_44 = arith.constant 0 : index
    %37 = vector.load %arg5[%c0_43, %c0_44] : memref<24x64xf32, #tpu.memory_space<vmem>>, vector<24x64xf32>
    tpu.vector_store %arg5[%c0_43, %c0_44], %36 {strides = array<i32>} : memref<24x64xf32, #tpu.memory_space<vmem>>, vector<24x64xf32>,
    %c0_45 = arith.constant 0 : index
    %c8 = arith.constant 8 : index
    %c0_46 = arith.constant 0 : index
    %38 = vector.load %arg1[%c0_45, %c8, %c0_46] : memref<1x44x64xbf16, #tpu.memory_space<vmem>>, vector<1x24x64xbf16>
    %39 = vector.shape_cast %38 : vector<1x24x64xbf16> to vector<24x64xbf16>
    %c5 = arith.constant 5 : index
    %c0_47 = arith.constant 0 : index
    %c0_48 = arith.constant 0 : index
    %40 = vector.load %arg2[%c5, %c0_47, %c0_48] : memref<9x64x64xbf16, #tpu.memory_space<vmem>>, vector<1x64x64xbf16>
    %41 = vector.shape_cast %40 : vector<1x64x64xbf16> to vector<64x64xbf16>
    %cst_49 = arith.constant dense<0.000000e+00> : vector<24x64xf32>
    %42 = tpu.matmul %39, %41, %cst_49 {dimension_numbers = #tpu.dot_dimension_numbers<[1], [0], [0], [1], [0, 0, 1, 1], [], []>} : vector<24x64xbf16>, vector<64x64xbf16>, vector<24x64xf32> -> vector<24x64xf32>
    %c0_50 = arith.constant 0 : index
    %c0_51 = arith.constant 0 : index
    %43 = vector.load %arg5[%c0_50, %c0_51] : memref<24x64xf32, #tpu.memory_space<vmem>>, vector<24x64xf32>
    %44 = arith.addf %43, %42 : vector<24x64xf32>
    %c0_52 = arith.constant 0 : index
    %c0_53 = arith.constant 0 : index
    %45 = vector.load %arg5[%c0_52, %c0_53] : memref<24x64xf32, #tpu.memory_space<vmem>>, vector<24x64xf32>
    tpu.vector_store %arg5[%c0_52, %c0_53], %44 {strides = array<i32>} : memref<24x64xf32, #tpu.memory_space<vmem>>, vector<24x64xf32>,
    %c0_54 = arith.constant 0 : index
    %c12 = arith.constant 12 : index
    %c0_55 = arith.constant 0 : index
    %46 = vector.load %arg1[%c0_54, %c12, %c0_55] : memref<1x44x64xbf16, #tpu.memory_space<vmem>>, vector<1x24x64xbf16>
    %47 = vector.shape_cast %46 : vector<1x24x64xbf16> to vector<24x64xbf16>
    %c6_56 = arith.constant 6 : index
    %c0_57 = arith.constant 0 : index
    %c0_58 = arith.constant 0 : index
    %48 = vector.load %arg2[%c6_56, %c0_57, %c0_58] : memref<9x64x64xbf16, #tpu.memory_space<vmem>>, vector<1x64x64xbf16>
    %49 = vector.shape_cast %48 : vector<1x64x64xbf16> to vector<64x64xbf16>
    %cst_59 = arith.constant dense<0.000000e+00> : vector<24x64xf32>
    %50 = tpu.matmul %47, %49, %cst_59 {dimension_numbers = #tpu.dot_dimension_numbers<[1], [0], [0], [1], [0, 0, 1, 1], [], []>} : vector<24x64xbf16>, vector<64x64xbf16>, vector<24x64xf32> -> vector<24x64xf32>
    %c0_60 = arith.constant 0 : index
    %c0_61 = arith.constant 0 : index
    %51 = vector.load %arg5[%c0_60, %c0_61] : memref<24x64xf32, #tpu.memory_space<vmem>>, vector<24x64xf32>
    %52 = arith.addf %51, %50 : vector<24x64xf32>
    %c0_62 = arith.constant 0 : index
    %c0_63 = arith.constant 0 : index
    %53 = vector.load %arg5[%c0_62, %c0_63] : memref<24x64xf32, #tpu.memory_space<vmem>>, vector<24x64xf32>
    tpu.vector_store %arg5[%c0_62, %c0_63], %52 {strides = array<i32>} : memref<24x64xf32, #tpu.memory_space<vmem>>, vector<24x64xf32>,
    %c0_64 = arith.constant 0 : index
    %c13 = arith.constant 13 : index
    %c0_65 = arith.constant 0 : index
    %54 = vector.load %arg1[%c0_64, %c13, %c0_65] : memref<1x44x64xbf16, #tpu.memory_space<vmem>>, vector<1x24x64xbf16>
    %55 = vector.shape_cast %54 : vector<1x24x64xbf16> to vector<24x64xbf16>
    %c7_66 = arith.constant 7 : index
    %c0_67 = arith.constant 0 : index
    %c0_68 = arith.constant 0 : index
    %56 = vector.load %arg2[%c7_66, %c0_67, %c0_68] : memref<9x64x64xbf16, #tpu.memory_space<vmem>>, vector<1x64x64xbf16>
    %57 = vector.shape_cast %56 : vector<1x64x64xbf16> to vector<64x64xbf16>
    %cst_69 = arith.constant dense<0.000000e+00> : vector<24x64xf32>
    %58 = tpu.matmul %55, %57, %cst_69 {dimension_numbers = #tpu.dot_dimension_numbers<[1], [0], [0], [1], [0, 0, 1, 1], [], []>} : vector<24x64xbf16>, vector<64x64xbf16>, vector<24x64xf32> -> vector<24x64xf32>
    %c0_70 = arith.constant 0 : index
    %c0_71 = arith.constant 0 : index
    %59 = vector.load %arg5[%c0_70, %c0_71] : memref<24x64xf32, #tpu.memory_space<vmem>>, vector<24x64xf32>
    %60 = arith.addf %59, %58 : vector<24x64xf32>
    %c0_72 = arith.constant 0 : index
    %c0_73 = arith.constant 0 : index
    %61 = vector.load %arg5[%c0_72, %c0_73] : memref<24x64xf32, #tpu.memory_space<vmem>>, vector<24x64xf32>
    tpu.vector_store %arg5[%c0_72, %c0_73], %60 {strides = array<i32>} : memref<24x64xf32, #tpu.memory_space<vmem>>, vector<24x64xf32>,
    %c0_74 = arith.constant 0 : index
    %c14 = arith.constant 14 : index
    %c0_75 = arith.constant 0 : index
    %62 = vector.load %arg1[%c0_74, %c14, %c0_75] : memref<1x44x64xbf16, #tpu.memory_space<vmem>>, vector<1x24x64xbf16>
    %63 = vector.shape_cast %62 : vector<1x24x64xbf16> to vector<24x64xbf16>
    %c8_76 = arith.constant 8 : index
    %c0_77 = arith.constant 0 : index
    %c0_78 = arith.constant 0 : index
    %64 = vector.load %arg2[%c8_76, %c0_77, %c0_78] : memref<9x64x64xbf16, #tpu.memory_space<vmem>>, vector<1x64x64xbf16>
    %65 = vector.shape_cast %64 : vector<1x64x64xbf16> to vector<64x64xbf16>
    %cst_79 = arith.constant dense<0.000000e+00> : vector<24x64xf32>
    %66 = tpu.matmul %63, %65, %cst_79 {dimension_numbers = #tpu.dot_dimension_numbers<[1], [0], [0], [1], [0, 0, 1, 1], [], []>} : vector<24x64xbf16>, vector<64x64xbf16>, vector<24x64xf32> -> vector<24x64xf32>
    %c0_80 = arith.constant 0 : index
    %c0_81 = arith.constant 0 : index
    %67 = vector.load %arg5[%c0_80, %c0_81] : memref<24x64xf32, #tpu.memory_space<vmem>>, vector<24x64xf32>
    %68 = arith.addf %67, %66 : vector<24x64xf32>
    %c0_82 = arith.constant 0 : index
    %c0_83 = arith.constant 0 : index
    %69 = vector.load %arg5[%c0_82, %c0_83] : memref<24x64xf32, #tpu.memory_space<vmem>>, vector<24x64xf32>
    tpu.vector_store %arg5[%c0_82, %c0_83], %68 {strides = array<i32>} : memref<24x64xf32, #tpu.memory_space<vmem>>, vector<24x64xf32>,
    %c0_84 = arith.constant 0 : index
    %c0_85 = arith.constant 0 : index
    %70 = vector.load %arg5[%c0_84, %c0_85] : memref<24x64xf32, #tpu.memory_space<vmem>>, vector<24x64xf32>
    %c0_86 = arith.constant 0 : index
    %c0_87 = arith.constant 0 : index
    %71 = vector.load %arg3[%c0_86, %c0_87] : memref<1x64xf32, #tpu.memory_space<vmem>>, vector<1x64xf32>
    %72 = vector.broadcast %71 : vector<1x64xf32> to vector<24x64xf32>
    %73 = arith.addf %70, %72 : vector<24x64xf32>
    %cst_88 = arith.constant 0.000000e+00 : f32
    %74 = vector.broadcast %cst_88 : f32 to vector<24x64xf32>
    %75 = arith.maximumf %73, %74 : vector<24x64xf32>
    %76 = arith.truncf %75 : vector<24x64xf32> to vector<24x64xbf16>
    %c0_89 = arith.constant 0 : index
    %c0_90 = arith.constant 0 : index
    %c0_91 = arith.constant 0 : index
    %77 = vector.load %arg4[%c0_89, %c0_90, %c0_91] : memref<1x24x64xbf16, #tpu.memory_space<vmem>>, vector<1x24x64xbf16>
    %78 = vector.shape_cast %77 : vector<1x24x64xbf16> to vector<24x64xbf16>
    %79 = vector.shape_cast %76 : vector<24x64xbf16> to vector<1x24x64xbf16>
    tpu.vector_store %arg4[%c0_89, %c0_90, %c0_91], %79 {strides = array<i32>} : memref<1x24x64xbf16, #tpu.memory_space<vmem>>, vector<1x24x64xbf16>,
    return
  }
  func.func @transform_0(%arg0: i32) -> (i32, i32, i32) {
    %c0_i32 = arith.constant 0 : i32
    %c0_i32_0 = arith.constant 0 : i32
    %c0_i32_1 = arith.constant 0 : i32
    return %arg0, %c0_i32, %c0_i32_0 : i32, i32, i32
  }
  func.func @transform_1(%arg0: i32) -> (i32, i32, i32) {
    %c0_i32 = arith.constant 0 : i32
    %c0_i32_0 = arith.constant 0 : i32
    %c0_i32_1 = arith.constant 0 : i32
    %c0_i32_2 = arith.constant 0 : i32
    return %c0_i32, %c0_i32_0, %c0_i32_1 : i32, i32, i32
  }
  func.func @transform_2(%arg0: i32) -> (i32, i32) {
    %c0_i32 = arith.constant 0 : i32
    %c0_i32_0 = arith.constant 0 : i32
    %c0_i32_1 = arith.constant 0 : i32
    return %c0_i32, %c0_i32_0 : i32, i32
  }
  func.func @transform_3(%arg0: i32) -> (i32, i32, i32) {
    %c0_i32 = arith.constant 0 : i32
    %c0_i32_0 = arith.constant 0 : i32
    %c0_i32_1 = arith.constant 0 : i32
    return %arg0, %c0_i32, %c0_i32_0 : i32, i32, i32
  }
}

module attributes {stable_mosaic.version = 11 : i64} {
  func.func @_pred_decode_kernel(%arg0: i32, %arg1: memref<168x64xbf16, #tpu.memory_space<vmem>>, %arg2: memref<64x128xbf16, #tpu.memory_space<vmem>>, %arg3: memref<1x128xf32, #tpu.memory_space<vmem>>, %arg4: memref<168x1xf32, #tpu.memory_space<vmem>>, %arg5: memref<168x1xf32, #tpu.memory_space<vmem>>, %arg6: memref<168x128xf32, #tpu.memory_space<vmem>>) attributes {dimension_semantics = [#tpu.dimension_semantics<parallel>], iteration_bounds = array<i64: 1>, scalar_prefetch = 0 : i64, scratch_operands = 0 : i64, tpu.core_type = #tpu.core_type<tc>, window_params = [{transform_indices = @transform_0, window_bounds = array<i64: 168, 64>}, {pipeline_mode = #tpu.pipeline_mode<synchronous>, transform_indices = @transform_1, window_bounds = array<i64: 64, 128>}, {pipeline_mode = #tpu.pipeline_mode<synchronous>, transform_indices = @transform_2, window_bounds = array<i64: 1, 128>}, {transform_indices = @transform_3, window_bounds = array<i64: 168, 1>}, {transform_indices = @transform_4, window_bounds = array<i64: 168, 1>}, {transform_indices = @transform_5, window_bounds = array<i64: 168, 128>}]} {
    %c0 = arith.constant 0 : index
    %c0_0 = arith.constant 0 : index
    %0 = vector.load %arg1[%c0, %c0_0] : memref<168x64xbf16, #tpu.memory_space<vmem>>, vector<168x64xbf16>
    %c0_1 = arith.constant 0 : index
    %c0_2 = arith.constant 0 : index
    %1 = vector.load %arg2[%c0_1, %c0_2] : memref<64x128xbf16, #tpu.memory_space<vmem>>, vector<64x128xbf16>
    %cst = arith.constant dense<0.000000e+00> : vector<168x128xf32>
    %2 = tpu.matmul %0, %1, %cst {dimension_numbers = #tpu.dot_dimension_numbers<[1], [0], [0], [1], [0, 0, 1, 1], [], []>} : vector<168x64xbf16>, vector<64x128xbf16>, vector<168x128xf32> -> vector<168x128xf32>
    %c0_3 = arith.constant 0 : index
    %c0_4 = arith.constant 0 : index
    %3 = vector.load %arg3[%c0_3, %c0_4] : memref<1x128xf32, #tpu.memory_space<vmem>>, vector<1x128xf32>
    %4 = vector.broadcast %3 : vector<1x128xf32> to vector<168x128xf32>
    %5 = arith.addf %2, %4 : vector<168x128xf32>
    %6 = tpu.iota {dimensions = array<i32: 1>} : vector<168x128xi32>
    %c2_i32 = arith.constant 2 : i32
    %c0_i32 = arith.constant 0 : i32
    %7 = arith.cmpi eq, %c2_i32, %c0_i32 : i32
    %c1_i32 = arith.constant 1 : i32
    %8 = arith.select %7, %c1_i32, %c2_i32 : i32
    %9 = vector.broadcast %8 : i32 to vector<168x128xi32>
    %10 = arith.remsi %6, %9 : vector<168x128xi32>
    %c0_i32_5 = arith.constant 0 : i32
    %11 = vector.broadcast %c0_i32_5 : i32 to vector<168x128xi32>
    %12 = arith.cmpi ne, %10, %11 : vector<168x128xi32>
    %c0_i32_6 = arith.constant 0 : i32
    %13 = vector.broadcast %c0_i32_6 : i32 to vector<168x128xi32>
    %14 = arith.cmpi slt, %10, %13 : vector<168x128xi32>
    %c0_i32_7 = arith.constant 0 : i32
    %15 = arith.cmpi slt, %8, %c0_i32_7 : i32
    %16 = vector.broadcast %15 : i1 to vector<168x128xi1>
    %17 = vector.broadcast %16 : vector<168x128xi1> to vector<168x128xi1>
    %18 = arith.xori %14, %17 : vector<168x128xi1>
    %19 = arith.andi %18, %12 : vector<168x128xi1>
    %20 = vector.broadcast %8 : i32 to vector<168x128xi32>
    %21 = arith.addi %10, %20 : vector<168x128xi32>
    %22 = arith.select %19, %21, %10 : vector<168x128xi1>, vector<168x128xi32>
    %c0_i32_8 = arith.constant 0 : i32
    %23 = vector.broadcast %c0_i32_8 : i32 to vector<168x128xi32>
    %24 = arith.cmpi eq, %22, %23 : vector<168x128xi32>
    %c0_9 = arith.constant 0 : index
    %c0_10 = arith.constant 0 : index
    %25 = vector.load %arg4[%c0_9, %c0_10] : memref<168x1xf32, #tpu.memory_space<vmem>>, vector<168x1xf32>
    %c0_11 = arith.constant 0 : index
    %c0_12 = arith.constant 0 : index
    %26 = vector.load %arg5[%c0_11, %c0_12] : memref<168x1xf32, #tpu.memory_space<vmem>>, vector<168x1xf32>
    %27 = vector.shape_cast %25 : vector<168x1xf32> to vector<168x1xf32>
    %28 = vector.broadcast %27 : vector<168x1xf32> to vector<168x128xf32>
    %29 = vector.shape_cast %26 : vector<168x1xf32> to vector<168x1xf32>
    %30 = vector.broadcast %29 : vector<168x1xf32> to vector<168x128xf32>
    %31 = arith.select %24, %28, %30 : vector<168x128xi1>, vector<168x128xf32>
    %c2_i32_13 = arith.constant 2 : i32
    %32 = vector.broadcast %c2_i32_13 : i32 to vector<168x128xi32>
    %33 = arith.cmpi slt, %6, %32 : vector<168x128xi32>
    %cst_14 = arith.constant -1.000000e+00 : f32
    %cst_15 = arith.constant 1.000000e+00 : f32
    %34 = vector.broadcast %cst_14 : f32 to vector<168x128xf32>
    %35 = vector.broadcast %cst_15 : f32 to vector<168x128xf32>
    %36 = arith.select %33, %34, %35 : vector<168x128xi1>, vector<168x128xf32>
    %37 = math.exp %5 : vector<168x128xf32>
    %38 = arith.mulf %36, %37 : vector<168x128xf32>
    %39 = arith.addf %31, %38 : vector<168x128xf32>
    %c4_i32 = arith.constant 4 : i32
    %40 = vector.broadcast %c4_i32 : i32 to vector<168x128xi32>
    %41 = arith.cmpi slt, %6, %40 : vector<168x128xi32>
    %42 = arith.select %41, %39, %5 : vector<168x128xi1>, vector<168x128xf32>
    %c0_16 = arith.constant 0 : index
    %c0_17 = arith.constant 0 : index
    %43 = vector.load %arg6[%c0_16, %c0_17] : memref<168x128xf32, #tpu.memory_space<vmem>>, vector<168x128xf32>
    tpu.vector_store %arg6[%c0_16, %c0_17], %42 {strides = array<i32>} : memref<168x128xf32, #tpu.memory_space<vmem>>, vector<168x128xf32>,
    return
  }
  func.func @transform_0(%arg0: i32) -> (i32, i32) {
    %c0_i32 = arith.constant 0 : i32
    %c0_i32_0 = arith.constant 0 : i32
    return %arg0, %c0_i32 : i32, i32
  }
  func.func @transform_1(%arg0: i32) -> (i32, i32) {
    %c0_i32 = arith.constant 0 : i32
    %c0_i32_0 = arith.constant 0 : i32
    %c0_i32_1 = arith.constant 0 : i32
    return %c0_i32, %c0_i32_0 : i32, i32
  }
  func.func @transform_2(%arg0: i32) -> (i32, i32) {
    %c0_i32 = arith.constant 0 : i32
    %c0_i32_0 = arith.constant 0 : i32
    %c0_i32_1 = arith.constant 0 : i32
    return %c0_i32, %c0_i32_0 : i32, i32
  }
  func.func @transform_3(%arg0: i32) -> (i32, i32) {
    %c0_i32 = arith.constant 0 : i32
    %c0_i32_0 = arith.constant 0 : i32
    return %arg0, %c0_i32 : i32, i32
  }
  func.func @transform_4(%arg0: i32) -> (i32, i32) {
    %c0_i32 = arith.constant 0 : i32
    %c0_i32_0 = arith.constant 0 : i32
    return %arg0, %c0_i32 : i32, i32
  }
  func.func @transform_5(%arg0: i32) -> (i32, i32) {
    %c0_i32 = arith.constant 0 : i32
    %c0_i32_0 = arith.constant 0 : i32
    return %arg0, %c0_i32 : i32, i32
  }
}

module attributes {stable_mosaic.version = 11 : i64} {
  func.func @_matmul_bias_act_kernel(%arg0: i32, %arg1: memref<168x64xbf16, #tpu.memory_space<vmem>>, %arg2: memref<64x128xbf16, #tpu.memory_space<vmem>>, %arg3: memref<1x128xf32, #tpu.memory_space<vmem>>, %arg4: memref<168x128xf32, #tpu.memory_space<vmem>>) attributes {dimension_semantics = [#tpu.dimension_semantics<parallel>], iteration_bounds = array<i64: 1>, scalar_prefetch = 0 : i64, scratch_operands = 0 : i64, tpu.core_type = #tpu.core_type<tc>, window_params = [{transform_indices = @transform_0, window_bounds = array<i64: 168, 64>}, {pipeline_mode = #tpu.pipeline_mode<synchronous>, transform_indices = @transform_1, window_bounds = array<i64: 64, 128>}, {pipeline_mode = #tpu.pipeline_mode<synchronous>, transform_indices = @transform_2, window_bounds = array<i64: 1, 128>}, {transform_indices = @transform_3, window_bounds = array<i64: 168, 128>}]} {
    %c0 = arith.constant 0 : index
    %c0_0 = arith.constant 0 : index
    %0 = vector.load %arg1[%c0, %c0_0] : memref<168x64xbf16, #tpu.memory_space<vmem>>, vector<168x64xbf16>
    %c0_1 = arith.constant 0 : index
    %c0_2 = arith.constant 0 : index
    %1 = vector.load %arg2[%c0_1, %c0_2] : memref<64x128xbf16, #tpu.memory_space<vmem>>, vector<64x128xbf16>
    %cst = arith.constant dense<0.000000e+00> : vector<168x128xf32>
    %2 = tpu.matmul %0, %1, %cst {dimension_numbers = #tpu.dot_dimension_numbers<[1], [0], [0], [1], [0, 0, 1, 1], [], []>} : vector<168x64xbf16>, vector<64x128xbf16>, vector<168x128xf32> -> vector<168x128xf32>
    %c0_3 = arith.constant 0 : index
    %c0_4 = arith.constant 0 : index
    %3 = vector.load %arg3[%c0_3, %c0_4] : memref<1x128xf32, #tpu.memory_space<vmem>>, vector<1x128xf32>
    %4 = vector.broadcast %3 : vector<1x128xf32> to vector<168x128xf32>
    %5 = arith.addf %2, %4 : vector<168x128xf32>
    %c0_5 = arith.constant 0 : index
    %c0_6 = arith.constant 0 : index
    %6 = vector.load %arg4[%c0_5, %c0_6] : memref<168x128xf32, #tpu.memory_space<vmem>>, vector<168x128xf32>
    tpu.vector_store %arg4[%c0_5, %c0_6], %5 {strides = array<i32>} : memref<168x128xf32, #tpu.memory_space<vmem>>, vector<168x128xf32>,
    return
  }
  func.func @transform_0(%arg0: i32) -> (i32, i32) {
    %c0_i32 = arith.constant 0 : i32
    %c0_i32_0 = arith.constant 0 : i32
    return %arg0, %c0_i32 : i32, i32
  }
  func.func @transform_1(%arg0: i32) -> (i32, i32) {
    %c0_i32 = arith.constant 0 : i32
    %c0_i32_0 = arith.constant 0 : i32
    %c0_i32_1 = arith.constant 0 : i32
    return %c0_i32, %c0_i32_0 : i32, i32
  }
  func.func @transform_2(%arg0: i32) -> (i32, i32) {
    %c0_i32 = arith.constant 0 : i32
    %c0_i32_0 = arith.constant 0 : i32
    %c0_i32_1 = arith.constant 0 : i32
    return %c0_i32, %c0_i32_0 : i32, i32
  }
  func.func @transform_3(%arg0: i32) -> (i32, i32) {
    %c0_i32 = arith.constant 0 : i32
    %c0_i32_0 = arith.constant 0 : i32
    return %arg0, %c0_i32 : i32, i32
  }
}

</mosaic_0001>

<bundles_post_ra>
// kernel: fcos_rt_forward.52
= control target key start
LH: loop header
LB: loop body
LE: loop exit
PB: predicated region body
PF: predicated region fallthrough
CT: control target
= control target key end

     0   :  { %s1385_s12 = smov 0   ;;  %s1600_s0 = inlined_call_operand.vmem [shape: bf16[2,24,64], index: 0, kind: input, shape index: {}]   ;;  %s1601_s1 = inlined_call_operand.vmem [shape: bf16[9,64,64], index: 1, kind: input, shape index: {}]   ;;  %s1602_s2 = inlined_call_operand.vmem [shape: f32[1,64], index: 2, kind: input, shape index: {}]   ;;  %s1603_s3 = inlined_call_operand.vmem [shape: bf16[2,8,64], index: 3, kind: output, shape index: {}]  }
   0x1 LB: > { %s1022_s13 = sadd.s32 4294967295, %s1361_s12   ;;  %p1026_p0 = scmp.ge.s32.totalorder %s1361_s12, 1  ;;  %s1361_s12 = sphi %s1385_s12, %s13_s12  }
   0x2   : > { %p137_p1 = scmp.lt.s32.totalorder %s1361_s12, 3 }
   0x4   : > { %p138_p2 = pnand %p1026_p0, %p137_p1 }
   0x5   : > { %p160_p3 = scmp.lt.s32.totalorder (!%p138_p2), %s1022_s13, 1 }
   0x6   : > { %141 = sbr.rel (%p138_p2) target bundleno = 316 (0x13c), region = 32 }
   0xb   : > { %v1312_v0 = vld [vmem:[%s1601_s1 + $0x18] sm:$0xff]   ;;  %v1363_v1 = vmov 0.0   ;;  %v1314_v3 = vld [vmem:[%s1601_s1 + $0x10] sm:$0xff]   ;;  %vm1364_vm0 = vmmov 0   ;;  %s1605_s13 = smov (!%p160_p3, %s1022_s13), 1  ;;  %v1316_v5 = vld [vmem:[%s1601_s1 + $0x8] sm:$0xff]  }
   0xc   : > { %1193 = vmatprep.subr.bf16.mxu0 %v1363_v1  ;;  %1205 = vmatprep.subr.bf16.mxu1 %v1363_v1  ;;  %v1313_v2 = vld [vmem:[%s1601_s1 + $0x38] sm:$0xff]   ;;  %v1315_v4 = vld [vmem:[%s1601_s1 + $0x30] sm:$0xff]   ;;  %s1301_s24 = smul.u32 12, %s1605_s13  ;;  %v1317_v6 = vld [vmem:[%s1601_s1 + $0x28] sm:$0xff]   ;;  %vm203_vm1 = vcmask 523264   ;;  %s1028_s18 = sshll.u32 %s1605_s13, 2 }
   0xd   : > { %1194 = vmatpush3.bf16.msra.mxu0 %v1312_v0  ;;  %1201 = vmatprep.mubr.msk.bf16.mxu0 %vm1364_vm0, %v1363_v1  ;;  %v1318_v7 = vld [vmem:[%s1601_s1] sm:$0xff]   ;;  %v1320_v13 = vld [vmem:[%s1601_s1 + $0x58] sm:$0xff]   ;;  %v1322_v17 = vld [vmem:[%s1601_s1 + $0x50] sm:$0xff]   ;;  %s168_s21 = scalar_lea.vmem %s1603_s3, %s1028_s18  ;;  %vm967_vm2 = vcmask 519168  }
   0xe   : > { %1206 = vmatpush3.bf16.msra.mxu1 %v1313_v2  ;;  %1195 = vmatprep.subr.bf16.mxu0 %v1363_v1  ;;  %s1427_s29 = scalar_lea.vmem %s1600_s0, %s1301_s24  ;;  %v1319_v9 = vld [vmem:[%s1601_s1 + $0x20] sm:$0xff]   ;;  %v1323_v15 = vld [vmem:[%s1601_s1 + $0x78] sm:$0xff]   ;;  %v1325_v18 = vld [vmem:[%s1601_s1 + $0x70] sm:$0xff]  }
   0xf   : > { %1207 = vmatprep.subr.bf16.mxu1 %v1363_v1  ;;  %1213 = vmatprep.mubr.msk.bf16.mxu1 %vm1364_vm0, %v1363_v1  ;;  %v1321_v8 = vld [vmem:[%s1427_s29] sm:$0x1f]   ;;  %v1324_v19 = vld [vmem:[%s1601_s1 + $0x48] sm:$0xff]   ;;  %v1329_v26 = vld [vmem:[%s1601_s1 + $0x98] sm:$0xff]  }
  0x10   : > { %v170_v10 = vld [vmem:[%s1427_s29] sm:$0xf]  ;;  %v265_v11 = vshrl.u32 %v1321_v8, 16  ;;  %v267_v12 = vshll.u32 %v1321_v8, 16  ;;  %v1327_v20 = vld [vmem:[%s1601_s1 + $0x68] sm:$0xff]   ;;  %v1334_v28 = vld [vmem:[%s1601_s1 + $0xb8] sm:$0xff]  }
  0x11   : > { %1196 = vmatpush3.bf16.msra.mxu0 %v1314_v3  ;;  %v1328_v21 = vld [vmem:[%s1427_s29] sm:$0x1e]   ;;  %v1331_v30 = vld [vmem:[%s1601_s1 + $0x90] sm:$0xff]   ;;  %v1333_v34 = vld [vmem:[%s1601_s1 + $0x88] sm:$0xff]  }
  0x12   : > { %1208 = vmatpush3.bf16.msra.mxu1 %v1315_v4  ;;  %1197 = vmatprep.subr.bf16.mxu0 %v1363_v1  ;;  %v269_v14 = vrot.slane %v267_v12, 1  ;;  %v1326_v22 = vld [vmem:[%s1601_s1 + $0x40] sm:$0xff]   ;;  %v357_v25 = vrot.slane %v1328_v21, 1  ;;  %v1336_v31 = vld [vmem:[%s1601_s1 + $0xb0] sm:$0xff]   ;;  %v1338_v35 = vld [vmem:[%s1601_s1 + $0xa8] sm:$0xff]  }
  0x13   : > { %1209 = vmatprep.subr.bf16.mxu1 %v1363_v1  ;;  %v1332_v23 = vld [vmem:[%s1427_s29] sm:$0x3c]   ;;  %v1339_v42 = vld [vmem:[%s1601_s1 + $0xd8] sm:$0xff]   ;;  %v1341_v45 = vld [vmem:[%s1601_s1 + $0xd0] sm:$0xff]  }
  0x14   : > { %v270_v16 = vor.u32 %v269_v14, %v265_v11  ;;  %v1330_v24 = vld [vmem:[%s1601_s1 + $0x60] sm:$0xff]   ;;  %v444_v27 = vrot.slane %v1332_v23, 2  ;;  %v1344_v44 = vld [vmem:[%s1601_s1 + $0xf8] sm:$0xff]   ;;  %v1346_v47 = vld [vmem:[%s1601_s1 + $0xf0] sm:$0xff]  }
  0x15   : > { %1198 = vmatpush3.bf16.msra.mxu0 %v1316_v5  ;;  %v1337_v29 = vld [vmem:[%s1427_s29] sm:$0x7c]   ;;  %v1343_v48 = vld [vmem:[%s1601_s1 + $0xc8] sm:$0xff]   ;;  %v1348_v56 = vld [vmem:[%s1601_s1 + $0x118] sm:$0xff]  }
  0x16   : > { %1210 = vmatpush3.bf16.msra.mxu1 %v1317_v6  ;;  %1199 = vmatprep.subr.bf16.mxu0 %v1363_v1  ;;  %v532_v32 = vshrl.u32 %v1337_v29, 16  ;;  %v535_v33 = vshll.u32 %v1337_v29, 16  ;;  %v1335_v38 = vld [vmem:[%s1601_s1 + $0x80] sm:$0xff]   ;;  %v1347_v50 = vld [vmem:[%s1601_s1 + $0xe8] sm:$0xff]   ;;  %v1350_v58 = vld [vmem:[%s1601_s1 + $0x110] sm:$0xff]  }
  0x17   : > { %1211 = vmatprep.subr.bf16.mxu1 %v1363_v1  ;;  %v1342_v39 = vld [vmem:[%s1427_s29] sm:$0x78]   ;;  %v1352_v59 = vld [vmem:[%s1601_s1 + $0x108] sm:$0xff]  }
  0x18   : > { %v534_v36 = vrot.slane %v532_v32, 2  ;;  %v537_v37 = vrot.slane %v535_v33, 3  ;;  %v1340_v40 = vld [vmem:[%s1601_s1 + $0xa0] sm:$0xff]   ;;  %v625_v43 = vrot.slane %v1342_v39, 3 }
  0x19   : > { %1200 = vmatpush3.bf16.msra.mxu0 %v1318_v7  ;;  %v1351_v46 = vld [vmem:[%s1427_s29 + $0x4] sm:$0x1f]  }
  0x1a   : > { %1212 = vmatpush3.bf16.msra.mxu1 %v1319_v9  ;;  %1217 = vmatprep.subr.bf16.mxu0 %v1363_v1  ;;  %v538_v41 = vor.u32 %v537_v37, %v534_v36  ;;  %v795_v49 = vshll.u32 %v1351_v46, 16  ;;  %v1345_v51 = vld [vmem:[%s1601_s1 + $0xc0] sm:$0xff]   ;;  %v793_v52 = vshrl.u32 %v1351_v46, 16 }
  0x1b   : > { %1229 = vmatprep.subr.bf16.mxu1 %v1363_v1  ;;  %v1349_v54 = vld [vmem:[%s1601_s1 + $0xe0] sm:$0xff]  }
  0x1c   : > { %1202 = vmatmul.mubr.msk.bf16.vlgmr.msra.gmra.mxu0 %vm203_vm1, %v170_v10  ;;  %v797_v53 = vrot.slane %v795_v49, 1  ;;  %v696_v55 = vld [vmem:[%s1427_s29 + $0x4] sm:$0xf] }
  0x1d   : > { %1218 = vmatpush3.bf16.msra.mxu0 %v1320_v13  ;;  %1214 = vmatmul.mubr.msk.bf16.vlgmr.msra.gmra.mxu1 %vm203_vm1, %v270_v16  ;;  %v1354_v60 = vld [vmem:[%s1427_s29 + $0x4] sm:$0x1e]  }
  0x1e   : > { %1219 = vmatprep.subr.bf16.mxu0 %v1363_v1  ;;  %1230 = vmatpush3.bf16.msra.mxu1 %v1323_v15  ;;  %v798_v57 = vor.u32 %v797_v53, %v793_v52  ;;  %v1353_v61 = vld [vmem:[%s1601_s1 + $0x100] sm:$0xff]   ;;  %v885_v62 = vrot.slane %v1354_v60, 1 }
  0x1f   : > { %1231 = vmatprep.subr.bf16.mxu1 %v1363_v1  ;;  %1225 = vmatprep.mubr.msk.bf16.mxu0 %vm1364_vm0, %v1363_v1 }
  0x20   : > { %1237 = vmatprep.mubr.msk.bf16.mxu1 %vm1364_vm0, %v1363_v1 }
  0x21   : > { %1220 = vmatpush3.bf16.msra.mxu0 %v1322_v17 }
  0x22   : > { %1221 = vmatprep.subr.bf16.mxu0 %v1363_v1  ;;  %1232 = vmatpush3.bf16.msra.mxu1 %v1325_v18 }
  0x23   : > { %1233 = vmatprep.subr.bf16.mxu1 %v1363_v1 }
  0x25   : > { %1222 = vmatpush3.bf16.msra.mxu0 %v1324_v19 }
  0x26   : > { %1223 = vmatprep.subr.bf16.mxu0 %v1363_v1  ;;  %1234 = vmatpush3.bf16.msra.mxu1 %v1327_v20 }
  0x27   : > { %1235 = vmatprep.subr.bf16.mxu1 %v1363_v1 }
  0x29   : > { %1224 = vmatpush3.bf16.msra.mxu0 %v1326_v22 }
  0x2a   : > { %1241 = vmatprep.subr.bf16.mxu0 %v1363_v1  ;;  %1236 = vmatpush3.bf16.msra.mxu1 %v1330_v24 }
  0x2b   : > { %1253 = vmatprep.subr.bf16.mxu1 %v1363_v1 }
  0x2c   : > { %1226 = vmatmul.mubr.msk.bf16.vlgmr.msra.gmra.mxu0 %vm203_vm1, %v357_v25 }
  0x2d   : > { %1242 = vmatpush3.bf16.msra.mxu0 %v1329_v26  ;;  %1238 = vmatmul.mubr.msk.bf16.vlgmr.msra.gmra.mxu1 %vm203_vm1, %v444_v27 }
  0x2e   : > { %1243 = vmatprep.subr.bf16.mxu0 %v1363_v1  ;;  %1254 = vmatpush3.bf16.msra.mxu1 %v1334_v28 }
  0x2f   : > { %1255 = vmatprep.subr.bf16.mxu1 %v1363_v1  ;;  %1249 = vmatprep.mubr.msk.bf16.mxu0 %vm1364_vm0, %v1363_v1 }
  0x30   : > { %1261 = vmatprep.mubr.msk.bf16.mxu1 %vm1364_vm0, %v1363_v1 }
  0x31   : > { %1244 = vmatpush3.bf16.msra.mxu0 %v1331_v30 }
  0x32   : > { %1245 = vmatprep.subr.bf16.mxu0 %v1363_v1  ;;  %1256 = vmatpush3.bf16.msra.mxu1 %v1336_v31 }
  0x33   : > { %1257 = vmatprep.subr.bf16.mxu1 %v1363_v1 }
  0x35   : > { %1246 = vmatpush3.bf16.msra.mxu0 %v1333_v34 }
  0x36   : > { %1247 = vmatprep.subr.bf16.mxu0 %v1363_v1  ;;  %1258 = vmatpush3.bf16.msra.mxu1 %v1338_v35 }
  0x37   : > { %1259 = vmatprep.subr.bf16.mxu1 %v1363_v1 }
  0x39   : > { %1248 = vmatpush3.bf16.msra.mxu0 %v1335_v38 }
  0x3a   : > { %1265 = vmatprep.subr.bf16.mxu0 %v1363_v1  ;;  %1260 = vmatpush3.bf16.msra.mxu1 %v1340_v40 }
  0x3b   : > { %1277 = vmatprep.subr.bf16.mxu1 %v1363_v1 }
  0x3c   : > { %1250 = vmatmul.mubr.msk.bf16.vlgmr.msra.gmra.mxu0 %vm203_vm1, %v538_v41 }
  0x3d   : > { %1266 = vmatpush3.bf16.msra.mxu0 %v1339_v42  ;;  %1262 = vmatmul.mubr.msk.bf16.vlgmr.msra.gmra.mxu1 %vm203_vm1, %v625_v43 }
  0x3e   : > { %1267 = vmatprep.subr.bf16.mxu0 %v1363_v1  ;;  %1278 = vmatpush3.bf16.msra.mxu1 %v1344_v44 }
  0x3f   : > { %1279 = vmatprep.subr.bf16.mxu1 %v1363_v1  ;;  %1273 = vmatprep.mubr.msk.bf16.mxu0 %vm1364_vm0, %v1363_v1 }
  0x40   : > { %1285 = vmatprep.mubr.msk.bf16.mxu1 %vm1364_vm0, %v1363_v1 }
  0x41   : > { %1268 = vmatpush3.bf16.msra.mxu0 %v1341_v45 }
  0x42   : > { %1269 = vmatprep.subr.bf16.mxu0 %v1363_v1  ;;  %1280 = vmatpush3.bf16.msra.mxu1 %v1346_v47 }
  0x43   : > { %1281 = vmatprep.subr.bf16.mxu1 %v1363_v1 }
  0x45   : > { %1270 = vmatpush3.bf16.msra.mxu0 %v1343_v48 }
  0x46   : > { %1271 = vmatprep.subr.bf16.mxu0 %v1363_v1  ;;  %1282 = vmatpush3.bf16.msra.mxu1 %v1347_v50 }
  0x47   : > { %1283 = vmatprep.subr.bf16.mxu1 %v1363_v1 }
  0x49   : > { %1272 = vmatpush3.bf16.msra.mxu0 %v1345_v51  ;;  %v1145_v51 = vld [vmem:[%s1602_s2] ss:$0 sm:$0xff] }
  0x4a   : > { %1289 = vmatprep.subr.bf16.mxu0 %v1363_v1  ;;  %1284 = vmatpush3.bf16.msra.mxu1 %v1349_v54 }
  0x4c   : > { %1274 = vmatmul.mubr.msk.bf16.vlgmr.msra.gmra.mxu0 %vm203_vm1, %v696_v55 }
  0x4d   : > { %1290 = vmatpush3.bf16.msra.mxu0 %v1348_v56  ;;  %1286 = vmatmul.mubr.msk.bf16.vlgmr.msra.gmra.mxu1 %vm203_vm1, %v798_v57 }
  0x4e   : > { %1291 = vmatprep.subr.bf16.mxu0 %v1363_v1  ;;  %1297 = vmatprep.mubr.msk.bf16.mxu0 %vm1364_vm0, %v1363_v1 }
  0x51   : > { %1292 = vmatpush3.bf16.msra.mxu0 %v1350_v58 }
  0x52   : > { %1293 = vmatprep.subr.bf16.mxu0 %v1363_v1 }
  0x55   : > { %1294 = vmatpush3.bf16.msra.mxu0 %v1352_v59 }
  0x56   : > { %1295 = vmatprep.subr.bf16.mxu0 %v1363_v1 }
  0x59   : > { %1296 = vmatpush3.bf16.msra.mxu0 %v1353_v61 }
  0x5c   : > { %1298 = vmatmul.mubr.msk.bf16.vlgmr.msra.gmra.mxu0 %vm203_vm1, %v885_v62 }
  0xdc   : > { %v241_v63 = vpop.f32.mrf.mxu0 }
  0xdd   : > { %247 = vst.msk [vmem:[#allocation2] sm:$0xff] %vm203_vm1, %v241_v63  ;;  %v332_v0 = vpop.f32.mrf.mxu1 }
  0xde   : > { %v1203_v2 = vpop.f32.mrf.mxu0 }
  0xdf   : > { %v1215_v3 = vpop.f32.mrf.mxu1 }
  0xe0   : > { %v244_v4 = vpop.f32.mrf.mxu0 }
  0xe1   : > { %v335_v5 = vpop.f32.mrf.mxu1 }
  0xe2   : > { %v1204_v6 = vpop.f32.mrf.mxu0 }
  0xe3   : > { %v1216_v7 = vpop.f32.mrf.mxu1 }
  0xe4   : > { %v338_v8 = vld [vmem:[#allocation2] sm:$0xff] }
  0xe5   : > { %v339_v9 = vadd.f32 %v338_v8, %v332_v0 }
  0xe7   : > { %340 = vst.msk [vmem:[#allocation2] sm:$0xff] %vm203_vm1, %v339_v9 }
  0xec   : > { %v419_v10 = vpop.f32.mrf.mxu0 }
  0xed   : > { %v506_v1 = vpop.f32.mrf.mxu1 }
  0xee   : > { %v425_v11 = vld [vmem:[#allocation2] sm:$0xff]  ;;  %v1227_v12 = vpop.f32.mrf.mxu0 }
  0xef   : > { %v426_v13 = vadd.f32 %v425_v11, %v419_v10  ;;  %v1239_v14 = vpop.f32.mrf.mxu1 }
  0xf0   : > { %v422_v15 = vpop.f32.mrf.mxu0 }
  0xf1   : > { %427 = vst.msk [vmem:[#allocation2] sm:$0xff] %vm203_vm1, %v426_v13  ;;  %v509_v16 = vpop.f32.mrf.mxu1 }
  0xf2   : > { %v1228_v17 = vpop.f32.mrf.mxu0 }
  0xf3   : > { %v1240_v18 = vpop.f32.mrf.mxu1 }
  0xf8   : > { %v512_v19 = vld [vmem:[#allocation2] sm:$0xff] }
  0xf9   : > { %v513_v20 = vadd.f32 %v512_v19, %v506_v1 }
  0xfb   : > { %514 = vst.msk [vmem:[#allocation2] sm:$0xff] %vm203_vm1, %v513_v20 }
  0xfc   : > { %v600_v21 = vpop.f32.mrf.mxu0 }
  0xfd   : > { %v687_v22 = vpop.f32.mrf.mxu1 }
  0xfe   : > { %v1251_v23 = vpop.f32.mrf.mxu0 }
  0xff   : > { %v1263_v24 = vpop.f32.mrf.mxu1 }
 0x100   : > { %v603_v25 = vpop.f32.mrf.mxu0 }
 0x101   : > { %v690_v26 = vpop.f32.mrf.mxu1 }
 0x102   : > { %v606_v27 = vld [vmem:[#allocation2] sm:$0xff]  ;;  %v1252_v28 = vpop.f32.mrf.mxu0 }
 0x103   : > { %v607_v29 = vadd.f32 %v606_v27, %v600_v21  ;;  %v1264_v30 = vpop.f32.mrf.mxu1 }
 0x105   : > { %608 = vst.msk [vmem:[#allocation2] sm:$0xff] %vm203_vm1, %v607_v29 }
 0x10c   : > { %v693_v31 = vld [vmem:[#allocation2] sm:$0xff]  ;;  %v767_v32 = vpop.f32.mrf.mxu0 }
 0x10d   : > { %v694_v33 = vadd.f32 %v693_v31, %v687_v22  ;;  %v860_v34 = vpop.f32.mrf.mxu1 }
 0x10e   : > { %v1275_v35 = vpop.f32.mrf.mxu0 }
 0x10f   : > { %695 = vst.msk [vmem:[#allocation2] sm:$0xff] %vm203_vm1, %v694_v33  ;;  %v1287_v36 = vpop.f32.mrf.mxu1 }
 0x110   : > { %v770_v37 = vpop.f32.mrf.mxu0 }
 0x111   : > { %v863_v38 = vpop.f32.mrf.mxu1 }
 0x112   : > { %v1276_v39 = vpop.f32.mrf.mxu0 }
 0x113   : > { %v1288_v40 = vpop.f32.mrf.mxu1 }
 0x116   : > { %v773_v41 = vld [vmem:[#allocation2] sm:$0xff] }
 0x117   : > { %v774_v42 = vadd.f32 %v773_v41, %v767_v32 }
 0x119   : > { %775 = vst.msk [vmem:[#allocation2] sm:$0xff] %vm203_vm1, %v774_v42 }
 0x11c   : > { %v947_v43 = vpop.f32.mrf.mxu0 }
 0x11e   : > { %v1299_v44 = vpop.f32.mrf.mxu0 }
 0x120   : > { %v866_v45 = vld [vmem:[#allocation2] sm:$0xff]  ;;  %v950_v46 = vpop.f32.mrf.mxu0 }
 0x121   : > { %v867_v47 = vadd.f32 %v866_v45, %v860_v34 }
 0x122   : > { %v1300_v48 = vpop.f32.mrf.mxu0 }
 0x123   : > { %868 = vst.msk [vmem:[#allocation2] sm:$0xff] %vm203_vm1, %v867_v47 }
 0x12a   : > { %v953_v49 = vld [vmem:[#allocation2] sm:$0xff] }
 0x12b   : > { %v954_v50 = vadd.f32 %v953_v49, %v947_v43 }
 0x12d   : > { %955 = vst.msk [vmem:[#allocation2] sm:$0xff] %vm203_vm1, %v954_v50 }
 0x134   : > { %v956_v52 = vld [vmem:[#allocation2] sm:$0xff] }
 0x135   : > { %v964_v53 = vadd.f32 %v1145_v51, %v956_v52 }
 0x137   : > { %v965_v54 = vmax.f32 %v964_v53, 0.0 }
 0x139   : > { %v966_v55 = vpack.c.bf16 %v965_v54, %v965_v54 }
 0x13b   : > { %968 = vst.msk [vmem:[%s168_s21] sm:$0xf] %vm967_vm2, %v966_v55 }
 0x13c PF: > { %s13_s12 = sadd.s32 1, %s1361_s12  }
 0x13d   : > { %p10_p4 = scmp.ge.s32.totalorder %s13_s12, 4  }
 0x13f   :  { %12 = sbr.rel (!%p10_p4) target bundleno = 1 (0x1), region = 70 }

// kernel: fcos_rt_forward.47
= control target key start
LH: loop header
LB: loop body
LE: loop exit
PB: predicated region body
PF: predicated region fallthrough
CT: control target
= control target key end

     0   :  { %vm2136_vm0 = vcmask 519168   ;;  %s3477_s1 = inlined_call_operand.vmem [shape: bf16[3072,64], index: 1, kind: input, shape index: {}]   ;;  %s3478_s0 = inlined_call_operand.vmem [shape: bf16[8,3072], index: 0, kind: input, shape index: {}]   ;;  %s3479_s2 = inlined_call_operand.vmem [shape: f32[1,64], index: 2, kind: input, shape index: {}]   ;;  %s3480_s3 = inlined_call_operand.vmem [shape: bf16[8,64], index: 3, kind: output, shape index: {}]  }
   0x1   :  { %v2623_v0 = vld [vmem:[%s3477_s1 + $0x78] sm:$0xff]   ;;  %v2627_v4 = vld [vmem:[%s3477_s1 + $0x70] sm:$0xff]   ;;  %v2631_v8 = vld [vmem:[%s3477_s1 + $0x68] sm:$0xff]  }
   0x2   :  { %v2624_v1 = vld [vmem:[%s3477_s1 + $0xf8] sm:$0xff]   ;;  %2359 = vmatprep.subr.bf16.mxu0 %v2623_v0  ;;  %v2628_v5 = vld [vmem:[%s3477_s1 + $0xf0] sm:$0xff]   ;;  %v2632_v9 = vld [vmem:[%s3477_s1 + $0xe8] sm:$0xff]  }
   0x3   :  { %v2625_v2 = vld [vmem:[%s3477_s1 + $0x38] sm:$0xff]   ;;  %2381 = vmatprep.subr.bf16.mxu1 %v2624_v1  ;;  %v2629_v6 = vld [vmem:[%s3477_s1 + $0x30] sm:$0xff]   ;;  %v2633_v10 = vld [vmem:[%s3477_s1 + $0x28] sm:$0xff]  }
   0x4   :  { %v2626_v3 = vld [vmem:[%s3477_s1 + $0xb8] sm:$0xff]   ;;  %2360 = vmatpush3.bf16.msra.mxu0 %v2625_v2  ;;  %v2630_v7 = vld [vmem:[%s3477_s1 + $0xb0] sm:$0xff]   ;;  %v2634_v11 = vld [vmem:[%s3477_s1 + $0xa8] sm:$0xff]  }
   0x5   :  { %2382 = vmatpush3.bf16.msra.mxu1 %v2626_v3  ;;  %2361 = vmatprep.subr.bf16.mxu0 %v2627_v4  ;;  %v2635_v12 = vld [vmem:[%s3477_s1 + $0x60] sm:$0xff]   ;;  %v2639_v16 = vld [vmem:[%s3477_s1 + $0x58] sm:$0xff]   ;;  %v2643_v20 = vld [vmem:[%s3477_s1 + $0x50] sm:$0xff]  }
   0x6   :  { %2383 = vmatprep.subr.bf16.mxu1 %v2628_v5  ;;  %v2636_v13 = vld [vmem:[%s3477_s1 + $0xe0] sm:$0xff]   ;;  %v2640_v17 = vld [vmem:[%s3477_s1 + $0xd8] sm:$0xff]   ;;  %v2644_v21 = vld [vmem:[%s3477_s1 + $0xd0] sm:$0xff]  }
   0x7   :  { %v2637_v14 = vld [vmem:[%s3477_s1 + $0x20] sm:$0xff]   ;;  %v2641_v18 = vld [vmem:[%s3477_s1 + $0x18] sm:$0xff]   ;;  %v2645_v22 = vld [vmem:[%s3477_s1 + $0x10] sm:$0xff]  }
   0x8   :  { %2362 = vmatpush3.bf16.msra.mxu0 %v2629_v6  ;;  %v2638_v15 = vld [vmem:[%s3477_s1 + $0xa0] sm:$0xff]   ;;  %v2642_v19 = vld [vmem:[%s3477_s1 + $0x98] sm:$0xff]   ;;  %v2646_v23 = vld [vmem:[%s3477_s1 + $0x90] sm:$0xff]  }
   0x9   :  { %2384 = vmatpush3.bf16.msra.mxu1 %v2630_v7  ;;  %2363 = vmatprep.subr.bf16.mxu0 %v2631_v8  ;;  %v2647_v24 = vld [vmem:[%s3477_s1 + $0x48] sm:$0xff]   ;;  %v2651_v28 = vld [vmem:[%s3477_s1 + $0x40] sm:$0xff]   ;;  %v2659_v38 = vld [vmem:[%s3477_s1 + $0x178] sm:$0xff]  }
   0xa   :  { %2385 = vmatprep.subr.bf16.mxu1 %v2632_v9  ;;  %v2648_v25 = vld [vmem:[%s3477_s1 + $0xc8] sm:$0xff]   ;;  %v2652_v29 = vld [vmem:[%s3477_s1 + $0xc0] sm:$0xff]   ;;  %v2660_v39 = vld [vmem:[%s3477_s1 + $0x1f8] sm:$0xff]  }
   0xb   :  { %v2649_v26 = vld [vmem:[%s3477_s1 + $0x8] sm:$0xff]   ;;  %v2653_v30 = vld [vmem:[%s3477_s1] sm:$0xff]   ;;  %v2661_v40 = vld [vmem:[%s3477_s1 + $0x138] sm:$0xff]  }
   0xc   :  { %2364 = vmatpush3.bf16.msra.mxu0 %v2633_v10  ;;  %v2650_v27 = vld [vmem:[%s3477_s1 + $0x88] sm:$0xff]   ;;  %v2654_v31 = vld [vmem:[%s3477_s1 + $0x80] sm:$0xff]   ;;  %v2662_v41 = vld [vmem:[%s3477_s1 + $0x1b8] sm:$0xff]  }
   0xd   :  { %2386 = vmatpush3.bf16.msra.mxu1 %v2634_v11  ;;  %2365 = vmatprep.subr.bf16.mxu0 %v2635_v12  ;;  %v15_v32 = vld [vmem:[%s3478_s0] sm:$0xff]  ;;  %v16_v33 = vld [vmem:[%s3478_s0 + $0x8] sm:$0xff]  ;;  %v2663_v42 = vld [vmem:[%s3477_s1 + $0x170] sm:$0xff]  }
   0xe   :  { %2387 = vmatprep.subr.bf16.mxu1 %v2636_v13  ;;  %v2143_v34 = vcombine.low %v15_v32, %v15_v32  ;;  %v2144_v35 = vcombine.high %v15_v32, %v15_v32  ;;  %v2145_v36 = vcombine.low %v16_v33, %v16_v33  ;;  %v2146_v37 = vcombine.high %v16_v33, %v16_v33  ;;  %v2664_v43 = vld [vmem:[%s3477_s1 + $0x1f0] sm:$0xff]   ;;  %v2667_v46 = vld [vmem:[%s3477_s1 + $0x168] sm:$0xff]   ;;  %v2671_v50 = vld [vmem:[%s3477_s1 + $0x160] sm:$0xff]  }
   0xf   :  { %v2665_v44 = vld [vmem:[%s3477_s1 + $0x130] sm:$0xff]   ;;  %v2668_v47 = vld [vmem:[%s3477_s1 + $0x1e8] sm:$0xff]   ;;  %v2672_v51 = vld [vmem:[%s3477_s1 + $0x1e0] sm:$0xff]  }
  0x10   :  { %2366 = vmatpush3.bf16.msra.mxu0 %v2637_v14  ;;  %1686 = vmatprep.mubr.bf16.mxu0 %v2144_v35  ;;  %v2666_v45 = vld [vmem:[%s3477_s1 + $0x1b0] sm:$0xff]   ;;  %v2669_v48 = vld [vmem:[%s3477_s1 + $0x128] sm:$0xff]   ;;  %v2673_v52 = vld [vmem:[%s3477_s1 + $0x120] sm:$0xff]  }
  0x11   :  { %2388 = vmatpush3.bf16.msra.mxu1 %v2638_v15  ;;  %2367 = vmatprep.subr.bf16.mxu0 %v2639_v16  ;;  %v2670_v49 = vld [vmem:[%s3477_s1 + $0x1a8] sm:$0xff]   ;;  %v2674_v53 = vld [vmem:[%s3477_s1 + $0x1a0] sm:$0xff]   ;;  %v2675_v54 = vld [vmem:[%s3477_s1 + $0x158] sm:$0xff]  }
  0x12   :  { %2389 = vmatprep.subr.bf16.mxu1 %v2640_v17  ;;  %1726 = vmatprep.mubr.bf16.mxu1 %v2146_v37  ;;  %v2676_v55 = vld [vmem:[%s3477_s1 + $0x1d8] sm:$0xff]   ;;  %v2679_v58 = vld [vmem:[%s3477_s1 + $0x150] sm:$0xff]   ;;  %v2683_v62 = vld [vmem:[%s3477_s1 + $0x148] sm:$0xff]  }
  0x13   :  { %v2677_v56 = vld [vmem:[%s3477_s1 + $0x118] sm:$0xff]   ;;  %v2680_v59 = vld [vmem:[%s3477_s1 + $0x1d0] sm:$0xff]   ;;  %v2684_v63 = vld [vmem:[%s3477_s1 + $0x1c8] sm:$0xff]  }
  0x14   :  { %2368 = vmatpush3.bf16.msra.mxu0 %v2641_v18  ;;  %v2678_v57 = vld [vmem:[%s3477_s1 + $0x198] sm:$0xff]   ;;  %v2681_v60 = vld [vmem:[%s3477_s1 + $0x110] sm:$0xff]   ;;  %v2685_v0 = vld [vmem:[%s3477_s1 + $0x108] sm:$0xff]  }
  0x15   :  { %2390 = vmatpush3.bf16.msra.mxu1 %v2642_v19  ;;  %2369 = vmatprep.subr.bf16.mxu0 %v2643_v20  ;;  %v2682_v61 = vld [vmem:[%s3477_s1 + $0x190] sm:$0xff]   ;;  %v2686_v1 = vld [vmem:[%s3477_s1 + $0x188] sm:$0xff]   ;;  %v2687_v2 = vld [vmem:[%s3477_s1 + $0x140] sm:$0xff]  }
  0x16   :  { %2391 = vmatprep.subr.bf16.mxu1 %v2644_v21  ;;  %v2688_v3 = vld [vmem:[%s3477_s1 + $0x1c0] sm:$0xff]   ;;  %v17_v6 = vld [vmem:[%s3478_s0 + $0x10] sm:$0xff]  ;;  %v18_v9 = vld [vmem:[%s3478_s0 + $0x18] sm:$0xff] }
  0x17   :  { %v2689_v4 = vld [vmem:[%s3477_s1 + $0x100] sm:$0xff]   ;;  %v2147_v7 = vcombine.low %v17_v6, %v17_v6  ;;  %v2148_v8 = vcombine.high %v17_v6, %v17_v6  ;;  %v2149_v10 = vcombine.low %v18_v9, %v18_v9  ;;  %v2150_v11 = vcombine.high %v18_v9, %v18_v9  ;;  %v2695_v12 = vld [vmem:[%s3477_s1 + $0x278] sm:$0xff]   ;;  %v2699_v16 = vld [vmem:[%s3477_s1 + $0x270] sm:$0xff]  }
  0x18   :  { %2370 = vmatpush3.bf16.msra.mxu0 %v2645_v22  ;;  %v2690_v5 = vld [vmem:[%s3477_s1 + $0x180] sm:$0xff]   ;;  %v2696_v13 = vld [vmem:[%s3477_s1 + $0x2f8] sm:$0xff]   ;;  %v2700_v17 = vld [vmem:[%s3477_s1 + $0x2f0] sm:$0xff]  }
  0x19   :  { %2392 = vmatpush3.bf16.msra.mxu1 %v2646_v23  ;;  %2371 = vmatprep.subr.bf16.mxu0 %v2647_v24  ;;  %v2697_v14 = vld [vmem:[%s3477_s1 + $0x238] sm:$0xff]   ;;  %v2701_v18 = vld [vmem:[%s3477_s1 + $0x230] sm:$0xff]   ;;  %v2703_v20 = vld [vmem:[%s3477_s1 + $0x268] sm:$0xff]  }
  0x1a   :  { %2393 = vmatprep.subr.bf16.mxu1 %v2648_v25  ;;  %v2698_v15 = vld [vmem:[%s3477_s1 + $0x2b8] sm:$0xff]   ;;  %v2702_v19 = vld [vmem:[%s3477_s1 + $0x2b0] sm:$0xff]   ;;  %v2704_v21 = vld [vmem:[%s3477_s1 + $0x2e8] sm:$0xff]  }
  0x1b   :  { %v2705_v22 = vld [vmem:[%s3477_s1 + $0x228] sm:$0xff]   ;;  %v2707_v24 = vld [vmem:[%s3477_s1 + $0x260] sm:$0xff]   ;;  %v2715_v32 = vld [vmem:[%s3477_s1 + $0x250] sm:$0xff]  }
  0x1c   :  { %2372 = vmatpush3.bf16.msra.mxu0 %v2649_v26  ;;  %v2706_v23 = vld [vmem:[%s3477_s1 + $0x2a8] sm:$0xff]   ;;  %v2708_v25 = vld [vmem:[%s3477_s1 + $0x2e0] sm:$0xff]   ;;  %v2716_v33 = vld [vmem:[%s3477_s1 + $0x2d0] sm:$0xff]  }
  0x1d   :  { %2394 = vmatpush3.bf16.msra.mxu1 %v2650_v27  ;;  %2373 = vmatprep.subr.bf16.mxu0 %v2651_v28  ;;  %v2709_v26 = vld [vmem:[%s3477_s1 + $0x220] sm:$0xff]   ;;  %v2711_v28 = vld [vmem:[%s3477_s1 + $0x258] sm:$0xff]   ;;  %v2718_v35 = vld [vmem:[%s3477_s1 + $0x290] sm:$0xff]  }
  0x1e   :  { %2395 = vmatprep.subr.bf16.mxu1 %v2652_v29  ;;  %v2710_v27 = vld [vmem:[%s3477_s1 + $0x2a0] sm:$0xff]   ;;  %v2712_v29 = vld [vmem:[%s3477_s1 + $0x2d8] sm:$0xff]   ;;  %v2720_v37 = vld [vmem:[%s3477_s1 + $0x2c8] sm:$0xff]  }
  0x1f   :  { %v2751_v6 = vld [vmem:[%s3477_s1 + $0x350] sm:$0xff]  }
  0x20   :  { %2374 = vmatpush3.bf16.msra.mxu0 %v2653_v30  ;;  %v2713_v30 = vld [vmem:[%s3477_s1 + $0x218] sm:$0xff]   ;;  %v2754_v9 = vld [vmem:[%s3477_s1 + $0x390] sm:$0xff]  }
  0x21   :  { %2396 = vmatpush3.bf16.msra.mxu1 %v2654_v31  ;;  %2403 = vmatprep.subr.bf16.mxu0 %v2659_v38  ;;  %v2714_v31 = vld [vmem:[%s3477_s1 + $0x298] sm:$0xff]   ;;  %v2721_v38 = vld [vmem:[%s3477_s1 + $0x208] sm:$0xff]  }
  0x22   :  { %2425 = vmatprep.subr.bf16.mxu1 %v2660_v39  ;;  %v2722_v39 = vld [vmem:[%s3477_s1 + $0x288] sm:$0xff]  }
  0x23   :  { %1687 = vmatmul.mubr.bf16.vlgmr.msra.gmra.mxu0 %v2143_v34  ;;  %v2717_v34 = vld [vmem:[%s3477_s1 + $0x210] sm:$0xff]  }
  0x24   :  { %1727 = vmatmul.mubr.bf16.vlgmr.msra.gmra.mxu1 %v2145_v36  ;;  %2404 = vmatpush3.bf16.msra.mxu0 %v2661_v40  ;;  %v2719_v36 = vld [vmem:[%s3477_s1 + $0x248] sm:$0xff]   ;;  %v2723_v40 = vld [vmem:[%s3477_s1 + $0x240] sm:$0xff]  }
  0x25   :  { %2426 = vmatpush3.bf16.msra.mxu1 %v2662_v41  ;;  %2405 = vmatprep.subr.bf16.mxu0 %v2663_v42  ;;  %v2724_v41 = vld [vmem:[%s3477_s1 + $0x2c0] sm:$0xff]  }
  0x26   :  { %2427 = vmatprep.subr.bf16.mxu1 %v2664_v43  ;;  %1766 = vmatprep.mubr.bf16.mxu0 %v2148_v8  ;;  %v2725_v42 = vld [vmem:[%s3477_s1 + $0x200] sm:$0xff]   ;;  %v2753_v8 = vld [vmem:[%s3477_s1 + $0x310] sm:$0xff]  }
  0x27   :  { %1806 = vmatprep.mubr.bf16.mxu1 %v2150_v11  ;;  %v2726_v43 = vld [vmem:[%s3477_s1 + $0x280] sm:$0xff]   ;;  %v2756_v11 = vld [vmem:[%s3477_s1 + $0x3c8] sm:$0xff]  }
  0x28   :  { %2406 = vmatpush3.bf16.msra.mxu0 %v2665_v44  ;;  %v19_v44 = vld [vmem:[%s3478_s0 + $0x20] sm:$0xff] }
  0x29   :  { %2428 = vmatpush3.bf16.msra.mxu1 %v2666_v45  ;;  %2407 = vmatprep.subr.bf16.mxu0 %v2667_v46  ;;  %v20_v45 = vld [vmem:[%s3478_s0 + $0x28] sm:$0xff]  ;;  %v2151_v46 = vcombine.low %v19_v44, %v19_v44 }
  0x2a   :  { %2429 = vmatprep.subr.bf16.mxu1 %v2668_v47  ;;  %v2152_v47 = vcombine.high %v19_v44, %v19_v44  ;;  %v2787_v44 = vld [vmem:[%s3477_s1 + $0x450] sm:$0xff]  }
  0x2c   :  { %2408 = vmatpush3.bf16.msra.mxu0 %v2669_v48  ;;  %v2153_v48 = vcombine.low %v20_v45, %v20_v45 }
  0x2d   :  { %2430 = vmatpush3.bf16.msra.mxu1 %v2670_v49  ;;  %2409 = vmatprep.subr.bf16.mxu0 %v2671_v50  ;;  %v2154_v49 = vcombine.high %v20_v45, %v20_v45  ;;  %v2731_v50 = vld [vmem:[%s3477_s1 + $0x378] sm:$0xff]   ;;  %v2788_v45 = vld [vmem:[%s3477_s1 + $0x4d0] sm:$0xff]  }
  0x2e   :  { %2431 = vmatprep.subr.bf16.mxu1 %v2672_v51  ;;  %v2732_v51 = vld [vmem:[%s3477_s1 + $0x3f8] sm:$0xff]  }
  0x30   :  { %2410 = vmatpush3.bf16.msra.mxu0 %v2673_v52  ;;  %v2733_v52 = vld [vmem:[%s3477_s1 + $0x338] sm:$0xff]  }
  0x31   :  { %2432 = vmatpush3.bf16.msra.mxu1 %v2674_v53  ;;  %2411 = vmatprep.subr.bf16.mxu0 %v2675_v54  ;;  %v2734_v53 = vld [vmem:[%s3477_s1 + $0x3b8] sm:$0xff]   ;;  %v2735_v54 = vld [vmem:[%s3477_s1 + $0x370] sm:$0xff]  }
  0x32   :  { %2433 = vmatprep.subr.bf16.mxu1 %v2676_v55  ;;  %v2736_v55 = vld [vmem:[%s3477_s1 + $0x3f0] sm:$0xff]  }
  0x34   :  { %2412 = vmatpush3.bf16.msra.mxu0 %v2677_v56  ;;  %v2737_v56 = vld [vmem:[%s3477_s1 + $0x330] sm:$0xff]  }
  0x35   :  { %2434 = vmatpush3.bf16.msra.mxu1 %v2678_v57  ;;  %2413 = vmatprep.subr.bf16.mxu0 %v2679_v58  ;;  %v2738_v57 = vld [vmem:[%s3477_s1 + $0x3b0] sm:$0xff]   ;;  %v2739_v58 = vld [vmem:[%s3477_s1 + $0x368] sm:$0xff]  }
  0x36   :  { %2435 = vmatprep.subr.bf16.mxu1 %v2680_v59  ;;  %v2740_v59 = vld [vmem:[%s3477_s1 + $0x3e8] sm:$0xff]  }
  0x38   :  { %2414 = vmatpush3.bf16.msra.mxu0 %v2681_v60  ;;  %v2741_v60 = vld [vmem:[%s3477_s1 + $0x328] sm:$0xff]  }
  0x39   :  { %2436 = vmatpush3.bf16.msra.mxu1 %v2682_v61  ;;  %2415 = vmatprep.subr.bf16.mxu0 %v2683_v62  ;;  %v2742_v61 = vld [vmem:[%s3477_s1 + $0x3a8] sm:$0xff]   ;;  %v2743_v62 = vld [vmem:[%s3477_s1 + $0x360] sm:$0xff]  }
  0x3a   :  { %2437 = vmatprep.subr.bf16.mxu1 %v2684_v63  ;;  %v2744_v63 = vld [vmem:[%s3477_s1 + $0x3e0] sm:$0xff]  }
  0x3c   :  { %2416 = vmatpush3.bf16.msra.mxu0 %v2685_v0  ;;  %v2745_v0 = vld [vmem:[%s3477_s1 + $0x320] sm:$0xff]  }
  0x3d   :  { %2438 = vmatpush3.bf16.msra.mxu1 %v2686_v1  ;;  %2417 = vmatprep.subr.bf16.mxu0 %v2687_v2  ;;  %v2746_v1 = vld [vmem:[%s3477_s1 + $0x3a0] sm:$0xff]   ;;  %v2747_v2 = vld [vmem:[%s3477_s1 + $0x358] sm:$0xff]  }
  0x3e   :  { %2439 = vmatprep.subr.bf16.mxu1 %v2688_v3  ;;  %v2748_v3 = vld [vmem:[%s3477_s1 + $0x3d8] sm:$0xff]  }
  0x40   :  { %2418 = vmatpush3.bf16.msra.mxu0 %v2689_v4  ;;  %v2749_v4 = vld [vmem:[%s3477_s1 + $0x318] sm:$0xff]  }
  0x41   :  { %2440 = vmatpush3.bf16.msra.mxu1 %v2690_v5  ;;  %2447 = vmatprep.subr.bf16.mxu0 %v2695_v12  ;;  %v2750_v5 = vld [vmem:[%s3477_s1 + $0x398] sm:$0xff]   ;;  %v2757_v12 = vld [vmem:[%s3477_s1 + $0x308] sm:$0xff]  }
  0x42   :  { %2469 = vmatprep.subr.bf16.mxu1 %v2696_v13  ;;  %v2758_v13 = vld [vmem:[%s3477_s1 + $0x388] sm:$0xff]  }
  0x43   :  { %1767 = vmatmul.mubr.bf16.vlgmr.msra.gmra.mxu0 %v2147_v7  ;;  %v2752_v7 = vld [vmem:[%s3477_s1 + $0x3d0] sm:$0xff]  }
  0x44   :  { %1807 = vmatmul.mubr.bf16.vlgmr.msra.gmra.mxu1 %v2149_v10  ;;  %2448 = vmatpush3.bf16.msra.mxu0 %v2697_v14  ;;  %v2755_v10 = vld [vmem:[%s3477_s1 + $0x348] sm:$0xff]   ;;  %v2759_v14 = vld [vmem:[%s3477_s1 + $0x340] sm:$0xff]  }
  0x45   :  { %2470 = vmatpush3.bf16.msra.mxu1 %v2698_v15  ;;  %2449 = vmatprep.subr.bf16.mxu0 %v2699_v16  ;;  %v2760_v15 = vld [vmem:[%s3477_s1 + $0x3c0] sm:$0xff]  }
  0x46   :  { %2471 = vmatprep.subr.bf16.mxu1 %v2700_v17  ;;  %1846 = vmatprep.mubr.bf16.mxu0 %v2152_v47  ;;  %v2761_v16 = vld [vmem:[%s3477_s1 + $0x300] sm:$0xff]   ;;  %v2790_v47 = vld [vmem:[%s3477_s1 + $0x490] sm:$0xff]  }
  0x47   :  { %1886 = vmatprep.mubr.bf16.mxu1 %v2154_v49  ;;  %v2762_v17 = vld [vmem:[%s3477_s1 + $0x380] sm:$0xff]   ;;  %v2792_v49 = vld [vmem:[%s3477_s1 + $0x4c8] sm:$0xff]  }
  0x48   :  { %2450 = vmatpush3.bf16.msra.mxu0 %v2701_v18  ;;  %v21_v18 = vld [vmem:[%s3478_s0 + $0x30] sm:$0xff] }
  0x49   :  { %2472 = vmatpush3.bf16.msra.mxu1 %v2702_v19  ;;  %2451 = vmatprep.subr.bf16.mxu0 %v2703_v20  ;;  %v22_v19 = vld [vmem:[%s3478_s0 + $0x38] sm:$0xff]  ;;  %v2155_v20 = vcombine.low %v21_v18, %v21_v18 }
  0x4a   :  { %2473 = vmatprep.subr.bf16.mxu1 %v2704_v21  ;;  %v2156_v21 = vcombine.high %v21_v18, %v21_v18  ;;  %v2823_v18 = vld [vmem:[%s3477_s1 + $0x550] sm:$0xff]  }
  0x4c   :  { %2452 = vmatpush3.bf16.msra.mxu0 %v2705_v22  ;;  %v2157_v22 = vcombine.low %v22_v19, %v22_v19 }
  0x4d   :  { %2474 = vmatpush3.bf16.msra.mxu1 %v2706_v23  ;;  %2453 = vmatprep.subr.bf16.mxu0 %v2707_v24  ;;  %v2767_v23 = vld [vmem:[%s3477_s1 + $0x478] sm:$0xff]   ;;  %v2158_v24 = vcombine.high %v22_v19, %v22_v19  ;;  %v2824_v19 = vld [vmem:[%s3477_s1 + $0x5d0] sm:$0xff]  }
  0x4e   :  { %2475 = vmatprep.subr.bf16.mxu1 %v2708_v25  ;;  %v2768_v25 = vld [vmem:[%s3477_s1 + $0x4f8] sm:$0xff]  }
  0x50   :  { %2454 = vmatpush3.bf16.msra.mxu0 %v2709_v26  ;;  %v2769_v26 = vld [vmem:[%s3477_s1 + $0x438] sm:$0xff]  }
  0x51   :  { %2476 = vmatpush3.bf16.msra.mxu1 %v2710_v27  ;;  %2455 = vmatprep.subr.bf16.mxu0 %v2711_v28  ;;  %v2770_v27 = vld [vmem:[%s3477_s1 + $0x4b8] sm:$0xff]   ;;  %v2771_v28 = vld [vmem:[%s3477_s1 + $0x470] sm:$0xff]  }
  0x52   :  { %2477 = vmatprep.subr.bf16.mxu1 %v2712_v29  ;;  %v2772_v29 = vld [vmem:[%s3477_s1 + $0x4f0] sm:$0xff]  }
  0x54   :  { %2456 = vmatpush3.bf16.msra.mxu0 %v2713_v30  ;;  %v2773_v30 = vld [vmem:[%s3477_s1 + $0x430] sm:$0xff]  }
  0x55   :  { %2478 = vmatpush3.bf16.msra.mxu1 %v2714_v31  ;;  %2457 = vmatprep.subr.bf16.mxu0 %v2715_v32  ;;  %v2774_v31 = vld [vmem:[%s3477_s1 + $0x4b0] sm:$0xff]   ;;  %v2775_v32 = vld [vmem:[%s3477_s1 + $0x468] sm:$0xff]  }
  0x56   :  { %2479 = vmatprep.subr.bf16.mxu1 %v2716_v33  ;;  %v2776_v33 = vld [vmem:[%s3477_s1 + $0x4e8] sm:$0xff]  }
  0x58   :  { %2458 = vmatpush3.bf16.msra.mxu0 %v2717_v34  ;;  %v2777_v34 = vld [vmem:[%s3477_s1 + $0x428] sm:$0xff]  }
  0x59   :  { %2480 = vmatpush3.bf16.msra.mxu1 %v2718_v35  ;;  %2459 = vmatprep.subr.bf16.mxu0 %v2719_v36  ;;  %v2778_v35 = vld [vmem:[%s3477_s1 + $0x4a8] sm:$0xff]   ;;  %v2779_v36 = vld [vmem:[%s3477_s1 + $0x460] sm:$0xff]  }
  0x5a   :  { %2481 = vmatprep.subr.bf16.mxu1 %v2720_v37  ;;  %v2780_v37 = vld [vmem:[%s3477_s1 + $0x4e0] sm:$0xff]  }
  0x5c   :  { %2460 = vmatpush3.bf16.msra.mxu0 %v2721_v38  ;;  %v2781_v38 = vld [vmem:[%s3477_s1 + $0x420] sm:$0xff]  }
  0x5d   :  { %2482 = vmatpush3.bf16.msra.mxu1 %v2722_v39  ;;  %2461 = vmatprep.subr.bf16.mxu0 %v2723_v40  ;;  %v2782_v39 = vld [vmem:[%s3477_s1 + $0x4a0] sm:$0xff]   ;;  %v2783_v40 = vld [vmem:[%s3477_s1 + $0x458] sm:$0xff]  }
  0x5e   :  { %2483 = vmatprep.subr.bf16.mxu1 %v2724_v41  ;;  %v2784_v41 = vld [vmem:[%s3477_s1 + $0x4d8] sm:$0xff]  }
  0x60   :  { %2462 = vmatpush3.bf16.msra.mxu0 %v2725_v42  ;;  %v2785_v42 = vld [vmem:[%s3477_s1 + $0x418] sm:$0xff]  }
  0x61   :  { %2484 = vmatpush3.bf16.msra.mxu1 %v2726_v43  ;;  %2491 = vmatprep.subr.bf16.mxu0 %v2731_v50  ;;  %v2786_v43 = vld [vmem:[%s3477_s1 + $0x498] sm:$0xff]   ;;  %v2793_v50 = vld [vmem:[%s3477_s1 + $0x408] sm:$0xff]  }
  0x62   :  { %2513 = vmatprep.subr.bf16.mxu1 %v2732_v51  ;;  %v2794_v51 = vld [vmem:[%s3477_s1 + $0x488] sm:$0xff]  }
  0x63   :  { %1847 = vmatmul.mubr.bf16.vlgmr.msra.gmra.mxu0 %v2151_v46  ;;  %v2789_v46 = vld [vmem:[%s3477_s1 + $0x410] sm:$0xff]  }
  0x64   :  { %1887 = vmatmul.mubr.bf16.vlgmr.msra.gmra.mxu1 %v2153_v48  ;;  %2492 = vmatpush3.bf16.msra.mxu0 %v2733_v52  ;;  %v2791_v48 = vld [vmem:[%s3477_s1 + $0x448] sm:$0xff]   ;;  %v2795_v52 = vld [vmem:[%s3477_s1 + $0x440] sm:$0xff]  }
  0x65   :  { %2514 = vmatpush3.bf16.msra.mxu1 %v2734_v53  ;;  %2493 = vmatprep.subr.bf16.mxu0 %v2735_v54  ;;  %v2796_v53 = vld [vmem:[%s3477_s1 + $0x4c0] sm:$0xff]  }
  0x66   :  { %2515 = vmatprep.subr.bf16.mxu1 %v2736_v55  ;;  %1926 = vmatprep.mubr.bf16.mxu0 %v2156_v21  ;;  %v2797_v54 = vld [vmem:[%s3477_s1 + $0x400] sm:$0xff]   ;;  %v2826_v21 = vld [vmem:[%s3477_s1 + $0x590] sm:$0xff]  }
  0x67   :  { %1966 = vmatprep.mubr.bf16.mxu1 %v2158_v24  ;;  %v2798_v55 = vld [vmem:[%s3477_s1 + $0x480] sm:$0xff]   ;;  %v2829_v24 = vld [vmem:[%s3477_s1 + $0x508] sm:$0xff]  }
  0x68   :  { %2494 = vmatpush3.bf16.msra.mxu0 %v2737_v56  ;;  %v23_v56 = vld [vmem:[%s3478_s0 + $0x40] sm:$0xff] }
  0x69   :  { %2516 = vmatpush3.bf16.msra.mxu1 %v2738_v57  ;;  %2495 = vmatprep.subr.bf16.mxu0 %v2739_v58  ;;  %v2159_v57 = vcombine.low %v23_v56, %v23_v56  ;;  %v2160_v58 = vcombine.high %v23_v56, %v23_v56 }
  0x6a   :  { %2517 = vmatprep.subr.bf16.mxu1 %v2740_v59  ;;  %v24_v59 = vld [vmem:[%s3478_s0 + $0x48] sm:$0xff] }
  0x6c   :  { %2496 = vmatpush3.bf16.msra.mxu0 %v2741_v60  ;;  %v2161_v60 = vcombine.low %v24_v59, %v24_v59 }
  0x6d   :  { %2518 = vmatpush3.bf16.msra.mxu1 %v2742_v61  ;;  %2497 = vmatprep.subr.bf16.mxu0 %v2743_v62  ;;  %v2162_v61 = vcombine.high %v24_v59, %v24_v59  ;;  %v2803_v62 = vld [vmem:[%s3477_s1 + $0x578] sm:$0xff]  }
  0x6e   :  { %2519 = vmatprep.subr.bf16.mxu1 %v2744_v63  ;;  %v2804_v63 = vld [vmem:[%s3477_s1 + $0x5f8] sm:$0xff]  }
  0x70   :  { %2498 = vmatpush3.bf16.msra.mxu0 %v2745_v0  ;;  %v2805_v0 = vld [vmem:[%s3477_s1 + $0x538] sm:$0xff]  }
  0x71   :  { %2520 = vmatpush3.bf16.msra.mxu1 %v2746_v1  ;;  %2499 = vmatprep.subr.bf16.mxu0 %v2747_v2  ;;  %v2806_v1 = vld [vmem:[%s3477_s1 + $0x5b8] sm:$0xff]   ;;  %v2807_v2 = vld [vmem:[%s3477_s1 + $0x570] sm:$0xff]  }
  0x72   :  { %2521 = vmatprep.subr.bf16.mxu1 %v2748_v3  ;;  %v2808_v3 = vld [vmem:[%s3477_s1 + $0x5f0] sm:$0xff]  }
  0x74   :  { %2500 = vmatpush3.bf16.msra.mxu0 %v2749_v4  ;;  %v2809_v4 = vld [vmem:[%s3477_s1 + $0x530] sm:$0xff]  }
  0x75   :  { %2522 = vmatpush3.bf16.msra.mxu1 %v2750_v5  ;;  %2501 = vmatprep.subr.bf16.mxu0 %v2751_v6  ;;  %v2810_v5 = vld [vmem:[%s3477_s1 + $0x5b0] sm:$0xff]   ;;  %v2811_v6 = vld [vmem:[%s3477_s1 + $0x568] sm:$0xff]  }
  0x76   :  { %2523 = vmatprep.subr.bf16.mxu1 %v2752_v7  ;;  %v2812_v7 = vld [vmem:[%s3477_s1 + $0x5e8] sm:$0xff]  }
  0x78   :  { %2502 = vmatpush3.bf16.msra.mxu0 %v2753_v8  ;;  %v2813_v8 = vld [vmem:[%s3477_s1 + $0x528] sm:$0xff]  }
  0x79   :  { %2524 = vmatpush3.bf16.msra.mxu1 %v2754_v9  ;;  %2503 = vmatprep.subr.bf16.mxu0 %v2755_v10  ;;  %v2814_v9 = vld [vmem:[%s3477_s1 + $0x5a8] sm:$0xff]   ;;  %v2815_v10 = vld [vmem:[%s3477_s1 + $0x560] sm:$0xff]  }
  0x7a   :  { %2525 = vmatprep.subr.bf16.mxu1 %v2756_v11  ;;  %v2816_v11 = vld [vmem:[%s3477_s1 + $0x5e0] sm:$0xff]  }
  0x7c   :  { %2504 = vmatpush3.bf16.msra.mxu0 %v2757_v12  ;;  %v2817_v12 = vld [vmem:[%s3477_s1 + $0x520] sm:$0xff]  }
  0x7d   :  { %2526 = vmatpush3.bf16.msra.mxu1 %v2758_v13  ;;  %2505 = vmatprep.subr.bf16.mxu0 %v2759_v14  ;;  %v2818_v13 = vld [vmem:[%s3477_s1 + $0x5a0] sm:$0xff]   ;;  %v2819_v14 = vld [vmem:[%s3477_s1 + $0x558] sm:$0xff]  }
  0x7e   :  { %2527 = vmatprep.subr.bf16.mxu1 %v2760_v15  ;;  %v2820_v15 = vld [vmem:[%s3477_s1 + $0x5d8] sm:$0xff]  }
  0x80   :  { %2506 = vmatpush3.bf16.msra.mxu0 %v2761_v16  ;;  %v2821_v16 = vld [vmem:[%s3477_s1 + $0x518] sm:$0xff]  }
  0x81   :  { %2528 = vmatpush3.bf16.msra.mxu1 %v2762_v17  ;;  %2535 = vmatprep.subr.bf16.mxu0 %v2767_v23  ;;  %v2822_v17 = vld [vmem:[%s3477_s1 + $0x598] sm:$0xff]   ;;  %v2828_v23 = vld [vmem:[%s3477_s1 + $0x5c8] sm:$0xff]  }
  0x82   :  { %2557 = vmatprep.subr.bf16.mxu1 %v2768_v25  ;;  %v2830_v25 = vld [vmem:[%s3477_s1 + $0x588] sm:$0xff]  }
  0x83   :  { %1927 = vmatmul.mubr.bf16.vlgmr.msra.gmra.mxu0 %v2155_v20  ;;  %v2825_v20 = vld [vmem:[%s3477_s1 + $0x510] sm:$0xff]  }
  0x84   :  { %1967 = vmatmul.mubr.bf16.vlgmr.msra.gmra.mxu1 %v2157_v22  ;;  %2536 = vmatpush3.bf16.msra.mxu0 %v2769_v26  ;;  %v2827_v22 = vld [vmem:[%s3477_s1 + $0x548] sm:$0xff]   ;;  %v2831_v26 = vld [vmem:[%s3477_s1 + $0x540] sm:$0xff]  }
  0x85   :  { %2558 = vmatpush3.bf16.msra.mxu1 %v2770_v27  ;;  %2537 = vmatprep.subr.bf16.mxu0 %v2771_v28  ;;  %v2832_v27 = vld [vmem:[%s3477_s1 + $0x5c0] sm:$0xff]  }
  0x86   :  { %2559 = vmatprep.subr.bf16.mxu1 %v2772_v29  ;;  %2006 = vmatprep.mubr.bf16.mxu0 %v2160_v58  ;;  %v2833_v28 = vld [vmem:[%s3477_s1 + $0x500] sm:$0xff]  }
  0x87   :  { %2046 = vmatprep.mubr.bf16.mxu1 %v2162_v61  ;;  %v2834_v29 = vld [vmem:[%s3477_s1 + $0x580] sm:$0xff]  }
  0x88   :  { %2538 = vmatpush3.bf16.msra.mxu0 %v2773_v30  ;;  %v25_v30 = vld [vmem:[%s3478_s0 + $0x50] sm:$0xff] }
  0x89   :  { %2560 = vmatpush3.bf16.msra.mxu1 %v2774_v31  ;;  %2539 = vmatprep.subr.bf16.mxu0 %v2775_v32  ;;  %v26_v31 = vld [vmem:[%s3478_s0 + $0x58] sm:$0xff]  ;;  %v2163_v32 = vcombine.low %v25_v30, %v25_v30 }
  0x8a   :  { %2561 = vmatprep.subr.bf16.mxu1 %v2776_v33  ;;  %v2164_v33 = vcombine.high %v25_v30, %v25_v30 }
  0x8c   :  { %2540 = vmatpush3.bf16.msra.mxu0 %v2777_v34  ;;  %v2165_v34 = vcombine.low %v26_v31, %v26_v31 }
  0x8d   :  { %2562 = vmatpush3.bf16.msra.mxu1 %v2778_v35  ;;  %2541 = vmatprep.subr.bf16.mxu0 %v2779_v36  ;;  %v2166_v35 = vcombine.high %v26_v31, %v26_v31 }
  0x8e   :  { %2563 = vmatprep.subr.bf16.mxu1 %v2780_v37 }
  0x90   :  { %2542 = vmatpush3.bf16.msra.mxu0 %v2781_v38  ;;  %v2142_v38 = vld [vmem:[%s3479_s2] ss:$0 sm:$0xff] }
  0x91   :  { %2564 = vmatpush3.bf16.msra.mxu1 %v2782_v39  ;;  %2543 = vmatprep.subr.bf16.mxu0 %v2783_v40 }
  0x92   :  { %2565 = vmatprep.subr.bf16.mxu1 %v2784_v41 }
  0x94   :  { %2544 = vmatpush3.bf16.msra.mxu0 %v2785_v42 }
  0x95   :  { %2566 = vmatpush3.bf16.msra.mxu1 %v2786_v43  ;;  %2545 = vmatprep.subr.bf16.mxu0 %v2787_v44 }
  0x96   :  { %2567 = vmatprep.subr.bf16.mxu1 %v2788_v45 }
  0x98   :  { %2546 = vmatpush3.bf16.msra.mxu0 %v2789_v46 }
  0x99   :  { %2568 = vmatpush3.bf16.msra.mxu1 %v2790_v47  ;;  %2547 = vmatprep.subr.bf16.mxu0 %v2791_v48 }
  0x9a   :  { %2569 = vmatprep.subr.bf16.mxu1 %v2792_v49 }
  0x9c   :  { %2548 = vmatpush3.bf16.msra.mxu0 %v2793_v50 }
  0x9d   :  { %2570 = vmatpush3.bf16.msra.mxu1 %v2794_v51  ;;  %2549 = vmatprep.subr.bf16.mxu0 %v2795_v52 }
  0x9e   :  { %2571 = vmatprep.subr.bf16.mxu1 %v2796_v53 }
  0xa0   :  { %2550 = vmatpush3.bf16.msra.mxu0 %v2797_v54 }
  0xa1   :  { %2572 = vmatpush3.bf16.msra.mxu1 %v2798_v55  ;;  %2579 = vmatprep.subr.bf16.mxu0 %v2803_v62 }
  0xa2   :  { %2601 = vmatprep.subr.bf16.mxu1 %v2804_v63 }
  0xa3   :  { %2007 = vmatmul.mubr.bf16.vlgmr.msra.gmra.mxu0 %v2159_v57 }
  0xa4   :  { %2047 = vmatmul.mubr.bf16.vlgmr.msra.gmra.mxu1 %v2161_v60  ;;  %2580 = vmatpush3.bf16.msra.mxu0 %v2805_v0 }
  0xa5   :  { %2602 = vmatpush3.bf16.msra.mxu1 %v2806_v1  ;;  %2581 = vmatprep.subr.bf16.mxu0 %v2807_v2 }
  0xa6   :  { %2603 = vmatprep.subr.bf16.mxu1 %v2808_v3  ;;  %2086 = vmatprep.mubr.bf16.mxu0 %v2164_v33 }
  0xa7   :  { %2126 = vmatprep.mubr.bf16.mxu1 %v2166_v35 }
  0xa8   :  { %2582 = vmatpush3.bf16.msra.mxu0 %v2809_v4 }
  0xa9   :  { %2604 = vmatpush3.bf16.msra.mxu1 %v2810_v5  ;;  %2583 = vmatprep.subr.bf16.mxu0 %v2811_v6 }
  0xaa   :  { %2605 = vmatprep.subr.bf16.mxu1 %v2812_v7 }
  0xac   :  { %2584 = vmatpush3.bf16.msra.mxu0 %v2813_v8 }
  0xad   :  { %2606 = vmatpush3.bf16.msra.mxu1 %v2814_v9  ;;  %2585 = vmatprep.subr.bf16.mxu0 %v2815_v10 }
  0xae   :  { %2607 = vmatprep.subr.bf16.mxu1 %v2816_v11 }
  0xb0   :  { %2586 = vmatpush3.bf16.msra.mxu0 %v2817_v12 }
  0xb1   :  { %2608 = vmatpush3.bf16.msra.mxu1 %v2818_v13  ;;  %2587 = vmatprep.subr.bf16.mxu0 %v2819_v14 }
  0xb2   :  { %2609 = vmatprep.subr.bf16.mxu1 %v2820_v15 }
  0xb4   :  { %2588 = vmatpush3.bf16.msra.mxu0 %v2821_v16 }
  0xb5   :  { %2610 = vmatpush3.bf16.msra.mxu1 %v2822_v17  ;;  %2589 = vmatprep.subr.bf16.mxu0 %v2823_v18 }
  0xb6   :  { %2611 = vmatprep.subr.bf16.mxu1 %v2824_v19 }
  0xb8   :  { %2590 = vmatpush3.bf16.msra.mxu0 %v2825_v20 }
  0xb9   :  { %2612 = vmatpush3.bf16.msra.mxu1 %v2826_v21  ;;  %2591 = vmatprep.subr.bf16.mxu0 %v2827_v22 }
  0xba   :  { %2613 = vmatprep.subr.bf16.mxu1 %v2828_v23 }
  0xbc   :  { %2592 = vmatpush3.bf16.msra.mxu0 %v2829_v24 }
  0xbd   :  { %2614 = vmatpush3.bf16.msra.mxu1 %v2830_v25  ;;  %2593 = vmatprep.subr.bf16.mxu0 %v2831_v26 }
  0xbe   :  { %2615 = vmatprep.subr.bf16.mxu1 %v2832_v27 }
  0xc0   :  { %2594 = vmatpush3.bf16.msra.mxu0 %v2833_v28 }
  0xc1   :  { %2616 = vmatpush3.bf16.msra.mxu1 %v2834_v29 }
  0xc3   :  { %2087 = vmatmul.mubr.bf16.vlgmr.msra.gmra.mxu0 %v2163_v32 }
  0xc4   :  { %2127 = vmatmul.mubr.bf16.vlgmr.msra.gmra.mxu1 %v2165_v34 }
  0xe3   :  { %v2375_v36 = vpop.f32.mrf.mxu0 }
  0xe4   :  { %v2397_v37 = vpop.f32.mrf.mxu1 }
  0xe5   :  { %v2376_v39 = vpop.f32.mrf.mxu0 }
  0xe6   :  { %v2398_v40 = vpop.f32.mrf.mxu1  ;;  %v2377_v41 = vadd.f32 %v2376_v39, %v2375_v36 }
  0xe7   :  { %v2399_v42 = vadd.f32 %v2398_v40, %v2397_v37  ;;  %v2378_v43 = vpop.f32.mrf.mxu0 }
  0xe8   :  { %v2400_v44 = vpop.f32.mrf.mxu1  ;;  %v1689_v45 = vadd.f32 %v2377_v41, %v2142_v38 }
  0xe9   :  { %v2379_v46 = vpop.f32.mrf.mxu0 }
  0xea   :  { %v2401_v47 = vpop.f32.mrf.mxu1  ;;  %v1729_v48 = vadd.f32 %v2399_v42, %v1689_v45 }
 0x103   :  { %v2419_v49 = vpop.f32.mrf.mxu0 }
 0x104   :  { %v2441_v50 = vpop.f32.mrf.mxu1 }
 0x105   :  { %v2420_v51 = vpop.f32.mrf.mxu0 }
 0x106   :  { %v2442_v52 = vpop.f32.mrf.mxu1  ;;  %v2421_v53 = vadd.f32 %v2420_v51, %v2419_v49 }
 0x107   :  { %v2443_v54 = vadd.f32 %v2442_v52, %v2441_v50  ;;  %v2422_v55 = vpop.f32.mrf.mxu0 }
 0x108   :  { %v2444_v56 = vpop.f32.mrf.mxu1  ;;  %v1769_v57 = vadd.f32 %v2421_v53, %v1729_v48 }
 0x109   :  { %v2423_v58 = vpop.f32.mrf.mxu0 }
 0x10a   :  { %v2445_v59 = vpop.f32.mrf.mxu1  ;;  %v1809_v60 = vadd.f32 %v2443_v54, %v1769_v57 }
 0x123   :  { %v2463_v61 = vpop.f32.mrf.mxu0 }
 0x124   :  { %v2485_v62 = vpop.f32.mrf.mxu1 }
 0x125   :  { %v2464_v63 = vpop.f32.mrf.mxu0 }
 0x126   :  { %v2465_v0 = vadd.f32 %v2464_v63, %v2463_v61  ;;  %v2486_v1 = vpop.f32.mrf.mxu1 }
 0x127   :  { %v2487_v2 = vadd.f32 %v2486_v1, %v2485_v62  ;;  %v2466_v3 = vpop.f32.mrf.mxu0 }
 0x128   :  { %v1849_v4 = vadd.f32 %v2465_v0, %v1809_v60  ;;  %v2488_v5 = vpop.f32.mrf.mxu1 }
 0x129   :  { %v2467_v6 = vpop.f32.mrf.mxu0 }
 0x12a   :  { %v1889_v7 = vadd.f32 %v2487_v2, %v1849_v4  ;;  %v2489_v8 = vpop.f32.mrf.mxu1 }
 0x143   :  { %v2507_v9 = vpop.f32.mrf.mxu0 }
 0x144   :  { %v2529_v10 = vpop.f32.mrf.mxu1 }
 0x145   :  { %v2508_v11 = vpop.f32.mrf.mxu0 }
 0x146   :  { %v2530_v12 = vpop.f32.mrf.mxu1  ;;  %v2509_v25 = vadd.f32 %v2508_v11, %v2507_v9 }
 0x147   :  { %v2510_v13 = vpop.f32.mrf.mxu0  ;;  %v2531_v27 = vadd.f32 %v2530_v12, %v2529_v10 }
 0x148   :  { %v2532_v14 = vpop.f32.mrf.mxu1  ;;  %v1929_v26 = vadd.f32 %v2509_v25, %v1889_v7 }
 0x149   :  { %v2511_v15 = vpop.f32.mrf.mxu0 }
 0x14a   :  { %v2533_v16 = vpop.f32.mrf.mxu1  ;;  %v1969_v29 = vadd.f32 %v2531_v27, %v1929_v26 }
 0x163   :  { %v2551_v17 = vpop.f32.mrf.mxu0 }
 0x164   :  { %v2573_v18 = vpop.f32.mrf.mxu1 }
 0x165   :  { %v2552_v19 = vpop.f32.mrf.mxu0 }
 0x166   :  { %v2574_v20 = vpop.f32.mrf.mxu1  ;;  %v2553_v28 = vadd.f32 %v2552_v19, %v2551_v17 }
 0x167   :  { %v2554_v21 = vpop.f32.mrf.mxu0  ;;  %v2575_v31 = vadd.f32 %v2574_v20, %v2573_v18 }
 0x168   :  { %v2576_v22 = vpop.f32.mrf.mxu1  ;;  %v2009_v30 = vadd.f32 %v2553_v28, %v1969_v29 }
 0x169   :  { %v2555_v23 = vpop.f32.mrf.mxu0 }
 0x16a   :  { %v2577_v24 = vpop.f32.mrf.mxu1  ;;  %v2049_v35 = vadd.f32 %v2575_v31, %v2009_v30 }
 0x183   :  { %v2595_v32 = vpop.f32.mrf.mxu0 }
 0x184   :  { %v2617_v33 = vpop.f32.mrf.mxu1 }
 0x185   :  { %v2596_v34 = vpop.f32.mrf.mxu0 }
 0x186   :  { %v2597_v36 = vadd.f32 %v2596_v34, %v2595_v32  ;;  %v2618_v37 = vpop.f32.mrf.mxu1 }
 0x187   :  { %v2598_v38 = vpop.f32.mrf.mxu0  ;;  %v2619_v40 = vadd.f32 %v2618_v37, %v2617_v33 }
 0x188   :  { %v2089_v39 = vadd.f32 %v2597_v36, %v2049_v35  ;;  %v2620_v41 = vpop.f32.mrf.mxu1 }
 0x189   :  { %v2599_v42 = vpop.f32.mrf.mxu0 }
 0x18a   :  { %v2129_v43 = vadd.f32 %v2619_v40, %v2089_v39  ;;  %v2621_v44 = vpop.f32.mrf.mxu1 }
 0x18c   :  { %v2134_v45 = vmax.f32 %v2129_v43, 0.0 }
 0x18e   :  { %v2135_v46 = vpack.c.bf16 %v2134_v45, %v2134_v45 }
 0x190   :  { %2137 = vst.msk [vmem:[%s3480_s3] sm:$0xf] %vm2136_vm0, %v2135_v46 }

// kernel: fcos_rt_forward.29
= control target key start
LH: loop header
LB: loop body
LE: loop exit
PB: predicated region body
PF: predicated region fallthrough
CT: control target
= control target key end

     0   :  { %v559_v0 = vmov 0   ;;  %vm206_vm0 = vcmask 523264   ;;  %vm408_vm1 = vcmask 519168   ;;  %s781_s1 = inlined_call_operand.vmem [shape: bf16[192,64], index: 1, kind: input, shape index: {}]   ;;  %s782_s0 = inlined_call_operand.vmem [shape: bf16[128,192], index: 0, kind: input, shape index: {}]   ;;  %s783_s2 = inlined_call_operand.vmem [shape: f32[1,64], index: 2, kind: input, shape index: {}]   ;;  %s784_s3 = inlined_call_operand.vmem [shape: bf16[128,64], index: 3, kind: output, shape index: {}]  }
   0x1   :  { %231 = vmatprep.subr.bf16.mxu0 %v559_v0  ;;  %498 = vmatprep.subr.bf16.mxu1 %v559_v0  ;;  %v523_v1 = vld [vmem:[%s781_s1 + $0x38] sm:$0xff]   ;;  %v524_v2 = vld [vmem:[%s781_s1 + $0x30] sm:$0xff]   ;;  %v525_v3 = vld [vmem:[%s781_s1 + $0x28] sm:$0xff]  }
   0x2   :  { %232 = vmatpush1.bf16.msra.mxu0 %v523_v1  ;;  %510 = vmatpush1.bf16.msra.mxu1 %v523_v1  ;;  %v526_v4 = vld [vmem:[%s781_s1 + $0x20] sm:$0xff]   ;;  %v527_v6 = vld [vmem:[%s781_s1 + $0x18] sm:$0xff]   ;;  %v528_v8 = vld [vmem:[%s781_s1 + $0x10] sm:$0xff]  }
   0x3   :  { %233 = vmatprep.subr.bf16.mxu0 %v559_v0  ;;  %499 = vmatprep.subr.bf16.mxu1 %v559_v0  ;;  %v537_v5 = vld [vmem:[%s782_s0 + $0x4] ss:$8 sps:$4 sm:$0xff]   ;;  %v531_v11 = vld [vmem:[%s781_s1 + $0x58] sm:$0xff]   ;;  %v532_v12 = vld [vmem:[%s781_s1 + $0x50] sm:$0xff]  }
   0x4   :  { %v540_v7 = vld [vmem:[%s782_s0 + $0x44] ss:$8 sps:$4 sm:$0xff]   ;;  %458 = vmatprep.mubr.msk.bf16.mxu0 %vm206_vm0, %v537_v5  ;;  %v535_v15 = vld [vmem:[%s782_s0] ss:$8 sps:$4 sm:$0xff]   ;;  %v541_v17 = vld [vmem:[%s782_s0 + $0x14] ss:$8 sps:$4 sm:$0xff]  }
   0x5   :  { %462 = vmatprep.mubr.msk.bf16.mxu1 %vm206_vm0, %v540_v7  ;;  %v529_v9 = vld [vmem:[%s781_s1 + $0x8] sm:$0xff]   ;;  %v530_v10 = vld [vmem:[%s781_s1] sm:$0xff]   ;;  %v543_v18 = vld [vmem:[%s782_s0 + $0x54] ss:$8 sps:$4 sm:$0xff]  }
   0x6   :  { %234 = vmatpush1.bf16.msra.mxu0 %v524_v2  ;;  %511 = vmatpush1.bf16.msra.mxu1 %v524_v2  ;;  %v533_v13 = vld [vmem:[%s781_s1 + $0x48] sm:$0xff]   ;;  %v534_v14 = vld [vmem:[%s781_s1 + $0x40] sm:$0xff]   ;;  %v545_v19 = vld [vmem:[%s782_s0 + $0x10] ss:$8 sps:$4 sm:$0xff]  }
   0x7   :  { %235 = vmatprep.subr.bf16.mxu0 %v559_v0  ;;  %500 = vmatprep.subr.bf16.mxu1 %v559_v0  ;;  %v538_v16 = vld [vmem:[%s782_s0 + $0x40] ss:$8 sps:$4 sm:$0xff]   ;;  %v546_v20 = vld [vmem:[%s782_s0 + $0x50] ss:$8 sps:$4 sm:$0xff]   ;;  %v547_v21 = vld [vmem:[%s782_s0 + $0x24] ss:$8 sps:$4 sm:$0xff]  }
   0x8   :  { %v549_v22 = vld [vmem:[%s782_s0 + $0x64] ss:$8 sps:$4 sm:$0xff]   ;;  %v551_v23 = vld [vmem:[%s782_s0 + $0x20] ss:$8 sps:$4 sm:$0xff]   ;;  %v553_v25 = vld [vmem:[%s782_s0 + $0x34] ss:$8 sps:$4 sm:$0xff]  }
   0x9   :  { %v552_v24 = vld [vmem:[%s782_s0 + $0x60] ss:$8 sps:$4 sm:$0xff]   ;;  %v555_v26 = vld [vmem:[%s782_s0 + $0x74] ss:$8 sps:$4 sm:$0xff]   ;;  %v557_v27 = vld [vmem:[%s782_s0 + $0x30] ss:$8 sps:$4 sm:$0xff]  }
   0xa   :  { %236 = vmatpush1.bf16.msra.mxu0 %v525_v3  ;;  %512 = vmatpush1.bf16.msra.mxu1 %v525_v3  ;;  %v558_v28 = vld [vmem:[%s782_s0 + $0x70] ss:$8 sps:$4 sm:$0xff]   ;;  %v699_v29 = vld [vmem:[%s783_s2] ss:$0 sm:$0xff] }
   0xb   :  { %237 = vmatprep.subr.bf16.mxu0 %v559_v0  ;;  %501 = vmatprep.subr.bf16.mxu1 %v559_v0 }
   0xe   :  { %238 = vmatpush1.bf16.msra.mxu0 %v526_v4  ;;  %513 = vmatpush1.bf16.msra.mxu1 %v526_v4 }
   0xf   :  { %239 = vmatprep.subr.bf16.mxu0 %v559_v0  ;;  %502 = vmatprep.subr.bf16.mxu1 %v559_v0 }
  0x12   :  { %240 = vmatpush1.bf16.msra.mxu0 %v527_v6  ;;  %514 = vmatpush1.bf16.msra.mxu1 %v527_v6 }
  0x13   :  { %241 = vmatprep.subr.bf16.mxu0 %v559_v0  ;;  %503 = vmatprep.subr.bf16.mxu1 %v559_v0 }
  0x16   :  { %242 = vmatpush1.bf16.msra.mxu0 %v528_v8  ;;  %515 = vmatpush1.bf16.msra.mxu1 %v528_v8 }
  0x17   :  { %243 = vmatprep.subr.bf16.mxu0 %v559_v0  ;;  %504 = vmatprep.subr.bf16.mxu1 %v559_v0 }
  0x1a   :  { %244 = vmatpush1.bf16.msra.mxu0 %v529_v9  ;;  %516 = vmatpush1.bf16.msra.mxu1 %v529_v9 }
  0x1b   :  { %245 = vmatprep.subr.bf16.mxu0 %v559_v0  ;;  %505 = vmatprep.subr.bf16.mxu1 %v559_v0 }
  0x1e   :  { %246 = vmatpush1.bf16.msra.mxu0 %v530_v10  ;;  %517 = vmatpush1.bf16.msra.mxu1 %v530_v10 }
  0x1f   :  { %255 = vmatprep.subr.bf16.mxu0 %v559_v0  ;;  %506 = vmatprep.subr.bf16.mxu1 %v559_v0 }
  0x22   :  { %256 = vmatpush2.bf16.msra.mxu0 %v531_v11  ;;  %518 = vmatpush2.bf16.msra.mxu1 %v531_v11 }
  0x23   :  { %257 = vmatprep.subr.bf16.mxu0 %v559_v0  ;;  %507 = vmatprep.subr.bf16.mxu1 %v559_v0 }
  0x26   :  { %258 = vmatpush2.bf16.msra.mxu0 %v532_v12  ;;  %519 = vmatpush2.bf16.msra.mxu1 %v532_v12 }
  0x27   :  { %259 = vmatprep.subr.bf16.mxu0 %v559_v0  ;;  %508 = vmatprep.subr.bf16.mxu1 %v559_v0 }
  0x2a   :  { %260 = vmatpush2.bf16.msra.mxu0 %v533_v13  ;;  %520 = vmatpush2.bf16.msra.mxu1 %v533_v13 }
  0x2b   :  { %261 = vmatprep.subr.bf16.mxu0 %v559_v0  ;;  %509 = vmatprep.subr.bf16.mxu1 %v559_v0 }
  0x2e   :  { %262 = vmatpush2.bf16.msra.mxu0 %v534_v14  ;;  %521 = vmatpush2.bf16.msra.mxu1 %v534_v14 }
  0x31   :  { %264 = vmatmul.mubr.bf16.vlgmr.msra.gmra.mxu0 %v535_v15  ;;  %296 = vmatmul.mubr.bf16.vlgmr.msra.gmra.mxu1 %v538_v16 }
  0x32   :  { %459 = vmatprep.mubr.msk.bf16.mxu0 %vm206_vm0, %v541_v17  ;;  %463 = vmatprep.mubr.msk.bf16.mxu1 %vm206_vm0, %v543_v18 }
  0x39   :  { %272 = vmatmul.mubr.bf16.gmra.mxu0 %v545_v19  ;;  %304 = vmatmul.mubr.bf16.gmra.mxu1 %v546_v20 }
  0x3a   :  { %460 = vmatprep.mubr.msk.bf16.mxu0 %vm206_vm0, %v547_v21  ;;  %464 = vmatprep.mubr.msk.bf16.mxu1 %vm206_vm0, %v549_v22 }
  0x41   :  { %280 = vmatmul.mubr.bf16.gmra.mxu0 %v551_v23  ;;  %312 = vmatmul.mubr.bf16.gmra.mxu1 %v552_v24 }
  0x42   :  { %461 = vmatprep.mubr.msk.bf16.mxu0 %vm206_vm0, %v553_v25  ;;  %465 = vmatprep.mubr.msk.bf16.mxu1 %vm206_vm0, %v555_v26 }
  0x49   :  { %288 = vmatmul.mubr.bf16.gmra.mxu0 %v557_v27  ;;  %320 = vmatmul.mubr.bf16.gmra.mxu1 %v558_v28 }
  0xf1   :  { %v265_v30 = vpop.f32.mrf.mxu0  ;;  %v297_v31 = vpop.f32.mrf.mxu1 }
  0xf2   :  { %v266_v32 = vadd.f32 %v699_v29, %v265_v30  ;;  %v298_v33 = vadd.f32 %v699_v29, %v297_v31 }
  0xf3   :  { %v267_v34 = vpop.f32.mrf.mxu0  ;;  %v299_v35 = vpop.f32.mrf.mxu1 }
  0xf4   :  { %v328_v36 = vmax.f32 %v266_v32, 0.0  ;;  %v336_v37 = vmax.f32 %v298_v33, 0.0 }
  0xf5   :  { %v268_v38 = vpop.f32.mrf.mxu0  ;;  %v300_v39 = vpop.f32.mrf.mxu1 }
  0xf6   :  { %v482_v40 = vpack.c.bf16 %v328_v36, %v328_v36  ;;  %v490_v41 = vpack.c.bf16 %v336_v37, %v336_v37  ;;  %v269_v42 = vadd.f32 %v699_v29, %v268_v38  ;;  %v301_v43 = vadd.f32 %v699_v29, %v300_v39 }
  0xf7   :  { %v270_v44 = vpop.f32.mrf.mxu0  ;;  %v302_v45 = vpop.f32.mrf.mxu1 }
  0xf8   :  { %409 = vst.msk [vmem:[%s784_s3] sm:$0xf] %vm408_vm1, %v482_v40  ;;  %417 = vst.msk [vmem:[%s784_s3 + $0x20] sm:$0xf] %vm408_vm1, %v490_v41  ;;  %v329_v46 = vmax.f32 %v269_v42, 0.0  ;;  %v337_v47 = vmax.f32 %v301_v43, 0.0 }
  0xf9   :  { %v273_v48 = vpop.f32.mrf.mxu0  ;;  %v305_v49 = vpop.f32.mrf.mxu1 }
  0xfa   :  { %v483_v50 = vpack.c.bf16 %v329_v46, %v329_v46  ;;  %v491_v51 = vpack.c.bf16 %v337_v47, %v337_v47  ;;  %v274_v52 = vadd.f32 %v699_v29, %v273_v48  ;;  %v306_v53 = vadd.f32 %v699_v29, %v305_v49 }
  0xfb   :  { %v275_v54 = vpop.f32.mrf.mxu0  ;;  %v307_v55 = vpop.f32.mrf.mxu1 }
  0xfc   :  { %410 = vst.msk [vmem:[%s784_s3 + $0x4] sm:$0xf] %vm408_vm1, %v483_v50  ;;  %418 = vst.msk [vmem:[%s784_s3 + $0x24] sm:$0xf] %vm408_vm1, %v491_v51  ;;  %v330_v56 = vmax.f32 %v274_v52, 0.0  ;;  %v338_v57 = vmax.f32 %v306_v53, 0.0 }
  0xfd   :  { %v276_v58 = vpop.f32.mrf.mxu0  ;;  %v308_v59 = vpop.f32.mrf.mxu1 }
  0xfe   :  { %v484_v60 = vpack.c.bf16 %v330_v56, %v330_v56  ;;  %v492_v61 = vpack.c.bf16 %v338_v57, %v338_v57  ;;  %v277_v62 = vadd.f32 %v699_v29, %v276_v58  ;;  %v309_v63 = vadd.f32 %v699_v29, %v308_v59 }
  0xff   :  { %v278_v0 = vpop.f32.mrf.mxu0  ;;  %v310_v1 = vpop.f32.mrf.mxu1 }
 0x100   :  { %411 = vst.msk [vmem:[%s784_s3 + $0x8] sm:$0xf] %vm408_vm1, %v484_v60  ;;  %419 = vst.msk [vmem:[%s784_s3 + $0x28] sm:$0xf] %vm408_vm1, %v492_v61  ;;  %v331_v2 = vmax.f32 %v277_v62, 0.0  ;;  %v339_v3 = vmax.f32 %v309_v63, 0.0 }
 0x101   :  { %v281_v4 = vpop.f32.mrf.mxu0  ;;  %v313_v5 = vpop.f32.mrf.mxu1 }
 0x102   :  { %v485_v6 = vpack.c.bf16 %v331_v2, %v331_v2  ;;  %v493_v7 = vpack.c.bf16 %v339_v3, %v339_v3  ;;  %v282_v8 = vadd.f32 %v699_v29, %v281_v4  ;;  %v314_v9 = vadd.f32 %v699_v29, %v313_v5 }
 0x103   :  { %v283_v10 = vpop.f32.mrf.mxu0  ;;  %v315_v11 = vpop.f32.mrf.mxu1 }
 0x104   :  { %412 = vst.msk [vmem:[%s784_s3 + $0xc] sm:$0xf] %vm408_vm1, %v485_v6  ;;  %420 = vst.msk [vmem:[%s784_s3 + $0x2c] sm:$0xf] %vm408_vm1, %v493_v7  ;;  %v332_v12 = vmax.f32 %v282_v8, 0.0  ;;  %v340_v13 = vmax.f32 %v314_v9, 0.0 }
 0x105   :  { %v284_v14 = vpop.f32.mrf.mxu0  ;;  %v316_v15 = vpop.f32.mrf.mxu1 }
 0x106   :  { %v486_v16 = vpack.c.bf16 %v332_v12, %v332_v12  ;;  %v494_v17 = vpack.c.bf16 %v340_v13, %v340_v13  ;;  %v285_v18 = vadd.f32 %v699_v29, %v284_v14  ;;  %v317_v19 = vadd.f32 %v699_v29, %v316_v15 }
 0x107   :  { %v286_v20 = vpop.f32.mrf.mxu0  ;;  %v318_v21 = vpop.f32.mrf.mxu1 }
 0x108   :  { %413 = vst.msk [vmem:[%s784_s3 + $0x10] sm:$0xf] %vm408_vm1, %v486_v16  ;;  %421 = vst.msk [vmem:[%s784_s3 + $0x30] sm:$0xf] %vm408_vm1, %v494_v17  ;;  %v333_v22 = vmax.f32 %v285_v18, 0.0  ;;  %v341_v23 = vmax.f32 %v317_v19, 0.0 }
 0x109   :  { %v289_v24 = vpop.f32.mrf.mxu0  ;;  %v321_v25 = vpop.f32.mrf.mxu1 }
 0x10a   :  { %v487_v26 = vpack.c.bf16 %v333_v22, %v333_v22  ;;  %v495_v27 = vpack.c.bf16 %v341_v23, %v341_v23  ;;  %v290_v28 = vadd.f32 %v699_v29, %v289_v24  ;;  %v322_v30 = vadd.f32 %v699_v29, %v321_v25 }
 0x10b   :  { %v291_v31 = vpop.f32.mrf.mxu0  ;;  %v323_v32 = vpop.f32.mrf.mxu1 }
 0x10c   :  { %414 = vst.msk [vmem:[%s784_s3 + $0x14] sm:$0xf] %vm408_vm1, %v487_v26  ;;  %422 = vst.msk [vmem:[%s784_s3 + $0x34] sm:$0xf] %vm408_vm1, %v495_v27  ;;  %v334_v33 = vmax.f32 %v290_v28, 0.0  ;;  %v342_v34 = vmax.f32 %v322_v30, 0.0 }
 0x10d   :  { %v292_v35 = vpop.f32.mrf.mxu0  ;;  %v324_v36 = vpop.f32.mrf.mxu1 }
 0x10e   :  { %v488_v37 = vpack.c.bf16 %v334_v33, %v334_v33  ;;  %v496_v38 = vpack.c.bf16 %v342_v34, %v342_v34  ;;  %v293_v39 = vadd.f32 %v699_v29, %v292_v35  ;;  %v325_v40 = vadd.f32 %v699_v29, %v324_v36 }
 0x10f   :  { %v294_v41 = vpop.f32.mrf.mxu0  ;;  %v326_v42 = vpop.f32.mrf.mxu1 }
 0x110   :  { %415 = vst.msk [vmem:[%s784_s3 + $0x18] sm:$0xf] %vm408_vm1, %v488_v37  ;;  %423 = vst.msk [vmem:[%s784_s3 + $0x38] sm:$0xf] %vm408_vm1, %v496_v38  ;;  %v335_v43 = vmax.f32 %v293_v39, 0.0  ;;  %v343_v44 = vmax.f32 %v325_v40, 0.0 }
 0x112   :  { %v489_v45 = vpack.c.bf16 %v335_v43, %v335_v43  ;;  %v497_v46 = vpack.c.bf16 %v343_v44, %v343_v44 }
 0x114   :  { %416 = vst.msk [vmem:[%s784_s3 + $0x1c] sm:$0xf] %vm408_vm1, %v489_v45  ;;  %424 = vst.msk [vmem:[%s784_s3 + $0x3c] sm:$0xf] %vm408_vm1, %v497_v46 }

// kernel: fcos_rt_forward.34
= control target key start
LH: loop header
LB: loop body
LE: loop exit
PB: predicated region body
PF: predicated region fallthrough
CT: control target
= control target key end

     0   :  { %s2912_s12 = smov 0   ;;  %s3438_s0 = inlined_call_operand.vmem [shape: bf16[2,108,64], index: 0, kind: input, shape index: {}]   ;;  %s3439_s1 = inlined_call_operand.vmem [shape: bf16[9,64,64], index: 1, kind: input, shape index: {}]   ;;  %s3440_s2 = inlined_call_operand.vmem [shape: f32[1,64], index: 2, kind: input, shape index: {}]   ;;  %s3441_s3 = inlined_call_operand.vmem [shape: bf16[2,80,64], index: 3, kind: output, shape index: {}]  }
   0x1 LB: > { %s2212_s13 = sadd.s32 4294967295, %s2888_s12   ;;  %p2216_p0 = scmp.ge.s32.totalorder %s2888_s12, 1  ;;  %s2888_s12 = sphi %s2912_s12, %s13_s12  }
   0x2   : > { %p137_p1 = scmp.lt.s32.totalorder %s2888_s12, 3 }
   0x4   : > { %p138_p2 = pnand %p2216_p0, %p137_p1 }
   0x5   : > { %p161_p3 = scmp.lt.s32.totalorder (!%p138_p2), %s2212_s13, 1 }
   0x6   : > { %141 = sbr.rel (%p138_p2) target bundleno = 429 (0x1ad), region = 32 }
   0xb   : > { %v2793_v0 = vld [vmem:[%s3439_s1 + $0x18] sm:$0xff]   ;;  %v2890_v1 = vmov 0.0   ;;  %v2794_v2 = vld [vmem:[%s3439_s1 + $0x10] sm:$0xff]   ;;  %vm2891_vm0 = vmmov 0   ;;  %s3443_s13 = smov (!%p161_p3, %s2212_s13), 1  ;;  %v2795_v3 = vld [vmem:[%s3439_s1 + $0x8] sm:$0xff]  }
   0xc   : > { %2773 = vmatprep.subr.bf16.mxu1 %v2890_v1  ;;  %2521 = vmatprep.subr.bf16.mxu0 %v2890_v1  ;;  %s2781_s20 = smul.u32 56, %s3443_s13  ;;  %v2796_v4 = vld [vmem:[%s3439_s1] sm:$0xff]   ;;  %vm239_vm1 = vcmask 523264   ;;  %v2798_v7 = vld [vmem:[%s3439_s1 + $0x38] sm:$0xff]   ;;  %v2799_v9 = vld [vmem:[%s3439_s1 + $0x30] sm:$0xff]   ;;  %vm621_vm2 = vcmask 1046528  }
   0xd   : > { %2777 = vmatpush3.bf16.msra.mxu1 %v2793_v0  ;;  %2522 = vmatpush3.bf16.msra.mxu0 %v2793_v0  ;;  %v2803_v8 = vld [vmem:[%s3439_s1 + $0x58] sm:$0xff]   ;;  %v2805_v10 = vld [vmem:[%s3439_s1 + $0x50] sm:$0xff]   ;;  %v2802_v13 = vld [vmem:[%s3439_s1 + $0x28] sm:$0xff]   ;;  %vm386_vm3 = vsmask.f32 7424  ;;  %vm1268_vm5 = vcmask 1045504  }
   0xe   : > { %2774 = vmatprep.subr.bf16.mxu1 %v2890_v1  ;;  %2537 = vmatprep.mubr.msk.bf16.mxu1 %vm2891_vm0, %v2890_v1  ;;  %s2945_s23 = scalar_lea.vmem %s3438_s0, %s2781_s20  ;;  %v2808_v15 = vld [vmem:[%s3439_s1 + $0x48] sm:$0xff]   ;;  %v2806_v18 = vld [vmem:[%s3439_s1 + $0x20] sm:$0xff]   ;;  %v2817_v29 = vld [vmem:[%s3439_s1 + $0x98] sm:$0xff]   ;;  %vm1024_vm4 = vsmask.f32 6400  ;;  %vm1915_vm6 = vcmask 1044480  }
   0xf   : > { %2523 = vmatprep.subr.bf16.mxu0 %v2890_v1  ;;  %2529 = vmatprep.mubr.msk.bf16.mxu0 %vm2891_vm0, %v2890_v1  ;;  %v2797_v5 = vld [vmem:[%s2945_s23 + $0x10] sm:$0xff]   ;;  %v2801_v6 = vld [vmem:[%s2945_s23] sm:$0xff]   ;;  %v2800_v11 = vld [vmem:[%s2945_s23 + $0x18] sm:$0xff]   ;;  %vm1671_vm7 = vsmask.f32 5376  ;;  %s2782_s18 = smul.u32 40, %s3443_s13 }
  0x10   : > { %v2807_v12 = vld [vmem:[%s2945_s23 + $0x8] sm:$0xff]   ;;  %v2809_v14 = vld [vmem:[%s2945_s23] sm:$0xff]   ;;  %v2818_v30 = vld [vmem:[%s2945_s23 + $0x10] sm:$0xff]   ;;  %vm2146_vm8 = vcmask 519168  }
  0x11   : > { %2778 = vmatpush3.bf16.msra.mxu1 %v2794_v2  ;;  %2524 = vmatpush3.bf16.msra.mxu0 %v2794_v2  ;;  %v2813_v16 = vld [vmem:[%s2945_s23] sm:$0xfe]   ;;  %v2814_v17 = vld [vmem:[%s2945_s23 + $0x8] sm:$0xff]   ;;  %v390_v20 = vshll.u32 %v2809_v14, 16  ;;  %v388_v25 = vshrl.u32 %v2809_v14, 16  ;;  %v2815_v33 = vld [vmem:[%s2945_s23 + $0x10] sm:$0xff]   ;;  %s3393_s13 = scalar_lea.vmem %s3441_s3, %s2782_s18 }
  0x12   : > { %2775 = vmatprep.subr.bf16.mxu1 %v2890_v1  ;;  %2525 = vmatprep.subr.bf16.mxu0 %v2890_v1  ;;  %v2810_v19 = vld [vmem:[%s2945_s23 + $0x8] sm:$0xff]   ;;  %v2812_v21 = vld [vmem:[%s3439_s1 + $0x40] sm:$0xff]   ;;  %v622_v22 = vrot.slane %v2813_v16, 1  ;;  %v623_v23 = vrot.slane %v2814_v17, 1  ;;  %v2822_v34 = vld [vmem:[%s3439_s1 + $0x90] sm:$0xff]   ;;  %v625_v35 = vrot.slane %v2818_v30, 1 }
  0x13   : > { %v2804_v24 = vld [vmem:[%s2945_s23 + $0x20] sm:$0xff]   ;;  %v392_v26 = vrot.slane %v390_v20, 1  ;;  %v395_v27 = vshll.u32 %v2810_v19, 16  ;;  %v2811_v36 = vld [vmem:[%s3439_s1 + $0x78] sm:$0xff]   ;;  %v399_v38 = vshrl.u32 %v2810_v19, 16  ;;  %v403_v39 = vshll.u32 %v2815_v33, 16 }
  0x14   : > { %v624_v28 = vsel %vm621_vm2, %v622_v22, %v623_v23  ;;  %v2820_v40 = vld [vmem:[%s2945_s23 + $0x18] sm:$0xff]   ;;  %v2826_v41 = vld [vmem:[%s3439_s1 + $0x88] sm:$0xff]   ;;  %v626_v42 = vsel %vm621_vm2, %v623_v23, %v625_v35  ;;  %v2816_v46 = vld [vmem:[%s3439_s1 + $0x70] sm:$0xff]   ;;  %v407_v51 = vshrl.u32 %v2815_v33, 16 }
  0x15   : > { %2779 = vmatpush3.bf16.msra.mxu1 %v2795_v3  ;;  %2526 = vmatpush3.bf16.msra.mxu0 %v2795_v3  ;;  %v393_v31 = vor.u32 %v392_v26, %v388_v25  ;;  %v397_v32 = vrot.slane %v395_v27, 1  ;;  %v2819_v43 = vld [vmem:[%s2945_s23 + $0x18] sm:$0xff]   ;;  %v405_v45 = vrot.slane %v403_v39, 1  ;;  %v627_v47 = vrot.slane %v2820_v40, 1  ;;  %v2831_v48 = vld [vmem:[%s3439_s1 + $0x80] sm:$0xff]   ;;  %v2821_v52 = vld [vmem:[%s3439_s1 + $0x68] sm:$0xff]  }
  0x16   : > { %2776 = vmatprep.subr.bf16.mxu1 %v2890_v1  ;;  %2527 = vmatprep.subr.bf16.mxu0 %v2890_v1  ;;  %v411_v49 = vshll.u32 %v2819_v43, 16  ;;  %v2824_v53 = vld [vmem:[%s2945_s23 + $0x20] sm:$0xff]   ;;  %v415_v61 = vshrl.u32 %v2819_v43, 16  ;;  %v2828_v63 = vld [vmem:[%s2945_s23 + $0x28] ss:$0 sps:$4 sm:$0x11]  }
  0x17   : > { %v398_v37 = vsel %vm386_vm3, %v393_v31, %v397_v32  ;;  %v401_v44 = vor.u32 %v399_v38, %v397_v32  ;;  %v628_v54 = vsel %vm621_vm2, %v625_v35, %v627_v47  ;;  %v2823_v56 = vld [vmem:[%s2945_s23 + $0x20] sm:$0xff]   ;;  %v409_v58 = vor.u32 %v407_v51, %v405_v45  ;;  %v2834_v2 = vld [vmem:[%s2945_s23 + $0xc] sm:$0xff]   ;;  %v2838_v19 = vld [vmem:[%s2945_s23 + $0x14] sm:$0xff]  }
  0x18   : > { %v413_v55 = vrot.slane %v411_v49, 1  ;;  %v2825_v57 = vld [vmem:[%s3439_s1 + $0x60] sm:$0xff]   ;;  %v629_v59 = vrot.slane %v2824_v53, 1  ;;  %v419_v62 = vshll.u32 %v2823_v56, 16  ;;  %v423_v14 = vshrl.u32 %v2823_v56, 16  ;;  %v2830_v26 = vld [vmem:[%s2945_s23 + $0xc] sm:$0xff]  }
  0x19   : > { %2780 = vmatpush3.bf16.msra.mxu1 %v2796_v4  ;;  %2528 = vmatpush3.bf16.msra.mxu0 %v2796_v4  ;;  %v406_v50 = vsel %vm386_vm3, %v401_v44, %v405_v45  ;;  %v2833_v0 = vld [vmem:[%s2945_s23 + $0x4] sm:$0xfe]   ;;  %v1043_v23 = vshrl.u32 %v2838_v19, 16  ;;  %v2837_v30 = vld [vmem:[%s3439_s1 + $0xd8] sm:$0xff]   ;;  %v2842_v40 = vld [vmem:[%s3439_s1 + $0xd0] sm:$0xff]  }
  0x1a   : > { %2549 = vmatprep.subr.bf16.mxu1 %v2890_v1  ;;  %2577 = vmatprep.subr.bf16.mxu0 %v2890_v1  ;;  %v414_v60 = vsel %vm386_vm3, %v409_v58, %v413_v55  ;;  %v630_v3 = vsel %vm621_vm2, %v627_v47, %v629_v59  ;;  %v2827_v4 = vld [vmem:[%s2945_s23 + $0x28] ss:$0 sps:$4 sm:$0x11]   ;;  %v2840_v31 = vld [vmem:[%s2945_s23 + $0x1c] sm:$0xff]   ;;  %v2835_v43 = vld [vmem:[%s2945_s23 + $0x14] sm:$0xff]  }
  0x1b   : > { %v2829_v25 = vld [vmem:[%s2945_s23 + $0x4] sm:$0xfe]   ;;  %v1045_v33 = vrot.slane %v1043_v23, 1  ;;  %v1055_v39 = vshll.u32 %v2840_v31, 16  ;;  %v826_v49 = vrot.slane %v2835_v43, 1  ;;  %v2857_v23 = vld [vmem:[%s3439_s1 + $0x118] sm:$0xff]  }
  0x1c   : > { %2538 = vmatmul.mubr.msk.bf16.vlgmr.msra.gmra.mxu1 %vm239_vm1, %v2797_v5  ;;  %2530 = vmatmul.mubr.msk.bf16.vlgmr.msra.gmra.mxu0 %vm239_vm1, %v2801_v6  ;;  %v417_v5 = vor.u32 %v415_v61, %v413_v55  ;;  %v421_v6 = vrot.slane %v419_v62, 1  ;;  %v823_v35 = vrot.slane %v2829_v25, 1  ;;  %v2844_v45 = vld [vmem:[%s2945_s23 + $0x24] sm:$0xff]   ;;  %v2839_v55 = vld [vmem:[%s2945_s23 + $0x1c] sm:$0xff]  }
  0x1d   : > { %2550 = vmatpush3.bf16.msra.mxu1 %v2798_v7  ;;  %2541 = vmatprep.mubr.msk.bf16.mxu1 %vm2891_vm0, %v2890_v1  ;;  %v1026_v7 = vshrl.u32 %v2833_v0, 16  ;;  %v1057_v47 = vrot.slane %v1055_v39, 2  ;;  %v1061_v51 = vshrl.u32 %v2844_v45, 16  ;;  %v2851_v53 = vld [vmem:[%s3439_s1 + $0xc0] sm:$0xff]   ;;  %v828_v62 = vrot.slane %v2839_v55, 1  ;;  %v2864_v43 = vld [vmem:[%s2945_s23 + $0x28] sm:$0xff]  }
  0x1e   : > { %2551 = vmatprep.subr.bf16.mxu1 %v2890_v1  ;;  %2578 = vmatpush3.bf16.msra.mxu0 %v2803_v8  ;;  %v1029_v8 = vshll.u32 %v2833_v0, 16  ;;  %v425_v22 = vor.u32 %v423_v14, %v421_v6  ;;  %v2848_v58 = vld [vmem:[%s2945_s23 + $0x2c] ss:$0 sps:$4 sm:$0x33]  }
  0x1f   : > { %2579 = vmatprep.subr.bf16.mxu0 %v2890_v1  ;;  %2533 = vmatprep.mubr.msk.bf16.mxu0 %vm2891_vm0, %v2890_v1  ;;  %v2853_v14 = vld [vmem:[%s2945_s23 + $0x8] sm:$0xfc]  }
  0x20   : > { %v1031_v16 = vrot.slane %v1029_v8, 2  ;;  %v2869_v55 = vld [vmem:[%s2945_s23 + $0x8] sm:$0xfc]  }
  0x21   : > { %2552 = vmatpush3.bf16.msra.mxu1 %v2799_v9  ;;  %v1034_v9 = vshrl.u32 %v2834_v2, 16 }
  0x22   : > { %2553 = vmatprep.subr.bf16.mxu1 %v2890_v1  ;;  %2580 = vmatpush3.bf16.msra.mxu0 %v2805_v10  ;;  %v1037_v10 = vshll.u32 %v2834_v2, 16  ;;  %v1070_v2 = vshrl.u32 %v2848_v58, 16 }
  0x23   : > { %2581 = vmatprep.subr.bf16.mxu0 %v2890_v1  ;;  %v1036_v17 = vrot.slane %v1034_v9, 1 }
  0x24   : > { %2542 = vmatmul.mubr.msk.bf16.gmra.mxu1 %vm239_vm1, %v2800_v11  ;;  %2534 = vmatmul.mubr.msk.bf16.gmra.mxu0 %vm239_vm1, %v2807_v12  ;;  %v631_v11 = vrot.slane %v2828_v63, 1  ;;  %v427_v12 = vshll.u32 %v2827_v4, 16  ;;  %v2845_v63 = vld [vmem:[%s3439_s1 + $0xa0] sm:$0xff]   ;;  %v829_v4 = vsel %vm621_vm2, %v826_v49, %v828_v62 }
  0x25   : > { %2554 = vmatpush3.bf16.msra.mxu1 %v2802_v13  ;;  %2545 = vmatprep.mubr.msk.bf16.mxu1 %vm2891_vm0, %v2890_v1  ;;  %v422_v13 = vsel %vm386_vm3, %v417_v5, %v421_v6  ;;  %v2843_v5 = vld [vmem:[%s2945_s23 + $0x24] sm:$0xff]  }
  0x26   : > { %2555 = vmatprep.subr.bf16.mxu1 %v2890_v1  ;;  %2582 = vmatpush3.bf16.msra.mxu0 %v2808_v15  ;;  %v1028_v15 = vrot.slane %v1026_v7, 1  ;;  %v632_v20 = vsel %vm621_vm2, %v629_v59, %v631_v11  ;;  %v1072_v7 = vrot.slane %v1070_v2, 1  ;;  %v830_v9 = vrot.slane %v2843_v5, 1 }
  0x27   : > { %2583 = vmatprep.subr.bf16.mxu0 %v2890_v1  ;;  %2585 = vmatprep.mubr.msk.bf16.mxu0 %vm2891_vm0, %v2890_v1 }
  0x28   : > { %v1032_v27 = vor.u32 %v1031_v16, %v1028_v15  ;;  %v831_v11 = vsel %vm621_vm2, %v828_v62, %v830_v9  ;;  %v2854_v15 = vld [vmem:[%s2945_s23 + $0x10] sm:$0xff]   ;;  %v1676_v62 = vshll.u32 %v2869_v55, 16 }
  0x29   : > { %2556 = vmatpush3.bf16.msra.mxu1 %v2806_v18  ;;  %v1039_v18 = vrot.slane %v1037_v10, 2 }
  0x2a   : > { %2605 = vmatprep.subr.bf16.mxu1 %v2890_v1  ;;  %2584 = vmatpush3.bf16.msra.mxu0 %v2812_v21  ;;  %v429_v21 = vrot.slane %v427_v12, 1  ;;  %v2847_v12 = vld [vmem:[%s2945_s23 + $0x2c] ss:$0 sps:$4 sm:$0x11]  }
  0x2b   : > { %2633 = vmatprep.subr.bf16.mxu0 %v2890_v1  ;;  %v832_v16 = vrot.slane %v2847_v12, 1 }
  0x2c   : > { %2546 = vmatmul.mubr.msk.bf16.gmra.mxu1 %vm239_vm1, %v2804_v24  ;;  %v1046_v24 = vshll.u32 %v2838_v19, 16 }
  0x2d   : > { %2557 = vmatprep.mubr.msk.bf16.mxu1 %vm2891_vm0, %v2890_v1  ;;  %2586 = vmatmul.mubr.msk.bf16.vlgmr.msra.gmra.mxu0 %vm239_vm1, %v624_v28  ;;  %v1040_v28 = vor.u32 %v1039_v18, %v1036_v17  ;;  %v1470_v17 = vrot.slane %v2853_v14, 2  ;;  %v1471_v18 = vrot.slane %v2854_v15, 2  ;;  %v833_v19 = vsel %vm621_vm2, %v830_v9, %v832_v16  ;;  %v2874_v9 = vld [vmem:[%s2945_s23 + $0x18] sm:$0xff]  }
  0x2e   : > { %2634 = vmatpush3.bf16.msra.mxu0 %v2817_v29  ;;  %2589 = vmatprep.mubr.msk.bf16.mxu0 %vm2891_vm0, %v2890_v1  ;;  %v430_v29 = vsel %vm386_vm3, %v425_v22, %v429_v21  ;;  %v2850_v21 = vld [vmem:[%s2945_s23 + $0xc] sm:$0xff]   ;;  %v1690_v14 = vshrl.u32 %v2874_v9, 16  ;;  %v1693_v15 = vshll.u32 %v2874_v9, 16 }
  0x2f   : > { %2635 = vmatprep.subr.bf16.mxu0 %v2890_v1  ;;  %v1041_v32 = vsel %vm1024_vm4, %v1032_v27, %v1040_v28  ;;  %v1472_v22 = vsel %vm1268_vm5, %v1470_v17, %v1471_v18 }
  0x32   : > { %2636 = vmatpush3.bf16.msra.mxu0 %v2822_v34  ;;  %v1048_v34 = vrot.slane %v1046_v24, 2  ;;  %v2858_v24 = vld [vmem:[%s2945_s23 + $0x18] sm:$0xff]  }
  0x33   : > { %2637 = vmatprep.subr.bf16.mxu0 %v2890_v1  ;;  %v1473_v27 = vrot.slane %v2858_v24, 2 }
  0x34   : > { %2558 = vmatmul.mubr.msk.bf16.vlgmr.msra.gmra.mxu1 %vm239_vm1, %v398_v37  ;;  %v1052_v37 = vshrl.u32 %v2840_v31, 16  ;;  %v1049_v38 = vor.u32 %v1048_v34, %v1045_v33  ;;  %v2855_v31 = vld [vmem:[%s2945_s23 + $0x14] sm:$0xff]   ;;  %v2860_v33 = vld [vmem:[%s2945_s23 + $0x20] sm:$0xff]   ;;  %v2866_v34 = vld [vmem:[%s3439_s1 + $0x108] sm:$0xff]  }
  0x35   : > { %2606 = vmatpush3.bf16.msra.mxu1 %v2811_v36  ;;  %2561 = vmatprep.mubr.msk.bf16.mxu1 %vm2891_vm0, %v2890_v1  ;;  %v824_v36 = vrot.slane %v2830_v26, 1  ;;  %v1270_v26 = vrot.slane %v2850_v21, 2 }
  0x36   : > { %2607 = vmatprep.subr.bf16.mxu1 %v2890_v1  ;;  %2590 = vmatmul.mubr.msk.bf16.gmra.mxu0 %vm239_vm1, %v626_v42  ;;  %v2832_v42 = vld [vmem:[%s3439_s1 + $0xb8] sm:$0xff]   ;;  %v1054_v44 = vrot.slane %v1052_v37, 1  ;;  %v1475_v37 = vrot.slane %v2860_v33, 2 }
  0x37   : > { %2593 = vmatprep.mubr.msk.bf16.mxu0 %vm2891_vm0, %v2890_v1  ;;  %2638 = vmatpush3.bf16.msra.mxu0 %v2826_v41  ;;  %v825_v41 = vsel %vm621_vm2, %v823_v35, %v824_v36  ;;  %v827_v56 = vsel %vm621_vm2, %v824_v36, %v826_v49  ;;  %v1272_v35 = vrot.slane %v2855_v31, 2  ;;  %v2856_v36 = vld [vmem:[%s3439_s1 + $0xf0] sm:$0xff]  }
  0x38   : > { %2639 = vmatprep.subr.bf16.mxu0 %v2890_v1 }
  0x39   : > { %2608 = vmatpush3.bf16.msra.mxu1 %v2816_v46  ;;  %v1050_v46 = vsel %vm1024_vm4, %v1040_v28, %v1049_v38  ;;  %v2862_v28 = vld [vmem:[%s3439_s1 + $0x110] sm:$0xff]   ;;  %v1273_v39 = vsel %vm1268_vm5, %v1270_v26, %v1272_v35 }
  0x3a   : > { %2609 = vmatprep.subr.bf16.mxu1 %v2890_v1 }
  0x3b   : > { %2640 = vmatpush3.bf16.msra.mxu0 %v2831_v48  ;;  %v2846_v48 = vld [vmem:[%s3439_s1 + $0xc8] sm:$0xff]  }
  0x3c   : > { %2562 = vmatmul.mubr.msk.bf16.gmra.mxu1 %vm239_vm1, %v406_v50  ;;  %2689 = vmatprep.subr.bf16.mxu0 %v2890_v1  ;;  %v2836_v50 = vld [vmem:[%s3439_s1 + $0xb0] sm:$0xff]  }
  0x3d   : > { %2565 = vmatprep.mubr.msk.bf16.mxu1 %vm2891_vm0, %v2890_v1  ;;  %2610 = vmatpush3.bf16.msra.mxu1 %v2821_v52  ;;  %v1064_v52 = vshll.u32 %v2844_v45, 16  ;;  %v2865_v45 = vld [vmem:[%s3439_s1 + $0xe0] sm:$0xff]  }
  0x3e   : > { %2594 = vmatmul.mubr.msk.bf16.gmra.mxu0 %vm239_vm1, %v628_v54  ;;  %2611 = vmatprep.subr.bf16.mxu1 %v2890_v1  ;;  %v1058_v54 = vor.u32 %v1057_v47, %v1054_v44 }
  0x3f   : > { %2597 = vmatprep.mubr.msk.bf16.mxu0 %vm2891_vm0, %v2890_v1  ;;  %v1066_v61 = vrot.slane %v1064_v52, 2 }
  0x40   : > { %v1059_v59 = vsel %vm1024_vm4, %v1049_v38, %v1058_v54  ;;  %v2871_v38 = vld [vmem:[%s3439_s1 + $0x100] sm:$0xff]  }
  0x41   : > { %2612 = vmatpush3.bf16.msra.mxu1 %v2825_v57  ;;  %v2841_v57 = vld [vmem:[%s3439_s1 + $0xa8] sm:$0xff]  }
  0x42   : > { %2661 = vmatprep.subr.bf16.mxu1 %v2890_v1 }
  0x44   : > { %2566 = vmatmul.mubr.msk.bf16.gmra.mxu1 %vm239_vm1, %v414_v60  ;;  %v1063_v60 = vrot.slane %v1061_v51, 1 }
  0x45   : > { %2569 = vmatprep.mubr.msk.bf16.mxu1 %vm2891_vm0, %v2890_v1 }
  0x46   : > { %2598 = vmatmul.mubr.msk.bf16.gmra.mxu0 %vm239_vm1, %v630_v3  ;;  %v1067_v0 = vor.u32 %v1066_v61, %v1063_v60  ;;  %v1073_v3 = vshll.u32 %v2848_v58, 16  ;;  %v2872_v58 = vld [vmem:[%s2945_s23 + $0x8] sm:$0xf8]   ;;  %v1673_v61 = vshrl.u32 %v2869_v55, 16 }
  0x47   : > { %2601 = vmatprep.mubr.msk.bf16.mxu0 %vm2891_vm0, %v2890_v1  ;;  %v1916_v2 = vrot.slane %v2872_v58, 3 }
  0x48   : > { %v1068_v6 = vsel %vm1024_vm4, %v1058_v54, %v1067_v0  ;;  %v1075_v8 = vrot.slane %v1073_v3, 2  ;;  %v1675_v5 = vrot.slane %v1673_v61, 2 }
  0x4a   : > { %v1076_v10 = vor.u32 %v1075_v8, %v1072_v7 }
  0x4c   : > { %2570 = vmatmul.mubr.msk.bf16.gmra.mxu1 %vm239_vm1, %v422_v13  ;;  %v1077_v13 = vsel %vm1024_vm4, %v1067_v0, %v1076_v10 }
  0x4d   : > { %2573 = vmatprep.mubr.msk.bf16.mxu1 %vm2891_vm0, %v2890_v1 }
  0x4e   : > { %2602 = vmatmul.mubr.msk.bf16.gmra.mxu0 %vm239_vm1, %v632_v20  ;;  %v2849_v20 = vld [vmem:[%s2945_s23 + $0x4] sm:$0xfc]  }
  0x4f   : > { %2641 = vmatprep.mubr.msk.bf16.mxu0 %vm2891_vm0, %v2890_v1  ;;  %v1269_v25 = vrot.slane %v2849_v20, 2  ;;  %v2876_v20 = vld [vmem:[%s2945_s23 + $0x20] sm:$0xff]  }
  0x50   : > { %v1699_v24 = vshrl.u32 %v2876_v20, 16 }
  0x54   : > { %2574 = vmatmul.mubr.msk.bf16.gmra.mxu1 %vm239_vm1, %v430_v29  ;;  %v1271_v29 = vsel %vm1268_vm5, %v1269_v25, %v1270_v26  ;;  %v1702_v25 = vshll.u32 %v2876_v20, 16 }
  0x55   : > { %2613 = vmatprep.mubr.msk.bf16.mxu1 %vm2891_vm0, %v2890_v1 }
  0x56   : > { %2642 = vmatmul.mubr.msk.bf16.vlgmr.msra.gmra.mxu0 %vm239_vm1, %v1041_v32  ;;  %v1474_v32 = vsel %vm1268_vm5, %v1471_v18, %v1473_v27  ;;  %v1692_v18 = vrot.slane %v1690_v14, 2 }
  0x57   : > { %2690 = vmatpush3.bf16.msra.mxu0 %v2837_v30  ;;  %2645 = vmatprep.mubr.msk.bf16.mxu0 %vm2891_vm0, %v2890_v1  ;;  %v2852_v30 = vld [vmem:[%s3439_s1 + $0xf8] sm:$0xff]  }
  0x58   : > { %2691 = vmatprep.subr.bf16.mxu0 %v2890_v1 }
  0x5b   : > { %2692 = vmatpush3.bf16.msra.mxu0 %v2842_v40  ;;  %v2859_v40 = vld [vmem:[%s2945_s23 + $0x1c] sm:$0xff]  }
  0x5c   : > { %2614 = vmatmul.mubr.msk.bf16.vlgmr.msra.gmra.mxu1 %vm239_vm1, %v825_v41  ;;  %2693 = vmatprep.subr.bf16.mxu0 %v2890_v1  ;;  %v2861_v41 = vld [vmem:[%s3439_s1 + $0xe8] sm:$0xff]   ;;  %v1274_v44 = vrot.slane %v2859_v40, 2  ;;  %v2880_v40 = vld [vmem:[%s2945_s23 + $0x30] ss:$0 sps:$4 sm:$0x77]  }
  0x5d   : > { %2662 = vmatpush3.bf16.msra.mxu1 %v2832_v42  ;;  %2617 = vmatprep.mubr.msk.bf16.mxu1 %vm2891_vm0, %v2890_v1  ;;  %v1476_v42 = vsel %vm1268_vm5, %v1473_v27, %v1475_v37 }
  0x5e   : > { %2663 = vmatprep.subr.bf16.mxu1 %v2890_v1  ;;  %2646 = vmatmul.mubr.msk.bf16.gmra.mxu0 %vm239_vm1, %v1050_v46  ;;  %v1477_v46 = vrot.slane %v2864_v43, 2  ;;  %v1275_v47 = vsel %vm1268_vm5, %v1272_v35, %v1274_v44 }
  0x5f   : > { %2649 = vmatprep.mubr.msk.bf16.mxu0 %vm2891_vm0, %v2890_v1  ;;  %2694 = vmatpush3.bf16.msra.mxu0 %v2846_v48  ;;  %v2863_v48 = vld [vmem:[%s2945_s23 + $0x24] sm:$0xff]  }
  0x60   : > { %2695 = vmatprep.subr.bf16.mxu0 %v2890_v1  ;;  %v1478_v49 = vsel %vm1268_vm5, %v1475_v37, %v1477_v46  ;;  %v1276_v51 = vrot.slane %v2863_v48, 2 }
  0x61   : > { %2664 = vmatpush3.bf16.msra.mxu1 %v2836_v50  ;;  %v2868_v50 = vld [vmem:[%s2945_s23 + $0x30] ss:$0 sps:$4 sm:$0x33]  }
  0x62   : > { %2665 = vmatprep.subr.bf16.mxu1 %v2890_v1  ;;  %v1479_v52 = vrot.slane %v2868_v50, 2  ;;  %v1277_v54 = vsel %vm1268_vm5, %v1274_v44, %v1276_v51  ;;  %v1717_v44 = vshrl.u32 %v2880_v40, 16 }
  0x63   : > { %2696 = vmatpush3.bf16.msra.mxu0 %v2851_v53  ;;  %v2867_v53 = vld [vmem:[%s2945_s23 + $0x2c] ss:$0 sps:$4 sm:$0x33]  }
  0x64   : > { %2618 = vmatmul.mubr.msk.bf16.gmra.mxu1 %vm239_vm1, %v827_v56  ;;  %2745 = vmatprep.subr.bf16.mxu0 %v2890_v1  ;;  %v2870_v56 = vld [vmem:[%s2945_s23 + $0x10] sm:$0xff]   ;;  %v1278_v60 = vrot.slane %v2867_v53, 2  ;;  %v1719_v48 = vrot.slane %v1717_v44, 2 }
  0x65   : > { %2621 = vmatprep.mubr.msk.bf16.mxu1 %vm2891_vm0, %v2890_v1  ;;  %2666 = vmatpush3.bf16.msra.mxu1 %v2841_v57  ;;  %v1480_v57 = vsel %vm1268_vm5, %v1477_v46, %v1479_v52  ;;  %v1684_v0 = vshll.u32 %v2870_v56, 16 }
  0x66   : > { %2650 = vmatmul.mubr.msk.bf16.gmra.mxu0 %vm239_vm1, %v1059_v59  ;;  %2667 = vmatprep.subr.bf16.mxu1 %v2890_v1  ;;  %v2873_v59 = vld [vmem:[%s2945_s23 + $0x10] sm:$0xff]  }
  0x67   : > { %2653 = vmatprep.mubr.msk.bf16.mxu0 %vm2891_vm0, %v2890_v1  ;;  %v1917_v3 = vrot.slane %v2873_v59, 3  ;;  %v1686_v8 = vrot.slane %v1684_v0, 3 }
  0x69   : > { %2668 = vmatpush3.bf16.msra.mxu1 %v2845_v63  ;;  %v1681_v63 = vshrl.u32 %v2870_v56, 16  ;;  %v1918_v10 = vsel %vm1915_vm6, %v1916_v2, %v1917_v3 }
  0x6a   : > { %2717 = vmatprep.subr.bf16.mxu1 %v2890_v1 }
  0x6b   : > { %v1683_v7 = vrot.slane %v1681_v63, 2 }
  0x6c   : > { %2622 = vmatmul.mubr.msk.bf16.gmra.mxu1 %vm239_vm1, %v829_v4  ;;  %v1279_v4 = vsel %vm1268_vm5, %v1276_v51, %v1278_v60 }
  0x6d   : > { %2625 = vmatprep.mubr.msk.bf16.mxu1 %vm2891_vm0, %v2890_v1 }
  0x6e   : > { %2654 = vmatmul.mubr.msk.bf16.gmra.mxu0 %vm239_vm1, %v1068_v6  ;;  %v1678_v6 = vrot.slane %v1676_v62, 3 }
  0x6f   : > { %2657 = vmatprep.mubr.msk.bf16.mxu0 %vm2891_vm0, %v2890_v1 }
  0x70   : > { %v1679_v12 = vor.u32 %v1678_v6, %v1675_v5 }
  0x74   : > { %2626 = vmatmul.mubr.msk.bf16.gmra.mxu1 %vm239_vm1, %v831_v11  ;;  %v2875_v11 = vld [vmem:[%s2945_s23 + $0x18] sm:$0xff]  }
  0x75   : > { %2629 = vmatprep.mubr.msk.bf16.mxu1 %vm2891_vm0, %v2890_v1  ;;  %v1919_v16 = vrot.slane %v2875_v11, 3 }
  0x76   : > { %2658 = vmatmul.mubr.msk.bf16.gmra.mxu0 %vm239_vm1, %v1077_v13  ;;  %v1687_v13 = vor.u32 %v1686_v8, %v1683_v7 }
  0x77   : > { %2697 = vmatprep.mubr.msk.bf16.mxu0 %vm2891_vm0, %v2890_v1  ;;  %v1920_v21 = vsel %vm1915_vm6, %v1917_v3, %v1919_v16 }
  0x78   : > { %v1688_v17 = vsel %vm1671_vm7, %v1679_v12, %v1687_v13 }
  0x7c   : > { %2630 = vmatmul.mubr.msk.bf16.gmra.mxu1 %vm239_vm1, %v833_v19  ;;  %v1695_v19 = vrot.slane %v1693_v15, 3 }
  0x7d   : > { %2669 = vmatprep.mubr.msk.bf16.mxu1 %vm2891_vm0, %v2890_v1 }
  0x7e   : > { %2698 = vmatmul.mubr.msk.bf16.vlgmr.msra.gmra.mxu0 %vm239_vm1, %v1472_v22  ;;  %v2877_v22 = vld [vmem:[%s2945_s23 + $0x20] sm:$0xff]  }
  0x7f   : > { %2746 = vmatpush3.bf16.msra.mxu0 %v2857_v23  ;;  %2701 = vmatprep.mubr.msk.bf16.mxu0 %vm2891_vm0, %v2890_v1  ;;  %v1696_v23 = vor.u32 %v1695_v19, %v1692_v18  ;;  %v1921_v26 = vrot.slane %v2877_v22, 3 }
  0x80   : > { %2747 = vmatprep.subr.bf16.mxu0 %v2890_v1 }
  0x81   : > { %v1697_v27 = vsel %vm1671_vm7, %v1687_v13, %v1696_v23  ;;  %v1922_v31 = vsel %vm1915_vm6, %v1919_v16, %v1921_v26 }
  0x83   : > { %2748 = vmatpush3.bf16.msra.mxu0 %v2862_v28  ;;  %v1701_v28 = vrot.slane %v1699_v24, 2 }
  0x84   : > { %2670 = vmatmul.mubr.msk.bf16.vlgmr.msra.gmra.mxu1 %vm239_vm1, %v1271_v29  ;;  %2749 = vmatprep.subr.bf16.mxu0 %v2890_v1  ;;  %v1704_v29 = vrot.slane %v1702_v25, 3 }
  0x85   : > { %2718 = vmatpush3.bf16.msra.mxu1 %v2852_v30  ;;  %2673 = vmatprep.mubr.msk.bf16.mxu1 %vm2891_vm0, %v2890_v1  ;;  %v2878_v30 = vld [vmem:[%s2945_s23 + $0x28] sm:$0xff]  }
  0x86   : > { %2719 = vmatprep.subr.bf16.mxu1 %v2890_v1  ;;  %2702 = vmatmul.mubr.msk.bf16.gmra.mxu0 %vm239_vm1, %v1474_v32  ;;  %v2879_v32 = vld [vmem:[%s2945_s23 + $0x28] sm:$0xff]   ;;  %v1705_v33 = vor.u32 %v1704_v29, %v1701_v28  ;;  %v1711_v35 = vshll.u32 %v2878_v30, 16 }
  0x87   : > { %2705 = vmatprep.mubr.msk.bf16.mxu0 %vm2891_vm0, %v2890_v1  ;;  %2750 = vmatpush3.bf16.msra.mxu0 %v2866_v34  ;;  %v1708_v34 = vshrl.u32 %v2878_v30, 16 }
  0x88   : > { %2751 = vmatprep.subr.bf16.mxu0 %v2890_v1  ;;  %v1706_v37 = vsel %vm1671_vm7, %v1696_v23, %v1705_v33 }
  0x89   : > { %2720 = vmatpush3.bf16.msra.mxu1 %v2856_v36  ;;  %v1923_v36 = vrot.slane %v2879_v32, 3 }
  0x8a   : > { %2721 = vmatprep.subr.bf16.mxu1 %v2890_v1 }
  0x8b   : > { %2752 = vmatpush3.bf16.msra.mxu0 %v2871_v38  ;;  %v1710_v38 = vrot.slane %v1708_v34, 2 }
  0x8c   : > { %2674 = vmatmul.mubr.msk.bf16.gmra.mxu1 %vm239_vm1, %v1273_v39  ;;  %v1713_v39 = vrot.slane %v1711_v35, 3 }
  0x8d   : > { %2677 = vmatprep.mubr.msk.bf16.mxu1 %vm2891_vm0, %v2890_v1  ;;  %2722 = vmatpush3.bf16.msra.mxu1 %v2861_v41  ;;  %v1924_v41 = vsel %vm1915_vm6, %v1921_v26, %v1923_v36 }
  0x8e   : > { %2706 = vmatmul.mubr.msk.bf16.gmra.mxu0 %vm239_vm1, %v1476_v42  ;;  %2723 = vmatprep.subr.bf16.mxu1 %v2890_v1  ;;  %v2881_v42 = vld [vmem:[%s2945_s23 + $0x30] ss:$0 sps:$4 sm:$0x77]   ;;  %v1714_v43 = vor.u32 %v1713_v39, %v1710_v38 }
  0x8f   : > { %2709 = vmatprep.mubr.msk.bf16.mxu0 %vm2891_vm0, %v2890_v1  ;;  %v1925_v46 = vrot.slane %v2881_v42, 3 }
  0x91   : > { %2724 = vmatpush3.bf16.msra.mxu1 %v2865_v45  ;;  %v1720_v45 = vshll.u32 %v2880_v40, 16  ;;  %v1926_v50 = vsel %vm1915_vm6, %v1923_v36, %v1925_v46 }
  0x94   : > { %2678 = vmatmul.mubr.msk.bf16.gmra.mxu1 %vm239_vm1, %v1275_v47  ;;  %v1715_v47 = vsel %vm1671_vm7, %v1705_v33, %v1714_v43 }
  0x95   : > { %2681 = vmatprep.mubr.msk.bf16.mxu1 %vm2891_vm0, %v2890_v1 }
  0x96   : > { %2710 = vmatmul.mubr.msk.bf16.gmra.mxu0 %vm239_vm1, %v1478_v49  ;;  %v1722_v49 = vrot.slane %v1720_v45, 3 }
  0x97   : > { %2713 = vmatprep.mubr.msk.bf16.mxu0 %vm2891_vm0, %v2890_v1 }
  0x98   : > { %v1723_v51 = vor.u32 %v1722_v49, %v1719_v48 }
  0x9a   : > { %v1724_v52 = vsel %vm1671_vm7, %v1714_v43, %v1723_v51 }
  0x9c   : > { %2682 = vmatmul.mubr.msk.bf16.gmra.mxu1 %vm239_vm1, %v1277_v54 }
  0x9d   : > { %2685 = vmatprep.mubr.msk.bf16.mxu1 %vm2891_vm0, %v2890_v1 }
  0x9e   : > { %2714 = vmatmul.mubr.msk.bf16.gmra.mxu0 %vm239_vm1, %v1480_v57 }
  0x9f   : > { %2753 = vmatprep.mubr.msk.bf16.mxu0 %vm2891_vm0, %v2890_v1 }
  0xa4   : > { %2686 = vmatmul.mubr.msk.bf16.gmra.mxu1 %vm239_vm1, %v1279_v4 }
  0xa5   : > { %2725 = vmatprep.mubr.msk.bf16.mxu1 %vm2891_vm0, %v2890_v1 }
  0xa6   : > { %2754 = vmatmul.mubr.msk.bf16.vlgmr.msra.gmra.mxu0 %vm239_vm1, %v1918_v10 }
  0xa7   : > { %2757 = vmatprep.mubr.msk.bf16.mxu0 %vm2891_vm0, %v2890_v1 }
  0xac   : > { %2726 = vmatmul.mubr.msk.bf16.vlgmr.msra.gmra.mxu1 %vm239_vm1, %v1688_v17 }
  0xad   : > { %2729 = vmatprep.mubr.msk.bf16.mxu1 %vm2891_vm0, %v2890_v1 }
  0xae   : > { %2758 = vmatmul.mubr.msk.bf16.gmra.mxu0 %vm239_vm1, %v1920_v21 }
  0xaf   : > { %2761 = vmatprep.mubr.msk.bf16.mxu0 %vm2891_vm0, %v2890_v1 }
  0xb4   : > { %2730 = vmatmul.mubr.msk.bf16.gmra.mxu1 %vm239_vm1, %v1697_v27 }
  0xb5   : > { %2733 = vmatprep.mubr.msk.bf16.mxu1 %vm2891_vm0, %v2890_v1 }
  0xb6   : > { %2762 = vmatmul.mubr.msk.bf16.gmra.mxu0 %vm239_vm1, %v1922_v31 }
  0xb7   : > { %2765 = vmatprep.mubr.msk.bf16.mxu0 %vm2891_vm0, %v2890_v1 }
  0xbc   : > { %2734 = vmatmul.mubr.msk.bf16.gmra.mxu1 %vm239_vm1, %v1706_v37 }
  0xbd   : > { %2737 = vmatprep.mubr.msk.bf16.mxu1 %vm2891_vm0, %v2890_v1 }
  0xbe   : > { %2766 = vmatmul.mubr.msk.bf16.gmra.mxu0 %vm239_vm1, %v1924_v41 }
  0xbf   : > { %2769 = vmatprep.mubr.msk.bf16.mxu0 %vm2891_vm0, %v2890_v1 }
  0xc4   : > { %2738 = vmatmul.mubr.msk.bf16.gmra.mxu1 %vm239_vm1, %v1715_v47 }
  0xc5   : > { %2741 = vmatprep.mubr.msk.bf16.mxu1 %vm2891_vm0, %v2890_v1 }
  0xc6   : > { %2770 = vmatmul.mubr.msk.bf16.gmra.mxu0 %vm239_vm1, %v1926_v50 }
  0xcc   : > { %2742 = vmatmul.mubr.msk.bf16.gmra.mxu1 %vm239_vm1, %v1724_v52 }
  0xdc   : > { %v305_v53 = vpop.f32.mrf.mxu1  ;;  %v289_v54 = vpop.f32.mrf.mxu0 }
  0xdd   : > { %332 = vst.msk [vmem:[#allocation2 + $0x20] sm:$0xff] %vm239_vm1, %v305_v53  ;;  %328 = vst.msk [vmem:[#allocation2] sm:$0xff] %vm239_vm1, %v289_v54 }
  0xde   : > { %v2539_v55 = vpop.f32.mrf.mxu1  ;;  %v2531_v56 = vpop.f32.mrf.mxu0 }
  0xe0   : > { %v308_v57 = vpop.f32.mrf.mxu1  ;;  %v292_v58 = vpop.f32.mrf.mxu0 }
  0xe1   : > { %333 = vst.msk [vmem:[#allocation2 + $0x28] sm:$0xff] %vm239_vm1, %v308_v57  ;;  %329 = vst.msk [vmem:[#allocation2 + $0x8] sm:$0xff] %vm239_vm1, %v292_v58 }
  0xe2   : > { %v2540_v1 = vpop.f32.mrf.mxu1  ;;  %v2532_v59 = vpop.f32.mrf.mxu0 }
  0xe4   : > { %v313_v60 = vpop.f32.mrf.mxu1  ;;  %v297_v61 = vpop.f32.mrf.mxu0  ;;  %v543_v12 = vld [vmem:[#allocation2] sm:$0xff] }
  0xe5   : > { %334 = vst.msk [vmem:[#allocation2 + $0x30] sm:$0xff] %vm239_vm1, %v313_v60  ;;  %330 = vst.msk [vmem:[#allocation2 + $0x10] sm:$0xff] %vm239_vm1, %v297_v61  ;;  %v547_v41 = vld [vmem:[#allocation2 + $0x20] sm:$0xff] }
  0xe6   : > { %v2543_v62 = vpop.f32.mrf.mxu1  ;;  %v2535_v63 = vpop.f32.mrf.mxu0 }
  0xe8   : > { %v316_v0 = vpop.f32.mrf.mxu1  ;;  %v300_v2 = vpop.f32.mrf.mxu0  ;;  %v544_v19 = vld [vmem:[#allocation2 + $0x8] sm:$0xff] }
  0xe9   : > { %335 = vst.msk [vmem:[#allocation2 + $0x38] sm:$0xff] %vm239_vm1, %v316_v0  ;;  %331 = vst.msk [vmem:[#allocation2 + $0x18] sm:$0xff] %vm239_vm1, %v300_v2  ;;  %v548_v49 = vld [vmem:[#allocation2 + $0x28] sm:$0xff] }
  0xea   : > { %v2544_v3 = vpop.f32.mrf.mxu1  ;;  %v2536_v4 = vpop.f32.mrf.mxu0 }
  0xec   : > { %v321_v5 = vpop.f32.mrf.mxu1  ;;  %v545_v23 = vld [vmem:[#allocation2 + $0x10] sm:$0xff] }
  0xed   : > { %336 = vst.msk [vmem:[#allocation2 + $0x40] sm:$0xff] %vm239_vm1, %v321_v5  ;;  %v706_v6 = vpop.f32.mrf.mxu0  ;;  %v549_v57 = vld [vmem:[#allocation2 + $0x30] sm:$0xff] }
  0xee   : > { %v2547_v7 = vpop.f32.mrf.mxu1 }
  0xef   : > { %v2587_v8 = vpop.f32.mrf.mxu0 }
  0xf0   : > { %v324_v9 = vpop.f32.mrf.mxu1  ;;  %v546_v33 = vld [vmem:[#allocation2 + $0x18] sm:$0xff] }
  0xf1   : > { %337 = vst.msk [vmem:[#allocation2 + $0x48] sm:$0xff] %vm239_vm1, %v324_v9  ;;  %v709_v10 = vpop.f32.mrf.mxu0  ;;  %v550_v0 = vld [vmem:[#allocation2 + $0x38] sm:$0xff] }
  0xf2   : > { %v2548_v11 = vpop.f32.mrf.mxu1 }
  0xf3   : > { %v2588_v13 = vpop.f32.mrf.mxu0 }
  0xf4   : > { %v504_v14 = vpop.f32.mrf.mxu1  ;;  %v551_v9 = vld [vmem:[#allocation2 + $0x40] sm:$0xff] }
  0xf5   : > { %v553_v15 = vadd.f32 %v543_v12, %v504_v14 }
  0xf6   : > { %v2559_v16 = vpop.f32.mrf.mxu1  ;;  %v714_v17 = vpop.f32.mrf.mxu0 }
  0xf7   : > { %563 = vst.msk [vmem:[#allocation2] sm:$0xff] %vm239_vm1, %v553_v15 }
  0xf8   : > { %v507_v18 = vpop.f32.mrf.mxu1  ;;  %v2591_v20 = vpop.f32.mrf.mxu0 }
  0xf9   : > { %v554_v21 = vadd.f32 %v544_v19, %v507_v18 }
  0xfa   : > { %v2560_v22 = vpop.f32.mrf.mxu1  ;;  %v717_v24 = vpop.f32.mrf.mxu0 }
  0xfb   : > { %564 = vst.msk [vmem:[#allocation2 + $0x8] sm:$0xff] %vm239_vm1, %v554_v21 }
  0xfc   : > { %v512_v25 = vpop.f32.mrf.mxu1  ;;  %v2592_v26 = vpop.f32.mrf.mxu0 }
  0xfd   : > { %v555_v27 = vadd.f32 %v545_v23, %v512_v25 }
  0xfe   : > { %v745_v28 = vld [vmem:[#allocation2] sm:$0xff]  ;;  %v2563_v29 = vpop.f32.mrf.mxu1  ;;  %v722_v30 = vpop.f32.mrf.mxu0 }
  0xff   : > { %v755_v31 = vadd.f32 %v745_v28, %v706_v6  ;;  %565 = vst.msk [vmem:[#allocation2 + $0x10] sm:$0xff] %vm239_vm1, %v555_v27 }
 0x100   : > { %v515_v32 = vpop.f32.mrf.mxu1  ;;  %v2595_v34 = vpop.f32.mrf.mxu0 }
 0x101   : > { %765 = vst.msk [vmem:[#allocation2] sm:$0xff] %vm239_vm1, %v755_v31  ;;  %v556_v35 = vadd.f32 %v546_v33, %v515_v32 }
 0x102   : > { %v746_v36 = vld [vmem:[#allocation2 + $0x8] sm:$0xff]  ;;  %v2564_v37 = vpop.f32.mrf.mxu1  ;;  %v725_v38 = vpop.f32.mrf.mxu0 }
 0x103   : > { %v756_v39 = vadd.f32 %v746_v36, %v709_v10  ;;  %566 = vst.msk [vmem:[#allocation2 + $0x18] sm:$0xff] %vm239_vm1, %v556_v35 }
 0x104   : > { %v520_v40 = vpop.f32.mrf.mxu1  ;;  %v2596_v42 = vpop.f32.mrf.mxu0 }
 0x105   : > { %766 = vst.msk [vmem:[#allocation2 + $0x8] sm:$0xff] %vm239_vm1, %v756_v39  ;;  %v557_v43 = vadd.f32 %v547_v41, %v520_v40 }
 0x106   : > { %v747_v44 = vld [vmem:[#allocation2 + $0x10] sm:$0xff]  ;;  %v2567_v45 = vpop.f32.mrf.mxu1  ;;  %v730_v46 = vpop.f32.mrf.mxu0 }
 0x107   : > { %v757_v47 = vadd.f32 %v747_v44, %v714_v17  ;;  %567 = vst.msk [vmem:[#allocation2 + $0x20] sm:$0xff] %vm239_vm1, %v557_v43  ;;  %v552_v17 = vld [vmem:[#allocation2 + $0x48] sm:$0xff] }
 0x108   : > { %v523_v48 = vpop.f32.mrf.mxu1  ;;  %v2599_v50 = vpop.f32.mrf.mxu0  ;;  %v946_v25 = vld [vmem:[#allocation2] sm:$0xff] }
 0x109   : > { %767 = vst.msk [vmem:[#allocation2 + $0x10] sm:$0xff] %vm239_vm1, %v757_v47  ;;  %v558_v51 = vadd.f32 %v548_v49, %v523_v48 }
 0x10a   : > { %v748_v52 = vld [vmem:[#allocation2 + $0x18] sm:$0xff]  ;;  %v2568_v53 = vpop.f32.mrf.mxu1  ;;  %v733_v54 = vpop.f32.mrf.mxu0 }
 0x10b   : > { %v758_v55 = vadd.f32 %v748_v52, %v717_v24  ;;  %568 = vst.msk [vmem:[#allocation2 + $0x28] sm:$0xff] %vm239_vm1, %v558_v51 }
 0x10c   : > { %v528_v56 = vpop.f32.mrf.mxu1  ;;  %v2600_v58 = vpop.f32.mrf.mxu0  ;;  %v947_v33 = vld [vmem:[#allocation2 + $0x8] sm:$0xff] }
 0x10d   : > { %768 = vst.msk [vmem:[#allocation2 + $0x18] sm:$0xff] %vm239_vm1, %v758_v55  ;;  %v559_v1 = vadd.f32 %v549_v57, %v528_v56 }
 0x10e   : > { %v749_v59 = vld [vmem:[#allocation2 + $0x20] sm:$0xff]  ;;  %v2571_v60 = vpop.f32.mrf.mxu1  ;;  %v738_v61 = vpop.f32.mrf.mxu0 }
 0x10f   : > { %v759_v62 = vadd.f32 %v749_v59, %v722_v30  ;;  %569 = vst.msk [vmem:[#allocation2 + $0x30] sm:$0xff] %vm239_vm1, %v559_v1 }
 0x110   : > { %v531_v63 = vpop.f32.mrf.mxu1  ;;  %v2603_v2 = vpop.f32.mrf.mxu0  ;;  %v948_v41 = vld [vmem:[#allocation2 + $0x10] sm:$0xff] }
 0x111   : > { %769 = vst.msk [vmem:[#allocation2 + $0x20] sm:$0xff] %vm239_vm1, %v759_v62  ;;  %v560_v3 = vadd.f32 %v550_v0, %v531_v63 }
 0x112   : > { %v750_v4 = vld [vmem:[#allocation2 + $0x28] sm:$0xff]  ;;  %v2572_v5 = vpop.f32.mrf.mxu1  ;;  %v741_v6 = vpop.f32.mrf.mxu0 }
 0x113   : > { %v760_v7 = vadd.f32 %v750_v4, %v725_v38  ;;  %570 = vst.msk [vmem:[#allocation2 + $0x38] sm:$0xff] %vm239_vm1, %v560_v3 }
 0x114   : > { %v536_v8 = vpop.f32.mrf.mxu1  ;;  %v2604_v10 = vpop.f32.mrf.mxu0  ;;  %v949_v49 = vld [vmem:[#allocation2 + $0x18] sm:$0xff] }
 0x115   : > { %770 = vst.msk [vmem:[#allocation2 + $0x28] sm:$0xff] %vm239_vm1, %v760_v7  ;;  %v561_v11 = vadd.f32 %v551_v9, %v536_v8 }
 0x116   : > { %v751_v12 = vld [vmem:[#allocation2 + $0x30] sm:$0xff]  ;;  %v2575_v13 = vpop.f32.mrf.mxu1  ;;  %v1151_v14 = vpop.f32.mrf.mxu0 }
 0x117   : > { %v761_v15 = vadd.f32 %v751_v12, %v730_v46  ;;  %571 = vst.msk [vmem:[#allocation2 + $0x40] sm:$0xff] %vm239_vm1, %v561_v11 }
 0x118   : > { %v539_v16 = vpop.f32.mrf.mxu1  ;;  %v2643_v18 = vpop.f32.mrf.mxu0  ;;  %v950_v57 = vld [vmem:[#allocation2 + $0x20] sm:$0xff] }
 0x119   : > { %771 = vst.msk [vmem:[#allocation2 + $0x30] sm:$0xff] %vm239_vm1, %v761_v15  ;;  %v562_v19 = vadd.f32 %v552_v17, %v539_v16 }
 0x11a   : > { %v752_v20 = vld [vmem:[#allocation2 + $0x38] sm:$0xff]  ;;  %v2576_v21 = vpop.f32.mrf.mxu1  ;;  %v1154_v22 = vpop.f32.mrf.mxu0 }
 0x11b   : > { %v762_v23 = vadd.f32 %v752_v20, %v733_v54  ;;  %572 = vst.msk [vmem:[#allocation2 + $0x48] sm:$0xff] %vm239_vm1, %v562_v19 }
 0x11c   : > { %v907_v24 = vpop.f32.mrf.mxu1  ;;  %v2644_v26 = vpop.f32.mrf.mxu0  ;;  %v951_v0 = vld [vmem:[#allocation2 + $0x28] sm:$0xff] }
 0x11d   : > { %772 = vst.msk [vmem:[#allocation2 + $0x38] sm:$0xff] %vm239_vm1, %v762_v23  ;;  %v956_v27 = vadd.f32 %v946_v25, %v907_v24 }
 0x11e   : > { %v753_v28 = vld [vmem:[#allocation2 + $0x40] sm:$0xff]  ;;  %v2615_v29 = vpop.f32.mrf.mxu1  ;;  %v1159_v30 = vpop.f32.mrf.mxu0 }
 0x11f   : > { %v763_v31 = vadd.f32 %v753_v28, %v738_v61  ;;  %966 = vst.msk [vmem:[#allocation2] sm:$0xff] %vm239_vm1, %v956_v27 }
 0x120   : > { %v910_v32 = vpop.f32.mrf.mxu1  ;;  %v2647_v34 = vpop.f32.mrf.mxu0  ;;  %v952_v9 = vld [vmem:[#allocation2 + $0x30] sm:$0xff] }
 0x121   : > { %773 = vst.msk [vmem:[#allocation2 + $0x40] sm:$0xff] %vm239_vm1, %v763_v31  ;;  %v957_v35 = vadd.f32 %v947_v33, %v910_v32 }
 0x122   : > { %v754_v36 = vld [vmem:[#allocation2 + $0x48] sm:$0xff]  ;;  %v2616_v37 = vpop.f32.mrf.mxu1  ;;  %v1162_v38 = vpop.f32.mrf.mxu0 }
 0x123   : > { %v764_v39 = vadd.f32 %v754_v36, %v741_v6  ;;  %967 = vst.msk [vmem:[#allocation2 + $0x8] sm:$0xff] %vm239_vm1, %v957_v35 }
 0x124   : > { %v915_v40 = vpop.f32.mrf.mxu1  ;;  %v2648_v42 = vpop.f32.mrf.mxu0  ;;  %v953_v17 = vld [vmem:[#allocation2 + $0x38] sm:$0xff] }
 0x125   : > { %774 = vst.msk [vmem:[#allocation2 + $0x48] sm:$0xff] %vm239_vm1, %v764_v39  ;;  %v958_v43 = vadd.f32 %v948_v41, %v915_v40 }
 0x126   : > { %v1190_v44 = vld [vmem:[#allocation2] sm:$0xff]  ;;  %v2619_v45 = vpop.f32.mrf.mxu1  ;;  %v1167_v46 = vpop.f32.mrf.mxu0 }
 0x127   : > { %v1200_v47 = vadd.f32 %v1190_v44, %v1151_v14  ;;  %968 = vst.msk [vmem:[#allocation2 + $0x10] sm:$0xff] %vm239_vm1, %v958_v43 }
 0x128   : > { %v918_v48 = vpop.f32.mrf.mxu1  ;;  %v2651_v50 = vpop.f32.mrf.mxu0  ;;  %v954_v25 = vld [vmem:[#allocation2 + $0x40] sm:$0xff] }
 0x129   : > { %1210 = vst.msk [vmem:[#allocation2] sm:$0xff] %vm239_vm1, %v1200_v47  ;;  %v959_v51 = vadd.f32 %v949_v49, %v918_v48 }
 0x12a   : > { %v1191_v52 = vld [vmem:[#allocation2 + $0x8] sm:$0xff]  ;;  %v2620_v53 = vpop.f32.mrf.mxu1  ;;  %v1170_v54 = vpop.f32.mrf.mxu0 }
 0x12b   : > { %v1201_v55 = vadd.f32 %v1191_v52, %v1154_v22  ;;  %969 = vst.msk [vmem:[#allocation2 + $0x18] sm:$0xff] %vm239_vm1, %v959_v51 }
 0x12c   : > { %v923_v56 = vpop.f32.mrf.mxu1  ;;  %v2652_v58 = vpop.f32.mrf.mxu0  ;;  %v955_v33 = vld [vmem:[#allocation2 + $0x48] sm:$0xff] }
 0x12d   : > { %1211 = vst.msk [vmem:[#allocation2 + $0x8] sm:$0xff] %vm239_vm1, %v1201_v55  ;;  %v960_v1 = vadd.f32 %v950_v57, %v923_v56 }
 0x12e   : > { %v1192_v59 = vld [vmem:[#allocation2 + $0x10] sm:$0xff]  ;;  %v2623_v60 = vpop.f32.mrf.mxu1  ;;  %v1175_v61 = vpop.f32.mrf.mxu0 }
 0x12f   : > { %v1202_v62 = vadd.f32 %v1192_v59, %v1159_v30  ;;  %970 = vst.msk [vmem:[#allocation2 + $0x20] sm:$0xff] %vm239_vm1, %v960_v1 }
 0x130   : > { %v926_v63 = vpop.f32.mrf.mxu1  ;;  %v2655_v2 = vpop.f32.mrf.mxu0  ;;  %v1392_v41 = vld [vmem:[#allocation2] sm:$0xff] }
 0x131   : > { %1212 = vst.msk [vmem:[#allocation2 + $0x10] sm:$0xff] %vm239_vm1, %v1202_v62  ;;  %v961_v3 = vadd.f32 %v951_v0, %v926_v63 }
 0x132   : > { %v1193_v4 = vld [vmem:[#allocation2 + $0x18] sm:$0xff]  ;;  %v2624_v5 = vpop.f32.mrf.mxu1  ;;  %v1178_v6 = vpop.f32.mrf.mxu0 }
 0x133   : > { %v1203_v7 = vadd.f32 %v1193_v4, %v1162_v38  ;;  %971 = vst.msk [vmem:[#allocation2 + $0x28] sm:$0xff] %vm239_vm1, %v961_v3 }
 0x134   : > { %v931_v8 = vpop.f32.mrf.mxu1  ;;  %v2656_v10 = vpop.f32.mrf.mxu0  ;;  %v1393_v49 = vld [vmem:[#allocation2 + $0x8] sm:$0xff] }
 0x135   : > { %1213 = vst.msk [vmem:[#allocation2 + $0x18] sm:$0xff] %vm239_vm1, %v1203_v7  ;;  %v962_v11 = vadd.f32 %v952_v9, %v931_v8 }
 0x136   : > { %v1194_v12 = vld [vmem:[#allocation2 + $0x20] sm:$0xff]  ;;  %v2627_v13 = vpop.f32.mrf.mxu1  ;;  %v1183_v14 = vpop.f32.mrf.mxu0 }
 0x137   : > { %v1204_v15 = vadd.f32 %v1194_v12, %v1167_v46  ;;  %972 = vst.msk [vmem:[#allocation2 + $0x30] sm:$0xff] %vm239_vm1, %v962_v11 }
 0x138   : > { %v934_v16 = vpop.f32.mrf.mxu1  ;;  %v2659_v18 = vpop.f32.mrf.mxu0  ;;  %v1394_v57 = vld [vmem:[#allocation2 + $0x10] sm:$0xff] }
 0x139   : > { %1214 = vst.msk [vmem:[#allocation2 + $0x20] sm:$0xff] %vm239_vm1, %v1204_v15  ;;  %v963_v19 = vadd.f32 %v953_v17, %v934_v16 }
 0x13a   : > { %v1195_v20 = vld [vmem:[#allocation2 + $0x28] sm:$0xff]  ;;  %v2628_v21 = vpop.f32.mrf.mxu1  ;;  %v1186_v22 = vpop.f32.mrf.mxu0 }
 0x13b   : > { %v1205_v23 = vadd.f32 %v1195_v20, %v1170_v54  ;;  %973 = vst.msk [vmem:[#allocation2 + $0x38] sm:$0xff] %vm239_vm1, %v963_v19 }
 0x13c   : > { %v939_v24 = vpop.f32.mrf.mxu1  ;;  %v2660_v26 = vpop.f32.mrf.mxu0  ;;  %v1395_v0 = vld [vmem:[#allocation2 + $0x18] sm:$0xff] }
 0x13d   : > { %1215 = vst.msk [vmem:[#allocation2 + $0x28] sm:$0xff] %vm239_vm1, %v1205_v23  ;;  %v964_v27 = vadd.f32 %v954_v25, %v939_v24 }
 0x13e   : > { %v1196_v28 = vld [vmem:[#allocation2 + $0x30] sm:$0xff]  ;;  %v2631_v29 = vpop.f32.mrf.mxu1  ;;  %v1554_v30 = vpop.f32.mrf.mxu0 }
 0x13f   : > { %v1206_v31 = vadd.f32 %v1196_v28, %v1175_v61  ;;  %974 = vst.msk [vmem:[#allocation2 + $0x40] sm:$0xff] %vm239_vm1, %v964_v27 }
 0x140   : > { %v942_v32 = vpop.f32.mrf.mxu1  ;;  %v2699_v34 = vpop.f32.mrf.mxu0  ;;  %v1396_v9 = vld [vmem:[#allocation2 + $0x20] sm:$0xff] }
 0x141   : > { %1216 = vst.msk [vmem:[#allocation2 + $0x30] sm:$0xff] %vm239_vm1, %v1206_v31  ;;  %v965_v35 = vadd.f32 %v955_v33, %v942_v32 }
 0x142   : > { %v1197_v36 = vld [vmem:[#allocation2 + $0x38] sm:$0xff]  ;;  %v2632_v37 = vpop.f32.mrf.mxu1  ;;  %v1557_v38 = vpop.f32.mrf.mxu0 }
 0x143   : > { %v1207_v39 = vadd.f32 %v1197_v36, %v1178_v6  ;;  %975 = vst.msk [vmem:[#allocation2 + $0x48] sm:$0xff] %vm239_vm1, %v965_v35 }
 0x144   : > { %v1353_v40 = vpop.f32.mrf.mxu1  ;;  %v2700_v42 = vpop.f32.mrf.mxu0  ;;  %v1397_v17 = vld [vmem:[#allocation2 + $0x28] sm:$0xff] }
 0x145   : > { %1217 = vst.msk [vmem:[#allocation2 + $0x38] sm:$0xff] %vm239_vm1, %v1207_v39  ;;  %v1402_v43 = vadd.f32 %v1392_v41, %v1353_v40 }
 0x146   : > { %v1198_v44 = vld [vmem:[#allocation2 + $0x40] sm:$0xff]  ;;  %v2671_v45 = vpop.f32.mrf.mxu1  ;;  %v1562_v46 = vpop.f32.mrf.mxu0 }
 0x147   : > { %v1208_v47 = vadd.f32 %v1198_v44, %v1183_v14  ;;  %1412 = vst.msk [vmem:[#allocation2] sm:$0xff] %vm239_vm1, %v1402_v43 }
 0x148   : > { %v1356_v48 = vpop.f32.mrf.mxu1  ;;  %v2703_v50 = vpop.f32.mrf.mxu0  ;;  %v1398_v25 = vld [vmem:[#allocation2 + $0x30] sm:$0xff] }
 0x149   : > { %1218 = vst.msk [vmem:[#allocation2 + $0x40] sm:$0xff] %vm239_vm1, %v1208_v47  ;;  %v1403_v51 = vadd.f32 %v1393_v49, %v1356_v48 }
 0x14a   : > { %v1199_v52 = vld [vmem:[#allocation2 + $0x48] sm:$0xff]  ;;  %v2672_v53 = vpop.f32.mrf.mxu1  ;;  %v1565_v54 = vpop.f32.mrf.mxu0 }
 0x14b   : > { %v1209_v55 = vadd.f32 %v1199_v52, %v1186_v22  ;;  %1413 = vst.msk [vmem:[#allocation2 + $0x8] sm:$0xff] %vm239_vm1, %v1403_v51 }
 0x14c   : > { %v1361_v56 = vpop.f32.mrf.mxu1  ;;  %v2704_v58 = vpop.f32.mrf.mxu0  ;;  %v1399_v33 = vld [vmem:[#allocation2 + $0x38] sm:$0xff] }
 0x14d   : > { %1219 = vst.msk [vmem:[#allocation2 + $0x48] sm:$0xff] %vm239_vm1, %v1209_v55  ;;  %v1404_v1 = vadd.f32 %v1394_v57, %v1361_v56 }
 0x14e   : > { %v1593_v59 = vld [vmem:[#allocation2] sm:$0xff]  ;;  %v2675_v60 = vpop.f32.mrf.mxu1  ;;  %v1570_v61 = vpop.f32.mrf.mxu0 }
 0x14f   : > { %v1603_v62 = vadd.f32 %v1593_v59, %v1554_v30  ;;  %1414 = vst.msk [vmem:[#allocation2 + $0x10] sm:$0xff] %vm239_vm1, %v1404_v1 }
 0x150   : > { %v1364_v63 = vpop.f32.mrf.mxu1  ;;  %v2707_v2 = vpop.f32.mrf.mxu0  ;;  %v1400_v41 = vld [vmem:[#allocation2 + $0x40] sm:$0xff] }
 0x151   : > { %1613 = vst.msk [vmem:[#allocation2] sm:$0xff] %vm239_vm1, %v1603_v62  ;;  %v1405_v3 = vadd.f32 %v1395_v0, %v1364_v63 }
 0x152   : > { %v1594_v4 = vld [vmem:[#allocation2 + $0x8] sm:$0xff]  ;;  %v2676_v5 = vpop.f32.mrf.mxu1  ;;  %v1573_v6 = vpop.f32.mrf.mxu0 }
 0x153   : > { %v1604_v7 = vadd.f32 %v1594_v4, %v1557_v38  ;;  %1415 = vst.msk [vmem:[#allocation2 + $0x18] sm:$0xff] %vm239_vm1, %v1405_v3 }
 0x154   : > { %v1369_v8 = vpop.f32.mrf.mxu1  ;;  %v2708_v10 = vpop.f32.mrf.mxu0  ;;  %v1401_v49 = vld [vmem:[#allocation2 + $0x48] sm:$0xff] }
 0x155   : > { %1614 = vst.msk [vmem:[#allocation2 + $0x8] sm:$0xff] %vm239_vm1, %v1604_v7  ;;  %v1406_v11 = vadd.f32 %v1396_v9, %v1369_v8 }
 0x156   : > { %v1595_v12 = vld [vmem:[#allocation2 + $0x10] sm:$0xff]  ;;  %v2679_v13 = vpop.f32.mrf.mxu1  ;;  %v1578_v14 = vpop.f32.mrf.mxu0 }
 0x157   : > { %v1605_v15 = vadd.f32 %v1595_v12, %v1562_v46  ;;  %1416 = vst.msk [vmem:[#allocation2 + $0x20] sm:$0xff] %vm239_vm1, %v1406_v11 }
 0x158   : > { %v1372_v16 = vpop.f32.mrf.mxu1  ;;  %v2711_v18 = vpop.f32.mrf.mxu0  ;;  %v1837_v57 = vld [vmem:[#allocation2] sm:$0xff] }
 0x159   : > { %1615 = vst.msk [vmem:[#allocation2 + $0x10] sm:$0xff] %vm239_vm1, %v1605_v15  ;;  %v1407_v19 = vadd.f32 %v1397_v17, %v1372_v16 }
 0x15a   : > { %v1596_v20 = vld [vmem:[#allocation2 + $0x18] sm:$0xff]  ;;  %v2680_v21 = vpop.f32.mrf.mxu1  ;;  %v1581_v22 = vpop.f32.mrf.mxu0 }
 0x15b   : > { %v1606_v23 = vadd.f32 %v1596_v20, %v1565_v54  ;;  %1417 = vst.msk [vmem:[#allocation2 + $0x28] sm:$0xff] %vm239_vm1, %v1407_v19 }
 0x15c   : > { %v1377_v24 = vpop.f32.mrf.mxu1  ;;  %v2712_v26 = vpop.f32.mrf.mxu0  ;;  %v1838_v0 = vld [vmem:[#allocation2 + $0x8] sm:$0xff] }
 0x15d   : > { %1616 = vst.msk [vmem:[#allocation2 + $0x18] sm:$0xff] %vm239_vm1, %v1606_v23  ;;  %v1408_v27 = vadd.f32 %v1398_v25, %v1377_v24 }
 0x15e   : > { %v1597_v28 = vld [vmem:[#allocation2 + $0x20] sm:$0xff]  ;;  %v2683_v29 = vpop.f32.mrf.mxu1  ;;  %v1586_v30 = vpop.f32.mrf.mxu0 }
 0x15f   : > { %v1607_v31 = vadd.f32 %v1597_v28, %v1570_v61  ;;  %1418 = vst.msk [vmem:[#allocation2 + $0x30] sm:$0xff] %vm239_vm1, %v1408_v27  ;;  %v3383_v28 = vld [vmem:[%s3440_s2] ss:$0 sm:$0xff] }
 0x160   : > { %v1380_v32 = vpop.f32.mrf.mxu1  ;;  %v2715_v34 = vpop.f32.mrf.mxu0  ;;  %v1839_v9 = vld [vmem:[#allocation2 + $0x10] sm:$0xff] }
 0x161   : > { %1617 = vst.msk [vmem:[#allocation2 + $0x20] sm:$0xff] %vm239_vm1, %v1607_v31  ;;  %v1409_v35 = vadd.f32 %v1399_v33, %v1380_v32 }
 0x162   : > { %v1598_v36 = vld [vmem:[#allocation2 + $0x28] sm:$0xff]  ;;  %v2684_v37 = vpop.f32.mrf.mxu1  ;;  %v1589_v38 = vpop.f32.mrf.mxu0 }
 0x163   : > { %v1608_v39 = vadd.f32 %v1598_v36, %v1573_v6  ;;  %1419 = vst.msk [vmem:[#allocation2 + $0x38] sm:$0xff] %vm239_vm1, %v1409_v35 }
 0x164   : > { %v1385_v40 = vpop.f32.mrf.mxu1  ;;  %v2716_v42 = vpop.f32.mrf.mxu0  ;;  %v1840_v17 = vld [vmem:[#allocation2 + $0x18] sm:$0xff] }
 0x165   : > { %1618 = vst.msk [vmem:[#allocation2 + $0x28] sm:$0xff] %vm239_vm1, %v1608_v39  ;;  %v1410_v43 = vadd.f32 %v1400_v41, %v1385_v40 }
 0x166   : > { %v1599_v44 = vld [vmem:[#allocation2 + $0x30] sm:$0xff]  ;;  %v2687_v45 = vpop.f32.mrf.mxu1  ;;  %v2000_v46 = vpop.f32.mrf.mxu0 }
 0x167   : > { %v1609_v47 = vadd.f32 %v1599_v44, %v1578_v14  ;;  %1420 = vst.msk [vmem:[#allocation2 + $0x40] sm:$0xff] %vm239_vm1, %v1410_v43 }
 0x168   : > { %v1388_v48 = vpop.f32.mrf.mxu1  ;;  %v2755_v50 = vpop.f32.mrf.mxu0  ;;  %v1841_v25 = vld [vmem:[#allocation2 + $0x20] sm:$0xff] }
 0x169   : > { %1619 = vst.msk [vmem:[#allocation2 + $0x30] sm:$0xff] %vm239_vm1, %v1609_v47  ;;  %v1411_v51 = vadd.f32 %v1401_v49, %v1388_v48 }
 0x16a   : > { %v1600_v52 = vld [vmem:[#allocation2 + $0x38] sm:$0xff]  ;;  %v2688_v53 = vpop.f32.mrf.mxu1  ;;  %v2003_v54 = vpop.f32.mrf.mxu0 }
 0x16b   : > { %v1610_v55 = vadd.f32 %v1600_v52, %v1581_v22  ;;  %1421 = vst.msk [vmem:[#allocation2 + $0x48] sm:$0xff] %vm239_vm1, %v1411_v51 }
 0x16c   : > { %v1798_v56 = vpop.f32.mrf.mxu1  ;;  %v2756_v58 = vpop.f32.mrf.mxu0  ;;  %v1842_v35 = vld [vmem:[#allocation2 + $0x28] sm:$0xff] }
 0x16d   : > { %1620 = vst.msk [vmem:[#allocation2 + $0x38] sm:$0xff] %vm239_vm1, %v1610_v55  ;;  %v1847_v1 = vadd.f32 %v1837_v57, %v1798_v56 }
 0x16e   : > { %v1601_v59 = vld [vmem:[#allocation2 + $0x40] sm:$0xff]  ;;  %v2727_v60 = vpop.f32.mrf.mxu1  ;;  %v2008_v61 = vpop.f32.mrf.mxu0 }
 0x16f   : > { %v1611_v62 = vadd.f32 %v1601_v59, %v1586_v30  ;;  %1857 = vst.msk [vmem:[#allocation2] sm:$0xff] %vm239_vm1, %v1847_v1 }
 0x170   : > { %v1801_v63 = vpop.f32.mrf.mxu1  ;;  %v2759_v2 = vpop.f32.mrf.mxu0 }
 0x171   : > { %1621 = vst.msk [vmem:[#allocation2 + $0x40] sm:$0xff] %vm239_vm1, %v1611_v62  ;;  %v1848_v3 = vadd.f32 %v1838_v0, %v1801_v63 }
 0x172   : > { %v1602_v4 = vld [vmem:[#allocation2 + $0x48] sm:$0xff]  ;;  %v2728_v5 = vpop.f32.mrf.mxu1  ;;  %v2011_v6 = vpop.f32.mrf.mxu0 }
 0x173   : > { %v1612_v7 = vadd.f32 %v1602_v4, %v1589_v38  ;;  %1858 = vst.msk [vmem:[#allocation2 + $0x8] sm:$0xff] %vm239_vm1, %v1848_v3 }
 0x174   : > { %v1806_v8 = vpop.f32.mrf.mxu1  ;;  %v2760_v10 = vpop.f32.mrf.mxu0  ;;  %v1844_v58 = vld [vmem:[#allocation2 + $0x38] sm:$0xff] }
 0x175   : > { %1622 = vst.msk [vmem:[#allocation2 + $0x48] sm:$0xff] %vm239_vm1, %v1612_v7  ;;  %v1849_v11 = vadd.f32 %v1839_v9, %v1806_v8 }
 0x176   : > { %v2039_v12 = vld [vmem:[#allocation2] sm:$0xff]  ;;  %v2731_v13 = vpop.f32.mrf.mxu1  ;;  %v2016_v14 = vpop.f32.mrf.mxu0 }
 0x177   : > { %v2049_v15 = vadd.f32 %v2039_v12, %v2000_v46  ;;  %1859 = vst.msk [vmem:[#allocation2 + $0x10] sm:$0xff] %vm239_vm1, %v1849_v11  ;;  %v1843_v46 = vld [vmem:[#allocation2 + $0x30] sm:$0xff] }
 0x178   : > { %v1809_v16 = vpop.f32.mrf.mxu1  ;;  %v2763_v18 = vpop.f32.mrf.mxu0 }
 0x179   : > { %2059 = vst.msk [vmem:[#allocation2] sm:$0xff] %vm239_vm1, %v2049_v15  ;;  %v1850_v19 = vadd.f32 %v1840_v17, %v1809_v16 }
 0x17a   : > { %v2040_v20 = vld [vmem:[#allocation2 + $0x8] sm:$0xff]  ;;  %v2732_v21 = vpop.f32.mrf.mxu1  ;;  %v2019_v22 = vpop.f32.mrf.mxu0 }
 0x17b   : > { %v2050_v23 = vadd.f32 %v2040_v20, %v2003_v54  ;;  %1860 = vst.msk [vmem:[#allocation2 + $0x18] sm:$0xff] %vm239_vm1, %v1850_v19 }
 0x17c   : > { %v1814_v24 = vpop.f32.mrf.mxu1  ;;  %v2764_v26 = vpop.f32.mrf.mxu0  ;;  %v1846_v17 = vld [vmem:[#allocation2 + $0x48] sm:$0xff] }
 0x17d   : > { %2060 = vst.msk [vmem:[#allocation2 + $0x8] sm:$0xff] %vm239_vm1, %v2050_v23  ;;  %v1851_v27 = vadd.f32 %v1841_v25, %v1814_v24 }
 0x17e   : > { %v2041_v29 = vld [vmem:[#allocation2 + $0x10] sm:$0xff]  ;;  %v2735_v30 = vpop.f32.mrf.mxu1  ;;  %v2024_v31 = vpop.f32.mrf.mxu0 }
 0x17f   : > { %v2051_v32 = vadd.f32 %v2041_v29, %v2008_v61  ;;  %1861 = vst.msk [vmem:[#allocation2 + $0x20] sm:$0xff] %vm239_vm1, %v1851_v27 }
 0x180   : > { %v2069_v33 = vld [vmem:[#allocation2] sm:$0xff]  ;;  %v1817_v34 = vpop.f32.mrf.mxu1  ;;  %v2767_v36 = vpop.f32.mrf.mxu0 }
 0x181   : > { %v2086_v37 = vadd.f32 %v3383_v28, %v2069_v33  ;;  %2061 = vst.msk [vmem:[#allocation2 + $0x10] sm:$0xff] %vm239_vm1, %v2051_v32  ;;  %v1852_v38 = vadd.f32 %v1842_v35, %v1817_v34 }
 0x182   : > { %v2042_v39 = vld [vmem:[#allocation2 + $0x18] sm:$0xff]  ;;  %v2736_v40 = vpop.f32.mrf.mxu1  ;;  %v2027_v41 = vpop.f32.mrf.mxu0 }
 0x183   : > { %v2096_v42 = vmax.f32 %v2086_v37, 0.0  ;;  %v2052_v43 = vadd.f32 %v2042_v39, %v2011_v6  ;;  %1862 = vst.msk [vmem:[#allocation2 + $0x28] sm:$0xff] %vm239_vm1, %v1852_v38  ;;  %v1845_v6 = vld [vmem:[#allocation2 + $0x40] sm:$0xff] }
 0x184   : > { %v2070_v44 = vld [vmem:[#allocation2 + $0x8] sm:$0xff]  ;;  %v1822_v45 = vpop.f32.mrf.mxu1  ;;  %v2768_v47 = vpop.f32.mrf.mxu0 }
 0x185   : > { %v2430_v48 = vpack.c.bf16 %v2096_v42, %v2096_v42  ;;  %v2087_v49 = vadd.f32 %v3383_v28, %v2070_v44  ;;  %2062 = vst.msk [vmem:[#allocation2 + $0x18] sm:$0xff] %vm239_vm1, %v2052_v43  ;;  %v1853_v50 = vadd.f32 %v1843_v46, %v1822_v45 }
 0x186   : > { %v2043_v51 = vld [vmem:[#allocation2 + $0x20] sm:$0xff]  ;;  %v2739_v52 = vpop.f32.mrf.mxu1  ;;  %v2032_v53 = vpop.f32.mrf.mxu0 }
 0x187   : > { %2147 = vst.msk [vmem:[%s3393_s13] sm:$0xf] %vm2146_vm8, %v2430_v48  ;;  %v2097_v54 = vmax.f32 %v2087_v49, 0.0  ;;  %v2053_v55 = vadd.f32 %v2043_v51, %v2016_v14 }
 0x188   : > { %1863 = vst.msk [vmem:[#allocation2 + $0x30] sm:$0xff] %vm239_vm1, %v1853_v50  ;;  %v2071_v56 = vld [vmem:[#allocation2 + $0x10] sm:$0xff]  ;;  %v1825_v57 = vpop.f32.mrf.mxu1  ;;  %v2771_v1 = vpop.f32.mrf.mxu0 }
 0x189   : > { %v2431_v59 = vpack.c.bf16 %v2097_v54, %v2097_v54  ;;  %v2088_v60 = vadd.f32 %v3383_v28, %v2071_v56  ;;  %2063 = vst.msk [vmem:[#allocation2 + $0x20] sm:$0xff] %vm239_vm1, %v2053_v55  ;;  %v1854_v61 = vadd.f32 %v1844_v58, %v1825_v57 }
 0x18a   : > { %v2044_v62 = vld [vmem:[#allocation2 + $0x28] sm:$0xff]  ;;  %v2740_v63 = vpop.f32.mrf.mxu1  ;;  %v2035_v0 = vpop.f32.mrf.mxu0 }
 0x18b   : > { %2148 = vst.msk [vmem:[%s3393_s13 + $0x4] sm:$0xf] %vm2146_vm8, %v2431_v59  ;;  %v2098_v2 = vmax.f32 %v2088_v60, 0.0  ;;  %v2054_v3 = vadd.f32 %v2044_v62, %v2019_v22 }
 0x18c   : > { %1864 = vst.msk [vmem:[#allocation2 + $0x38] sm:$0xff] %vm239_vm1, %v1854_v61  ;;  %v2072_v4 = vld [vmem:[#allocation2 + $0x18] sm:$0xff]  ;;  %v1830_v5 = vpop.f32.mrf.mxu1  ;;  %v2772_v7 = vpop.f32.mrf.mxu0 }
 0x18d   : > { %v2432_v8 = vpack.c.bf16 %v2098_v2, %v2098_v2  ;;  %v2089_v9 = vadd.f32 %v3383_v28, %v2072_v4  ;;  %2064 = vst.msk [vmem:[#allocation2 + $0x28] sm:$0xff] %vm239_vm1, %v2054_v3  ;;  %v1855_v10 = vadd.f32 %v1845_v6, %v1830_v5 }
 0x18e   : > { %v2743_v12 = vpop.f32.mrf.mxu1 }
 0x18f   : > { %v2045_v11 = vld [vmem:[#allocation2 + $0x30] sm:$0xff]  ;;  %2149 = vst.msk [vmem:[%s3393_s13 + $0x8] sm:$0xf] %vm2146_vm8, %v2432_v8  ;;  %v2099_v13 = vmax.f32 %v2089_v9, 0.0 }
 0x190   : > { %v2055_v14 = vadd.f32 %v2045_v11, %v2024_v31  ;;  %1865 = vst.msk [vmem:[#allocation2 + $0x40] sm:$0xff] %vm239_vm1, %v1855_v10  ;;  %v2073_v15 = vld [vmem:[#allocation2 + $0x20] sm:$0xff]  ;;  %v1833_v16 = vpop.f32.mrf.mxu1 }
 0x191   : > { %v2433_v18 = vpack.c.bf16 %v2099_v13, %v2099_v13  ;;  %v2090_v19 = vadd.f32 %v3383_v28, %v2073_v15  ;;  %v1856_v20 = vadd.f32 %v1846_v17, %v1833_v16 }
 0x192   : > { %2065 = vst.msk [vmem:[#allocation2 + $0x30] sm:$0xff] %vm239_vm1, %v2055_v14  ;;  %v2744_v22 = vpop.f32.mrf.mxu1 }
 0x193   : > { %v2046_v21 = vld [vmem:[#allocation2 + $0x38] sm:$0xff]  ;;  %2150 = vst.msk [vmem:[%s3393_s13 + $0xc] sm:$0xf] %vm2146_vm8, %v2433_v18  ;;  %v2100_v23 = vmax.f32 %v2090_v19, 0.0 }
 0x194   : > { %v2056_v24 = vadd.f32 %v2046_v21, %v2027_v41  ;;  %1866 = vst.msk [vmem:[#allocation2 + $0x48] sm:$0xff] %vm239_vm1, %v1856_v20  ;;  %v2074_v25 = vld [vmem:[#allocation2 + $0x28] sm:$0xff] }
 0x195   : > { %v2434_v26 = vpack.c.bf16 %v2100_v23, %v2100_v23  ;;  %v2091_v27 = vadd.f32 %v3383_v28, %v2074_v25 }
 0x196   : > { %2066 = vst.msk [vmem:[#allocation2 + $0x38] sm:$0xff] %vm239_vm1, %v2056_v24 }
 0x197   : > { %v2047_v29 = vld [vmem:[#allocation2 + $0x40] sm:$0xff]  ;;  %2151 = vst.msk [vmem:[%s3393_s13 + $0x10] sm:$0xf] %vm2146_vm8, %v2434_v26  ;;  %v2101_v30 = vmax.f32 %v2091_v27, 0.0 }
 0x198   : > { %v2057_v31 = vadd.f32 %v2047_v29, %v2032_v53 }
 0x199   : > { %v2075_v32 = vld [vmem:[#allocation2 + $0x30] sm:$0xff]  ;;  %v2435_v33 = vpack.c.bf16 %v2101_v30, %v2101_v30 }
 0x19a   : > { %v2092_v34 = vadd.f32 %v3383_v28, %v2075_v32  ;;  %2067 = vst.msk [vmem:[#allocation2 + $0x40] sm:$0xff] %vm239_vm1, %v2057_v31 }
 0x19b   : > { %v2048_v35 = vld [vmem:[#allocation2 + $0x48] sm:$0xff]  ;;  %2152 = vst.msk [vmem:[%s3393_s13 + $0x14] sm:$0xf] %vm2146_vm8, %v2435_v33 }
 0x19c   : > { %v2102_v36 = vmax.f32 %v2092_v34, 0.0  ;;  %v2058_v37 = vadd.f32 %v2048_v35, %v2035_v0 }
 0x19d   : > { %v2076_v38 = vld [vmem:[#allocation2 + $0x38] sm:$0xff] }
 0x19e   : > { %v2436_v39 = vpack.c.bf16 %v2102_v36, %v2102_v36  ;;  %v2093_v40 = vadd.f32 %v3383_v28, %v2076_v38  ;;  %2068 = vst.msk [vmem:[#allocation2 + $0x48] sm:$0xff] %vm239_vm1, %v2058_v37 }
 0x1a0   : > { %2153 = vst.msk [vmem:[%s3393_s13 + $0x18] sm:$0xf] %vm2146_vm8, %v2436_v39  ;;  %v2103_v41 = vmax.f32 %v2093_v40, 0.0 }
 0x1a1   : > { %v2077_v42 = vld [vmem:[#allocation2 + $0x40] sm:$0xff] }
 0x1a2   : > { %v2437_v43 = vpack.c.bf16 %v2103_v41, %v2103_v41  ;;  %v2094_v44 = vadd.f32 %v3383_v28, %v2077_v42 }
 0x1a4   : > { %2154 = vst.msk [vmem:[%s3393_s13 + $0x1c] sm:$0xf] %vm2146_vm8, %v2437_v43  ;;  %v2104_v45 = vmax.f32 %v2094_v44, 0.0 }
 0x1a5   : > { %v2078_v46 = vld [vmem:[#allocation2 + $0x48] sm:$0xff] }
 0x1a6   : > { %v2438_v47 = vpack.c.bf16 %v2104_v45, %v2104_v45  ;;  %v2095_v48 = vadd.f32 %v3383_v28, %v2078_v46 }
 0x1a8   : > { %2155 = vst.msk [vmem:[%s3393_s13 + $0x20] sm:$0xf] %vm2146_vm8, %v2438_v47  ;;  %v2105_v49 = vmax.f32 %v2095_v48, 0.0 }
 0x1aa   : > { %v2439_v50 = vpack.c.bf16 %v2105_v49, %v2105_v49 }
 0x1ac   : > { %2156 = vst.msk [vmem:[%s3393_s13 + $0x24] sm:$0xf] %vm2146_vm8, %v2439_v50 }
 0x1ad PF: > { %s13_s12 = sadd.s32 1, %s2888_s12  }
 0x1ae   : > { %p10_p4 = scmp.ge.s32.totalorder %s13_s12, 4  }
 0x1b0   :  { %12 = sbr.rel (!%p10_p4) target bundleno = 1 (0x1), region = 70 }

// kernel: fcos_rt_forward.38
= control target key start
LH: loop header
LB: loop body
LE: loop exit
PB: predicated region body
PF: predicated region fallthrough
CT: control target
= control target key end

     0   :  { %vm645_vm0 = vcmask 519168   ;;  %s1104_s1 = inlined_call_operand.vmem [shape: bf16[768,64], index: 1, kind: input, shape index: {}]   ;;  %s1105_s0 = inlined_call_operand.vmem [shape: bf16[32,768], index: 0, kind: input, shape index: {}]   ;;  %s1106_s2 = inlined_call_operand.vmem [shape: f32[1,64], index: 2, kind: input, shape index: {}]   ;;  %s1107_s3 = inlined_call_operand.vmem [shape: bf16[32,64], index: 3, kind: output, shape index: {}]  }
   0x1   :  { %v823_v0 = vld [vmem:[%s1104_s1 + $0x78] sm:$0xff]   ;;  %v827_v4 = vld [vmem:[%s1104_s1 + $0x70] sm:$0xff]   ;;  %v831_v8 = vld [vmem:[%s1104_s1 + $0x68] sm:$0xff]  }
   0x2   :  { %v824_v1 = vld [vmem:[%s1104_s1 + $0xf8] sm:$0xff]   ;;  %723 = vmatprep.subr.bf16.mxu0 %v823_v0  ;;  %v828_v5 = vld [vmem:[%s1104_s1 + $0xf0] sm:$0xff]   ;;  %v832_v9 = vld [vmem:[%s1104_s1 + $0xe8] sm:$0xff]  }
   0x3   :  { %v825_v2 = vld [vmem:[%s1104_s1 + $0x38] sm:$0xff]   ;;  %751 = vmatprep.subr.bf16.mxu1 %v824_v1  ;;  %v829_v6 = vld [vmem:[%s1104_s1 + $0x30] sm:$0xff]   ;;  %v833_v10 = vld [vmem:[%s1104_s1 + $0x28] sm:$0xff]  }
   0x4   :  { %v826_v3 = vld [vmem:[%s1104_s1 + $0xb8] sm:$0xff]   ;;  %724 = vmatpush3.bf16.msra.mxu0 %v825_v2  ;;  %v830_v7 = vld [vmem:[%s1104_s1 + $0xb0] sm:$0xff]   ;;  %v834_v11 = vld [vmem:[%s1104_s1 + $0xa8] sm:$0xff]  }
   0x5   :  { %752 = vmatpush3.bf16.msra.mxu1 %v826_v3  ;;  %725 = vmatprep.subr.bf16.mxu0 %v827_v4  ;;  %v835_v12 = vld [vmem:[%s1104_s1 + $0x60] sm:$0xff]   ;;  %v839_v16 = vld [vmem:[%s1104_s1 + $0x58] sm:$0xff]   ;;  %v843_v20 = vld [vmem:[%s1104_s1 + $0x50] sm:$0xff]  }
   0x6   :  { %753 = vmatprep.subr.bf16.mxu1 %v828_v5  ;;  %v836_v13 = vld [vmem:[%s1104_s1 + $0xe0] sm:$0xff]   ;;  %v840_v17 = vld [vmem:[%s1104_s1 + $0xd8] sm:$0xff]   ;;  %v844_v21 = vld [vmem:[%s1104_s1 + $0xd0] sm:$0xff]  }
   0x7   :  { %v837_v14 = vld [vmem:[%s1104_s1 + $0x20] sm:$0xff]   ;;  %v841_v18 = vld [vmem:[%s1104_s1 + $0x18] sm:$0xff]   ;;  %v845_v22 = vld [vmem:[%s1104_s1 + $0x10] sm:$0xff]  }
   0x8   :  { %726 = vmatpush3.bf16.msra.mxu0 %v829_v6  ;;  %v838_v15 = vld [vmem:[%s1104_s1 + $0xa0] sm:$0xff]   ;;  %v842_v19 = vld [vmem:[%s1104_s1 + $0x98] sm:$0xff]   ;;  %v846_v23 = vld [vmem:[%s1104_s1 + $0x90] sm:$0xff]  }
   0x9   :  { %754 = vmatpush3.bf16.msra.mxu1 %v830_v7  ;;  %727 = vmatprep.subr.bf16.mxu0 %v831_v8  ;;  %v847_v24 = vld [vmem:[%s1104_s1 + $0x48] sm:$0xff]   ;;  %v851_v28 = vld [vmem:[%s1104_s1 + $0x40] sm:$0xff]   ;;  %v861_v36 = vld [vmem:[%s1104_s1 + $0x178] sm:$0xff]  }
   0xa   :  { %755 = vmatprep.subr.bf16.mxu1 %v832_v9  ;;  %v848_v25 = vld [vmem:[%s1104_s1 + $0xc8] sm:$0xff]   ;;  %v852_v29 = vld [vmem:[%s1104_s1 + $0xc0] sm:$0xff]   ;;  %v862_v37 = vld [vmem:[%s1104_s1 + $0x138] sm:$0xff]  }
   0xb   :  { %v849_v26 = vld [vmem:[%s1104_s1 + $0x8] sm:$0xff]   ;;  %v853_v30 = vld [vmem:[%s1104_s1] sm:$0xff]   ;;  %v863_v38 = vld [vmem:[%s1104_s1 + $0x170] sm:$0xff]  }
   0xc   :  { %728 = vmatpush3.bf16.msra.mxu0 %v833_v10  ;;  %v850_v27 = vld [vmem:[%s1104_s1 + $0x88] sm:$0xff]   ;;  %v854_v31 = vld [vmem:[%s1104_s1 + $0x80] sm:$0xff]   ;;  %v864_v39 = vld [vmem:[%s1104_s1 + $0x130] sm:$0xff]  }
   0xd   :  { %756 = vmatpush3.bf16.msra.mxu1 %v834_v11  ;;  %729 = vmatprep.subr.bf16.mxu0 %v835_v12  ;;  %v855_v32 = vld [vmem:[%s1105_s0] ss:$24 sps:$4 sm:$0xff]   ;;  %v857_v33 = vld [vmem:[%s1105_s0 + $0x4] ss:$24 sps:$4 sm:$0xff]   ;;  %v865_v40 = vld [vmem:[%s1104_s1 + $0x168] sm:$0xff]  }
   0xe   :  { %757 = vmatprep.subr.bf16.mxu1 %v836_v13  ;;  %v858_v34 = vld [vmem:[%s1105_s0 + $0x8] ss:$24 sps:$4 sm:$0xff]   ;;  %v860_v35 = vld [vmem:[%s1105_s0 + $0xc] ss:$24 sps:$4 sm:$0xff]   ;;  %510 = vmatprep.mubr.bf16.mxu0 %v857_v33  ;;  %v873_v46 = vld [vmem:[%s1105_s0 + $0x3c] ss:$24 sps:$4 sm:$0xff]  }
   0xf   :  { %559 = vmatprep.mubr.bf16.mxu1 %v860_v35  ;;  %v866_v41 = vld [vmem:[%s1104_s1 + $0x128] sm:$0xff]   ;;  %v867_v42 = vld [vmem:[%s1104_s1 + $0x160] sm:$0xff]   ;;  %v872_v47 = vld [vmem:[%s1104_s1 + $0x158] sm:$0xff]  }
  0x10   :  { %730 = vmatpush3.bf16.msra.mxu0 %v837_v14  ;;  %v869_v43 = vld [vmem:[%s1105_s0 + $0x34] ss:$24 sps:$4 sm:$0xff]   ;;  %v868_v44 = vld [vmem:[%s1104_s1 + $0x120] sm:$0xff]   ;;  %v871_v45 = vld [vmem:[%s1105_s0 + $0x30] ss:$24 sps:$4 sm:$0xff]  }
  0x11   :  { %758 = vmatpush3.bf16.msra.mxu1 %v838_v15  ;;  %731 = vmatprep.subr.bf16.mxu0 %v839_v16  ;;  %v876_v48 = vld [vmem:[%s1105_s0 + $0x38] ss:$24 sps:$4 sm:$0xff]   ;;  %v885_v52 = vld [vmem:[%s1105_s0 + $0x14] ss:$24 sps:$4 sm:$0xff]   ;;  %v888_v54 = vld [vmem:[%s1105_s0 + $0x44] ss:$24 sps:$4 sm:$0xff]  }
  0x12   :  { %759 = vmatprep.subr.bf16.mxu1 %v840_v17  ;;  %v875_v49 = vld [vmem:[%s1104_s1 + $0x118] sm:$0xff]   ;;  %v877_v50 = vld [vmem:[%s1104_s1 + $0x150] sm:$0xff]   ;;  %v879_v53 = vld [vmem:[%s1104_s1 + $0x148] sm:$0xff]  }
  0x13   :  { %v878_v51 = vld [vmem:[%s1104_s1 + $0x110] sm:$0xff]   ;;  %v880_v55 = vld [vmem:[%s1104_s1 + $0x108] sm:$0xff]   ;;  %v881_v56 = vld [vmem:[%s1104_s1 + $0x140] sm:$0xff]  }
  0x14   :  { %732 = vmatpush3.bf16.msra.mxu0 %v841_v18  ;;  %v882_v57 = vld [vmem:[%s1104_s1 + $0x100] sm:$0xff]   ;;  %v883_v58 = vld [vmem:[%s1105_s0 + $0x10] ss:$24 sps:$4 sm:$0xff]  }
  0x15   :  { %760 = vmatpush3.bf16.msra.mxu1 %v842_v19  ;;  %733 = vmatprep.subr.bf16.mxu0 %v843_v20  ;;  %v886_v59 = vld [vmem:[%s1105_s0 + $0x40] ss:$24 sps:$4 sm:$0xff]  }
  0x16   :  { %761 = vmatprep.subr.bf16.mxu1 %v844_v21  ;;  %v654_v11 = vld [vmem:[%s1106_s2] ss:$0 sm:$0xff] }
  0x18   :  { %734 = vmatpush3.bf16.msra.mxu0 %v845_v22 }
  0x19   :  { %762 = vmatpush3.bf16.msra.mxu1 %v846_v23  ;;  %735 = vmatprep.subr.bf16.mxu0 %v847_v24 }
  0x1a   :  { %763 = vmatprep.subr.bf16.mxu1 %v848_v25 }
  0x1c   :  { %736 = vmatpush3.bf16.msra.mxu0 %v849_v26 }
  0x1d   :  { %764 = vmatpush3.bf16.msra.mxu1 %v850_v27  ;;  %737 = vmatprep.subr.bf16.mxu0 %v851_v28 }
  0x1e   :  { %765 = vmatprep.subr.bf16.mxu1 %v852_v29 }
  0x20   :  { %738 = vmatpush3.bf16.msra.mxu0 %v853_v30 }
  0x21   :  { %766 = vmatpush3.bf16.msra.mxu1 %v854_v31  ;;  %779 = vmatprep.subr.bf16.mxu0 %v861_v36 }
  0x22   :  { %807 = vmatprep.subr.bf16.mxu1 %v861_v36 }
  0x23   :  { %511 = vmatmul.mubr.bf16.vlgmr.msra.gmra.mxu0 %v855_v32 }
  0x24   :  { %560 = vmatmul.mubr.bf16.vlgmr.msra.gmra.mxu1 %v858_v34  ;;  %780 = vmatpush3.bf16.msra.mxu0 %v862_v37 }
  0x25   :  { %815 = vmatpush3.bf16.msra.mxu1 %v862_v37  ;;  %781 = vmatprep.subr.bf16.mxu0 %v863_v38 }
  0x26   :  { %808 = vmatprep.subr.bf16.mxu1 %v863_v38  ;;  %518 = vmatprep.mubr.bf16.mxu0 %v869_v43 }
  0x27   :  { %567 = vmatprep.mubr.bf16.mxu1 %v873_v46 }
  0x28   :  { %782 = vmatpush3.bf16.msra.mxu0 %v864_v39 }
  0x29   :  { %816 = vmatpush3.bf16.msra.mxu1 %v864_v39  ;;  %783 = vmatprep.subr.bf16.mxu0 %v865_v40 }
  0x2a   :  { %809 = vmatprep.subr.bf16.mxu1 %v865_v40 }
  0x2b   :  { %519 = vmatmul.mubr.bf16.gmra.mxu0 %v871_v45 }
  0x2c   :  { %784 = vmatpush3.bf16.msra.mxu0 %v866_v41  ;;  %568 = vmatmul.mubr.bf16.gmra.mxu1 %v876_v48 }
  0x2d   :  { %817 = vmatpush3.bf16.msra.mxu1 %v866_v41  ;;  %785 = vmatprep.subr.bf16.mxu0 %v867_v42 }
  0x2e   :  { %810 = vmatprep.subr.bf16.mxu1 %v867_v42  ;;  %608 = vmatprep.mubr.bf16.mxu0 %v885_v52 }
  0x2f   :  { %616 = vmatprep.mubr.bf16.mxu1 %v888_v54 }
  0x30   :  { %786 = vmatpush3.bf16.msra.mxu0 %v868_v44 }
  0x31   :  { %818 = vmatpush3.bf16.msra.mxu1 %v868_v44  ;;  %787 = vmatprep.subr.bf16.mxu0 %v872_v47 }
  0x32   :  { %811 = vmatprep.subr.bf16.mxu1 %v872_v47 }
  0x34   :  { %788 = vmatpush3.bf16.msra.mxu0 %v875_v49 }
  0x35   :  { %819 = vmatpush3.bf16.msra.mxu1 %v875_v49  ;;  %789 = vmatprep.subr.bf16.mxu0 %v877_v50 }
  0x36   :  { %812 = vmatprep.subr.bf16.mxu1 %v877_v50 }
  0x38   :  { %790 = vmatpush3.bf16.msra.mxu0 %v878_v51 }
  0x39   :  { %820 = vmatpush3.bf16.msra.mxu1 %v878_v51  ;;  %791 = vmatprep.subr.bf16.mxu0 %v879_v53 }
  0x3a   :  { %813 = vmatprep.subr.bf16.mxu1 %v879_v53 }
  0x3c   :  { %792 = vmatpush3.bf16.msra.mxu0 %v880_v55 }
  0x3d   :  { %821 = vmatpush3.bf16.msra.mxu1 %v880_v55  ;;  %793 = vmatprep.subr.bf16.mxu0 %v881_v56 }
  0x3e   :  { %814 = vmatprep.subr.bf16.mxu1 %v881_v56 }
  0x40   :  { %794 = vmatpush3.bf16.msra.mxu0 %v882_v57 }
  0x41   :  { %822 = vmatpush3.bf16.msra.mxu1 %v882_v57 }
  0x43   :  { %609 = vmatmul.mubr.bf16.vlgmr.msra.gmra.mxu0 %v883_v58 }
  0x44   :  { %617 = vmatmul.mubr.bf16.vlgmr.msra.gmra.mxu1 %v886_v59 }
  0xe3   :  { %v739_v60 = vpop.f32.mrf.mxu0 }
  0xe4   :  { %v767_v61 = vpop.f32.mrf.mxu1 }
  0xe5   :  { %v740_v62 = vpop.f32.mrf.mxu0 }
  0xe6   :  { %v768_v63 = vpop.f32.mrf.mxu1  ;;  %v741_v9 = vadd.f32 %v740_v62, %v739_v60 }
  0xe7   :  { %v742_v0 = vpop.f32.mrf.mxu0  ;;  %v769_v21 = vadd.f32 %v768_v63, %v767_v61 }
  0xe8   :  { %v770_v1 = vpop.f32.mrf.mxu1  ;;  %v513_v14 = vadd.f32 %v741_v9, %v654_v11 }
  0xe9   :  { %v743_v2 = vpop.f32.mrf.mxu0 }
  0xea   :  { %v771_v3 = vpop.f32.mrf.mxu1  ;;  %v744_v15 = vadd.f32 %v743_v2, %v742_v0  ;;  %v562_v24 = vadd.f32 %v769_v21, %v513_v14 }
  0xeb   :  { %v745_v4 = vpop.f32.mrf.mxu0  ;;  %v772_v33 = vadd.f32 %v771_v3, %v770_v1 }
  0xec   :  { %v773_v5 = vpop.f32.mrf.mxu1  ;;  %v516_v25 = vadd.f32 %v744_v15, %v654_v11 }
  0xed   :  { %v746_v6 = vpop.f32.mrf.mxu0 }
  0xee   :  { %v774_v7 = vpop.f32.mrf.mxu1  ;;  %v747_v12 = vadd.f32 %v746_v6, %v745_v4  ;;  %v565_v38 = vadd.f32 %v772_v33, %v516_v25 }
  0xef   :  { %v748_v8 = vpop.f32.mrf.mxu0  ;;  %v775_v18 = vadd.f32 %v774_v7, %v773_v5 }
  0xf0   :  { %v776_v10 = vpop.f32.mrf.mxu1  ;;  %v521_v17 = vadd.f32 %v747_v12, %v654_v11 }
  0xf1   :  { %v749_v13 = vpop.f32.mrf.mxu0 }
  0xf2   :  { %v777_v16 = vpop.f32.mrf.mxu1  ;;  %v750_v19 = vadd.f32 %v749_v13, %v748_v8  ;;  %v570_v28 = vadd.f32 %v775_v18, %v521_v17 }
  0xf3   :  { %v778_v30 = vadd.f32 %v777_v16, %v776_v10 }
  0xf4   :  { %v524_v29 = vadd.f32 %v750_v19, %v654_v11 }
  0xf6   :  { %v573_v42 = vadd.f32 %v778_v30, %v524_v29 }
 0x103   :  { %v795_v20 = vpop.f32.mrf.mxu0 }
 0x104   :  { %v801_v22 = vpop.f32.mrf.mxu1 }
 0x105   :  { %v796_v23 = vpop.f32.mrf.mxu0 }
 0x106   :  { %v797_v26 = vadd.f32 %v796_v23, %v795_v20  ;;  %v802_v27 = vpop.f32.mrf.mxu1 }
 0x107   :  { %v803_v31 = vadd.f32 %v802_v27, %v801_v22  ;;  %v798_v32 = vpop.f32.mrf.mxu0 }
 0x108   :  { %v611_v34 = vadd.f32 %v797_v26, %v562_v24  ;;  %v804_v35 = vpop.f32.mrf.mxu1 }
 0x109   :  { %v619_v36 = vadd.f32 %v803_v31, %v570_v28  ;;  %v799_v37 = vpop.f32.mrf.mxu0 }
 0x10a   :  { %v625_v39 = vmax.f32 %v611_v34, 0.0  ;;  %v800_v40 = vadd.f32 %v799_v37, %v798_v32  ;;  %v805_v41 = vpop.f32.mrf.mxu1 }
 0x10b   :  { %v627_v43 = vmax.f32 %v619_v36, 0.0  ;;  %v806_v44 = vadd.f32 %v805_v41, %v804_v35 }
 0x10c   :  { %v719_v45 = vpack.c.bf16 %v625_v39, %v625_v39  ;;  %v614_v46 = vadd.f32 %v800_v40, %v565_v38 }
 0x10d   :  { %v721_v47 = vpack.c.bf16 %v627_v43, %v627_v43  ;;  %v622_v48 = vadd.f32 %v806_v44, %v573_v42 }
 0x10e   :  { %646 = vst.msk [vmem:[%s1107_s3] sm:$0xf] %vm645_vm0, %v719_v45  ;;  %v626_v49 = vmax.f32 %v614_v46, 0.0 }
 0x10f   :  { %648 = vst.msk [vmem:[%s1107_s3 + $0x8] sm:$0xf] %vm645_vm0, %v721_v47  ;;  %v628_v50 = vmax.f32 %v622_v48, 0.0 }
 0x110   :  { %v720_v51 = vpack.c.bf16 %v626_v49, %v626_v49 }
 0x111   :  { %v722_v52 = vpack.c.bf16 %v628_v50, %v628_v50 }
 0x112   :  { %647 = vst.msk [vmem:[%s1107_s3 + $0x4] sm:$0xf] %vm645_vm0, %v720_v51 }
 0x113   :  { %649 = vst.msk [vmem:[%s1107_s3 + $0xc] sm:$0xf] %vm645_vm0, %v722_v52 }

// kernel: fcos_rt_forward.43
= control target key start
LH: loop header
LB: loop body
LE: loop exit
PB: predicated region body
PF: predicated region fallthrough
CT: control target
= control target key end

     0   :  { %s1711_s12 = smov 0   ;;  %s1911_s0 = inlined_call_operand.vmem [shape: bf16[2,44,64], index: 0, kind: input, shape index: {}]   ;;  %s1912_s1 = inlined_call_operand.vmem [shape: bf16[9,64,64], index: 1, kind: input, shape index: {}]   ;;  %s1913_s2 = inlined_call_operand.vmem [shape: f32[1,64], index: 2, kind: input, shape index: {}]   ;;  %s1914_s3 = inlined_call_operand.vmem [shape: bf16[2,24,64], index: 3, kind: output, shape index: {}]  }
   0x1 LB: > { %s1305_s13 = sadd.s32 4294967295, %s1689_s12   ;;  %p1309_p0 = scmp.ge.s32.totalorder %s1689_s12, 1  ;;  %s1689_s12 = sphi %s1711_s12, %s13_s12  }
   0x2   : > { %p137_p1 = scmp.lt.s32.totalorder %s1689_s12, 3 }
   0x4   : > { %p138_p2 = pnand %p1309_p0, %p137_p1 }
   0x5   : > { %p161_p3 = scmp.lt.s32.totalorder (!%p138_p2), %s1305_s13, 1 }
   0x6   : > { %141 = sbr.rel (%p138_p2) target bundleno = 322 (0x142), region = 32 }
   0xb   : > { %v1629_v0 = vld [vmem:[%s1912_s1 + $0x18] sm:$0xff]   ;;  %v1631_v2 = vld [vmem:[%s1912_s1 + $0x10] sm:$0xff]   ;;  %s1916_s13 = smov (!%p161_p3, %s1305_s13), 1  ;;  %v1633_v4 = vld [vmem:[%s1912_s1 + $0x8] sm:$0xff]   ;;  %vm215_vm0 = vcmask 523264   ;;  %vm422_vm2 = vcmask 1046528  }
   0xc   : > { %v1630_v1 = vld [vmem:[%s1912_s1 + $0x38] sm:$0xff]   ;;  %1511 = vmatprep.subr.bf16.mxu0 %v1629_v0  ;;  %v1632_v3 = vld [vmem:[%s1912_s1 + $0x30] sm:$0xff]   ;;  %s1619_s24 = smul.u32 24, %s1916_s13  ;;  %v1634_v5 = vld [vmem:[%s1912_s1 + $0x28] sm:$0xff]   ;;  %vm296_vm1 = vsmask.f32 7424 }
   0xd   : > { %1512 = vmatpush3.bf16.msra.mxu0 %v1629_v0  ;;  %1523 = vmatprep.subr.bf16.mxu1 %v1630_v1  ;;  %v1635_v6 = vld [vmem:[%s1912_s1] sm:$0xff]   ;;  %v1639_v10 = vld [vmem:[%s1912_s1 + $0x58] sm:$0xff]   ;;  %v1642_v20 = vld [vmem:[%s1912_s1 + $0x50] sm:$0xff]   ;;  %vm536_vm3 = vcmask 1044480   ;;  %vm650_vm4 = vsmask.f32 4352 }
   0xe   : > { %1524 = vmatpush3.bf16.msra.mxu1 %v1630_v1  ;;  %1513 = vmatprep.subr.bf16.mxu0 %v1631_v2  ;;  %s1746_s4 = scalar_lea.vmem %s1911_s0, %s1619_s24  ;;  %v1636_v8 = vld [vmem:[%s1912_s1 + $0x20] sm:$0xff]   ;;  %v1643_v17 = vld [vmem:[%s1912_s1 + $0x78] sm:$0xff]   ;;  %v1644_v23 = vld [vmem:[%s1912_s1 + $0x48] sm:$0xff]   ;;  %vm885_vm5 = vcmask 1045504   ;;  %vm999_vm6 = vsmask.f32 5376 }
   0xf   : > { %1525 = vmatprep.subr.bf16.mxu1 %v1632_v3  ;;  %v1637_v7 = vld [vmem:[%s1746_s4] sm:$0xff]   ;;  %v1638_v9 = vld [vmem:[%s1746_s4 + $0x8] ss:$0 sps:$4 sm:$0xff]   ;;  %v1645_v24 = vld [vmem:[%s1912_s1 + $0x70] sm:$0xff]   ;;  %s1620_s18 = smul.u32 12, %s1916_s13  ;;  %vm1246_vm7 = vcmask 519168  }
  0x10   : > { %1519 = vmatprep.mubr.msk.bf16.mxu0 %vm215_vm0, %v1637_v7  ;;  %v1640_v11 = vld [vmem:[%s1746_s4] sm:$0xff]   ;;  %v1641_v12 = vld [vmem:[%s1746_s4 + $0x8] sm:$0x1f]   ;;  %v1650_v35 = vld [vmem:[%s1912_s1 + $0x98] sm:$0xff]  }
  0x11   : > { %1514 = vmatpush3.bf16.msra.mxu0 %v1631_v2  ;;  %v298_v13 = vshrl.u32 %v1640_v11, 16  ;;  %v300_v14 = vshll.u32 %v1640_v11, 16  ;;  %v305_v15 = vshll.u32 %v1641_v12, 16  ;;  %v309_v16 = vshrl.u32 %v1641_v12, 16  ;;  %v1648_v26 = vld [vmem:[%s1746_s4] sm:$0xfe]   ;;  %s170_s21 = scalar_lea.vmem %s1914_s3, %s1620_s18 }
  0x12   : > { %1526 = vmatpush3.bf16.msra.mxu1 %v1632_v3  ;;  %1515 = vmatprep.subr.bf16.mxu0 %v1633_v4  ;;  %v1649_v27 = vld [vmem:[%s1746_s4 + $0x8] sm:$0x1f]   ;;  %v423_v28 = vrot.slane %v1648_v26, 1  ;;  %v1646_v29 = vld [vmem:[%s1912_s1 + $0x40] sm:$0xff]   ;;  %v1652_v39 = vld [vmem:[%s1912_s1 + $0x90] sm:$0xff]  }
  0x13   : > { %1527 = vmatprep.subr.bf16.mxu1 %v1634_v5  ;;  %v302_v18 = vrot.slane %v300_v14, 1  ;;  %v307_v19 = vrot.slane %v305_v15, 1  ;;  %v424_v30 = vrot.slane %v1649_v27, 1  ;;  %v1647_v31 = vld [vmem:[%s1912_s1 + $0x68] sm:$0xff]   ;;  %v1653_v33 = vld [vmem:[%s1746_s4] sm:$0xf8]  }
  0x14   : > { %v1654_v34 = vld [vmem:[%s1746_s4 + $0x8] sm:$0x7f]   ;;  %v537_v36 = vrot.slane %v1653_v33, 3  ;;  %v1651_v37 = vld [vmem:[%s1912_s1 + $0x60] sm:$0xff]   ;;  %v1656_v42 = vld [vmem:[%s1912_s1 + $0xb8] sm:$0xff]  }
  0x15   : > { %1516 = vmatpush3.bf16.msra.mxu0 %v1633_v4  ;;  %v303_v21 = vor.u32 %v302_v18, %v298_v13  ;;  %v311_v22 = vor.u32 %v309_v16, %v307_v19  ;;  %v425_v32 = vsel %vm422_vm2, %v423_v28, %v424_v30  ;;  %v538_v38 = vrot.slane %v1654_v34, 3  ;;  %v1659_v41 = vld [vmem:[%s1746_s4] sm:$0xf8]   ;;  %v1660_v43 = vld [vmem:[%s1746_s4 + $0x8] sm:$0xff]   ;;  %v1658_v47 = vld [vmem:[%s1912_s1 + $0xb0] sm:$0xff]  }
  0x16   : > { %1528 = vmatpush3.bf16.msra.mxu1 %v1634_v5  ;;  %1517 = vmatprep.subr.bf16.mxu0 %v1635_v6  ;;  %v652_v44 = vshrl.u32 %v1659_v41, 16  ;;  %v655_v45 = vshll.u32 %v1659_v41, 16  ;;  %v1655_v46 = vld [vmem:[%s1912_s1 + $0x88] sm:$0xff]   ;;  %v660_v48 = vshrl.u32 %v1660_v43, 16  ;;  %v663_v49 = vshll.u32 %v1660_v43, 16  ;;  %v1657_v57 = vld [vmem:[%s1912_s1 + $0x80] sm:$0xff]  }
  0x17   : > { %1529 = vmatprep.subr.bf16.mxu1 %v1636_v8  ;;  %v308_v25 = vsel %vm296_vm1, %v303_v21, %v307_v19  ;;  %v539_v40 = vsel %vm536_vm3, %v537_v36, %v538_v38  ;;  %v1665_v56 = vld [vmem:[%s1746_s4 + $0x4] sm:$0xff]   ;;  %v1662_v60 = vld [vmem:[%s1912_s1 + $0xd8] sm:$0xff]   ;;  %v1672_v63 = vld [vmem:[%s1746_s4 + $0xc] sm:$0x3f]  }
  0x18   : > { %1531 = vmatprep.mubr.msk.bf16.mxu1 %vm215_vm0, %v308_v25  ;;  %v654_v50 = vrot.slane %v652_v44, 3  ;;  %v657_v51 = vrot.slane %v655_v45, 4  ;;  %v662_v52 = vrot.slane %v660_v48, 3  ;;  %v665_v53 = vrot.slane %v663_v49, 4  ;;  %v1661_v59 = vld [vmem:[%s1912_s1 + $0xa8] sm:$0xff]   ;;  %v1663_v61 = vld [vmem:[%s1912_s1 + $0xa0] sm:$0xff]  }
  0x19   : > { %1518 = vmatpush3.bf16.msra.mxu0 %v1635_v6  ;;  %v1671_v62 = vld [vmem:[%s1746_s4 + $0x4] sm:$0xfc]   ;;  %v887_v1 = vrot.slane %v1672_v63, 2  ;;  %v1664_v2 = vld [vmem:[%s1912_s1 + $0xd0] sm:$0xff]   ;;  %v1668_v3 = vld [vmem:[%s1912_s1 + $0xf8] sm:$0xff]  }
  0x1a   : > { %1530 = vmatpush3.bf16.msra.mxu1 %v1636_v8  ;;  %1535 = vmatprep.subr.bf16.mxu0 %v1639_v10  ;;  %v658_v54 = vor.u32 %v657_v51, %v654_v50  ;;  %v666_v55 = vor.u32 %v665_v53, %v662_v52  ;;  %v886_v0 = vrot.slane %v1671_v62, 2  ;;  %v1666_v4 = vld [vmem:[%s1746_s4 + $0xc] ss:$0 sps:$4 sm:$0xff]   ;;  %v1677_v6 = vld [vmem:[%s1746_s4 + $0x4] sm:$0xfc]   ;;  %v1674_v25 = vld [vmem:[%s1912_s1 + $0x118] sm:$0xff]  }
  0x1b   : > { %1547 = vmatprep.subr.bf16.mxu1 %v1643_v17  ;;  %v1678_v7 = vld [vmem:[%s1746_s4 + $0xc] sm:$0x7f]   ;;  %v1004_v11 = vshll.u32 %v1677_v6, 16  ;;  %v1669_v18 = vld [vmem:[%s1912_s1 + $0xc0] sm:$0xff]  }
  0x1c   : > { %1520 = vmatmul.mubr.msk.bf16.vlgmr.msra.gmra.mxu0 %vm215_vm0, %v1638_v9  ;;  %v667_v58 = vsel %vm650_vm4, %v658_v54, %v666_v55  ;;  %v888_v5 = vsel %vm885_vm5, %v886_v0, %v887_v1  ;;  %v1667_v8 = vld [vmem:[%s1912_s1 + $0xc8] sm:$0xff]   ;;  %v1670_v9 = vld [vmem:[%s1912_s1 + $0xf0] sm:$0xff]   ;;  %v1009_v12 = vshrl.u32 %v1678_v7, 16  ;;  %v1012_v13 = vshll.u32 %v1678_v7, 16  ;;  %v1675_v26 = vld [vmem:[%s1912_s1 + $0xe0] sm:$0xff]  }
  0x1d   : > { %1536 = vmatpush3.bf16.msra.mxu0 %v1639_v10  ;;  %1532 = vmatmul.mubr.msk.bf16.vlgmr.msra.gmra.mxu1 %vm215_vm0, %v311_v22  ;;  %v1001_v10 = vshrl.u32 %v1677_v6, 16  ;;  %v1006_v15 = vrot.slane %v1004_v11, 3  ;;  %v1673_v19 = vld [vmem:[%s1912_s1 + $0xe8] sm:$0xff]  }
  0x1e   : > { %1537 = vmatprep.subr.bf16.mxu0 %v1642_v20  ;;  %1548 = vmatpush3.bf16.msra.mxu1 %v1643_v17  ;;  %v1011_v16 = vrot.slane %v1009_v12, 2  ;;  %v1014_v17 = vrot.slane %v1012_v13, 3  ;;  %v1681_v22 = vld [vmem:[%s1746_s4 + $0x4] sm:$0xf8]  }
  0x1f   : > { %1549 = vmatprep.subr.bf16.mxu1 %v1645_v24  ;;  %1543 = vmatprep.mubr.msk.bf16.mxu0 %vm215_vm0, %v425_v32  ;;  %v1003_v14 = vrot.slane %v1001_v10, 2  ;;  %v1127_v27 = vrot.slane %v1681_v22, 3  ;;  %v1680_v32 = vld [vmem:[%s1912_s1 + $0x100] sm:$0xff]  }
  0x20   : > { %1555 = vmatprep.mubr.msk.bf16.mxu1 %vm215_vm0, %v539_v40  ;;  %v1015_v21 = vor.u32 %v1014_v17, %v1011_v16 }
  0x21   : > { %1538 = vmatpush3.bf16.msra.mxu0 %v1642_v20  ;;  %v1007_v20 = vor.u32 %v1006_v15, %v1003_v14 }
  0x22   : > { %1539 = vmatprep.subr.bf16.mxu0 %v1644_v23  ;;  %1550 = vmatpush3.bf16.msra.mxu1 %v1645_v24 }
  0x23   : > { %1551 = vmatprep.subr.bf16.mxu1 %v1647_v31  ;;  %v1016_v24 = vsel %vm999_vm6, %v1007_v20, %v1015_v21 }
  0x25   : > { %1540 = vmatpush3.bf16.msra.mxu0 %v1644_v23  ;;  %v1682_v23 = vld [vmem:[%s1746_s4 + $0xc] sm:$0x7f]  }
  0x26   : > { %1541 = vmatprep.subr.bf16.mxu0 %v1646_v29  ;;  %1552 = vmatpush3.bf16.msra.mxu1 %v1647_v31  ;;  %v1128_v28 = vrot.slane %v1682_v23, 3  ;;  %v1679_v31 = vld [vmem:[%s1912_s1 + $0x108] sm:$0xff]  }
  0x27   : > { %1553 = vmatprep.subr.bf16.mxu1 %v1651_v37 }
  0x29   : > { %1542 = vmatpush3.bf16.msra.mxu0 %v1646_v29  ;;  %v1676_v29 = vld [vmem:[%s1912_s1 + $0x110] sm:$0xff]  }
  0x2a   : > { %1559 = vmatprep.subr.bf16.mxu0 %v1650_v35  ;;  %1554 = vmatpush3.bf16.msra.mxu1 %v1651_v37 }
  0x2b   : > { %1571 = vmatprep.subr.bf16.mxu1 %v1656_v42 }
  0x2c   : > { %1544 = vmatmul.mubr.msk.bf16.vlgmr.msra.gmra.mxu0 %vm215_vm0, %v424_v30  ;;  %v1129_v30 = vsel %vm536_vm3, %v1127_v27, %v1128_v28 }
  0x2d   : > { %1560 = vmatpush3.bf16.msra.mxu0 %v1650_v35  ;;  %1556 = vmatmul.mubr.msk.bf16.vlgmr.msra.gmra.mxu1 %vm215_vm0, %v538_v38 }
  0x2e   : > { %1561 = vmatprep.subr.bf16.mxu0 %v1652_v39  ;;  %1572 = vmatpush3.bf16.msra.mxu1 %v1656_v42 }
  0x2f   : > { %1573 = vmatprep.subr.bf16.mxu1 %v1658_v47  ;;  %1567 = vmatprep.mubr.msk.bf16.mxu0 %vm215_vm0, %v667_v58 }
  0x30   : > { %1579 = vmatprep.mubr.msk.bf16.mxu1 %vm215_vm0, %v1665_v56 }
  0x31   : > { %1562 = vmatpush3.bf16.msra.mxu0 %v1652_v39 }
  0x32   : > { %1563 = vmatprep.subr.bf16.mxu0 %v1655_v46  ;;  %1574 = vmatpush3.bf16.msra.mxu1 %v1658_v47 }
  0x33   : > { %1575 = vmatprep.subr.bf16.mxu1 %v1661_v59 }
  0x35   : > { %1564 = vmatpush3.bf16.msra.mxu0 %v1655_v46 }
  0x36   : > { %1565 = vmatprep.subr.bf16.mxu0 %v1657_v57  ;;  %1576 = vmatpush3.bf16.msra.mxu1 %v1661_v59 }
  0x37   : > { %1577 = vmatprep.subr.bf16.mxu1 %v1663_v61 }
  0x39   : > { %1566 = vmatpush3.bf16.msra.mxu0 %v1657_v57 }
  0x3a   : > { %1583 = vmatprep.subr.bf16.mxu0 %v1662_v60  ;;  %1578 = vmatpush3.bf16.msra.mxu1 %v1663_v61 }
  0x3b   : > { %1595 = vmatprep.subr.bf16.mxu1 %v1668_v3 }
  0x3c   : > { %1568 = vmatmul.mubr.msk.bf16.vlgmr.msra.gmra.mxu0 %vm215_vm0, %v666_v55 }
  0x3d   : > { %1584 = vmatpush3.bf16.msra.mxu0 %v1662_v60  ;;  %1591 = vmatprep.mubr.msk.bf16.mxu0 %vm215_vm0, %v888_v5 }
  0x3e   : > { %1585 = vmatprep.subr.bf16.mxu0 %v1664_v2  ;;  %1580 = vmatmul.mubr.msk.bf16.vlgmr.msra.gmra.mxu1 %vm215_vm0, %v1666_v4 }
  0x3f   : > { %1596 = vmatpush3.bf16.msra.mxu1 %v1668_v3  ;;  %1603 = vmatprep.mubr.msk.bf16.mxu1 %vm215_vm0, %v1016_v24 }
  0x40   : > { %1597 = vmatprep.subr.bf16.mxu1 %v1670_v9 }
  0x41   : > { %1586 = vmatpush3.bf16.msra.mxu0 %v1664_v2 }
  0x42   : > { %1587 = vmatprep.subr.bf16.mxu0 %v1667_v8 }
  0x43   : > { %1598 = vmatpush3.bf16.msra.mxu1 %v1670_v9 }
  0x44   : > { %1599 = vmatprep.subr.bf16.mxu1 %v1673_v19 }
  0x45   : > { %1588 = vmatpush3.bf16.msra.mxu0 %v1667_v8 }
  0x46   : > { %1589 = vmatprep.subr.bf16.mxu0 %v1669_v18 }
  0x47   : > { %1600 = vmatpush3.bf16.msra.mxu1 %v1673_v19 }
  0x48   : > { %1601 = vmatprep.subr.bf16.mxu1 %v1675_v26 }
  0x49   : > { %1590 = vmatpush3.bf16.msra.mxu0 %v1669_v18 }
  0x4a   : > { %1607 = vmatprep.subr.bf16.mxu0 %v1674_v25 }
  0x4b   : > { %1602 = vmatpush3.bf16.msra.mxu1 %v1675_v26 }
  0x4c   : > { %1592 = vmatmul.mubr.msk.bf16.vlgmr.msra.gmra.mxu0 %vm215_vm0, %v887_v1 }
  0x4d   : > { %1608 = vmatpush3.bf16.msra.mxu0 %v1674_v25  ;;  %1615 = vmatprep.mubr.msk.bf16.mxu0 %vm215_vm0, %v1129_v30 }
  0x4e   : > { %1609 = vmatprep.subr.bf16.mxu0 %v1676_v29  ;;  %1604 = vmatmul.mubr.msk.bf16.vlgmr.msra.gmra.mxu1 %vm215_vm0, %v1015_v21 }
  0x51   : > { %1610 = vmatpush3.bf16.msra.mxu0 %v1676_v29 }
  0x52   : > { %1611 = vmatprep.subr.bf16.mxu0 %v1679_v31 }
  0x55   : > { %1612 = vmatpush3.bf16.msra.mxu0 %v1679_v31 }
  0x56   : > { %1613 = vmatprep.subr.bf16.mxu0 %v1680_v32 }
  0x59   : > { %1614 = vmatpush3.bf16.msra.mxu0 %v1680_v32 }
  0x5c   : > { %1616 = vmatmul.mubr.msk.bf16.vlgmr.msra.gmra.mxu0 %vm215_vm0, %v1128_v28 }
  0xdc   : > { %v1521_v33 = vpop.f32.mrf.mxu0 }
  0xdd   : > { %272 = vst.msk [vmem:[#allocation2 + $0x10] sm:$0xff] %vm215_vm0, %v1521_v33  ;;  %v1533_v35 = vpop.f32.mrf.mxu1 }
  0xde   : > { %v256_v34 = vpop.f32.mrf.mxu0 }
  0xdf   : > { %270 = vst.msk [vmem:[#allocation2] sm:$0xff] %vm215_vm0, %v256_v34  ;;  %v376_v37 = vpop.f32.mrf.mxu1 }
  0xe0   : > { %v1522_v36 = vpop.f32.mrf.mxu0 }
  0xe1   : > { %v1534_v40 = vpop.f32.mrf.mxu1 }
  0xe2   : > { %v259_v38 = vpop.f32.mrf.mxu0 }
  0xe3   : > { %271 = vst.msk [vmem:[#allocation2 + $0x8] sm:$0xff] %vm215_vm0, %v259_v38  ;;  %v379_v44 = vpop.f32.mrf.mxu1 }
  0xe4   : > { %v392_v39 = vld [vmem:[#allocation2 + $0x10] sm:$0xff] }
  0xe5   : > { %v395_v41 = vadd.f32 %v1533_v35, %v392_v39 }
  0xe6   : > { %v390_v42 = vld [vmem:[#allocation2] sm:$0xff] }
  0xe7   : > { %398 = vst.msk [vmem:[#allocation2 + $0x10] sm:$0xff] %vm215_vm0, %v395_v41  ;;  %v393_v43 = vadd.f32 %v390_v42, %v376_v37 }
  0xe9   : > { %396 = vst.msk [vmem:[#allocation2] sm:$0xff] %vm215_vm0, %v393_v43 }
  0xea   : > { %v391_v45 = vld [vmem:[#allocation2 + $0x8] sm:$0xff] }
  0xeb   : > { %v394_v46 = vadd.f32 %v391_v45, %v379_v44 }
  0xec   : > { %v1545_v47 = vpop.f32.mrf.mxu0 }
  0xed   : > { %397 = vst.msk [vmem:[#allocation2 + $0x8] sm:$0xff] %vm215_vm0, %v394_v46  ;;  %v1557_v53 = vpop.f32.mrf.mxu1 }
  0xee   : > { %v506_v48 = vld [vmem:[#allocation2 + $0x10] sm:$0xff]  ;;  %v490_v49 = vpop.f32.mrf.mxu0 }
  0xef   : > { %v509_v50 = vadd.f32 %v1545_v47, %v506_v48  ;;  %v604_v55 = vpop.f32.mrf.mxu1 }
  0xf0   : > { %v504_v51 = vld [vmem:[#allocation2] sm:$0xff]  ;;  %v1546_v52 = vpop.f32.mrf.mxu0 }
  0xf1   : > { %512 = vst.msk [vmem:[#allocation2 + $0x10] sm:$0xff] %vm215_vm0, %v509_v50  ;;  %v507_v54 = vadd.f32 %v504_v51, %v490_v49  ;;  %v1558_v58 = vpop.f32.mrf.mxu1 }
  0xf2   : > { %v493_v56 = vpop.f32.mrf.mxu0 }
  0xf3   : > { %510 = vst.msk [vmem:[#allocation2] sm:$0xff] %vm215_vm0, %v507_v54  ;;  %v607_v1 = vpop.f32.mrf.mxu1 }
  0xf4   : > { %v505_v57 = vld [vmem:[#allocation2 + $0x8] sm:$0xff] }
  0xf5   : > { %v508_v59 = vadd.f32 %v505_v57, %v493_v56 }
  0xf7   : > { %511 = vst.msk [vmem:[#allocation2 + $0x8] sm:$0xff] %vm215_vm0, %v508_v59 }
  0xf8   : > { %v620_v60 = vld [vmem:[#allocation2 + $0x10] sm:$0xff] }
  0xf9   : > { %v623_v61 = vadd.f32 %v1557_v53, %v620_v60  ;;  %v1448_v53 = vld [vmem:[%s1913_s2] ss:$0 sm:$0xff] }
  0xfa   : > { %v618_v62 = vld [vmem:[#allocation2] sm:$0xff] }
  0xfb   : > { %626 = vst.msk [vmem:[#allocation2 + $0x10] sm:$0xff] %vm215_vm0, %v623_v61  ;;  %v621_v63 = vadd.f32 %v618_v62, %v604_v55 }
  0xfc   : > { %v1569_v0 = vpop.f32.mrf.mxu0 }
  0xfd   : > { %624 = vst.msk [vmem:[#allocation2] sm:$0xff] %vm215_vm0, %v621_v63 }
  0xfe   : > { %v619_v2 = vld [vmem:[#allocation2 + $0x8] sm:$0xff]  ;;  %v732_v3 = vpop.f32.mrf.mxu0  ;;  %v1581_v6 = vpop.f32.mrf.mxu1 }
  0xff   : > { %v622_v4 = vadd.f32 %v619_v2, %v607_v1 }
 0x100   : > { %v1570_v5 = vpop.f32.mrf.mxu0  ;;  %v839_v8 = vpop.f32.mrf.mxu1 }
 0x101   : > { %625 = vst.msk [vmem:[#allocation2 + $0x8] sm:$0xff] %vm215_vm0, %v622_v4 }
 0x102   : > { %v748_v7 = vld [vmem:[#allocation2 + $0x10] sm:$0xff]  ;;  %v1582_v11 = vpop.f32.mrf.mxu1  ;;  %v735_v13 = vpop.f32.mrf.mxu0 }
 0x103   : > { %v751_v9 = vadd.f32 %v1569_v0, %v748_v7 }
 0x104   : > { %v746_v10 = vld [vmem:[#allocation2] sm:$0xff]  ;;  %v842_v20 = vpop.f32.mrf.mxu1 }
 0x105   : > { %754 = vst.msk [vmem:[#allocation2 + $0x10] sm:$0xff] %vm215_vm0, %v751_v9  ;;  %v749_v12 = vadd.f32 %v746_v10, %v732_v3 }
 0x107   : > { %752 = vst.msk [vmem:[#allocation2] sm:$0xff] %vm215_vm0, %v749_v12 }
 0x108   : > { %v747_v14 = vld [vmem:[#allocation2 + $0x8] sm:$0xff] }
 0x109   : > { %v750_v15 = vadd.f32 %v747_v14, %v735_v13 }
 0x10b   : > { %753 = vst.msk [vmem:[#allocation2 + $0x8] sm:$0xff] %vm215_vm0, %v750_v15 }
 0x10c   : > { %v855_v16 = vld [vmem:[#allocation2 + $0x10] sm:$0xff]  ;;  %v1593_v17 = vpop.f32.mrf.mxu0 }
 0x10d   : > { %v858_v18 = vadd.f32 %v1581_v6, %v855_v16 }
 0x10e   : > { %v853_v19 = vld [vmem:[#allocation2] sm:$0xff]  ;;  %v953_v21 = vpop.f32.mrf.mxu0  ;;  %v1605_v24 = vpop.f32.mrf.mxu1 }
 0x10f   : > { %861 = vst.msk [vmem:[#allocation2 + $0x10] sm:$0xff] %vm215_vm0, %v858_v18  ;;  %v856_v22 = vadd.f32 %v853_v19, %v839_v8 }
 0x110   : > { %v1594_v23 = vpop.f32.mrf.mxu0  ;;  %v1081_v26 = vpop.f32.mrf.mxu1 }
 0x111   : > { %859 = vst.msk [vmem:[#allocation2] sm:$0xff] %vm215_vm0, %v856_v22 }
 0x112   : > { %v854_v25 = vld [vmem:[#allocation2 + $0x8] sm:$0xff]  ;;  %v1606_v28 = vpop.f32.mrf.mxu1  ;;  %v956_v33 = vpop.f32.mrf.mxu0 }
 0x113   : > { %v857_v27 = vadd.f32 %v854_v25, %v842_v20 }
 0x114   : > { %v1084_v43 = vpop.f32.mrf.mxu1 }
 0x115   : > { %860 = vst.msk [vmem:[#allocation2 + $0x8] sm:$0xff] %vm215_vm0, %v857_v27 }
 0x116   : > { %v969_v29 = vld [vmem:[#allocation2 + $0x10] sm:$0xff] }
 0x117   : > { %v972_v30 = vadd.f32 %v1593_v17, %v969_v29 }
 0x118   : > { %v967_v31 = vld [vmem:[#allocation2] sm:$0xff] }
 0x119   : > { %975 = vst.msk [vmem:[#allocation2 + $0x10] sm:$0xff] %vm215_vm0, %v972_v30  ;;  %v970_v32 = vadd.f32 %v967_v31, %v953_v21 }
 0x11b   : > { %973 = vst.msk [vmem:[#allocation2] sm:$0xff] %vm215_vm0, %v970_v32 }
 0x11c   : > { %v968_v34 = vld [vmem:[#allocation2 + $0x8] sm:$0xff]  ;;  %v1617_v35 = vpop.f32.mrf.mxu0 }
 0x11d   : > { %v971_v36 = vadd.f32 %v968_v34, %v956_v33 }
 0x11e   : > { %v1194_v37 = vpop.f32.mrf.mxu0 }
 0x11f   : > { %974 = vst.msk [vmem:[#allocation2 + $0x8] sm:$0xff] %vm215_vm0, %v971_v36 }
 0x120   : > { %v1097_v38 = vld [vmem:[#allocation2 + $0x10] sm:$0xff]  ;;  %v1618_v39 = vpop.f32.mrf.mxu0 }
 0x121   : > { %v1100_v40 = vadd.f32 %v1605_v24, %v1097_v38 }
 0x122   : > { %v1095_v41 = vld [vmem:[#allocation2] sm:$0xff]  ;;  %v1197_v50 = vpop.f32.mrf.mxu0 }
 0x123   : > { %1103 = vst.msk [vmem:[#allocation2 + $0x10] sm:$0xff] %vm215_vm0, %v1100_v40  ;;  %v1098_v42 = vadd.f32 %v1095_v41, %v1081_v26 }
 0x125   : > { %1101 = vst.msk [vmem:[#allocation2] sm:$0xff] %vm215_vm0, %v1098_v42 }
 0x126   : > { %v1096_v44 = vld [vmem:[#allocation2 + $0x8] sm:$0xff] }
 0x127   : > { %v1099_v45 = vadd.f32 %v1096_v44, %v1084_v43 }
 0x129   : > { %1102 = vst.msk [vmem:[#allocation2 + $0x8] sm:$0xff] %vm215_vm0, %v1099_v45 }
 0x12a   : > { %v1210_v46 = vld [vmem:[#allocation2 + $0x10] sm:$0xff] }
 0x12b   : > { %v1213_v47 = vadd.f32 %v1617_v35, %v1210_v46 }
 0x12c   : > { %v1208_v48 = vld [vmem:[#allocation2] sm:$0xff] }
 0x12d   : > { %1216 = vst.msk [vmem:[#allocation2 + $0x10] sm:$0xff] %vm215_vm0, %v1213_v47  ;;  %v1211_v49 = vadd.f32 %v1208_v48, %v1194_v37 }
 0x12f   : > { %1214 = vst.msk [vmem:[#allocation2] sm:$0xff] %vm215_vm0, %v1211_v49 }
 0x130   : > { %v1209_v51 = vld [vmem:[#allocation2 + $0x8] sm:$0xff] }
 0x131   : > { %v1212_v52 = vadd.f32 %v1209_v51, %v1197_v50 }
 0x133   : > { %1215 = vst.msk [vmem:[#allocation2 + $0x8] sm:$0xff] %vm215_vm0, %v1212_v52 }
 0x134   : > { %v1219_v54 = vld [vmem:[#allocation2 + $0x10] sm:$0xff] }
 0x135   : > { %v1229_v55 = vadd.f32 %v1448_v53, %v1219_v54 }
 0x136   : > { %v1217_v56 = vld [vmem:[#allocation2] sm:$0xff] }
 0x137   : > { %v1232_v57 = vmax.f32 %v1229_v55, 0.0  ;;  %v1227_v58 = vadd.f32 %v1448_v53, %v1217_v56 }
 0x139   : > { %v1456_v59 = vpack.c.bf16 %v1232_v57, %v1232_v57  ;;  %v1230_v60 = vmax.f32 %v1227_v58, 0.0 }
 0x13a   : > { %v1218_v61 = vld [vmem:[#allocation2 + $0x8] sm:$0xff] }
 0x13b   : > { %1249 = vst.msk [vmem:[%s170_s21 + $0x8] sm:$0xf] %vm1246_vm7, %v1456_v59  ;;  %v1454_v62 = vpack.c.bf16 %v1230_v60, %v1230_v60  ;;  %v1228_v63 = vadd.f32 %v1448_v53, %v1218_v61 }
 0x13d   : > { %1247 = vst.msk [vmem:[%s170_s21] sm:$0xf] %vm1246_vm7, %v1454_v62  ;;  %v1231_v0 = vmax.f32 %v1228_v63, 0.0 }
 0x13f   : > { %v1455_v1 = vpack.c.bf16 %v1231_v0, %v1231_v0 }
 0x141   : > { %1248 = vst.msk [vmem:[%s170_s21 + $0x4] sm:$0xf] %vm1246_vm7, %v1455_v1 }
 0x142 PF: > { %s13_s12 = sadd.s32 1, %s1689_s12  }
 0x143   : > { %p10_p4 = scmp.ge.s32.totalorder %s13_s12, 4  }
 0x145   :  { %12 = sbr.rel (!%p10_p4) target bundleno = 1 (0x1), region = 70 }

// kernel: tile.13
= control target key start
LH: loop header
LB: loop body
LE: loop exit
PB: predicated region body
PF: predicated region fallthrough
CT: control target
= control target key end

     0   :  { %s22_s0 = inlined_call_operand.vmem [shape: f32[84], index: 0, kind: input, shape index: {}]   ;;  %s23_s1 = inlined_call_operand.vmem [shape: f32[2,84], index: 1, kind: output, shape index: {}]  }
   0x1   :  { %v4_v0 = vld [vmem:[%s22_s0] ss:$0 sm:$0xff] }
   0x2   :  { %5 = vst [vmem:[%s23_s1] sm:$0x3] %v4_v0 }

// kernel: tile.0
= control target key start
LH: loop header
LB: loop body
LE: loop exit
PB: predicated region body
PF: predicated region fallthrough
CT: control target
= control target key end

     0   :  { %s771_s8 = smov 125   ;;  %s772_s9 = smov 126   ;;  %vm8_vm0 = vcmask 7168   ;;  %s1202_s0 = inlined_call_operand.vmem [shape: f32[2,84], index: 0, kind: input, shape index: {}]   ;;  %s1203_s1 = inlined_call_operand.vmem [shape: f32[168,1], index: 1, kind: output, shape index: {}]  }
   0x1   :  { %v5_v0 = vld [vmem:[%s1202_s0] sm:$0x3]  ;;  %s770_s0 = smov 127   ;;  %s773_s10 = smov 124  }
   0x2   :  { %6 = vst [vmem:[#allocation0] sm:$0x3] %v5_v0  ;;  %s774_s11 = smov 123   ;;  %s775_s12 = smov 122  }
   0x3   :  { %s776_s13 = smov 121   ;;  %s777_s14 = smov 120  }
   0x4   :  { %s77_s15 = smov 3  ;;  %s778_s16 = smov 119  }
   0x5   :  { %s779_s17 = smov 118   ;;  %s85_s18 = smov 3 }
   0x6   :  { %s93_s19 = smov 3  ;;  %s780_s20 = smov 117  }
   0x7   :  { %s781_s21 = smov 116   ;;  %s101_s22 = smov 3 }
   0x8   :  { %s109_s23 = smov 3  ;;  %s782_s24 = smov 115  }
   0x9   :  { %v10_v1 = vld [vmem:[#allocation0] sm:$0x3]   ;;  %s783_s25 = smov 114   ;;  %s117_s26 = smov 3 }
   0xa   :  { %v22_v2 = vld [vmem:[#allocation0] sm:$0x3]   ;;  %11 = vrot.lane.b32.xlu0 %v10_v1, %s770_s0  ;;  %s125_s27 = smov 3  ;;  %s784_s28 = smov 113  }
   0xb   :  { %23 = vrot.lane.b32.xlu1 %v22_v2, %s771_s8  ;;  %v16_v3 = vld [vmem:[#allocation0] sm:$0x3]   ;;  %s785_s29 = smov 112   ;;  %s133_s30 = smov 3 }
   0xc   :  { %v28_v4 = vld [vmem:[#allocation0] sm:$0x3]   ;;  %s141_s2 = smov 3  ;;  %s786_s3 = smov 111  }
   0xd   :  { %v34_v5 = vld [vmem:[#allocation0] sm:$0x3]   ;;  %s787_s4 = smov 110   ;;  %s149_s5 = smov 3 }
   0xe   :  { %17 = vrot.lane.b32.xlu0 %v16_v3, %s772_s9  ;;  %v40_v6 = vld [vmem:[#allocation0] sm:$0x3]   ;;  %s157_s6 = smov 3  ;;  %s788_s7 = smov 109  }
   0xf   :  { %29 = vrot.lane.b32.xlu1 %v28_v4, %s773_s10  ;;  %v46_v7 = vld [vmem:[#allocation0] sm:$0x3]   ;;  %s789_s0 = smov 108   ;;  %s165_s8 = smov 3 }
  0x10   :  { %v52_v8 = vld [vmem:[#allocation0] sm:$0x3]   ;;  %s173_s9 = smov 3  ;;  %s790_s10 = smov 107  }
  0x11   :  { %v58_v9 = vld [vmem:[#allocation0] sm:$0x3]  }
  0x12   :  { %35 = vrot.lane.b32.xlu0 %v34_v5, %s774_s11  ;;  %v64_v10 = vld [vmem:[#allocation0] sm:$0x3]   ;;  %s791_s11 = smov 106  }
  0x13   :  { %41 = vrot.lane.b32.xlu1 %v40_v6, %s775_s12  ;;  %v70_v11 = vld [vmem:[#allocation0] sm:$0x3]   ;;  %s181_s12 = smov 3 }
  0x14   :  { %v78_v12 = vld [vmem:[#allocation0 + $0x1] ss:$-1 sm:%s77_s15]   ;;  %s793_s15 = smov 104  }
  0x15   :  { %v86_v13 = vld [vmem:[#allocation0 + $0x1] ss:$-1 sm:%s85_s18]   ;;  %s794_s18 = smov 103  }
  0x16   :  { %47 = vrot.lane.b32.xlu0 %v46_v7, %s776_s13  ;;  %v94_v14 = vld [vmem:[#allocation0 + $0x1] ss:$-1 sm:%s93_s19]   ;;  %s189_s13 = smov 3  ;;  %s795_s19 = smov 102  }
  0x17   :  { %53 = vrot.lane.b32.xlu1 %v52_v8, %s777_s14  ;;  %v102_v15 = vld [vmem:[#allocation0 + $0x1] ss:$-1 sm:%s101_s22]   ;;  %s792_s14 = smov 105   ;;  %s796_s22 = smov 101  }
  0x18   :  { %v110_v16 = vld [vmem:[#allocation0 + $0x1] ss:$-1 sm:%s109_s23]   ;;  %s797_s23 = smov 100  }
  0x19   :  { %v118_v17 = vld [vmem:[#allocation0 + $0x1] ss:$-1 sm:%s117_s26]   ;;  %s799_s26 = smov 98  }
  0x1a   :  { %59 = vrot.lane.b32.xlu0 %v58_v9, %s778_s16  ;;  %v126_v18 = vld [vmem:[#allocation0 + $0x1] ss:$-1 sm:%s125_s27]   ;;  %s197_s16 = smov 3  ;;  %s800_s27 = smov 97  }
  0x1b   :  { %65 = vrot.lane.b32.xlu1 %v64_v10, %s779_s17  ;;  %v134_v19 = vld [vmem:[#allocation0 + $0x1] ss:$-1 sm:%s133_s30]   ;;  %s205_s17 = smov 3  ;;  %s803_s30 = smov 94  }
  0x1c   :  { %v142_v20 = vld [vmem:[#allocation0 + $0x1] ss:$-1 sm:%s141_s2]   ;;  %s804_s2 = smov 93  }
  0x1d   :  { %v150_v21 = vld [vmem:[#allocation0 + $0x1] ss:$-1 sm:%s149_s5]   ;;  %s807_s5 = smov 90  }
  0x1e   :  { %71 = vrot.lane.b32.xlu0 %v70_v11, %s780_s20  ;;  %v158_v22 = vld [vmem:[#allocation0 + $0x1] ss:$-1 sm:%s157_s6]   ;;  %s213_s20 = smov 3  ;;  %s808_s6 = smov 89  }
  0x1f   :  { %79 = vrot.lane.b32.xlu1 %v78_v12, %s781_s21  ;;  %v166_v23 = vld [vmem:[#allocation0 + $0x1] ss:$-1 sm:%s165_s8]   ;;  %s221_s21 = smov 3  ;;  %s810_s8 = smov 87  }
  0x20   :  { %v174_v24 = vld [vmem:[#allocation0 + $0x1] ss:$-1 sm:%s173_s9]   ;;  %s811_s9 = smov 86  }
  0x21   :  { %v182_v25 = vld [vmem:[#allocation0 + $0x1] ss:$-1 sm:%s181_s12]   ;;  %s812_s12 = smov 85  }
  0x22   :  { %87 = vrot.lane.b32.xlu0 %v86_v13, %s782_s24  ;;  %v190_v26 = vld [vmem:[#allocation0 + $0x1] ss:$-1 sm:%s189_s13]   ;;  %s229_s24 = smov 3  ;;  %s813_s13 = smov 84  }
  0x23   :  { %95 = vrot.lane.b32.xlu1 %v94_v14, %s783_s25  ;;  %v198_v27 = vld [vmem:[#allocation0 + $0x1] ss:$-1 sm:%s197_s16]   ;;  %s798_s25 = smov 99   ;;  %s814_s16 = smov 83  }
  0x24   :  { %v206_v28 = vld [vmem:[#allocation0 + $0x1] ss:$-1 sm:%s205_s17]   ;;  %s815_s17 = smov 82  }
  0x25   :  { %v214_v29 = vld [vmem:[#allocation0 + $0x1] ss:$-1 sm:%s213_s20]   ;;  %s816_s20 = smov 81  }
  0x26   :  { %103 = vrot.lane.b32.xlu0 %v102_v15, %s784_s28  ;;  %v222_v30 = vld [vmem:[#allocation0 + $0x1] ss:$-1 sm:%s221_s21]   ;;  %s801_s28 = smov 96   ;;  %s817_s21 = smov 80  }
  0x27   :  { %111 = vrot.lane.b32.xlu1 %v110_v16, %s785_s29  ;;  %v230_v31 = vld [vmem:[#allocation0 + $0x1] ss:$-1 sm:%s229_s24]   ;;  %s802_s29 = smov 95   ;;  %s818_s24 = smov 79  }
  0x28   :  { %v236_v32 = vld [vmem:[#allocation0] sm:$0x3]  }
  0x29   :  { %v242_v33 = vld [vmem:[#allocation0] sm:$0x3]  }
  0x2a   :  { %119 = vrot.lane.b32.xlu0 %v118_v17, %s786_s3  ;;  %v248_v34 = vld [vmem:[#allocation0] sm:$0x3]   ;;  %s805_s3 = smov 92  }
  0x2b   :  { %127 = vrot.lane.b32.xlu1 %v126_v18, %s787_s4  ;;  %v254_v35 = vld [vmem:[#allocation0] sm:$0x3]   ;;  %s806_s4 = smov 91  }
  0x2c   :  { %v260_v36 = vld [vmem:[#allocation0] sm:$0x3]  }
  0x2d   :  { %v266_v37 = vld [vmem:[#allocation0] sm:$0x3]  }
  0x2e   :  { %135 = vrot.lane.b32.xlu0 %v134_v19, %s788_s7  ;;  %v272_v38 = vld [vmem:[#allocation0] sm:$0x3]   ;;  %s809_s7 = smov 88  }
  0x2f   :  { %143 = vrot.lane.b32.xlu1 %v142_v20, %s789_s0  ;;  %v278_v39 = vld [vmem:[#allocation0] sm:$0x3]   ;;  %s309_s0 = smov 3 }
  0x30   :  { %v284_v40 = vld [vmem:[#allocation0] sm:$0x3]  }
  0x31   :  { %v290_v41 = vld [vmem:[#allocation0] sm:$0x3]  }
  0x32   :  { %151 = vrot.lane.b32.xlu0 %v150_v21, %s790_s10  ;;  %v296_v42 = vld [vmem:[#allocation0] sm:$0x3]   ;;  %s317_s10 = smov 3 }
  0x33   :  { %159 = vrot.lane.b32.xlu1 %v158_v22, %s791_s11  ;;  %v302_v43 = vld [vmem:[#allocation0] sm:$0x3]   ;;  %s325_s11 = smov 3 }
  0x34   :  { %v310_v44 = vld [vmem:[#allocation0 + $0x1] ss:$-1 sm:%s309_s0]   ;;  %s825_s0 = smov 72  }
  0x35   :  { %v318_v45 = vld [vmem:[#allocation0 + $0x1] ss:$-1 sm:%s317_s10]   ;;  %s826_s10 = smov 71  }
  0x36   :  { %167 = vrot.lane.b32.xlu0 %v166_v23, %s792_s14  ;;  %v326_v46 = vld [vmem:[#allocation0 + $0x1] ss:$-1 sm:%s325_s11]   ;;  %s333_s14 = smov 3  ;;  %s827_s11 = smov 70  }
  0x37   :  { %175 = vrot.lane.b32.xlu1 %v174_v24, %s793_s15  ;;  %s341_s15 = smov 3  ;;  %v334_v47 = vld [vmem:[#allocation0 + $0x1] ss:$-1 sm:%s333_s14]   ;;  %s837_s14 = smov 60  }
  0x38   :  { %v342_v48 = vld [vmem:[#allocation0 + $0x1] ss:$-1 sm:%s341_s15]  }
  0x39   :  { %v468_v4 = vld [vmem:[#allocation0] sm:$0x3]  }
  0x3a   :  { %183 = vrot.lane.b32.xlu0 %v182_v25, %s794_s18  ;;  %s349_s18 = smov 3  ;;  %v474_v7 = vld [vmem:[#allocation0] sm:$0x3]  }
  0x3b   :  { %191 = vrot.lane.b32.xlu1 %v190_v26, %s795_s19  ;;  %s357_s19 = smov 3  ;;  %v350_v49 = vld [vmem:[#allocation0 + $0x1] ss:$-1 sm:%s349_s18]   ;;  %s828_s18 = smov 69  }
  0x3c   :  { %v358_v50 = vld [vmem:[#allocation0 + $0x1] ss:$-1 sm:%s357_s19]   ;;  %s829_s19 = smov 68  }
  0x3d   :  { %v480_v8 = vld [vmem:[#allocation0] sm:$0x3]  }
  0x3e   :  { %199 = vrot.lane.b32.xlu0 %v198_v27, %s796_s22  ;;  %s365_s22 = smov 3  ;;  %v486_v11 = vld [vmem:[#allocation0] sm:$0x3]  }
  0x3f   :  { %207 = vrot.lane.b32.xlu1 %v206_v28, %s797_s23  ;;  %s373_s23 = smov 3  ;;  %v366_v51 = vld [vmem:[#allocation0 + $0x1] ss:$-1 sm:%s365_s22]   ;;  %s581_s22 = smov 3 }
  0x40   :  { %v374_v52 = vld [vmem:[#allocation0 + $0x1] ss:$-1 sm:%s373_s23]   ;;  %s589_s23 = smov 3 }
  0x41   :  { %v492_v12 = vld [vmem:[#allocation0] sm:$0x3]  }
  0x42   :  { %215 = vrot.lane.b32.xlu0 %v214_v29, %s798_s25  ;;  %s819_s25 = smov 78   ;;  %v498_v15 = vld [vmem:[#allocation0] sm:$0x3]  }
  0x43   :  { %223 = vrot.lane.b32.xlu1 %v222_v30, %s799_s26  ;;  %s381_s26 = smov 3  ;;  %v504_v16 = vld [vmem:[#allocation0] sm:$0x3]  }
  0x44   :  { %v382_v53 = vld [vmem:[#allocation0 + $0x1] ss:$-1 sm:%s381_s26]   ;;  %s831_s26 = smov 66  }
  0x45   :  { %v510_v19 = vld [vmem:[#allocation0] sm:$0x3]  }
  0x46   :  { %231 = vrot.lane.b32.xlu0 %v230_v31, %s800_s27  ;;  %s389_s27 = smov 3  ;;  %v516_v20 = vld [vmem:[#allocation0] sm:$0x3]  }
  0x47   :  { %237 = vrot.lane.b32.xlu1 %v236_v32, %s801_s28  ;;  %s820_s28 = smov 77   ;;  %v390_v54 = vld [vmem:[#allocation0 + $0x1] ss:$-1 sm:%s389_s27]   ;;  %s541_s27 = smov 3 }
  0x48   :  { %v522_v23 = vld [vmem:[#allocation0] sm:$0x3]  }
  0x49   :  { %v528_v24 = vld [vmem:[#allocation0] sm:$0x3]  }
  0x4a   :  { %243 = vrot.lane.b32.xlu0 %v242_v33, %s802_s29  ;;  %s821_s29 = smov 76   ;;  %v534_v27 = vld [vmem:[#allocation0] sm:$0x3]  }
  0x4b   :  { %249 = vrot.lane.b32.xlu1 %v248_v34, %s803_s30  ;;  %s397_s30 = smov 3  ;;  %v542_v28 = vld [vmem:[#allocation0 + $0x1] ss:$-1 sm:%s541_s27]  }
  0x4c   :  { %v398_v55 = vld [vmem:[#allocation0 + $0x1] ss:$-1 sm:%s397_s30]   ;;  %s597_s30 = smov 3 }
  0x4e   :  { %255 = vrot.lane.b32.xlu0 %v254_v35, %s804_s2  ;;  %s405_s2 = smov 3  ;;  %v7_v35 = vld [vmem:[#allocation0] sm:$0x3]  }
  0x4f   :  { %261 = vrot.lane.b32.xlu1 %v260_v36, %s805_s3  ;;  %s822_s3 = smov 75   ;;  %v406_v56 = vld [vmem:[#allocation0 + $0x1] ss:$-1 sm:%s405_s2]   ;;  %s832_s2 = smov 65  }
  0x50   :  { %9 = vst.msk [vmem:[%s1203_s1] ss:$84 sm:$0x3] %vm8_vm0, %v7_v35  }
  0x52   :  { %267 = vrot.lane.b32.xlu0 %v266_v37, %s806_s4  ;;  %s823_s4 = smov 74  }
  0x53   :  { %273 = vrot.lane.b32.xlu1 %v272_v38, %s807_s5  ;;  %s413_s5 = smov 3 }
  0x54   :  { %v414_v57 = vld [vmem:[#allocation0 + $0x1] ss:$-1 sm:%s413_s5]   ;;  %s549_s5 = smov 3 }
  0x55   :  { %v550_v31 = vld [vmem:[#allocation0 + $0x1] ss:$-1 sm:%s549_s5]  }
  0x56   :  { %279 = vrot.lane.b32.xlu0 %v278_v39, %s808_s6  ;;  %s421_s6 = smov 3 }
  0x57   :  { %285 = vrot.lane.b32.xlu1 %v284_v40, %s809_s7  ;;  %s824_s7 = smov 73   ;;  %v422_v58 = vld [vmem:[#allocation0 + $0x1] ss:$-1 sm:%s421_s6]   ;;  %s557_s6 = smov 3 }
  0x58   :  { %v558_v32 = vld [vmem:[#allocation0 + $0x1] ss:$-1 sm:%s557_s6]   ;;  %s850_s6 = smov 47  }
  0x59   :  { %v582_v40 = vld [vmem:[#allocation0 + $0x1] ss:$-1 sm:%s581_s22]  }
  0x5a   :  { %291 = vrot.lane.b32.xlu0 %v290_v41, %s810_s8  ;;  %s429_s8 = smov 3  ;;  %v590_v41 = vld [vmem:[#allocation0 + $0x1] ss:$-1 sm:%s589_s23]  }
  0x5b   :  { %297 = vrot.lane.b32.xlu1 %v296_v42, %s811_s9  ;;  %s437_s9 = smov 3  ;;  %v430_v59 = vld [vmem:[#allocation0 + $0x1] ss:$-1 sm:%s429_s8]   ;;  %s835_s8 = smov 62  }
  0x5c   :  { %v438_v60 = vld [vmem:[#allocation0 + $0x1] ss:$-1 sm:%s437_s9]  }
  0x5e   :  { %303 = vrot.lane.b32.xlu0 %v302_v43, %s812_s12  ;;  %s445_s12 = smov 3 }
  0x5f   :  { %311 = vrot.lane.b32.xlu1 %v310_v44, %s813_s13  ;;  %s453_s13 = smov 3  ;;  %v446_v63 = vld [vmem:[#allocation0 + $0x1] ss:$-1 sm:%s445_s12]   ;;  %s565_s12 = smov 3 }
  0x60   :  { %v454_v0 = vld [vmem:[#allocation0 + $0x1] ss:$-1 sm:%s453_s13]   ;;  %s836_s13 = smov 61  }
  0x61   :  { %v566_v36 = vld [vmem:[#allocation0 + $0x1] ss:$-1 sm:%s565_s12]  }
  0x62   :  { %319 = vrot.lane.b32.xlu0 %v318_v45, %s814_s16  ;;  %v598_v44 = vld [vmem:[#allocation0 + $0x1] ss:$-1 sm:%s597_s30]  }
  0x63   :  { %327 = vrot.lane.b32.xlu1 %v326_v46, %s815_s17 }
  0x66   :  { %335 = vrot.lane.b32.xlu0 %v334_v47, %s816_s20  ;;  %s461_s20 = smov 3 }
  0x67   :  { %343 = vrot.lane.b32.xlu1 %v342_v48, %s817_s21  ;;  %v462_v3 = vld [vmem:[#allocation0 + $0x1] ss:$-1 sm:%s461_s20]   ;;  %s839_s20 = smov 58   ;;  %s847_s21 = smov 50  }
  0x6a   :  { %351 = vrot.lane.b32.xlu0 %v350_v49, %s818_s24 }
  0x6b   :  { %359 = vrot.lane.b32.xlu1 %v358_v50, %s819_s25  ;;  %s830_s25 = smov 67  }
  0x6e   :  { %367 = vrot.lane.b32.xlu0 %v366_v51, %s820_s28  ;;  %s848_s28 = smov 49  }
  0x6f   :  { %375 = vrot.lane.b32.xlu1 %v374_v52, %s821_s29  ;;  %s849_s29 = smov 48  }
  0x72   :  { %383 = vrot.lane.b32.xlu0 %v382_v53, %s822_s3  ;;  %s833_s3 = smov 64  }
  0x73   :  { %391 = vrot.lane.b32.xlu1 %v390_v54, %s823_s4  ;;  %s843_s4 = smov 54  }
  0x76   :  { %399 = vrot.lane.b32.xlu0 %v398_v55, %s824_s7  ;;  %s851_s7 = smov 46  }
  0x77   :  { %407 = vrot.lane.b32.xlu1 %v406_v56, %s825_s0  ;;  %s834_s0 = smov 63  }
  0x7a   :  { %415 = vrot.lane.b32.xlu0 %v414_v57, %s826_s10  ;;  %s844_s10 = smov 53  }
  0x7b   :  { %423 = vrot.lane.b32.xlu1 %v422_v58, %s827_s11  ;;  %s845_s11 = smov 52  }
  0x7c   :  { %v12_v61 = vpop.permute.xlu0 %11  }
  0x7d   :  { %v24_v62 = vpop.permute.xlu1 %23   ;;  %604 = vst.msk [vmem:[%s1203_s1 + $0x1] ss:$84 sm:$0x3] %vm8_vm0, %v12_v61  }
  0x7e   :  { %606 = vst.msk [vmem:[%s1203_s1 + $0x3] ss:$84 sm:$0x3] %vm8_vm0, %v24_v62   ;;  %431 = vrot.lane.b32.xlu0 %v430_v59, %s828_s18 }
  0x7f   :  { %439 = vrot.lane.b32.xlu1 %v438_v60, %s829_s19  ;;  %s838_s19 = smov 59  }
  0x80   :  { %v18_v1 = vpop.permute.xlu0 %17  }
  0x81   :  { %v30_v2 = vpop.permute.xlu1 %29   ;;  %605 = vst.msk [vmem:[%s1203_s1 + $0x2] ss:$84 sm:$0x3] %vm8_vm0, %v18_v1  }
  0x82   :  { %607 = vst.msk [vmem:[%s1203_s1 + $0x4] ss:$84 sm:$0x3] %vm8_vm0, %v30_v2   ;;  %447 = vrot.lane.b32.xlu0 %v446_v63, %s830_s25  ;;  %s840_s25 = smov 57  }
  0x83   :  { %455 = vrot.lane.b32.xlu1 %v454_v0, %s831_s26  ;;  %s841_s26 = smov 56  }
  0x84   :  { %v36_v5 = vpop.permute.xlu0 %35  }
  0x85   :  { %v42_v6 = vpop.permute.xlu1 %41   ;;  %608 = vst.msk [vmem:[%s1203_s1 + $0x5] ss:$84 sm:$0x3] %vm8_vm0, %v36_v5  }
  0x86   :  { %609 = vst.msk [vmem:[%s1203_s1 + $0x6] ss:$84 sm:$0x3] %vm8_vm0, %v42_v6   ;;  %463 = vrot.lane.b32.xlu0 %v462_v3, %s832_s2 }
  0x87   :  { %469 = vrot.lane.b32.xlu1 %v468_v4, %s833_s3  ;;  %s842_s3 = smov 55  }
  0x88   :  { %v48_v9 = vpop.permute.xlu0 %47  }
  0x89   :  { %v54_v10 = vpop.permute.xlu1 %53   ;;  %610 = vst.msk [vmem:[%s1203_s1 + $0x7] ss:$84 sm:$0x3] %vm8_vm0, %v48_v9  }
  0x8a   :  { %611 = vst.msk [vmem:[%s1203_s1 + $0x8] ss:$84 sm:$0x3] %vm8_vm0, %v54_v10   ;;  %475 = vrot.lane.b32.xlu0 %v474_v7, %s834_s0 }
  0x8b   :  { %481 = vrot.lane.b32.xlu1 %v480_v8, %s835_s8 }
  0x8c   :  { %v60_v13 = vpop.permute.xlu0 %59  }
  0x8d   :  { %v66_v14 = vpop.permute.xlu1 %65   ;;  %612 = vst.msk [vmem:[%s1203_s1 + $0x9] ss:$84 sm:$0x3] %vm8_vm0, %v60_v13  }
  0x8e   :  { %613 = vst.msk [vmem:[%s1203_s1 + $0xa] ss:$84 sm:$0x3] %vm8_vm0, %v66_v14   ;;  %487 = vrot.lane.b32.xlu0 %v486_v11, %s836_s13  ;;  %s573_s13 = smov 3 }
  0x8f   :  { %493 = vrot.lane.b32.xlu1 %v492_v12, %s837_s14  ;;  %v574_v37 = vld [vmem:[#allocation0 + $0x1] ss:$-1 sm:%s573_s13]  }
  0x90   :  { %v72_v17 = vpop.permute.xlu0 %71  }
  0x91   :  { %v80_v18 = vpop.permute.xlu1 %79   ;;  %614 = vst.msk [vmem:[%s1203_s1 + $0xb] ss:$84 sm:$0x3] %vm8_vm0, %v72_v17  }
  0x92   :  { %615 = vst.msk [vmem:[%s1203_s1 + $0x60] ss:$-84 sm:$0x3] %vm8_vm0, %v80_v18   ;;  %499 = vrot.lane.b32.xlu0 %v498_v15, %s838_s19 }
  0x93   :  { %505 = vrot.lane.b32.xlu1 %v504_v16, %s839_s20  ;;  %s846_s20 = smov 51  }
  0x94   :  { %v88_v21 = vpop.permute.xlu0 %87  }
  0x95   :  { %v96_v22 = vpop.permute.xlu1 %95   ;;  %616 = vst.msk [vmem:[%s1203_s1 + $0x61] ss:$-84 sm:$0x3] %vm8_vm0, %v88_v21  }
  0x96   :  { %617 = vst.msk [vmem:[%s1203_s1 + $0x62] ss:$-84 sm:$0x3] %vm8_vm0, %v96_v22   ;;  %511 = vrot.lane.b32.xlu0 %v510_v19, %s840_s25 }
  0x97   :  { %517 = vrot.lane.b32.xlu1 %v516_v20, %s841_s26 }
  0x98   :  { %v104_v25 = vpop.permute.xlu0 %103  }
  0x99   :  { %v112_v26 = vpop.permute.xlu1 %111   ;;  %618 = vst.msk [vmem:[%s1203_s1 + $0x63] ss:$-84 sm:$0x3] %vm8_vm0, %v104_v25  }
  0x9a   :  { %619 = vst.msk [vmem:[%s1203_s1 + $0x64] ss:$-84 sm:$0x3] %vm8_vm0, %v112_v26   ;;  %523 = vrot.lane.b32.xlu0 %v522_v23, %s842_s3 }
  0x9b   :  { %529 = vrot.lane.b32.xlu1 %v528_v24, %s843_s4 }
  0x9c   :  { %v120_v29 = vpop.permute.xlu0 %119  }
  0x9d   :  { %v128_v30 = vpop.permute.xlu1 %127   ;;  %620 = vst.msk [vmem:[%s1203_s1 + $0x65] ss:$-84 sm:$0x3] %vm8_vm0, %v120_v29  }
  0x9e   :  { %621 = vst.msk [vmem:[%s1203_s1 + $0x66] ss:$-84 sm:$0x3] %vm8_vm0, %v128_v30   ;;  %535 = vrot.lane.b32.xlu0 %v534_v27, %s844_s10 }
  0x9f   :  { %543 = vrot.lane.b32.xlu1 %v542_v28, %s845_s11  ;;  %s852_s11 = smov 45  }
  0xa0   :  { %v136_v33 = vpop.permute.xlu0 %135  }
  0xa1   :  { %v144_v34 = vpop.permute.xlu1 %143   ;;  %622 = vst.msk [vmem:[%s1203_s1 + $0x67] ss:$-84 sm:$0x3] %vm8_vm0, %v136_v33  }
  0xa2   :  { %623 = vst.msk [vmem:[%s1203_s1 + $0x68] ss:$-84 sm:$0x3] %vm8_vm0, %v144_v34   ;;  %551 = vrot.lane.b32.xlu0 %v550_v31, %s846_s20 }
  0xa3   :  { %559 = vrot.lane.b32.xlu1 %v558_v32, %s847_s21 }
  0xa4   :  { %v152_v38 = vpop.permute.xlu0 %151  }
  0xa5   :  { %v160_v39 = vpop.permute.xlu1 %159   ;;  %624 = vst.msk [vmem:[%s1203_s1 + $0x69] ss:$-84 sm:$0x3] %vm8_vm0, %v152_v38  }
  0xa6   :  { %625 = vst.msk [vmem:[%s1203_s1 + $0x6a] ss:$-84 sm:$0x3] %vm8_vm0, %v160_v39   ;;  %567 = vrot.lane.b32.xlu0 %v566_v36, %s848_s28 }
  0xa7   :  { %575 = vrot.lane.b32.xlu1 %v574_v37, %s849_s29 }
  0xa8   :  { %v168_v42 = vpop.permute.xlu0 %167  }
  0xa9   :  { %v176_v43 = vpop.permute.xlu1 %175   ;;  %626 = vst.msk [vmem:[%s1203_s1 + $0x6b] ss:$-84 sm:$0x3] %vm8_vm0, %v168_v42  }
  0xaa   :  { %627 = vst.msk [vmem:[%s1203_s1 + $0x6c] ss:$-84 sm:$0x3] %vm8_vm0, %v176_v43   ;;  %583 = vrot.lane.b32.xlu0 %v582_v40, %s850_s6 }
  0xab   :  { %591 = vrot.lane.b32.xlu1 %v590_v41, %s851_s7 }
  0xac   :  { %v184_v45 = vpop.permute.xlu0 %183  }
  0xad   :  { %v192_v46 = vpop.permute.xlu1 %191   ;;  %628 = vst.msk [vmem:[%s1203_s1 + $0x6d] ss:$-84 sm:$0x3] %vm8_vm0, %v184_v45  }
  0xae   :  { %629 = vst.msk [vmem:[%s1203_s1 + $0x6e] ss:$-84 sm:$0x3] %vm8_vm0, %v192_v46   ;;  %599 = vrot.lane.b32.xlu0 %v598_v44, %s852_s11 }
  0xb0   :  { %v200_v47 = vpop.permute.xlu0 %199  }
  0xb1   :  { %v208_v48 = vpop.permute.xlu1 %207   ;;  %630 = vst.msk [vmem:[%s1203_s1 + $0x6f] ss:$-84 sm:$0x3] %vm8_vm0, %v200_v47  }
  0xb2   :  { %631 = vst.msk [vmem:[%s1203_s1 + $0x70] ss:$-84 sm:$0x3] %vm8_vm0, %v208_v48  }
  0xb4   :  { %v216_v49 = vpop.permute.xlu0 %215  }
  0xb5   :  { %v224_v50 = vpop.permute.xlu1 %223   ;;  %632 = vst.msk [vmem:[%s1203_s1 + $0x71] ss:$-84 sm:$0x3] %vm8_vm0, %v216_v49  }
  0xb6   :  { %633 = vst.msk [vmem:[%s1203_s1 + $0x72] ss:$-84 sm:$0x3] %vm8_vm0, %v224_v50  }
  0xb8   :  { %v232_v51 = vpop.permute.xlu0 %231  }
  0xb9   :  { %v238_v52 = vpop.permute.xlu1 %237   ;;  %634 = vst.msk [vmem:[%s1203_s1 + $0x73] ss:$-84 sm:$0x3] %vm8_vm0, %v232_v51  }
  0xba   :  { %635 = vst.msk [vmem:[%s1203_s1 + $0x20] ss:$84 sm:$0x3] %vm8_vm0, %v238_v52  }
  0xbc   :  { %v244_v53 = vpop.permute.xlu0 %243  }
  0xbd   :  { %v250_v54 = vpop.permute.xlu1 %249   ;;  %636 = vst.msk [vmem:[%s1203_s1 + $0x21] ss:$84 sm:$0x3] %vm8_vm0, %v244_v53  }
  0xbe   :  { %637 = vst.msk [vmem:[%s1203_s1 + $0x22] ss:$84 sm:$0x3] %vm8_vm0, %v250_v54  }
  0xc0   :  { %v256_v55 = vpop.permute.xlu0 %255  }
  0xc1   :  { %v262_v56 = vpop.permute.xlu1 %261   ;;  %638 = vst.msk [vmem:[%s1203_s1 + $0x23] ss:$84 sm:$0x3] %vm8_vm0, %v256_v55  }
  0xc2   :  { %639 = vst.msk [vmem:[%s1203_s1 + $0x24] ss:$84 sm:$0x3] %vm8_vm0, %v262_v56  }
  0xc4   :  { %v268_v57 = vpop.permute.xlu0 %267  }
  0xc5   :  { %v274_v58 = vpop.permute.xlu1 %273   ;;  %640 = vst.msk [vmem:[%s1203_s1 + $0x25] ss:$84 sm:$0x3] %vm8_vm0, %v268_v57  }
  0xc6   :  { %641 = vst.msk [vmem:[%s1203_s1 + $0x26] ss:$84 sm:$0x3] %vm8_vm0, %v274_v58  }
  0xc8   :  { %v280_v59 = vpop.permute.xlu0 %279  }
  0xc9   :  { %v286_v60 = vpop.permute.xlu1 %285   ;;  %642 = vst.msk [vmem:[%s1203_s1 + $0x27] ss:$84 sm:$0x3] %vm8_vm0, %v280_v59  }
  0xca   :  { %643 = vst.msk [vmem:[%s1203_s1 + $0x28] ss:$84 sm:$0x3] %vm8_vm0, %v286_v60  }
  0xcc   :  { %v292_v61 = vpop.permute.xlu0 %291  }
  0xcd   :  { %v298_v62 = vpop.permute.xlu1 %297   ;;  %644 = vst.msk [vmem:[%s1203_s1 + $0x29] ss:$84 sm:$0x3] %vm8_vm0, %v292_v61  }
  0xce   :  { %645 = vst.msk [vmem:[%s1203_s1 + $0x2a] ss:$84 sm:$0x3] %vm8_vm0, %v298_v62  }
  0xd0   :  { %v304_v63 = vpop.permute.xlu0 %303  }
  0xd1   :  { %v312_v0 = vpop.permute.xlu1 %311   ;;  %646 = vst.msk [vmem:[%s1203_s1 + $0x2b] ss:$84 sm:$0x3] %vm8_vm0, %v304_v63  }
  0xd2   :  { %647 = vst.msk [vmem:[%s1203_s1 + $0x80] ss:$-84 sm:$0x3] %vm8_vm0, %v312_v0  }
  0xd4   :  { %v320_v1 = vpop.permute.xlu0 %319  }
  0xd5   :  { %v328_v2 = vpop.permute.xlu1 %327   ;;  %648 = vst.msk [vmem:[%s1203_s1 + $0x81] ss:$-84 sm:$0x3] %vm8_vm0, %v320_v1  }
  0xd6   :  { %649 = vst.msk [vmem:[%s1203_s1 + $0x82] ss:$-84 sm:$0x3] %vm8_vm0, %v328_v2  }
  0xd8   :  { %v336_v3 = vpop.permute.xlu0 %335  }
  0xd9   :  { %v344_v4 = vpop.permute.xlu1 %343   ;;  %650 = vst.msk [vmem:[%s1203_s1 + $0x83] ss:$-84 sm:$0x3] %vm8_vm0, %v336_v3  }
  0xda   :  { %651 = vst.msk [vmem:[%s1203_s1 + $0x84] ss:$-84 sm:$0x3] %vm8_vm0, %v344_v4  }
  0xdc   :  { %v352_v5 = vpop.permute.xlu0 %351  }
  0xdd   :  { %v360_v6 = vpop.permute.xlu1 %359   ;;  %652 = vst.msk [vmem:[%s1203_s1 + $0x85] ss:$-84 sm:$0x3] %vm8_vm0, %v352_v5  }
  0xde   :  { %653 = vst.msk [vmem:[%s1203_s1 + $0x86] ss:$-84 sm:$0x3] %vm8_vm0, %v360_v6  }
  0xe0   :  { %v368_v7 = vpop.permute.xlu0 %367  }
  0xe1   :  { %v376_v8 = vpop.permute.xlu1 %375   ;;  %654 = vst.msk [vmem:[%s1203_s1 + $0x87] ss:$-84 sm:$0x3] %vm8_vm0, %v368_v7  }
  0xe2   :  { %655 = vst.msk [vmem:[%s1203_s1 + $0x88] ss:$-84 sm:$0x3] %vm8_vm0, %v376_v8  }
  0xe4   :  { %v384_v9 = vpop.permute.xlu0 %383  }
  0xe5   :  { %v392_v10 = vpop.permute.xlu1 %391   ;;  %656 = vst.msk [vmem:[%s1203_s1 + $0x89] ss:$-84 sm:$0x3] %vm8_vm0, %v384_v9  }
  0xe6   :  { %657 = vst.msk [vmem:[%s1203_s1 + $0x8a] ss:$-84 sm:$0x3] %vm8_vm0, %v392_v10  }
  0xe8   :  { %v400_v11 = vpop.permute.xlu0 %399  }
  0xe9   :  { %v408_v12 = vpop.permute.xlu1 %407   ;;  %658 = vst.msk [vmem:[%s1203_s1 + $0x8b] ss:$-84 sm:$0x3] %vm8_vm0, %v400_v11  }
  0xea   :  { %659 = vst.msk [vmem:[%s1203_s1 + $0x8c] ss:$-84 sm:$0x3] %vm8_vm0, %v408_v12  }
  0xec   :  { %v416_v13 = vpop.permute.xlu0 %415  }
  0xed   :  { %v424_v14 = vpop.permute.xlu1 %423   ;;  %660 = vst.msk [vmem:[%s1203_s1 + $0x8d] ss:$-84 sm:$0x3] %vm8_vm0, %v416_v13  }
  0xee   :  { %661 = vst.msk [vmem:[%s1203_s1 + $0x8e] ss:$-84 sm:$0x3] %vm8_vm0, %v424_v14  }
  0xf0   :  { %v432_v15 = vpop.permute.xlu0 %431  }
  0xf1   :  { %v440_v16 = vpop.permute.xlu1 %439   ;;  %662 = vst.msk [vmem:[%s1203_s1 + $0x8f] ss:$-84 sm:$0x3] %vm8_vm0, %v432_v15  }
  0xf2   :  { %663 = vst.msk [vmem:[%s1203_s1 + $0x90] ss:$-84 sm:$0x3] %vm8_vm0, %v440_v16  }
  0xf4   :  { %v448_v17 = vpop.permute.xlu0 %447  }
  0xf5   :  { %v456_v18 = vpop.permute.xlu1 %455   ;;  %664 = vst.msk [vmem:[%s1203_s1 + $0x91] ss:$-84 sm:$0x3] %vm8_vm0, %v448_v17  }
  0xf6   :  { %665 = vst.msk [vmem:[%s1203_s1 + $0x92] ss:$-84 sm:$0x3] %vm8_vm0, %v456_v18  }
  0xf8   :  { %v464_v19 = vpop.permute.xlu0 %463  }
  0xf9   :  { %v470_v20 = vpop.permute.xlu1 %469   ;;  %666 = vst.msk [vmem:[%s1203_s1 + $0x93] ss:$-84 sm:$0x3] %vm8_vm0, %v464_v19  }
  0xfa   :  { %667 = vst.msk [vmem:[%s1203_s1 + $0x40] ss:$84 sm:$0x3] %vm8_vm0, %v470_v20  }
  0xfc   :  { %v476_v21 = vpop.permute.xlu0 %475  }
  0xfd   :  { %v482_v22 = vpop.permute.xlu1 %481   ;;  %668 = vst.msk [vmem:[%s1203_s1 + $0x41] ss:$84 sm:$0x3] %vm8_vm0, %v476_v21  }
  0xfe   :  { %669 = vst.msk [vmem:[%s1203_s1 + $0x42] ss:$84 sm:$0x3] %vm8_vm0, %v482_v22  }
 0x100   :  { %v488_v23 = vpop.permute.xlu0 %487  }
 0x101   :  { %v494_v24 = vpop.permute.xlu1 %493   ;;  %670 = vst.msk [vmem:[%s1203_s1 + $0x43] ss:$84 sm:$0x3] %vm8_vm0, %v488_v23  }
 0x102   :  { %671 = vst.msk [vmem:[%s1203_s1 + $0x44] ss:$84 sm:$0x3] %vm8_vm0, %v494_v24  }
 0x104   :  { %v500_v25 = vpop.permute.xlu0 %499  }
 0x105   :  { %v506_v26 = vpop.permute.xlu1 %505   ;;  %672 = vst.msk [vmem:[%s1203_s1 + $0x45] ss:$84 sm:$0x3] %vm8_vm0, %v500_v25  }
 0x106   :  { %673 = vst.msk [vmem:[%s1203_s1 + $0x46] ss:$84 sm:$0x3] %vm8_vm0, %v506_v26  }
 0x108   :  { %v512_v27 = vpop.permute.xlu0 %511  }
 0x109   :  { %v518_v28 = vpop.permute.xlu1 %517   ;;  %674 = vst.msk [vmem:[%s1203_s1 + $0x47] ss:$84 sm:$0x3] %vm8_vm0, %v512_v27  }
 0x10a   :  { %675 = vst.msk [vmem:[%s1203_s1 + $0x48] ss:$84 sm:$0x3] %vm8_vm0, %v518_v28  }
 0x10c   :  { %v524_v29 = vpop.permute.xlu0 %523  }
 0x10d   :  { %v530_v30 = vpop.permute.xlu1 %529   ;;  %676 = vst.msk [vmem:[%s1203_s1 + $0x49] ss:$84 sm:$0x3] %vm8_vm0, %v524_v29  }
 0x10e   :  { %677 = vst.msk [vmem:[%s1203_s1 + $0x4a] ss:$84 sm:$0x3] %vm8_vm0, %v530_v30  }
 0x110   :  { %v536_v31 = vpop.permute.xlu0 %535  }
 0x111   :  { %v544_v32 = vpop.permute.xlu1 %543   ;;  %678 = vst.msk [vmem:[%s1203_s1 + $0x4b] ss:$84 sm:$0x3] %vm8_vm0, %v536_v31  }
 0x112   :  { %679 = vst.msk [vmem:[%s1203_s1 + $0xa0] ss:$-84 sm:$0x3] %vm8_vm0, %v544_v32  }
 0x114   :  { %v552_v33 = vpop.permute.xlu0 %551  }
 0x115   :  { %v560_v34 = vpop.permute.xlu1 %559   ;;  %680 = vst.msk [vmem:[%s1203_s1 + $0xa1] ss:$-84 sm:$0x3] %vm8_vm0, %v552_v33  }
 0x116   :  { %681 = vst.msk [vmem:[%s1203_s1 + $0xa2] ss:$-84 sm:$0x3] %vm8_vm0, %v560_v34  }
 0x118   :  { %v568_v35 = vpop.permute.xlu0 %567  }
 0x119   :  { %v576_v36 = vpop.permute.xlu1 %575   ;;  %682 = vst.msk [vmem:[%s1203_s1 + $0xa3] ss:$-84 sm:$0x3] %vm8_vm0, %v568_v35  }
 0x11a   :  { %683 = vst.msk [vmem:[%s1203_s1 + $0xa4] ss:$-84 sm:$0x3] %vm8_vm0, %v576_v36  }
 0x11c   :  { %v584_v37 = vpop.permute.xlu0 %583  }
 0x11d   :  { %v592_v38 = vpop.permute.xlu1 %591   ;;  %684 = vst.msk [vmem:[%s1203_s1 + $0xa5] ss:$-84 sm:$0x3] %vm8_vm0, %v584_v37  }
 0x11e   :  { %685 = vst.msk [vmem:[%s1203_s1 + $0xa6] ss:$-84 sm:$0x3] %vm8_vm0, %v592_v38  }
 0x120   :  { %v600_v39 = vpop.permute.xlu0 %599  }
 0x121   :  { %686 = vst.msk [vmem:[%s1203_s1 + $0xa7] ss:$-84 sm:$0x3] %vm8_vm0, %v600_v39  }

// kernel: fcos_rt_forward.57
= control target key start
LH: loop header
LB: loop body
LE: loop exit
PB: predicated region body
PF: predicated region fallthrough
CT: control target
= control target key end

     0   :  { %v874_v0 = vmov 0   ;;  %v875_v5 = vmov 0.0   ;;  %vm876_vm0 = vmmov 0   ;;  %vm134_vm1 = vcmask 523264   ;;  %s1504_s3 = inlined_call_operand.vmem [shape: f32[168,1], index: 3, kind: input, shape index: {}]   ;;  %s1505_s1 = inlined_call_operand.vmem [shape: bf16[64,128], index: 1, kind: input, shape index: {}]   ;;  %s1506_s0 = inlined_call_operand.vmem [shape: bf16[168,64], index: 0, kind: input, shape index: {}]   ;;  %s1507_s4 = inlined_call_operand.vmem [shape: f32[168,1], index: 4, kind: input, shape index: {}]   ;;  %s1508_s2 = inlined_call_operand.vmem [shape: f32[1,128], index: 2, kind: input, shape index: {}]   ;;  %s1509_s5 = inlined_call_operand.vmem [shape: f32[168,128], index: 5, kind: output, shape index: {}]  }
   0x1   :  { %816 = vset.pattern.permute.xlu1 %v874_v0  ;;  %815 = vset.pattern.permute.xlu0 %v874_v0  ;;  %v305_v1 = vld [vmem:[%s1504_s3 + $0x10] sm:$0xff]  ;;  %v303_v2 = vld [vmem:[%s1504_s3] sm:$0xff]  ;;  %v817_v3 = vld [vmem:[%s1505_s1 + $0x18] sm:$0xff]  }
   0x2   :  { %357 = vperm.xlu1 %816, %v305_v1   ;;  %347 = vperm.xlu0 %815, %v303_v2   ;;  %v306_v4 = vld [vmem:[%s1504_s3 + $0x18] sm:$0xff]  ;;  %v304_v6 = vld [vmem:[%s1504_s3 + $0x8] sm:$0xff]  ;;  %v818_v7 = vld [vmem:[%s1505_s1 + $0x10] sm:$0xff]  }
   0x3   :  { %751 = vmatprep.subr.bf16.mxu0 %v875_v5  ;;  %803 = vmatprep.subr.bf16.mxu1 %v875_v5  ;;  %v308_v8 = vld [vmem:[%s1504_s3 + $0x28] sm:$0xff]  ;;  %v307_v9 = vld [vmem:[%s1504_s3 + $0x20] sm:$0xff]  ;;  %v310_v11 = vld [vmem:[%s1504_s3 + $0x38] sm:$0xff] }
   0x4   :  { %752 = vmatpush3.bf16.msra.mxu0 %v817_v3  ;;  %807 = vmatpush3.bf16.msra.mxu1 %v817_v3  ;;  %v819_v10 = vld [vmem:[%s1505_s1 + $0x8] sm:$0xff]   ;;  %v309_v12 = vld [vmem:[%s1504_s3 + $0x30] sm:$0xff]  ;;  %v820_v13 = vld [vmem:[%s1505_s1] sm:$0xff]  }
   0x5   :  { %753 = vmatprep.subr.bf16.mxu0 %v875_v5  ;;  %804 = vmatprep.subr.bf16.mxu1 %v875_v5  ;;  %v312_v14 = vld [vmem:[%s1504_s3 + $0x48] sm:$0xff]  ;;  %v311_v15 = vld [vmem:[%s1504_s3 + $0x40] sm:$0xff]  ;;  %v822_v17 = vld [vmem:[%s1506_s0 + $0x30] sm:$0xff]  }
   0x6   :  { %362 = vperm.xlu1 %816, %v306_v4   ;;  %352 = vperm.xlu0 %815, %v304_v6   ;;  %v821_v16 = vld [vmem:[%s1506_s0] sm:$0xff]   ;;  %v314_v18 = vld [vmem:[%s1504_s3 + $0x58] sm:$0xff]  ;;  %v313_v19 = vld [vmem:[%s1504_s3 + $0x50] sm:$0xff] }
   0x7   :  { %759 = vmatprep.mubr.msk.bf16.mxu0 %vm876_vm0, %v875_v5  ;;  %783 = vmatprep.mubr.msk.bf16.mxu1 %vm876_vm0, %v875_v5  ;;  %v316_v20 = vld [vmem:[%s1504_s3 + $0x68] sm:$0xff]  ;;  %v315_v21 = vld [vmem:[%s1504_s3 + $0x60] sm:$0xff]  ;;  %v824_v23 = vld [vmem:[%s1506_s0 + $0x38] sm:$0xff]  }
   0x8   :  { %754 = vmatpush3.bf16.msra.mxu0 %v818_v7  ;;  %808 = vmatpush3.bf16.msra.mxu1 %v818_v7  ;;  %v823_v22 = vld [vmem:[%s1506_s0 + $0x8] sm:$0xff]   ;;  %v318_v24 = vld [vmem:[%s1504_s3 + $0x78] sm:$0xff]  ;;  %v317_v25 = vld [vmem:[%s1504_s3 + $0x70] sm:$0xff] }
   0x9   :  { %755 = vmatprep.subr.bf16.mxu0 %v875_v5  ;;  %805 = vmatprep.subr.bf16.mxu1 %v875_v5  ;;  %v320_v26 = vld [vmem:[%s1504_s3 + $0x88] sm:$0xff]  ;;  %v319_v27 = vld [vmem:[%s1504_s3 + $0x80] sm:$0xff]  ;;  %v825_v28 = vld [vmem:[%s1506_s0 + $0x10] sm:$0xff]  }
   0xa   :  { %372 = vperm.xlu1 %816, %v308_v8   ;;  %367 = vperm.xlu0 %815, %v307_v9   ;;  %v826_v29 = vld [vmem:[%s1506_s0 + $0x40] sm:$0xff]   ;;  %v322_v30 = vld [vmem:[%s1504_s3 + $0x98] sm:$0xff]  ;;  %v321_v31 = vld [vmem:[%s1504_s3 + $0x90] sm:$0xff] }
   0xb   :  { %v324_v32 = vld [vmem:[%s1507_s4] sm:$0xff]  ;;  %v827_v34 = vld [vmem:[%s1506_s0 + $0x18] sm:$0xff]   ;;  %v828_v35 = vld [vmem:[%s1506_s0 + $0x48] sm:$0xff]  }
   0xc   :  { %756 = vmatpush3.bf16.msra.mxu0 %v819_v10  ;;  %809 = vmatpush3.bf16.msra.mxu1 %v819_v10  ;;  %v323_v33 = vld [vmem:[%s1504_s3 + $0xa0] sm:$0xff]  ;;  %v326_v36 = vld [vmem:[%s1507_s4 + $0x10] sm:$0xff]  ;;  %v325_v37 = vld [vmem:[%s1507_s4 + $0x8] sm:$0xff] }
   0xd   :  { %757 = vmatprep.subr.bf16.mxu0 %v875_v5  ;;  %806 = vmatprep.subr.bf16.mxu1 %v875_v5  ;;  %v328_v38 = vld [vmem:[%s1507_s4 + $0x20] sm:$0xff]  ;;  %v327_v39 = vld [vmem:[%s1507_s4 + $0x18] sm:$0xff]  ;;  %v830_v41 = vld [vmem:[%s1506_s0 + $0x50] ss:$0 sps:$4 sm:$0xff]  }
   0xe   :  { %382 = vperm.xlu1 %816, %v310_v11   ;;  %377 = vperm.xlu0 %815, %v309_v12   ;;  %v829_v40 = vld [vmem:[%s1506_s0 + $0x20] sm:$0xff]   ;;  %v330_v42 = vld [vmem:[%s1507_s4 + $0x30] sm:$0xff]  ;;  %v329_v43 = vld [vmem:[%s1507_s4 + $0x28] sm:$0xff] }
   0xf   :  { %v332_v44 = vld [vmem:[%s1507_s4 + $0x40] sm:$0xff]  ;;  %v331_v45 = vld [vmem:[%s1507_s4 + $0x38] sm:$0xff]  ;;  %v831_v46 = vld [vmem:[%s1506_s0 + $0x28] sm:$0xff]  }
  0x10   :  { %758 = vmatpush3.bf16.msra.mxu0 %v820_v13  ;;  %810 = vmatpush3.bf16.msra.mxu1 %v820_v13  ;;  %v334_v47 = vld [vmem:[%s1507_s4 + $0x50] sm:$0xff]  ;;  %v333_v48 = vld [vmem:[%s1507_s4 + $0x48] sm:$0xff]  ;;  %v336_v49 = vld [vmem:[%s1507_s4 + $0x60] sm:$0xff] }
  0x11   :  { %v335_v50 = vld [vmem:[%s1507_s4 + $0x58] sm:$0xff]  ;;  %v338_v51 = vld [vmem:[%s1507_s4 + $0x70] sm:$0xff]  ;;  %v337_v52 = vld [vmem:[%s1507_s4 + $0x68] sm:$0xff] }
  0x12   :  { %392 = vperm.xlu1 %816, %v312_v14   ;;  %387 = vperm.xlu0 %815, %v311_v15   ;;  %v340_v53 = vld [vmem:[%s1507_s4 + $0x80] sm:$0xff]  ;;  %v339_v54 = vld [vmem:[%s1507_s4 + $0x78] sm:$0xff]  ;;  %v342_v55 = vld [vmem:[%s1507_s4 + $0x90] sm:$0xff] }
  0x13   :  { %760 = vmatmul.mubr.msk.bf16.vlgmr.msra.gmra.mxu0 %vm134_vm1, %v821_v16  ;;  %784 = vmatmul.mubr.msk.bf16.vlgmr.msra.gmra.mxu1 %vm134_vm1, %v822_v17  ;;  %v341_v56 = vld [vmem:[%s1507_s4 + $0x88] sm:$0xff]  ;;  %v344_v57 = vld [vmem:[%s1507_s4 + $0xa0] sm:$0xff]  ;;  %v343_v58 = vld [vmem:[%s1507_s4 + $0x98] sm:$0xff] }
  0x14   :  { %763 = vmatprep.mubr.msk.bf16.mxu0 %vm876_vm0, %v875_v5  ;;  %787 = vmatprep.mubr.msk.bf16.mxu1 %vm876_vm0, %v875_v5 }
  0x16   :  { %402 = vperm.xlu1 %816, %v314_v18   ;;  %397 = vperm.xlu0 %815, %v313_v19  }
  0x1a   :  { %412 = vperm.xlu1 %816, %v316_v20   ;;  %407 = vperm.xlu0 %815, %v315_v21  }
  0x1b   :  { %764 = vmatmul.mubr.msk.bf16.gmra.mxu0 %vm134_vm1, %v823_v22  ;;  %788 = vmatmul.mubr.msk.bf16.gmra.mxu1 %vm134_vm1, %v824_v23  ;;  %v1177_v22 = vld [vmem:[%s1508_s2] ss:$0 sm:$0xff] }
  0x1c   :  { %767 = vmatprep.mubr.msk.bf16.mxu0 %vm876_vm0, %v875_v5  ;;  %791 = vmatprep.mubr.msk.bf16.mxu1 %vm876_vm0, %v875_v5 }
  0x1e   :  { %422 = vperm.xlu1 %816, %v318_v24   ;;  %417 = vperm.xlu0 %815, %v317_v25  }
  0x22   :  { %432 = vperm.xlu1 %816, %v320_v26   ;;  %427 = vperm.xlu0 %815, %v319_v27  }
  0x23   :  { %768 = vmatmul.mubr.msk.bf16.gmra.mxu0 %vm134_vm1, %v825_v28  ;;  %792 = vmatmul.mubr.msk.bf16.gmra.mxu1 %vm134_vm1, %v826_v29 }
  0x24   :  { %771 = vmatprep.mubr.msk.bf16.mxu0 %vm876_vm0, %v875_v5  ;;  %795 = vmatprep.mubr.msk.bf16.mxu1 %vm876_vm0, %v875_v5 }
  0x26   :  { %442 = vperm.xlu1 %816, %v322_v30   ;;  %437 = vperm.xlu0 %815, %v321_v31  }
  0x2a   :  { %452 = vperm.xlu1 %816, %v324_v32   ;;  %447 = vperm.xlu0 %815, %v323_v33   ;;  %v288_v33 = vlaneseq }
  0x2b   :  { %772 = vmatmul.mubr.msk.bf16.gmra.mxu0 %vm134_vm1, %v827_v34  ;;  %796 = vmatmul.mubr.msk.bf16.gmra.mxu1 %vm134_vm1, %v828_v35 }
  0x2c   :  { %775 = vmatprep.mubr.msk.bf16.mxu0 %vm876_vm0, %v875_v5  ;;  %799 = vmatprep.mubr.msk.bf16.mxu1 %vm876_vm0, %v875_v5 }
  0x2e   :  { %462 = vperm.xlu1 %816, %v326_v36   ;;  %457 = vperm.xlu0 %815, %v325_v37  }
  0x32   :  { %472 = vperm.xlu1 %816, %v328_v38   ;;  %467 = vperm.xlu0 %815, %v327_v39  }
  0x33   :  { %776 = vmatmul.mubr.msk.bf16.gmra.mxu0 %vm134_vm1, %v829_v40  ;;  %800 = vmatmul.mubr.msk.bf16.gmra.mxu1 %vm134_vm1, %v830_v41 }
  0x34   :  { %779 = vmatprep.mubr.msk.bf16.mxu0 %vm876_vm0, %v875_v5 }
  0x36   :  { %482 = vperm.xlu1 %816, %v330_v42   ;;  %477 = vperm.xlu0 %815, %v329_v43   ;;  %v1201_v43 = vand.u32 127, %v288_v33 }
  0x38   :  { %vm576_vm2 = vcmp.lt.s32.totalorder %v1201_v43, 2  ;;  %vm662_vm4 = vcmp.lt.s32.totalorder %v1201_v43, 4 }
  0x3a   :  { %492 = vperm.xlu1 %816, %v332_v44   ;;  %487 = vperm.xlu0 %815, %v331_v45  }
  0x3b   :  { %780 = vmatmul.mubr.msk.bf16.gmra.mxu0 %vm134_vm1, %v831_v46 }
  0x3e   :  { %502 = vperm.xlu1 %816, %v334_v47   ;;  %497 = vperm.xlu0 %815, %v333_v48  }
  0x42   :  { %512 = vperm.xlu1 %816, %v336_v49   ;;  %507 = vperm.xlu0 %815, %v335_v50  }
  0x46   :  { %522 = vperm.xlu1 %816, %v338_v51   ;;  %517 = vperm.xlu0 %815, %v337_v52  }
  0x4a   :  { %532 = vperm.xlu1 %816, %v340_v53   ;;  %527 = vperm.xlu0 %815, %v339_v54   ;;  %v294_v53 = vand.u32 1, %v1201_v43 }
  0x4c   :  { %vm1229_vm3 = vcmp.eq.s32.totalorder %v294_v53, 0 }
  0x4e   :  { %542 = vperm.xlu1 %816, %v342_v55   ;;  %537 = vperm.xlu0 %815, %v341_v56  }
  0x52   :  { %552 = vperm.xlu1 %816, %v344_v57   ;;  %547 = vperm.xlu0 %815, %v343_v58  }
  0x7d   :  { %v1120_v59 = vpop.permute.xlu0 %347  ;;  %v1122_v60 = vpop.permute.xlu1 %357 }
  0x81   :  { %v1124_v61 = vpop.permute.xlu0 %352  ;;  %v1126_v62 = vpop.permute.xlu1 %362 }
  0x85   :  { %v1128_v63 = vpop.permute.xlu0 %367  ;;  %v1130_v0 = vpop.permute.xlu1 %372 }
  0x89   :  { %v1132_v1 = vpop.permute.xlu0 %377  ;;  %v1134_v2 = vpop.permute.xlu1 %382 }
  0x8d   :  { %v1136_v3 = vpop.permute.xlu0 %387  ;;  %v1138_v4 = vpop.permute.xlu1 %392 }
  0x91   :  { %v1140_v5 = vpop.permute.xlu0 %397  ;;  %v1142_v6 = vpop.permute.xlu1 %402 }
  0x95   :  { %v1144_v7 = vpop.permute.xlu0 %407  ;;  %v1146_v8 = vpop.permute.xlu1 %412 }
  0x99   :  { %v1148_v9 = vpop.permute.xlu0 %417  ;;  %v1150_v10 = vpop.permute.xlu1 %422 }
  0x9d   :  { %v1152_v11 = vpop.permute.xlu0 %427  ;;  %v1154_v12 = vpop.permute.xlu1 %432 }
  0xa1   :  { %v1156_v13 = vpop.permute.xlu0 %437  ;;  %v1158_v14 = vpop.permute.xlu1 %442 }
  0xa5   :  { %v1160_v15 = vpop.permute.xlu0 %447  ;;  %v1162_v16 = vpop.permute.xlu1 %452 }
  0xa9   :  { %v1164_v17 = vpop.permute.xlu0 %457  ;;  %v1166_v18 = vpop.permute.xlu1 %462 }
  0xad   :  { %v1168_v19 = vpop.permute.xlu0 %467  ;;  %v1170_v20 = vpop.permute.xlu1 %472 }
  0xb1   :  { %v1172_v21 = vpop.permute.xlu0 %477  ;;  %v1179_v25 = vpop.permute.xlu1 %482 }
  0xb5   :  { %v1187_v30 = vpop.permute.xlu0 %487  ;;  %v1197_v40 = vpop.permute.xlu1 %492 }
  0xb9   :  { %v1203_v46 = vpop.permute.xlu0 %497  ;;  %v1215_v56 = vpop.permute.xlu1 %502 }
  0xd3   :  { %v202_v23 = vpop.f32.mrf.mxu0  ;;  %v250_v24 = vpop.f32.mrf.mxu1 }
  0xd4   :  { %v1182_v26 = vadd.f32 %v1177_v22, %v202_v23  ;;  %v1185_v27 = vadd.f32 %v1177_v22, %v250_v24 }
  0xd5   :  { %v761_v28 = vpop.f32.mrf.mxu0  ;;  %v785_v29 = vpop.f32.mrf.mxu1 }
  0xd6   :  { %v578_v31 = vmul.f32 1.442695, %v1182_v26  ;;  %v602_v32 = vmul.f32 1.442695, %v1185_v27  ;;  %v1223_v28 = vpop.permute.xlu0 %507 }
  0xd7   :  { %v205_v34 = vpop.f32.mrf.mxu0  ;;  %v253_v35 = vpop.f32.mrf.mxu1 }
  0xd8   :  { %832 = vpow2.f32 %v578_v31  ;;  %v1192_v36 = vadd.f32 %v1177_v22, %v205_v34  ;;  %v1195_v37 = vadd.f32 %v1177_v22, %v253_v35 }
  0xd9   :  { %834 = vpow2.f32 %v602_v32  ;;  %v762_v38 = vpop.f32.mrf.mxu0  ;;  %v786_v39 = vpop.f32.mrf.mxu1  ;;  %v877_v32 = vmov 1.0  }
  0xda   :  { %v580_v41 = vmul.f32 1.442695, %v1192_v36  ;;  %v604_v42 = vmul.f32 1.442695, %v1195_v37  ;;  %v1227_v33 = vsel %vm576_vm2, -1.0, %v877_v32 }
  0xdb   :  { %v210_v44 = vpop.f32.mrf.mxu0  ;;  %v258_v45 = vpop.f32.mrf.mxu1 }
  0xdc   :  { %836 = vpow2.f32 %v580_v41  ;;  %v1206_v47 = vadd.f32 %v1177_v22, %v210_v44  ;;  %v1209_v48 = vadd.f32 %v1177_v22, %v258_v45 }
  0xdd   :  { %838 = vpow2.f32 %v604_v42  ;;  %v765_v49 = vpop.f32.mrf.mxu0  ;;  %v789_v50 = vpop.f32.mrf.mxu1 }
  0xde   :  { %v582_v51 = vmul.f32 1.442695, %v1206_v47  ;;  %v606_v52 = vmul.f32 1.442695, %v1209_v48  ;;  %v513_v50 = vpop.permute.xlu1 %512 }
  0xdf   :  { %v213_v54 = vpop.f32.mrf.mxu0  ;;  %v261_v55 = vpop.f32.mrf.mxu1 }
  0xe0   :  { %840 = vpow2.f32 %v582_v51  ;;  %v1218_v57 = vadd.f32 %v1177_v22, %v213_v54  ;;  %v1221_v58 = vadd.f32 %v1177_v22, %v261_v55  ;;  %v555_v54 = vsel %vm1229_vm3, %v1120_v59, %v1162_v16 }
  0xe1   :  { %842 = vpow2.f32 %v606_v52  ;;  %v766_v23 = vpop.f32.mrf.mxu0  ;;  %v790_v24 = vpop.f32.mrf.mxu1  ;;  %v567_v55 = vsel %vm1229_vm3, %v1144_v7, %v513_v50 }
  0xe2   :  { %v584_v29 = vmul.f32 1.442695, %v1218_v57  ;;  %v608_v31 = vmul.f32 1.442695, %v1221_v58 }
  0xe3   :  { %v218_v34 = vpop.f32.mrf.mxu0  ;;  %v266_v35 = vpop.f32.mrf.mxu1 }
  0xe4   :  { %844 = vpow2.f32 %v584_v29  ;;  %v1234_v39 = vadd.f32 %v1177_v22, %v218_v34  ;;  %v1237_v41 = vadd.f32 %v1177_v22, %v266_v35 }
  0xe5   :  { %v833_v42 = vpop.eup %832  ;;  %846 = vpow2.f32 %v608_v31  ;;  %v769_v44 = vpop.f32.mrf.mxu0 }
  0xe6   :  { %v793_v45 = vpop.f32.mrf.mxu1  ;;  %v835_v49 = vpop.eup %834  ;;  %v620_v51 = vmul.f32 %v833_v42, %v1227_v33  ;;  %v586_v52 = vmul.f32 1.442695, %v1234_v39  ;;  %v610_v53 = vmul.f32 1.442695, %v1237_v41 }
  0xe7   :  { %v632_v23 = vmul.f32 %v835_v49, %v1227_v33  ;;  %v221_v24 = vpop.f32.mrf.mxu0  ;;  %v518_v31 = vpop.permute.xlu0 %517 }
  0xe8   :  { %v269_v29 = vpop.f32.mrf.mxu1  ;;  %v641_v32 = vadd.f32 %v620_v51, %v555_v54  ;;  %848 = vpow2.f32 %v586_v52  ;;  %v1252_v34 = vadd.f32 %v1177_v22, %v221_v24  ;;  %v556_v52 = vsel %vm1229_vm3, %v1124_v61, %v1164_v17  ;;  %v523_v24 = vpop.permute.xlu1 %522 }
  0xe9   :  { %v1255_v35 = vadd.f32 %v1177_v22, %v269_v29  ;;  %v837_v59 = vpop.eup %836  ;;  %v653_v16 = vadd.f32 %v632_v23, %v567_v55  ;;  %850 = vpow2.f32 %v610_v53  ;;  %v770_v42 = vpop.f32.mrf.mxu0  ;;  %v568_v53 = vsel %vm1229_vm3, %v1146_v8, %v518_v31 }
  0xea   :  { %v794_v7 = vpop.f32.mrf.mxu1  ;;  %v839_v44 = vpop.eup %838  ;;  %v663_v45 = vsel %vm662_vm4, %v641_v32, %v1182_v26  ;;  %v621_v49 = vmul.f32 %v837_v59, %v1227_v33  ;;  %v588_v50 = vmul.f32 1.442695, %v1252_v34 }
  0xeb   :  { %v612_v51 = vmul.f32 1.442695, %v1255_v35  ;;  %684 = vst [vmem:[%s1509_s5] sm:$0xff] %v663_v45  ;;  %v675_v26 = vsel %vm662_vm4, %v653_v16, %v1185_v27  ;;  %v633_v54 = vmul.f32 %v839_v44, %v1227_v33  ;;  %v226_v55 = vpop.f32.mrf.mxu0  ;;  %v557_v45 = vsel %vm1229_vm3, %v1122_v60, %v1166_v18 }
  0xec   :  { %v274_v23 = vpop.f32.mrf.mxu1  ;;  %696 = vst [vmem:[%s1509_s5 + $0x60] sm:$0xff] %v675_v26  ;;  %v642_v61 = vadd.f32 %v621_v49, %v556_v52  ;;  %852 = vpow2.f32 %v588_v50  ;;  %v1281_v8 = vadd.f32 %v1177_v22, %v226_v55  ;;  %v569_v49 = vsel %vm1229_vm3, %v1148_v9, %v523_v24 }
  0xed   :  { %v1284_v17 = vadd.f32 %v1177_v22, %v274_v23  ;;  %v841_v29 = vpop.eup %840  ;;  %v654_v31 = vadd.f32 %v633_v54, %v568_v53  ;;  %854 = vpow2.f32 %v612_v51  ;;  %v773_v27 = vpop.f32.mrf.mxu0 }
  0xee   :  { %v797_v32 = vpop.f32.mrf.mxu1  ;;  %v843_v59 = vpop.eup %842  ;;  %v664_v16 = vsel %vm662_vm4, %v642_v61, %v1192_v36  ;;  %v622_v42 = vmul.f32 %v841_v29, %v1227_v33  ;;  %v590_v7 = vmul.f32 1.442695, %v1281_v8  ;;  %v558_v27 = vsel %vm1229_vm3, %v1126_v62, %v1168_v19 }
  0xef   :  { %v614_v44 = vmul.f32 1.442695, %v1284_v17  ;;  %685 = vst [vmem:[%s1509_s5 + $0x8] sm:$0xff] %v664_v16  ;;  %v676_v36 = vsel %vm662_vm4, %v654_v31, %v1195_v37  ;;  %v634_v50 = vmul.f32 %v843_v59, %v1227_v33  ;;  %v229_v51 = vpop.f32.mrf.mxu0  ;;  %v528_v53 = vpop.permute.xlu0 %527 }
  0xf0   :  { %v277_v52 = vpop.f32.mrf.mxu1  ;;  %697 = vst [vmem:[%s1509_s5 + $0x68] sm:$0xff] %v676_v36  ;;  %v643_v60 = vadd.f32 %v622_v42, %v557_v45  ;;  %856 = vpow2.f32 %v590_v7  ;;  %v1310_v9 = vadd.f32 %v1177_v22, %v229_v51  ;;  %v570_v32 = vsel %vm1229_vm3, %v1150_v10, %v528_v53  ;;  %v533_v7 = vpop.permute.xlu1 %532 }
  0xf1   :  { %v1313_v18 = vadd.f32 %v1177_v22, %v277_v52  ;;  %v845_v26 = vpop.eup %844  ;;  %v655_v54 = vadd.f32 %v634_v50, %v569_v49  ;;  %858 = vpow2.f32 %v614_v44  ;;  %v774_v37 = vpop.f32.mrf.mxu0 }
  0xf2   :  { %v798_v55 = vpop.f32.mrf.mxu1  ;;  %v847_v23 = vpop.eup %846  ;;  %v665_v24 = vsel %vm662_vm4, %v643_v60, %v1206_v47  ;;  %v623_v61 = vmul.f32 %v845_v26, %v1227_v33  ;;  %v592_v29 = vmul.f32 1.442695, %v1310_v9  ;;  %v559_v60 = vsel %vm1229_vm3, %v1128_v63, %v1170_v20 }
  0xf3   :  { %v616_v31 = vmul.f32 1.442695, %v1313_v18  ;;  %686 = vst [vmem:[%s1509_s5 + $0x10] sm:$0xff] %v665_v24  ;;  %v677_v47 = vsel %vm662_vm4, %v655_v54, %v1209_v48  ;;  %v635_v59 = vmul.f32 %v847_v23, %v1227_v33  ;;  %v234_v16 = vpop.f32.mrf.mxu0  ;;  %v571_v55 = vsel %vm1229_vm3, %v1152_v11, %v533_v7  ;;  %v538_v23 = vpop.permute.xlu0 %537 }
  0xf4   :  { %v282_v42 = vpop.f32.mrf.mxu1  ;;  %698 = vst [vmem:[%s1509_s5 + $0x70] sm:$0xff] %v677_v47  ;;  %v644_v62 = vadd.f32 %v623_v61, %v558_v27  ;;  %860 = vpow2.f32 %v592_v29  ;;  %v1339_v10 = vadd.f32 %v1177_v22, %v234_v16  ;;  %v560_v47 = vsel %vm1229_vm3, %v1130_v0, %v1172_v21 }
  0xf5   :  { %v1342_v19 = vadd.f32 %v1177_v22, %v282_v42  ;;  %v849_v44 = vpop.eup %848  ;;  %v656_v45 = vadd.f32 %v635_v59, %v570_v32  ;;  %862 = vpow2.f32 %v616_v31  ;;  %v777_v48 = vpop.f32.mrf.mxu0  ;;  %v572_v42 = vsel %vm1229_vm3, %v1154_v12, %v538_v23 }
  0xf6   :  { %v801_v49 = vpop.f32.mrf.mxu1  ;;  %v851_v36 = vpop.eup %850  ;;  %v666_v50 = vsel %vm662_vm4, %v644_v62, %v1218_v57  ;;  %v624_v51 = vmul.f32 %v849_v44, %v1227_v33  ;;  %v594_v52 = vmul.f32 1.442695, %v1339_v10 }
  0xf7   :  { %v618_v53 = vmul.f32 1.442695, %v1342_v19  ;;  %687 = vst [vmem:[%s1509_s5 + $0x18] sm:$0xff] %v666_v50  ;;  %v678_v26 = vsel %vm662_vm4, %v656_v45, %v1221_v58  ;;  %v636_v57 = vmul.f32 %v851_v36, %v1227_v33  ;;  %v237_v54 = vpop.f32.mrf.mxu0  ;;  %v543_v62 = vpop.permute.xlu1 %542  ;;  %v561_v36 = vsel %vm1229_vm3, %v1132_v1, %v1179_v25 }
  0xf8   :  { %v285_v37 = vpop.f32.mrf.mxu1  ;;  %699 = vst [vmem:[%s1509_s5 + $0x78] sm:$0xff] %v678_v26  ;;  %v645_v63 = vadd.f32 %v624_v51, %v559_v60  ;;  %864 = vpow2.f32 %v594_v52  ;;  %v1368_v20 = vadd.f32 %v1177_v22, %v237_v54  ;;  %v573_v52 = vsel %vm1229_vm3, %v1156_v13, %v543_v62  ;;  %v548_v60 = vpop.permute.xlu0 %547 }
  0xf9   :  { %v853_v24 = vpop.eup %852  ;;  %v657_v58 = vadd.f32 %v636_v57, %v571_v55  ;;  %866 = vpow2.f32 %v618_v53  ;;  %v778_v61 = vpop.f32.mrf.mxu0  ;;  %v562_v55 = vsel %vm1229_vm3, %v1134_v2, %v1187_v30 }
  0xfa   :  { %v802_v29 = vpop.f32.mrf.mxu1  ;;  %v855_v31 = vpop.eup %854  ;;  %v667_v11 = vsel %vm662_vm4, %v645_v63, %v1234_v39  ;;  %v625_v27 = vmul.f32 %v853_v24, %v1227_v33  ;;  %v596_v32 = vmul.f32 1.442695, %v1368_v20 }
  0xfb   :  { %688 = vst [vmem:[%s1509_s5 + $0x20] sm:$0xff] %v667_v11  ;;  %v679_v59 = vsel %vm662_vm4, %v657_v58, %v1237_v41  ;;  %v637_v16 = vmul.f32 %v855_v31, %v1227_v33  ;;  %v242_v39 = vpop.f32.mrf.mxu0  ;;  %v553_v30 = vpop.permute.xlu1 %552 }
  0xfc   :  { %700 = vst [vmem:[%s1509_s5 + $0x80] sm:$0xff] %v679_v59  ;;  %v646_v0 = vadd.f32 %v625_v27, %v560_v47  ;;  %868 = vpow2.f32 %v596_v32  ;;  %v1393_v21 = vadd.f32 %v1177_v22, %v242_v39 }
  0xfd   :  { %v857_v7 = vpop.eup %856  ;;  %v658_v44 = vadd.f32 %v637_v16, %v572_v42  ;;  %v781_v41 = vpop.f32.mrf.mxu0 }
  0xfe   :  { %v859_v45 = vpop.eup %858  ;;  %v668_v48 = vsel %vm662_vm4, %v646_v0, %v1252_v34  ;;  %v626_v12 = vmul.f32 %v857_v7, %v1227_v33  ;;  %v598_v49 = vmul.f32 1.442695, %v1393_v21 }
  0xff   :  { %689 = vst [vmem:[%s1509_s5 + $0x28] sm:$0xff] %v668_v48  ;;  %v680_v50 = vsel %vm662_vm4, %v658_v44, %v1255_v35  ;;  %v638_v51 = vmul.f32 %v859_v45, %v1227_v33  ;;  %v245_v34 = vpop.f32.mrf.mxu0 }
 0x100   :  { %701 = vst [vmem:[%s1509_s5 + $0x88] sm:$0xff] %v680_v50  ;;  %v647_v1 = vadd.f32 %v626_v12, %v561_v36  ;;  %870 = vpow2.f32 %v598_v49  ;;  %v246_v25 = vadd.f32 %v1177_v22, %v245_v34 }
 0x101   :  { %v861_v53 = vpop.eup %860  ;;  %v659_v26 = vadd.f32 %v638_v51, %v573_v52  ;;  %v782_v57 = vpop.f32.mrf.mxu0 }
 0x102   :  { %v863_v35 = vpop.eup %862  ;;  %v669_v54 = vsel %vm662_vm4, %v647_v1, %v1281_v8  ;;  %v627_v37 = vmul.f32 %v861_v53, %v1227_v33  ;;  %v600_v13 = vmul.f32 1.442695, %v246_v25  ;;  %v574_v8 = vsel %vm1229_vm3, %v1158_v14, %v548_v60 }
 0x103   :  { %690 = vst [vmem:[%s1509_s5 + $0x30] sm:$0xff] %v669_v54  ;;  %v681_v22 = vsel %vm662_vm4, %v659_v26, %v1284_v17  ;;  %v639_v23 = vmul.f32 %v863_v35, %v1227_v33  ;;  %v563_v14 = vsel %vm1229_vm3, %v1136_v3, %v1197_v40 }
 0x104   :  { %702 = vst [vmem:[%s1509_s5 + $0x90] sm:$0xff] %v681_v22  ;;  %v648_v63 = vadd.f32 %v627_v37, %v562_v55  ;;  %872 = vpow2.f32 %v600_v13 }
 0x105   :  { %v865_v2 = vpop.eup %864  ;;  %v660_v24 = vadd.f32 %v639_v23, %v574_v8 }
 0x106   :  { %v867_v58 = vpop.eup %866  ;;  %v670_v17 = vsel %vm662_vm4, %v648_v63, %v1310_v9  ;;  %v628_v61 = vmul.f32 %v865_v2, %v1227_v33  ;;  %v575_v9 = vsel %vm1229_vm3, %v1160_v15, %v553_v30 }
 0x107   :  { %691 = vst [vmem:[%s1509_s5 + $0x38] sm:$0xff] %v670_v17  ;;  %v682_v29 = vsel %vm662_vm4, %v660_v24, %v1313_v18  ;;  %v640_v31 = vmul.f32 %v867_v58, %v1227_v33  ;;  %v564_v18 = vsel %vm1229_vm3, %v1138_v4, %v1203_v46  ;;  %v565_v46 = vsel %vm1229_vm3, %v1140_v5, %v1215_v56 }
 0x108   :  { %703 = vst [vmem:[%s1509_s5 + $0x98] sm:$0xff] %v682_v29  ;;  %v649_v11 = vadd.f32 %v628_v61, %v563_v14 }
 0x109   :  { %v869_v3 = vpop.eup %868  ;;  %v661_v40 = vadd.f32 %v640_v31, %v575_v9 }
 0x10a   :  { %v671_v27 = vsel %vm662_vm4, %v649_v11, %v1339_v10  ;;  %v629_v32 = vmul.f32 %v869_v3, %v1227_v33 }
 0x10b   :  { %692 = vst [vmem:[%s1509_s5 + $0x40] sm:$0xff] %v671_v27  ;;  %v683_v15 = vsel %vm662_vm4, %v661_v40, %v1342_v19 }
 0x10c   :  { %704 = vst [vmem:[%s1509_s5 + $0xa0] sm:$0xff] %v683_v15  ;;  %v650_v10 = vadd.f32 %v629_v32, %v564_v18 }
 0x10d   :  { %v871_v47 = vpop.eup %870 }
 0x10e   :  { %v672_v59 = vsel %vm662_vm4, %v650_v10, %v1368_v20  ;;  %v630_v4 = vmul.f32 %v871_v47, %v1227_v33  ;;  %v566_v20 = vsel %vm1229_vm3, %v1142_v6, %v1223_v28 }
 0x10f   :  { %693 = vst [vmem:[%s1509_s5 + $0x48] sm:$0xff] %v672_v59 }
 0x110   :  { %v651_v19 = vadd.f32 %v630_v4, %v565_v46 }
 0x111   :  { %v873_v16 = vpop.eup %872 }
 0x112   :  { %v673_v39 = vsel %vm662_vm4, %v651_v19, %v1393_v21  ;;  %v631_v42 = vmul.f32 %v873_v16, %v1227_v33 }
 0x113   :  { %694 = vst [vmem:[%s1509_s5 + $0x50] sm:$0xff] %v673_v39 }
 0x114   :  { %v652_v5 = vadd.f32 %v631_v42, %v566_v20 }
 0x116   :  { %v674_v56 = vsel %vm662_vm4, %v652_v5, %v246_v25 }
 0x117   :  { %695 = vst [vmem:[%s1509_s5 + $0x58] sm:$0xff] %v674_v56 }

// kernel: fcos_rt_forward.56
= control target key start
LH: loop header
LB: loop body
LE: loop exit
PB: predicated region body
PF: predicated region fallthrough
CT: control target
= control target key end

     0   :  { %v426_v0 = vmov 0.0   ;;  %vm427_vm0 = vmmov 0   ;;  %vm128_vm1 = vcmask 523264   ;;  %s604_s1 = inlined_call_operand.vmem [shape: bf16[64,128], index: 1, kind: input, shape index: {}]   ;;  %s605_s0 = inlined_call_operand.vmem [shape: bf16[168,64], index: 0, kind: input, shape index: {}]   ;;  %s606_s2 = inlined_call_operand.vmem [shape: f32[1,128], index: 2, kind: input, shape index: {}]   ;;  %s607_s3 = inlined_call_operand.vmem [shape: f32[168,128], index: 3, kind: output, shape index: {}]  }
   0x1   :  { %349 = vmatprep.subr.bf16.mxu0 %v426_v0  ;;  %v411_v1 = vld [vmem:[%s604_s1 + $0x18] sm:$0xff]   ;;  %401 = vmatprep.subr.bf16.mxu1 %v426_v0  ;;  %v412_v2 = vld [vmem:[%s604_s1 + $0x10] sm:$0xff]   ;;  %v413_v3 = vld [vmem:[%s604_s1 + $0x8] sm:$0xff]  }
   0x2   :  { %357 = vmatprep.mubr.msk.bf16.mxu0 %vm427_vm0, %v426_v0  ;;  %381 = vmatprep.mubr.msk.bf16.mxu1 %vm427_vm0, %v426_v0  ;;  %v414_v4 = vld [vmem:[%s604_s1] sm:$0xff]   ;;  %v416_v6 = vld [vmem:[%s605_s0 + $0x30] sm:$0xff]   ;;  %v417_v7 = vld [vmem:[%s605_s0 + $0x8] sm:$0xff]  }
   0x3   :  { %350 = vmatpush3.bf16.msra.mxu0 %v411_v1  ;;  %405 = vmatpush3.bf16.msra.mxu1 %v411_v1  ;;  %v415_v5 = vld [vmem:[%s605_s0] sm:$0xff]   ;;  %v418_v8 = vld [vmem:[%s605_s0 + $0x38] sm:$0xff]   ;;  %v419_v9 = vld [vmem:[%s605_s0 + $0x10] sm:$0xff]  }
   0x4   :  { %351 = vmatprep.subr.bf16.mxu0 %v426_v0  ;;  %402 = vmatprep.subr.bf16.mxu1 %v426_v0  ;;  %v420_v10 = vld [vmem:[%s605_s0 + $0x40] sm:$0xff]   ;;  %v421_v11 = vld [vmem:[%s605_s0 + $0x18] sm:$0xff]   ;;  %v422_v12 = vld [vmem:[%s605_s0 + $0x48] sm:$0xff]  }
   0x5   :  { %v423_v13 = vld [vmem:[%s605_s0 + $0x20] sm:$0xff]   ;;  %v424_v14 = vld [vmem:[%s605_s0 + $0x50] ss:$0 sps:$4 sm:$0xff]   ;;  %v425_v15 = vld [vmem:[%s605_s0 + $0x28] sm:$0xff]  }
   0x6   :  { %v518_v16 = vld [vmem:[%s606_s2] ss:$0 sm:$0xff] }
   0x7   :  { %352 = vmatpush3.bf16.msra.mxu0 %v412_v2  ;;  %406 = vmatpush3.bf16.msra.mxu1 %v412_v2 }
   0x8   :  { %353 = vmatprep.subr.bf16.mxu0 %v426_v0  ;;  %403 = vmatprep.subr.bf16.mxu1 %v426_v0 }
   0xb   :  { %354 = vmatpush3.bf16.msra.mxu0 %v413_v3  ;;  %407 = vmatpush3.bf16.msra.mxu1 %v413_v3 }
   0xc   :  { %355 = vmatprep.subr.bf16.mxu0 %v426_v0  ;;  %404 = vmatprep.subr.bf16.mxu1 %v426_v0 }
   0xf   :  { %356 = vmatpush3.bf16.msra.mxu0 %v414_v4  ;;  %408 = vmatpush3.bf16.msra.mxu1 %v414_v4 }
  0x12   :  { %358 = vmatmul.mubr.msk.bf16.vlgmr.msra.gmra.mxu0 %vm128_vm1, %v415_v5  ;;  %382 = vmatmul.mubr.msk.bf16.vlgmr.msra.gmra.mxu1 %vm128_vm1, %v416_v6 }
  0x13   :  { %361 = vmatprep.mubr.msk.bf16.mxu0 %vm427_vm0, %v426_v0  ;;  %385 = vmatprep.mubr.msk.bf16.mxu1 %vm427_vm0, %v426_v0 }
  0x1a   :  { %362 = vmatmul.mubr.msk.bf16.gmra.mxu0 %vm128_vm1, %v417_v7  ;;  %386 = vmatmul.mubr.msk.bf16.gmra.mxu1 %vm128_vm1, %v418_v8 }
  0x1b   :  { %365 = vmatprep.mubr.msk.bf16.mxu0 %vm427_vm0, %v426_v0  ;;  %389 = vmatprep.mubr.msk.bf16.mxu1 %vm427_vm0, %v426_v0 }
  0x22   :  { %366 = vmatmul.mubr.msk.bf16.gmra.mxu0 %vm128_vm1, %v419_v9  ;;  %390 = vmatmul.mubr.msk.bf16.gmra.mxu1 %vm128_vm1, %v420_v10 }
  0x23   :  { %369 = vmatprep.mubr.msk.bf16.mxu0 %vm427_vm0, %v426_v0  ;;  %393 = vmatprep.mubr.msk.bf16.mxu1 %vm427_vm0, %v426_v0 }
  0x2a   :  { %370 = vmatmul.mubr.msk.bf16.gmra.mxu0 %vm128_vm1, %v421_v11  ;;  %394 = vmatmul.mubr.msk.bf16.gmra.mxu1 %vm128_vm1, %v422_v12 }
  0x2b   :  { %373 = vmatprep.mubr.msk.bf16.mxu0 %vm427_vm0, %v426_v0  ;;  %397 = vmatprep.mubr.msk.bf16.mxu1 %vm427_vm0, %v426_v0 }
  0x32   :  { %374 = vmatmul.mubr.msk.bf16.gmra.mxu0 %vm128_vm1, %v423_v13  ;;  %398 = vmatmul.mubr.msk.bf16.gmra.mxu1 %vm128_vm1, %v424_v14 }
  0x33   :  { %377 = vmatprep.mubr.msk.bf16.mxu0 %vm427_vm0, %v426_v0 }
  0x3a   :  { %378 = vmatmul.mubr.msk.bf16.gmra.mxu0 %vm128_vm1, %v425_v15 }
  0xd2   :  { %v196_v17 = vpop.f32.mrf.mxu0  ;;  %v244_v18 = vpop.f32.mrf.mxu1 }
  0xd3   :  { %v197_v19 = vadd.f32 %v518_v16, %v196_v17  ;;  %v245_v20 = vadd.f32 %v518_v16, %v244_v18 }
  0xd4   :  { %v359_v21 = vpop.f32.mrf.mxu0  ;;  %v383_v22 = vpop.f32.mrf.mxu1 }
  0xd5   :  { %282 = vst [vmem:[%s607_s3] sm:$0xff] %v197_v19  ;;  %294 = vst [vmem:[%s607_s3 + $0x60] sm:$0xff] %v245_v20 }
  0xd6   :  { %v199_v23 = vpop.f32.mrf.mxu0  ;;  %v247_v24 = vpop.f32.mrf.mxu1 }
  0xd7   :  { %v200_v25 = vadd.f32 %v518_v16, %v199_v23  ;;  %v248_v26 = vadd.f32 %v518_v16, %v247_v24 }
  0xd8   :  { %v360_v27 = vpop.f32.mrf.mxu0  ;;  %v384_v28 = vpop.f32.mrf.mxu1 }
  0xd9   :  { %283 = vst [vmem:[%s607_s3 + $0x8] sm:$0xff] %v200_v25  ;;  %295 = vst [vmem:[%s607_s3 + $0x68] sm:$0xff] %v248_v26 }
  0xda   :  { %v204_v29 = vpop.f32.mrf.mxu0  ;;  %v252_v30 = vpop.f32.mrf.mxu1 }
  0xdb   :  { %v205_v31 = vadd.f32 %v518_v16, %v204_v29  ;;  %v253_v32 = vadd.f32 %v518_v16, %v252_v30 }
  0xdc   :  { %v363_v33 = vpop.f32.mrf.mxu0  ;;  %v387_v34 = vpop.f32.mrf.mxu1 }
  0xdd   :  { %284 = vst [vmem:[%s607_s3 + $0x10] sm:$0xff] %v205_v31  ;;  %296 = vst [vmem:[%s607_s3 + $0x70] sm:$0xff] %v253_v32 }
  0xde   :  { %v207_v35 = vpop.f32.mrf.mxu0  ;;  %v255_v36 = vpop.f32.mrf.mxu1 }
  0xdf   :  { %v208_v37 = vadd.f32 %v518_v16, %v207_v35  ;;  %v256_v38 = vadd.f32 %v518_v16, %v255_v36 }
  0xe0   :  { %v364_v39 = vpop.f32.mrf.mxu0  ;;  %v388_v40 = vpop.f32.mrf.mxu1 }
  0xe1   :  { %285 = vst [vmem:[%s607_s3 + $0x18] sm:$0xff] %v208_v37  ;;  %297 = vst [vmem:[%s607_s3 + $0x78] sm:$0xff] %v256_v38 }
  0xe2   :  { %v212_v41 = vpop.f32.mrf.mxu0  ;;  %v260_v42 = vpop.f32.mrf.mxu1 }
  0xe3   :  { %v213_v43 = vadd.f32 %v518_v16, %v212_v41  ;;  %v261_v44 = vadd.f32 %v518_v16, %v260_v42 }
  0xe4   :  { %v367_v45 = vpop.f32.mrf.mxu0  ;;  %v391_v46 = vpop.f32.mrf.mxu1 }
  0xe5   :  { %286 = vst [vmem:[%s607_s3 + $0x20] sm:$0xff] %v213_v43  ;;  %298 = vst [vmem:[%s607_s3 + $0x80] sm:$0xff] %v261_v44 }
  0xe6   :  { %v215_v47 = vpop.f32.mrf.mxu0  ;;  %v263_v48 = vpop.f32.mrf.mxu1 }
  0xe7   :  { %v216_v49 = vadd.f32 %v518_v16, %v215_v47  ;;  %v264_v50 = vadd.f32 %v518_v16, %v263_v48 }
  0xe8   :  { %v368_v51 = vpop.f32.mrf.mxu0  ;;  %v392_v52 = vpop.f32.mrf.mxu1 }
  0xe9   :  { %287 = vst [vmem:[%s607_s3 + $0x28] sm:$0xff] %v216_v49  ;;  %299 = vst [vmem:[%s607_s3 + $0x88] sm:$0xff] %v264_v50 }
  0xea   :  { %v220_v53 = vpop.f32.mrf.mxu0  ;;  %v268_v54 = vpop.f32.mrf.mxu1 }
  0xeb   :  { %v221_v55 = vadd.f32 %v518_v16, %v220_v53  ;;  %v269_v56 = vadd.f32 %v518_v16, %v268_v54 }
  0xec   :  { %v371_v57 = vpop.f32.mrf.mxu0  ;;  %v395_v58 = vpop.f32.mrf.mxu1 }
  0xed   :  { %288 = vst [vmem:[%s607_s3 + $0x30] sm:$0xff] %v221_v55  ;;  %300 = vst [vmem:[%s607_s3 + $0x90] sm:$0xff] %v269_v56 }
  0xee   :  { %v223_v59 = vpop.f32.mrf.mxu0  ;;  %v271_v60 = vpop.f32.mrf.mxu1 }
  0xef   :  { %v224_v61 = vadd.f32 %v518_v16, %v223_v59  ;;  %v272_v62 = vadd.f32 %v518_v16, %v271_v60 }
  0xf0   :  { %v372_v63 = vpop.f32.mrf.mxu0  ;;  %v396_v0 = vpop.f32.mrf.mxu1 }
  0xf1   :  { %289 = vst [vmem:[%s607_s3 + $0x38] sm:$0xff] %v224_v61  ;;  %301 = vst [vmem:[%s607_s3 + $0x98] sm:$0xff] %v272_v62 }
  0xf2   :  { %v228_v1 = vpop.f32.mrf.mxu0  ;;  %v276_v2 = vpop.f32.mrf.mxu1 }
  0xf3   :  { %v229_v3 = vadd.f32 %v518_v16, %v228_v1  ;;  %v277_v4 = vadd.f32 %v518_v16, %v276_v2 }
  0xf4   :  { %v375_v5 = vpop.f32.mrf.mxu0  ;;  %v399_v6 = vpop.f32.mrf.mxu1 }
  0xf5   :  { %290 = vst [vmem:[%s607_s3 + $0x40] sm:$0xff] %v229_v3  ;;  %302 = vst [vmem:[%s607_s3 + $0xa0] sm:$0xff] %v277_v4 }
  0xf6   :  { %v231_v7 = vpop.f32.mrf.mxu0  ;;  %v279_v8 = vpop.f32.mrf.mxu1 }
  0xf7   :  { %v232_v9 = vadd.f32 %v518_v16, %v231_v7 }
  0xf8   :  { %v376_v10 = vpop.f32.mrf.mxu0  ;;  %v400_v11 = vpop.f32.mrf.mxu1 }
  0xf9   :  { %291 = vst [vmem:[%s607_s3 + $0x48] sm:$0xff] %v232_v9 }
  0xfa   :  { %v236_v12 = vpop.f32.mrf.mxu0 }
  0xfb   :  { %v237_v13 = vadd.f32 %v518_v16, %v236_v12 }
  0xfc   :  { %v379_v14 = vpop.f32.mrf.mxu0 }
  0xfd   :  { %292 = vst [vmem:[%s607_s3 + $0x50] sm:$0xff] %v237_v13 }
  0xfe   :  { %v239_v15 = vpop.f32.mrf.mxu0 }
  0xff   :  { %v240_v17 = vadd.f32 %v518_v16, %v239_v15 }
 0x100   :  { %v380_v18 = vpop.f32.mrf.mxu0 }
 0x101   :  { %293 = vst [vmem:[%s607_s3 + $0x58] sm:$0xff] %v240_v17 }

</bundles_post_ra>
